<compile_context>
chip_gen: v6e
topology: v6e:2x2x1
jax: 0.10.0
libtpu: 0.0.40
codegen_flags: <defaults>
</compile_context>

<pallas_src>
import functools
import math

import numpy as np
import jax
import jax.numpy as jnp
from jax.experimental import pallas as pl
from jax.experimental.pallas import tpu as pltpu


# ----------------------------- glue (plain JAX / numpy) -----------------------------

def cube_partition(x, cube_size):
    B, D, H, W, C = x.shape
    bd, bh, bw = cube_size
    x = x.reshape(B, D // bd, bd, H // bh, bh, W // bw, bw, C)
    x = jnp.transpose(x, (0, 1, 3, 5, 2, 4, 6, 7))
    return x.reshape(-1, bd, bh, bw, C)


def compute_attn_mask(D, H, W, cube_size):
    bd, bh, bw = cube_size
    md, mh, mw = bd // 2, bh // 2, bw // 2
    mask = np.zeros((1, D, H, W, 1), dtype=np.float32)
    d_slices = (slice(0, -bd), slice(-bd, -md), slice(-md, None))
    h_slices = (slice(0, -bh), slice(-bh, -mh), slice(-mh, None))
    w_slices = (slice(0, -bw), slice(-bw, -mw), slice(-mw, None))
    cnt = 0
    for ds in d_slices:
        for hs in h_slices:
            for ws in w_slices:
                mask[:, ds, hs, ws, :] = cnt
                cnt += 1
    mask_cubes = np.asarray(cube_partition(jnp.asarray(mask), cube_size))
    mask_cubes = mask_cubes.reshape(-1, bd * bh * bw)
    attn_mask = mask_cubes[:, None, :] - mask_cubes[:, :, None]
    attn_mask = np.where(attn_mask != 0, np.float32(-100.0), np.float32(0.0))
    return jnp.asarray(attn_mask)  # (n_cubes_per_batch, N, N)


def relative_position_index(cube_size):
    bd, bh, bw = cube_size
    coords = np.stack(np.meshgrid(np.arange(bd), np.arange(bh), np.arange(bw),
                                  indexing="ij"))                      # (3, bd, bh, bw)
    coords_flatten = coords.reshape(3, -1)
    rel = coords_flatten[:, :, None] - coords_flatten[:, None, :]       # (3, N, N)
    rel = rel.transpose(1, 2, 0).copy()
    rel[:, :, 0] += bd - 1
    rel[:, :, 1] += bh - 1
    rel[:, :, 2] += bw - 1
    rel[:, :, 0] *= (2 * bh - 1) * (2 * bw - 1)
    rel[:, :, 1] *= 2 * bw - 1
    return rel.sum(-1)                                                  # (N, N) int


def _choose_cubes_per_step(batch, n_c, tokens, channels, heads,
                           vmem_budget_bytes=8 << 20):
    """Tb = g * n_c with g | batch: largest per-step tile whose working set fits the
    budget, preferring >= 2 grid steps so a v7x chip keeps both TensorCores busy."""
    def step_bytes(g):
        tb = g * n_c
        tok = tb * tokens * channels * 4 * 2            # input + output token tiles
        scores = heads * tb * tokens * tokens * 4 * 3   # attn / exp / probs intermediates
        return tok + scores

    divisors = [g for g in range(1, batch + 1) if batch % g == 0]
    feasible = [g for g in divisors if step_bytes(g) <= vmem_budget_bytes] or [1]
    multi_step = [g for g in feasible if batch // g >= 2]
    g = max(multi_step) if multi_step else max(feasible)
    return g * n_c


# ---------------------------------- Pallas kernel ----------------------------------

def _transcube_kernel(x_ref, bm_ref, wqkv_ref, bqkv_ref, wp_ref, bp_ref, o_ref,
                      *, heads, dim_head, tokens, rescale):
    N = tokens
    dh = dim_head
    hd = heads * dh
    TbN, C = x_ref.shape
    Tb = TbN // N
    mm_dtype = wqkv_ref.dtype

    # ---- fused QKV projection: one wide MXU matmul + one fused bias add ----
    qkv = (jnp.dot(x_ref[...], wqkv_ref[...], preferred_element_type=jnp.float32)
           + bqkv_ref[...])                                     # (Tb*N, 3*hd) f32
    qkv = qkv.reshape(Tb, N, 3 * hd)                            # leading-dim split only

    q = qkv[:, :, 0 * hd:1 * hd]
    k = qkv[:, :, 1 * hd:2 * hd]
    v = qkv[:, :, 2 * hd:3 * hd]

    # ---- F.normalize(p=2, dim=-2): L2 over the token axis, eps=1e-12 ----
    # max(sqrt(s), 1e-12) == sqrt(max(s, 1e-24)); rsqrt runs on the EUP slot.
    qs = jnp.sum(q * q, axis=1, keepdims=True)
    ks = jnp.sum(k * k, axis=1, keepdims=True)
    q = q * (jax.lax.rsqrt(jnp.maximum(qs, 1e-24)) * rescale)    # fold `rescale` into q
    k = k * jax.lax.rsqrt(jnp.maximum(ks, 1e-24))

    # ---- fold heads into the batch dim: (Tb, N, heads*dh) -> (heads*Tb, N, dh) ----
    def heads_to_batch(t):
        return jnp.concatenate([t[:, :, h * dh:(h + 1) * dh] for h in range(heads)],
                               axis=0)

    qh = heads_to_batch(q).astype(mm_dtype)
    kh = heads_to_batch(k).astype(mm_dtype)
    vh = heads_to_batch(v).astype(mm_dtype)

    # ---- scores for all heads in one batched matmul; one fused bias+mask add ----
    attn = jnp.einsum("bnd,bmd->bnm", qh, kh, preferred_element_type=jnp.float32)
    attn = attn + bm_ref[...]                                    # rel-pos bias + shift mask

    # ---- softmax (denominator reciprocal on the EUP) ----
    m = jnp.max(attn, axis=-1, keepdims=True)
    e = jnp.exp(attn - m)
    p = e * pl.reciprocal(jnp.sum(e, axis=-1, keepdims=True), approx=True)

    # ---- context for all heads in one batched matmul ----
    ctx = jnp.einsum("bnm,bmd->bnd", p.astype(mm_dtype), vh,
                     preferred_element_type=jnp.float32)          # (heads*Tb, N, dh)

    # ---- reassemble head-major channels: (heads*Tb, N, dh) -> (Tb*N, heads*dh) ----
    ctx = jnp.concatenate([ctx[h * Tb:(h + 1) * Tb] for h in range(heads)], axis=-1)
    ctx = ctx.reshape(Tb * N, hd)

    # ---- fused output projection ----
    out = (jnp.dot(ctx.astype(mm_dtype), wp_ref[...],
                   preferred_element_type=jnp.float32) + bp_ref[...])
    # C=32 < 128 lanes -> masked stores; kept 2-D (token-major) to avoid an in-kernel
    # lane-splitting reshape at this channel width.
    o_ref[...] = out.astype(o_ref.dtype)


def transcube_pallas(x, params, cube_size, heads, dim_head, move_cube,
                     cubes_per_step=None, matmul_dtype=jnp.bfloat16):
    out_dtype = x.dtype
    b, d, h, w, c = x.shape
    cd, ch, cw = cube_size
    N = cd * ch * cw
    hd = heads * dim_head
    rescale = dim_head ** (-0.5)
    n_c = (d // cd) * (h // ch) * (w // cw)
    Bp = b * n_c

    if move_cube:
        x = jnp.roll(x, ((-cd) // 2, (-ch) // 2, (-cw) // 2), axis=(1, 2, 3))
    xc = cube_partition(x, cube_size).reshape(Bp, N, c)
    x_tok = xc.reshape(Bp * N, c).astype(matmul_dtype)           # bf16 MXU inputs

    if cubes_per_step is None:
        Tb = _choose_cubes_per_step(b, n_c, N, c, heads)
    else:
        Tb = cubes_per_step
    assert Bp % Tb == 0 and Tb % n_c == 0 and (Tb * N) % 8 == 0
    g = Tb // n_c
    grid = (Bp // Tb,)

    # Rel-pos bias + shift mask pre-combined into ONE grid-constant operand, ordered to
    # match the kernel's head-into-batch layout (index = head*Tb + cube).
    rel_idx = relative_position_index(cube_size)
    bias = params["rpb_table"][jnp.asarray(rel_idx.reshape(-1))]
    bias = bias.reshape(N, N, heads).transpose(2, 0, 1)          # (heads, N, N)
    if move_cube:
        mask = compute_attn_mask(d, h, w, cube_size)             # (n_c, N, N)
        mask_t = jnp.tile(mask, (g, 1, 1))                       # (Tb, N, N)
    else:
        mask_t = jnp.zeros((Tb, N, N), jnp.float32)
    bias_mask = (bias[:, None] + mask_t[None]).reshape(heads * Tb, N, N)

    # Fused projection weights (wide matmuls instead of per-head 8-wide dots).
    w_qkv = jnp.concatenate([params["wq"], params["wk"], params["wv"]],
                            axis=1).astype(matmul_dtype)          # (C, 3*hd)
    b_qkv = jnp.concatenate([params["bq"], params["bk"], params["bv"]]).reshape(1, 3 * hd)
    w_p = params["wp"].astype(matmul_dtype)                       # (hd, C)
    b_p = params["bp"].reshape(1, c)

    kernel = functools.partial(_transcube_kernel, heads=heads, dim_head=dim_head,
                               tokens=N, rescale=rescale)
    const2 = lambda i: (0, 0)
    const3 = lambda i: (0, 0, 0)

    out_tok = pl.pallas_call(
        kernel,
        out_shape=jax.ShapeDtypeStruct((Bp * N, c), out_dtype),
        grid_spec=pltpu.PrefetchScalarGridSpec(
            num_scalar_prefetch=0,
            grid=grid,
            in_specs=[
                pl.BlockSpec((Tb * N, c), lambda i: (i, 0)),       # token tile (streamed)
                pl.BlockSpec((heads * Tb, N, N), const3),          # bias+mask (resident)
                pl.BlockSpec((c, 3 * hd), const2),                 # fused W_qkv (resident)
                pl.BlockSpec((1, 3 * hd), const2),                 # fused b_qkv
                pl.BlockSpec((hd, c), const2),                     # W_proj
                pl.BlockSpec((1, c), const2),                      # b_proj
            ],
            out_specs=pl.BlockSpec((Tb * N, c), lambda i: (i, 0)),
        ),
        compiler_params=pltpu.CompilerParams(dimension_semantics=("parallel",)),
    )(x_tok, bias_mask, w_qkv, b_qkv, w_p, b_p)

    # mirrors torch's `.view(b, d, h, w, c)` (the module does not invert cube_partition)
    out = out_tok.reshape(b, d, h, w, c)
    if move_cube:
        out = jnp.roll(out, (cd // 2, ch // 2, cw // 2), axis=(1, 2, 3))
    return out


# ------------------------------ plain-JAX reference ---------------------------------

def transcube_reference(x, params, cube_size, heads, dim_head, move_cube):
    hp = jax.lax.Precision.HIGHEST
    b, d, h, w, c = x.shape
    cd, ch, cw = cube_size
    N = cd * ch * cw
    if move_cube:
        x = jnp.roll(x, ((-cd) // 2, (-ch) // 2, (-cw) // 2), axis=(1, 2, 3))
    xc = cube_partition(x, cube_size).reshape(-1, N, c)

    q = jnp.einsum("bnc,ck->bnk", xc, params["wq"], precision=hp) + params["bq"]
    k = jnp.einsum("bnc,ck->bnk", xc, params["wk"], precision=hp) + params["bk"]
    v = jnp.einsum("bnc,ck->bnk", xc, params["wv"], precision=hp) + params["bv"]
    split = lambda t: t.reshape(-1, N, heads, dim_head).transpose(0, 2, 1, 3)
    q, k, v = split(q), split(k), split(v)

    def l2n(t):
        n = jnp.sqrt(jnp.sum(t * t, axis=-2, keepdims=True))
        return t / jnp.maximum(n, 1e-12)

    q, k = l2n(q), l2n(k)
    attn = jnp.einsum("bhnd,bhmd->bhnm", q, k, precision=hp) * (dim_head ** (-0.5))

    rel_idx = relative_position_index(cube_size)
    bias = params["rpb_table"][jnp.asarray(rel_idx.reshape(-1))]
    bias = bias.reshape(N, N, heads).transpose(2, 0, 1)
    attn = attn + bias[None]

    if move_cube:
        mask = compute_attn_mask(d, h, w, cube_size)
        n_c = mask.shape[0]
        attn = attn.reshape(b, n_c, heads, N, N) + mask[None, :, None]
        attn = attn.reshape(-1, heads, N, N)

    attn = jax.nn.softmax(attn, axis=-1)
    ctx = jnp.einsum("bhnm,bhmd->bhnd", attn, v, precision=hp)
    ctx = ctx.transpose(0, 2, 1, 3).reshape(-1, N, c)
    out = jnp.einsum("bnk,kc->bnc", ctx, params["wp"], precision=hp) + params["bp"]
    out = out.reshape(b, d, h, w, c)
    if move_cube:
        out = jnp.roll(out, (cd // 2, ch // 2, cw // 2), axis=(1, 2, 3))
    return out


# ---------------------------------------- main ----------------------------------------

if __name__ == "__main__":
    b, d, h, w = 2, 4, 8, 8
    heads, dim_head = 4, 8
    dim = heads * dim_head            # 32  (module assumes dim == heads*dim_head)
    cube_size = (2, 4, 4)

    key = jax.random.PRNGKey(0)
    ks = jax.random.split(key, 10)
    x = jax.random.normal(ks[0], (b, d, h, w, dim), jnp.float32)

    scale = 1.0 / math.sqrt(dim)
    table_sz = (2 * cube_size[0] - 1) * (2 * cube_size[1] - 1) * (2 * cube_size[2] - 1)
    params = {
        "wq": jax.random.uniform(ks[1], (dim, heads * dim_head), jnp.float32, -scale, scale),
        "bq": jax.random.uniform(ks[2], (heads * dim_head,), jnp.float32, -scale, scale),
        "wk": jax.random.uniform(ks[3], (dim, heads * dim_head), jnp.float32, -scale, scale),
        "bk": jax.random.uniform(ks[4], (heads * dim_head,), jnp.float32, -scale, scale),
        "wv": jax.random.uniform(ks[5], (dim, heads * dim_head), jnp.float32, -scale, scale),
        "bv": jax.random.uniform(ks[6], (heads * dim_head,), jnp.float32, -scale, scale),
        "wp": jax.random.uniform(ks[7], (heads * dim_head, dim), jnp.float32, -scale, scale),
        "bp": jax.random.uniform(ks[8], (dim,), jnp.float32, -scale, scale),
        "rpb_table": 0.02 * jax.random.truncated_normal(ks[9], -2.0, 2.0,
                                                        (table_sz, heads), jnp.float32),
    }

    for move_cube in (False, True):
        out = transcube_pallas(x, params, cube_size, heads, dim_head, move_cube)
        out = jax.block_until_ready(out)
        ref = transcube_reference(x, params, cube_size, heads, dim_head, move_cube)
        err = float(jnp.max(jnp.abs(out - ref)))
        assert out.shape == (b, d, h, w, dim)
        # bf16 MXU inputs with f32 accumulation vs. an f32-HIGHEST reference:
        # expected max-abs error is O(1e-3 .. 1e-2).
        assert err < 2e-2, f"mismatch (move_cube={move_cube}): {err}"

    print("KERNEL_OK")
</pallas_src>

<mosaic_0001>
module attributes {stable_mosaic.version = 11 : i64} {
  func.func @_transcube_kernel(%arg0: i32, %arg1: memref<256x32xbf16, #tpu.memory_space<vmem>>, %arg2: memref<32x32x32xf32, #tpu.memory_space<vmem>>, %arg3: memref<32x96xbf16, #tpu.memory_space<vmem>>, %arg4: memref<1x96xf32, #tpu.memory_space<vmem>>, %arg5: memref<32x32xbf16, #tpu.memory_space<vmem>>, %arg6: memref<1x32xf32, #tpu.memory_space<vmem>>, %arg7: memref<256x32xf32, #tpu.memory_space<vmem>>) attributes {dimension_semantics = [#tpu.dimension_semantics<parallel>], iteration_bounds = array<i64: 2>, scalar_prefetch = 0 : i64, scratch_operands = 0 : i64, tpu.core_type = #tpu.core_type<tc>, window_params = [{transform_indices = @transform_0, window_bounds = array<i64: 256, 32>}, {pipeline_mode = #tpu.pipeline_mode<synchronous>, transform_indices = @transform_1, window_bounds = array<i64: 32, 32, 32>}, {pipeline_mode = #tpu.pipeline_mode<synchronous>, transform_indices = @transform_2, window_bounds = array<i64: 32, 96>}, {pipeline_mode = #tpu.pipeline_mode<synchronous>, transform_indices = @transform_3, window_bounds = array<i64: 1, 96>}, {pipeline_mode = #tpu.pipeline_mode<synchronous>, transform_indices = @transform_4, window_bounds = array<i64: 32, 32>}, {pipeline_mode = #tpu.pipeline_mode<synchronous>, transform_indices = @transform_5, window_bounds = array<i64: 1, 32>}, {transform_indices = @transform_6, window_bounds = array<i64: 256, 32>}]} {
    %c0 = arith.constant 0 : index
    %c0_0 = arith.constant 0 : index
    %0 = vector.load %arg1[%c0, %c0_0] : memref<256x32xbf16, #tpu.memory_space<vmem>>, vector<256x32xbf16>
    %c0_1 = arith.constant 0 : index
    %c0_2 = arith.constant 0 : index
    %1 = vector.load %arg3[%c0_1, %c0_2] : memref<32x96xbf16, #tpu.memory_space<vmem>>, vector<32x96xbf16>
    %cst = arith.constant dense<0.000000e+00> : vector<256x96xf32>
    %2 = tpu.matmul %0, %1, %cst {dimension_numbers = #tpu.dot_dimension_numbers<[1], [0], [0], [1], [0, 0, 1, 1], [], []>} : vector<256x32xbf16>, vector<32x96xbf16>, vector<256x96xf32> -> vector<256x96xf32>
    %c0_3 = arith.constant 0 : index
    %c0_4 = arith.constant 0 : index
    %3 = vector.load %arg4[%c0_3, %c0_4] : memref<1x96xf32, #tpu.memory_space<vmem>>, vector<1x96xf32>
    %4 = vector.broadcast %3 : vector<1x96xf32> to vector<256x96xf32>
    %5 = arith.addf %2, %4 : vector<256x96xf32>
    %6 = vector.shape_cast %5 : vector<256x96xf32> to vector<8x32x96xf32>
    %7 = vector.extract_strided_slice %6 {offsets = [0, 0, 0], sizes = [8, 32, 32], strides = [1, 1, 1]} : vector<8x32x96xf32> to vector<8x32x32xf32>
    %8 = vector.extract_strided_slice %6 {offsets = [0, 0, 32], sizes = [8, 32, 32], strides = [1, 1, 1]} : vector<8x32x96xf32> to vector<8x32x32xf32>
    %9 = vector.extract_strided_slice %6 {offsets = [0, 0, 64], sizes = [8, 32, 32], strides = [1, 1, 1]} : vector<8x32x96xf32> to vector<8x32x32xf32>
    %10 = arith.mulf %7, %7 : vector<8x32x32xf32>
    %cst_5 = arith.constant dense<0.000000e+00> : vector<8x32xf32>
    %11 = vector.multi_reduction <add>, %10, %cst_5 [1] : vector<8x32x32xf32> to vector<8x32xf32>
    %12 = vector.shape_cast %11 : vector<8x32xf32> to vector<8x1x32xf32>
    %13 = arith.mulf %8, %8 : vector<8x32x32xf32>
    %cst_6 = arith.constant dense<0.000000e+00> : vector<8x32xf32>
    %14 = vector.multi_reduction <add>, %13, %cst_6 [1] : vector<8x32x32xf32> to vector<8x32xf32>
    %15 = vector.shape_cast %14 : vector<8x32xf32> to vector<8x1x32xf32>
    %cst_7 = arith.constant 1.000000e-24 : f32
    %16 = vector.broadcast %cst_7 : f32 to vector<8x1x32xf32>
    %17 = arith.maximumf %12, %16 : vector<8x1x32xf32>
    %18 = math.rsqrt %17 : vector<8x1x32xf32>
    %cst_8 = arith.constant 0.353553385 : f32
    %19 = vector.broadcast %cst_8 : f32 to vector<8x1x32xf32>
    %20 = arith.mulf %18, %19 : vector<8x1x32xf32>
    %21 = vector.broadcast %20 : vector<8x1x32xf32> to vector<8x32x32xf32>
    %22 = arith.mulf %7, %21 : vector<8x32x32xf32>
    %cst_9 = arith.constant 1.000000e-24 : f32
    %23 = vector.broadcast %cst_9 : f32 to vector<8x1x32xf32>
    %24 = arith.maximumf %15, %23 : vector<8x1x32xf32>
    %25 = math.rsqrt %24 : vector<8x1x32xf32>
    %26 = vector.broadcast %25 : vector<8x1x32xf32> to vector<8x32x32xf32>
    %27 = arith.mulf %8, %26 : vector<8x32x32xf32>
    %28 = vector.extract_strided_slice %22 {offsets = [0, 0, 0], sizes = [8, 32, 8], strides = [1, 1, 1]} : vector<8x32x32xf32> to vector<8x32x8xf32>
    %29 = vector.extract_strided_slice %22 {offsets = [0, 0, 8], sizes = [8, 32, 8], strides = [1, 1, 1]} : vector<8x32x32xf32> to vector<8x32x8xf32>
    %30 = vector.extract_strided_slice %22 {offsets = [0, 0, 16], sizes = [8, 32, 8], strides = [1, 1, 1]} : vector<8x32x32xf32> to vector<8x32x8xf32>
    %31 = vector.extract_strided_slice %22 {offsets = [0, 0, 24], sizes = [8, 32, 8], strides = [1, 1, 1]} : vector<8x32x32xf32> to vector<8x32x8xf32>
    %32 = tpu.concatenate %28, %29, %30, %31 in 0 : vector<8x32x8xf32>, vector<8x32x8xf32>, vector<8x32x8xf32>, vector<8x32x8xf32> -> vector<32x32x8xf32>
    %33 = arith.truncf %32 : vector<32x32x8xf32> to vector<32x32x8xbf16>
    %34 = vector.extract_strided_slice %27 {offsets = [0, 0, 0], sizes = [8, 32, 8], strides = [1, 1, 1]} : vector<8x32x32xf32> to vector<8x32x8xf32>
    %35 = vector.extract_strided_slice %27 {offsets = [0, 0, 8], sizes = [8, 32, 8], strides = [1, 1, 1]} : vector<8x32x32xf32> to vector<8x32x8xf32>
    %36 = vector.extract_strided_slice %27 {offsets = [0, 0, 16], sizes = [8, 32, 8], strides = [1, 1, 1]} : vector<8x32x32xf32> to vector<8x32x8xf32>
    %37 = vector.extract_strided_slice %27 {offsets = [0, 0, 24], sizes = [8, 32, 8], strides = [1, 1, 1]} : vector<8x32x32xf32> to vector<8x32x8xf32>
    %38 = tpu.concatenate %34, %35, %36, %37 in 0 : vector<8x32x8xf32>, vector<8x32x8xf32>, vector<8x32x8xf32>, vector<8x32x8xf32> -> vector<32x32x8xf32>
    %39 = arith.truncf %38 : vector<32x32x8xf32> to vector<32x32x8xbf16>
    %40 = vector.extract_strided_slice %9 {offsets = [0, 0, 0], sizes = [8, 32, 8], strides = [1, 1, 1]} : vector<8x32x32xf32> to vector<8x32x8xf32>
    %41 = vector.extract_strided_slice %9 {offsets = [0, 0, 8], sizes = [8, 32, 8], strides = [1, 1, 1]} : vector<8x32x32xf32> to vector<8x32x8xf32>
    %42 = vector.extract_strided_slice %9 {offsets = [0, 0, 16], sizes = [8, 32, 8], strides = [1, 1, 1]} : vector<8x32x32xf32> to vector<8x32x8xf32>
    %43 = vector.extract_strided_slice %9 {offsets = [0, 0, 24], sizes = [8, 32, 8], strides = [1, 1, 1]} : vector<8x32x32xf32> to vector<8x32x8xf32>
    %44 = tpu.concatenate %40, %41, %42, %43 in 0 : vector<8x32x8xf32>, vector<8x32x8xf32>, vector<8x32x8xf32>, vector<8x32x8xf32> -> vector<32x32x8xf32>
    %45 = arith.truncf %44 : vector<32x32x8xf32> to vector<32x32x8xbf16>
    "tpu.trace_start"() <{level = 10 : i32, message = "bnd,bmd->bnm"}> : () -> ()
    %cst_10 = arith.constant dense<0.000000e+00> : vector<32x32x32xf32>
    %46 = tpu.matmul %33, %39, %cst_10 {dimension_numbers = #tpu.dot_dimension_numbers<[2], [2], [1], [1], [0, 0, 0, 1, 1, 1], [0], [0]>} : vector<32x32x8xbf16>, vector<32x32x8xbf16>, vector<32x32x32xf32> -> vector<32x32x32xf32>
    "tpu.trace_stop"() : () -> ()
    %c0_11 = arith.constant 0 : index
    %c0_12 = arith.constant 0 : index
    %c0_13 = arith.constant 0 : index
    %47 = vector.load %arg2[%c0_11, %c0_12, %c0_13] : memref<32x32x32xf32, #tpu.memory_space<vmem>>, vector<32x32x32xf32>
    %48 = arith.addf %46, %47 : vector<32x32x32xf32>
    %cst_14 = arith.constant dense<0xFF800000> : vector<32x32xf32>
    %49 = vector.multi_reduction <maximumf>, %48, %cst_14 [2] : vector<32x32x32xf32> to vector<32x32xf32>
    %50 = vector.shape_cast %49 : vector<32x32xf32> to vector<32x32x1xf32>
    %51 = vector.broadcast %50 : vector<32x32x1xf32> to vector<32x32x32xf32>
    %52 = arith.subf %48, %51 : vector<32x32x32xf32>
    %53 = math.exp %52 : vector<32x32x32xf32>
    %cst_15 = arith.constant dense<0.000000e+00> : vector<32x32xf32>
    %54 = vector.multi_reduction <add>, %53, %cst_15 [2] : vector<32x32x32xf32> to vector<32x32xf32>
    %55 = vector.shape_cast %54 : vector<32x32xf32> to vector<32x32x1xf32>
    %56 = tpu.reciprocal %55 {approx = true} : vector<32x32x1xf32> -> vector<32x32x1xf32>
    %57 = vector.broadcast %56 : vector<32x32x1xf32> to vector<32x32x32xf32>
    %58 = arith.mulf %53, %57 : vector<32x32x32xf32>
    %59 = arith.truncf %58 : vector<32x32x32xf32> to vector<32x32x32xbf16>
    "tpu.trace_start"() <{level = 10 : i32, message = "bnm,bmd->bnd"}> : () -> ()
    %cst_16 = arith.constant dense<0.000000e+00> : vector<32x32x8xf32>
    %60 = tpu.matmul %59, %45, %cst_16 {dimension_numbers = #tpu.dot_dimension_numbers<[2], [1], [1], [2], [0, 0, 0, 1, 1, 2], [0], [0]>} : vector<32x32x32xbf16>, vector<32x32x8xbf16>, vector<32x32x8xf32> -> vector<32x32x8xf32>
    "tpu.trace_stop"() : () -> ()
    %61 = vector.extract_strided_slice %60 {offsets = [0, 0, 0], sizes = [8, 32, 8], strides = [1, 1, 1]} : vector<32x32x8xf32> to vector<8x32x8xf32>
    %62 = vector.extract_strided_slice %60 {offsets = [8, 0, 0], sizes = [8, 32, 8], strides = [1, 1, 1]} : vector<32x32x8xf32> to vector<8x32x8xf32>
    %63 = vector.extract_strided_slice %60 {offsets = [16, 0, 0], sizes = [8, 32, 8], strides = [1, 1, 1]} : vector<32x32x8xf32> to vector<8x32x8xf32>
    %64 = vector.extract_strided_slice %60 {offsets = [24, 0, 0], sizes = [8, 32, 8], strides = [1, 1, 1]} : vector<32x32x8xf32> to vector<8x32x8xf32>
    %65 = tpu.concatenate %61, %62, %63, %64 in 2 : vector<8x32x8xf32>, vector<8x32x8xf32>, vector<8x32x8xf32>, vector<8x32x8xf32> -> vector<8x32x32xf32>
    %66 = vector.shape_cast %65 : vector<8x32x32xf32> to vector<256x32xf32>
    %67 = arith.truncf %66 : vector<256x32xf32> to vector<256x32xbf16>
    %c0_17 = arith.constant 0 : index
    %c0_18 = arith.constant 0 : index
    %68 = vector.load %arg5[%c0_17, %c0_18] : memref<32x32xbf16, #tpu.memory_space<vmem>>, vector<32x32xbf16>
    %cst_19 = arith.constant dense<0.000000e+00> : vector<256x32xf32>
    %69 = tpu.matmul %67, %68, %cst_19 {dimension_numbers = #tpu.dot_dimension_numbers<[1], [0], [0], [1], [0, 0, 1, 1], [], []>} : vector<256x32xbf16>, vector<32x32xbf16>, vector<256x32xf32> -> vector<256x32xf32>
    %c0_20 = arith.constant 0 : index
    %c0_21 = arith.constant 0 : index
    %70 = vector.load %arg6[%c0_20, %c0_21] : memref<1x32xf32, #tpu.memory_space<vmem>>, vector<1x32xf32>
    %71 = vector.broadcast %70 : vector<1x32xf32> to vector<256x32xf32>
    %72 = arith.addf %69, %71 : vector<256x32xf32>
    %c0_22 = arith.constant 0 : index
    %c0_23 = arith.constant 0 : index
    %73 = vector.load %arg7[%c0_22, %c0_23] : memref<256x32xf32, #tpu.memory_space<vmem>>, vector<256x32xf32>
    tpu.vector_store %arg7[%c0_22, %c0_23], %72 {strides = array<i32>} : memref<256x32xf32, #tpu.memory_space<vmem>>, vector<256x32xf32>,
    return
  }
  func.func @transform_0(%arg0: i32) -> (i32, i32) {
    %c0_i32 = arith.constant 0 : i32
    %c0_i32_0 = arith.constant 0 : i32
    return %arg0, %c0_i32 : i32, i32
  }
  func.func @transform_1(%arg0: i32) -> (i32, i32, i32) {
    %c0_i32 = arith.constant 0 : i32
    %c0_i32_0 = arith.constant 0 : i32
    %c0_i32_1 = arith.constant 0 : i32
    %c0_i32_2 = arith.constant 0 : i32
    return %c0_i32, %c0_i32_0, %c0_i32_1 : i32, i32, i32
  }
  func.func @transform_2(%arg0: i32) -> (i32, i32) {
    %c0_i32 = arith.constant 0 : i32
    %c0_i32_0 = arith.constant 0 : i32
    %c0_i32_1 = arith.constant 0 : i32
    return %c0_i32, %c0_i32_0 : i32, i32
  }
  func.func @transform_3(%arg0: i32) -> (i32, i32) {
    %c0_i32 = arith.constant 0 : i32
    %c0_i32_0 = arith.constant 0 : i32
    %c0_i32_1 = arith.constant 0 : i32
    return %c0_i32, %c0_i32_0 : i32, i32
  }
  func.func @transform_4(%arg0: i32) -> (i32, i32) {
    %c0_i32 = arith.constant 0 : i32
    %c0_i32_0 = arith.constant 0 : i32
    %c0_i32_1 = arith.constant 0 : i32
    return %c0_i32, %c0_i32_0 : i32, i32
  }
  func.func @transform_5(%arg0: i32) -> (i32, i32) {
    %c0_i32 = arith.constant 0 : i32
    %c0_i32_0 = arith.constant 0 : i32
    %c0_i32_1 = arith.constant 0 : i32
    return %c0_i32, %c0_i32_0 : i32, i32
  }
  func.func @transform_6(%arg0: i32) -> (i32, i32) {
    %c0_i32 = arith.constant 0 : i32
    %c0_i32_0 = arith.constant 0 : i32
    return %arg0, %c0_i32 : i32, i32
  }
}

</mosaic_0001>

<bundles_post_ra>
// kernel: tpu_custom_call.1
= control target key start
LH: loop header
LB: loop body
LE: loop exit
PB: predicated region body
PF: predicated region fallthrough
CT: control target
= control target key end

     0   :  { %11 = vsyncpa [#allocation3], 0  ;;  %s11480_s21 = smov 0   ;;  %s16126_s0 = inlined_call_operand.vmem [shape: bf16[512,32], index: 0, kind: input, shape index: {}]   ;;  %s16127_s1 = inlined_call_operand.hbm [shape: f32[32,32,32], index: 1, kind: input, shape index: {}]   ;;  %s16128_s2 = inlined_call_operand.vmem [shape: bf16[32,96], index: 2, kind: input, shape index: {}]   ;;  %s16129_s3 = inlined_call_operand.vmem [shape: f32[1,96], index: 3, kind: input, shape index: {}]   ;;  %s16130_s4 = inlined_call_operand.vmem [shape: bf16[32,32], index: 4, kind: input, shape index: {}]   ;;  %s16131_s5 = inlined_call_operand.vmem [shape: f32[1,32], index: 5, kind: input, shape index: {}]   ;;  %s16132_s6 = inlined_call_operand.vmem [shape: f32[512,32], index: 6, kind: output, shape index: {}]  }
   0x1 LB: > { %s8704_s22 = sadd.s32 4294967295, %s11432_s21   ;;  %p8706_p0 = scmp.ge.s32.totalorder %s11432_s21, 1  ;;  %s11432_s21 = sphi %s11480_s21, %s17_s21  }
   0x2   : > { %p179_p1 = scmp.lt.s32.totalorder %s11432_s21, 3  ;;  %s11434_s23 = smov [#allocation2]  }
   0x3   : > { %s191_s24 = sshll.u32 %s11434_s23, 4  ;;  %p11492_p3 = scmp.eq.s32.totalorder %s8704_s22, 0  ;;  %s192_s24 = int_to_ptr.vmem [resolvable:$true] %s191_s24 }
   0x4   : > { %p11488_p2 = pnand %p8706_p0, %p179_p1  ;;  %s11407_s27 = scalar_lea.vmem %s192_s24, 16384 }
   0x5   : > { %p11408_p7 = scmp.ne.s32.totalorder %s192_s24, %s11407_s27  ;;  %p11415_p10 = scmp.lt.s32.totalorder %s192_s24, %s192_s24 }
   0x6   : > { %p9847_p4 = pneg %p11488_p2  ;;  %p11416_p11 = scmp.lt.s32.totalorder %s11407_s27, %s11407_s27 }
   0x8   : > { %p9848_p5 = pnand %p11492_p3, %p9847_p4  ;;  %p11417_p12 = por %p11416_p11, %p11415_p10 }
   0xa   : > { %p11398_p6 = pneg %p9848_p5 }
   0xc   : > { %p11410_p8 = pnand %p11408_p7, %p11398_p6 }
   0xe   : > { %p11411_p9 = pneg %p11410_p8 }
  0x10   : > { %p11418_p13 = pnand %p11417_p12, %p11411_p9 }
  0x12   : > { %11421 = shalt.err (!%p11418_p13)
}
  0x13   : > { %s11435_s28 = smov 128   ;;  %s11436_s29 = smov 8  }
  0x14   : > { %9850 = dma.hbm_to_vmem [thread:$0]  (!%p9848_p5), %s16127_s1, 16384, %s192_s24, [#allocation3], %s11435_s28, %s11435_s28, %s11436_s29  }
  0x15   : > { %228 = sbr.rel (%p11488_p2) target bundleno = 2889 (0xb49), region = 44 }
  0x1a   : > { %11427 = dma.done.wait (%p11492_p3), [#allocation3], 16384  }
  0x1b   : > { %11429 = vsyncadd (%p11492_p3), [#allocation3], 4294950912  ;;  %s8711_s8 = sshll.u32 %s8704_s22, 5  ;;  %v10832_v0 = vld [vmem:[%s16128_s2 + $0x8] sm:$0xff]   ;;  %v10833_v1 = vld [vmem:[%s16128_s2] sm:$0xff]   ;;  %vm406_vm0 = vcmask 261120  }
  0x1c   : > { %p259_p0 = scmp.lt.s32.totalorder %s8711_s8, 63  ;;  %9191 = vmatprep.subr.bf16.mxu0 %v10832_v0  ;;  %v11558_v20 = vld [vmem:[%s16129_s3] ss:$0 sm:$0xff]  ;;  %vm752_vm1 = vcmask 523520   ;;  %s11437_s19 = smov 120   ;;  %vm2247_vm2 = vcmask 64512  }
  0x1d   : > { %9192 = vmatpush3.bf16.msra.mxu0 %v10832_v0  ;;  %s11438_s20 = smov 112   ;;  %s11439_s22 = smov 104   ;;  %vm8290_vm3 = vcmask 130048   ;;  %vm8323_vm4 = vcmask 195584  }
  0x1e   : > { %s17217_s8 = smov (!%p259_p0, %s8711_s8), 63  ;;  %9193 = vmatprep.subr.bf16.mxu0 %v10833_v1  ;;  %s11440_s23 = smov 96  }
  0x1f   : > { %s8712_s9 = sshll.u32 %s17217_s8, 2  ;;  %s11441_s24 = smov 64  }
  0x20   : > { %s11515_s12 = scalar_lea.vmem %s16126_s0, %s8712_s9  ;;  %s11442_s25 = smov 8  }
  0x21   : > { %v10834_v2 = vld [vmem:[%s11515_s12] sm:$0xff]   ;;  %v10835_v3 = vld [vmem:[%s11515_s12 + $0x8] sm:$0xff]   ;;  %9194 = vmatpush3.bf16.msra.mxu0 %v10833_v1  ;;  %v10836_v4 = vld [vmem:[%s11515_s12 + $0x10] sm:$0xff]   ;;  %s11443_s26 = smov 16   ;;  %s11444_s7 = smov 24  }
  0x22   : > { %9195 = vmatprep.mubr.msk.bf16.mxu0 %vm406_vm0, %v10834_v2  ;;  %v10837_v5 = vld [vmem:[%s11515_s12 + $0x18] sm:$0xff]   ;;  %v10838_v6 = vld [vmem:[%s11515_s12 + $0x20] sm:$0xff]   ;;  %v10839_v7 = vld [vmem:[%s11515_s12 + $0x28] sm:$0xff]   ;;  %s8714_s9 = sshll.u32 %s17217_s8, 3 }
  0x23   : > { %v10840_v8 = vld [vmem:[%s11515_s12 + $0x30] sm:$0xff]   ;;  %v10841_v9 = vld [vmem:[%s11515_s12 + $0x38] sm:$0xff]   ;;  %v10842_v10 = vld [vmem:[%s11515_s12 + $0x40] sm:$0xff]   ;;  %s16025_s14 = scalar_lea.vmem %s16132_s6, %s8714_s9 }
  0x24   : > { %9196 = vmatmul.mubr.msk.bf16.vlgmr.msra.gmra.mxu0 %vm406_vm0, %v10835_v3  ;;  %v10843_v11 = vld [vmem:[%s11515_s12 + $0x48] sm:$0xff]   ;;  %v10844_v12 = vld [vmem:[%s11515_s12 + $0x50] sm:$0xff]   ;;  %v10845_v13 = vld [vmem:[%s11515_s12 + $0x58] sm:$0xff]  }
  0x25   : > { %9199 = vmatprep.mubr.msk.bf16.mxu0 %vm406_vm0, %v10836_v4  ;;  %v10846_v14 = vld [vmem:[%s11515_s12 + $0x60] sm:$0xff]   ;;  %v10847_v15 = vld [vmem:[%s11515_s12 + $0x68] sm:$0xff]   ;;  %v10848_v16 = vld [vmem:[%s11515_s12 + $0x70] sm:$0xff]  }
  0x26   : > { %v10849_v17 = vld [vmem:[%s11515_s12 + $0x78] sm:$0xff]  }
  0x2c   : > { %9200 = vmatmul.mubr.msk.bf16.gmra.mxu0 %vm406_vm0, %v10837_v5 }
  0x2d   : > { %9203 = vmatprep.mubr.msk.bf16.mxu0 %vm406_vm0, %v10838_v6 }
  0x34   : > { %9204 = vmatmul.mubr.msk.bf16.gmra.mxu0 %vm406_vm0, %v10839_v7 }
  0x35   : > { %9207 = vmatprep.mubr.msk.bf16.mxu0 %vm406_vm0, %v10840_v8 }
  0x3c   : > { %9208 = vmatmul.mubr.msk.bf16.gmra.mxu0 %vm406_vm0, %v10841_v9 }
  0x3d   : > { %9211 = vmatprep.mubr.msk.bf16.mxu0 %vm406_vm0, %v10842_v10 }
  0x44   : > { %9212 = vmatmul.mubr.msk.bf16.gmra.mxu0 %vm406_vm0, %v10843_v11 }
  0x45   : > { %9215 = vmatprep.mubr.msk.bf16.mxu0 %vm406_vm0, %v10844_v12 }
  0x4c   : > { %9216 = vmatmul.mubr.msk.bf16.gmra.mxu0 %vm406_vm0, %v10845_v13 }
  0x4d   : > { %9219 = vmatprep.mubr.msk.bf16.mxu0 %vm406_vm0, %v10846_v14 }
  0x54   : > { %9220 = vmatmul.mubr.msk.bf16.gmra.mxu0 %vm406_vm0, %v10847_v15 }
  0x55   : > { %9223 = vmatprep.mubr.msk.bf16.mxu0 %vm406_vm0, %v10848_v16 }
  0x5c   : > { %9224 = vmatmul.mubr.msk.bf16.gmra.mxu0 %vm406_vm0, %v10849_v17 }
  0xe4   : > { %v9197_v18 = vpop.f32.mrf.mxu0 }
  0xe5   : > { %v11567_v24 = vadd.f32 %v9197_v18, %v11558_v20 }
  0xe6   : > { %v489_v19 = vpop.f32.mrf.mxu0 }
  0xe7   : > { %v11561_v22 = vadd.f32 %v11558_v20, %v489_v19  ;;  %16419 = vst [vmem:[#allocation7_spill] sm:$0xff] %v11567_v24  ;;  %v618_v35 = vmul.f32 %v11567_v24, %v11567_v24 }
  0xe8   : > { %v9198_v21 = vpop.f32.mrf.mxu0 }
  0xe9   : > { %16417 = vst [vmem:[#allocation5_spill] sm:$0xff] %v11561_v22  ;;  %v11564_v23 = vadd.f32 %v9198_v21, %v11558_v20  ;;  %v616_v29 = vmul.f32 %v11561_v22, %v11561_v22  ;;  %v756_v42 = vsel %vm752_vm1, %v618_v35, 0.0  ;;  %v651_v7 = vsel %vm406_vm0, %v618_v35, 0.0 }
  0xea   : > { %v492_v25 = vpop.f32.mrf.mxu0 }
  0xeb   : > { %16418 = vst [vmem:[#allocation6_spill] sm:$0xff] %v11564_v23  ;;  %v11570_v26 = vadd.f32 %v11558_v20, %v492_v25  ;;  %v9872_v28 = vpack.i.bf16 %v11564_v23, %v11567_v24  ;;  %v753_v36 = vsel %vm752_vm1, %v616_v29, 0.0  ;;  %v619_v43 = vmul.f32 %v11564_v23, %v11564_v23 }
  0xec   : > { %v9201_v27 = vpop.f32.mrf.mxu0  ;;  %v648_v0 = vsel %vm406_vm0, %v616_v29, 0.0 }
  0xed   : > { %16420 = vst [vmem:[#allocation8_spill] sm:$0xff] %v11570_v26  ;;  %v617_v30 = vmul.f32 %v11570_v26, %v11570_v26  ;;  %9873 = vrot.lane.b32.xlu0 %v9872_v28, %s11437_s19  ;;  %v9887_v32 = vpack.i.bf16 %v11570_v26, %v11561_v22  ;;  %v11588_v39 = vadd.f32 %v9201_v27, %v11558_v20  ;;  %v758_v50 = vsel %vm752_vm1, %v619_v43, 0.0 }
  0xee   : > { %v505_v31 = vpop.f32.mrf.mxu0  ;;  %v653_v19 = vsel %vm406_vm0, %v619_v43, 0.0 }
  0xef   : > { %v754_v33 = vsel %vm752_vm1, %v617_v30, 0.0  ;;  %9888 = vrot.lane.b32.xlu1 %v9887_v32, %s11437_s19  ;;  %16421 = vst [vmem:[#allocation9_spill] sm:$0xff] %v11588_v39  ;;  %v11602_v47 = vadd.f32 %v11558_v20, %v505_v31  ;;  %v649_v61 = vsel %vm406_vm0, %v617_v30, 0.0 }
  0xf0   : > { %v9202_v34 = vpop.f32.mrf.mxu0  ;;  %v755_v37 = vadd.f32 %v754_v33, %v753_v36  ;;  %v650_v2 = vadd.f32 %v649_v61, %v648_v0 }
  0xf1   : > { %9878 = vrot.lane.b32.xlu0 %v9872_v28, %s11438_s20  ;;  %v11591_v40 = vadd.f32 %v9202_v34, %v11558_v20  ;;  %16424 = vst [vmem:[#allocation12_spill] sm:$0xff] %v11602_v47  ;;  %v11657_v21 = vmul.f32 %v11602_v47, %v11602_v47 }
  0xf2   : > { %v508_v38 = vpop.f32.mrf.mxu0  ;;  %v757_v44 = vadd.f32 %v756_v42, %v755_v37  ;;  %v652_v13 = vadd.f32 %v651_v7, %v650_v2 }
  0xf3   : > { %16422 = vst [vmem:[#allocation10_spill] sm:$0xff] %v11591_v40  ;;  %9893 = vrot.lane.b32.xlu1 %v9887_v32, %s11438_s20  ;;  %v11598_v45 = vadd.f32 %v11558_v20, %v508_v38  ;;  %v9902_v49 = vpack.i.bf16 %v11591_v40, %v11588_v39  ;;  %v11709_v61 = vmul.f32 %v11591_v40, %v11591_v40 }
  0xf4   : > { %v9205_v41 = vpop.f32.mrf.mxu0  ;;  %v759_v51 = vadd.f32 %v758_v50, %v757_v44  ;;  %v654_v30 = vadd.f32 %v653_v19, %v652_v13  ;;  %v766_v44 = vsel %vm752_vm1, %v11657_v21, 0.0 }
  0xf5   : > { %16423 = vst [vmem:[#allocation11_spill] sm:$0xff] %v11598_v45  ;;  %9883 = vrot.lane.b32.xlu0 %v9872_v28, %s11439_s22  ;;  %v9922_v53 = vpack.i.bf16 %v11598_v45, %v11602_v47  ;;  %v11616_v57 = vadd.f32 %v9205_v41, %v11558_v20  ;;  %v11661_v25 = vmul.f32 %v11598_v45, %v11598_v45 }
  0xf6   : > { %v521_v46 = vpop.f32.mrf.mxu0  ;;  %v760_v56 = vrot.slane %v759_v51, 4  ;;  %v655_v42 = vrot.slane %v654_v30, 4 }
  0xf7   : > { %9898 = vrot.lane.b32.xlu1 %v9887_v32, %s11439_s22  ;;  %16426 = vst [vmem:[#allocation14_spill] sm:$0xff] %v11616_v57  ;;  %v11635_v8 = vadd.f32 %v11558_v20, %v521_v46  ;;  %v767_v36 = vsel %vm752_vm1, %v11661_v25, 0.0 }
  0xf8   : > { %v9206_v48 = vpop.f32.mrf.mxu0  ;;  %v761_v62 = vadd.f32 %v760_v56, %v759_v51 }
  0xf9   : > { %9903 = vrot.lane.b32.xlu0 %v9902_v49, %s11437_s19  ;;  %v11612_v54 = vadd.f32 %v9206_v48, %v11558_v20  ;;  %16429 = vst [vmem:[#allocation17_spill] sm:$0xff] %v11635_v8  ;;  %v11689_v48 = vmul.f32 %v11588_v39, %v11588_v39 }
  0xfa   : > { %v524_v52 = vpop.f32.mrf.mxu0  ;;  %v762_v3 = vrot.slane %v761_v62, 2 }
  0xfb   : > { %16425 = vst [vmem:[#allocation13_spill] sm:$0xff] %v11612_v54  ;;  %9923 = vrot.lane.b32.xlu1 %v9922_v53, %s11438_s20  ;;  %v9932_v60 = vpack.i.bf16 %v11612_v54, %v11616_v57  ;;  %v11638_v9 = vadd.f32 %v11558_v20, %v524_v52 }
  0xfc   : > { %v9209_v55 = vpop.f32.mrf.mxu0  ;;  %v763_v14 = vadd.f32 %v762_v3, %v761_v62  ;;  %v771_v3 = vsel %vm752_vm1, %v11709_v61, 0.0 }
  0xfd   : > { %9908 = vrot.lane.b32.xlu0 %v9902_v49, %s11438_s20  ;;  %16430 = vst [vmem:[#allocation18_spill] sm:$0xff] %v11638_v9  ;;  %v9947_v16 = vpack.i.bf16 %v11638_v9, %v11635_v8  ;;  %v11670_v32 = vadd.f32 %v9209_v55, %v11558_v20 }
  0xfe   : > { %v537_v58 = vpop.f32.mrf.mxu0  ;;  %v764_v31 = vrot.slane %v763_v14, 1 }
  0xff   : > { %9928 = vrot.lane.b32.xlu1 %v9922_v53, %s11439_s22  ;;  %16433 = vst [vmem:[#allocation21_spill] sm:$0xff] %v11670_v32  ;;  %v11692_v50 = vadd.f32 %v11558_v20, %v537_v58  ;;  %v769_v58 = vsel %vm752_vm1, %v11689_v48, 0.0 }
 0x100   : > { %v9210_v59 = vpop.f32.mrf.mxu0  ;;  %v765_v43 = vadd.f32 %v764_v31, %v763_v14 }
 0x101   : > { %9913 = vrot.lane.b32.xlu0 %v9902_v49, %s11439_s22  ;;  %v11673_v33 = vadd.f32 %v9210_v59, %v11558_v20  ;;  %v768_v49 = vadd.f32 %v767_v36, %v766_v44  ;;  %16435 = vst [vmem:[#allocation23_spill] sm:$0xff] %v11692_v50  ;;  %v624_v44 = vmul.f32 %v11635_v8, %v11635_v8 }
 0x102   : > { %v540_v63 = vpop.f32.mrf.mxu0  ;;  %v913_v55 = vmax.f32 %v765_v43, 1e-24 }
 0x103   : > { %9933 = vrot.lane.b32.xlu1 %v9932_v60, %s11437_s19  ;;  %16434 = vst [vmem:[#allocation22_spill] sm:$0xff] %v11673_v33  ;;  %v9962_v38 = vpack.i.bf16 %v11673_v33, %v11670_v32  ;;  %v11695_v51 = vadd.f32 %v11558_v20, %v540_v63  ;;  %v770_v63 = vadd.f32 %v769_v58, %v768_v49 }
 0x104   : > { %v9213_v1 = vpop.f32.mrf.mxu0  ;;  %10852 = vrsqrt.f32 %v913_v55 }
 0x105   : > { %9918 = vrot.lane.b32.xlu0 %v9922_v53, %s11437_s19  ;;  %v11628_v5 = vadd.f32 %v9213_v1, %v11558_v20  ;;  %16436 = vst [vmem:[#allocation24_spill] sm:$0xff] %v11695_v51  ;;  %v656_v53 = vadd.f32 %v655_v42, %v654_v30  ;;  %v772_v7 = vadd.f32 %v771_v3, %v770_v63 }
 0x106   : > { %v553_v4 = vpop.f32.mrf.mxu0 }
 0x107   : > { %16427 = vst [vmem:[#allocation15_spill] sm:$0xff] %v11628_v5  ;;  %v11631_v6 = vadd.f32 %v11558_v20, %v553_v4  ;;  %9943 = vrot.lane.b32.xlu1 %v9932_v60, %s11439_s22  ;;  %v634_v17 = vmul.f32 %v11628_v5, %v11628_v5  ;;  %v657_v62 = vrot.slane %v656_v53, 2 }
 0x108   : > { %v9214_v10 = vpop.f32.mrf.mxu0 }
 0x109   : > { %16428 = vst [vmem:[#allocation16_spill] sm:$0xff] %v11631_v6  ;;  %v632_v11 = vmul.f32 %v11631_v6, %v11631_v6  ;;  %v11644_v12 = vadd.f32 %v9214_v10, %v11558_v20  ;;  %9938 = vrot.lane.b32.xlu0 %v9932_v60, %s11438_s20  ;;  %v808_v34 = vsel %vm752_vm1, %v634_v17, 0.0  ;;  %v9977_v60 = vpack.i.bf16 %v11695_v51, %v11692_v50 }
 0x10a   : > { %v556_v15 = vpop.f32.mrf.mxu0  ;;  %v658_v1 = vadd.f32 %v657_v62, %v656_v53  ;;  %v703_v2 = vsel %vm406_vm0, %v634_v17, 0.0  ;;  %v773_v17 = vrot.slane %v772_v7, 4  ;;  %v626_v62 = vmul.f32 %v11616_v57, %v11616_v57 }
 0x10b   : > { %16431 = vst [vmem:[#allocation19_spill] sm:$0xff] %v11644_v12  ;;  %v11652_v18 = vadd.f32 %v11558_v20, %v556_v15  ;;  %9948 = vrot.lane.b32.xlu1 %v9947_v16, %s11437_s19  ;;  %v805_v27 = vsel %vm752_vm1, %v632_v11, 0.0  ;;  %v635_v28 = vmul.f32 %v11644_v12, %v11644_v12  ;;  %v700_v56 = vsel %vm406_vm0, %v632_v11, 0.0 }
 0x10c   : > { %v659_v4 = vrot.slane %v658_v1, 1  ;;  %v9992_v10 = vpack.i.bf16 %v11644_v12, %v11628_v5  ;;  %v9217_v13 = vpop.f32.mrf.mxu0  ;;  %v774_v30 = vadd.f32 %v773_v17, %v772_v7  ;;  %v779_v7 = vsel %vm752_vm1, %v624_v44, 0.0 }
 0x10d   : > { %16432 = vst [vmem:[#allocation20_spill] sm:$0xff] %v11652_v18  ;;  %v633_v29 = vmul.f32 %v11652_v18, %v11652_v18  ;;  %9958 = vrot.lane.b32.xlu0 %v9947_v16, %s11439_s22  ;;  %v810_v41 = vsel %vm752_vm1, %v635_v28, 0.0  ;;  %v705_v15 = vsel %vm406_vm0, %v635_v28, 0.0  ;;  %v782_v17 = vsel %vm752_vm1, %v626_v62, 0.0 }
 0x10e   : > { %v660_v14 = vadd.f32 %v659_v4, %v658_v1  ;;  %v662_v1 = vsel %vm406_vm0, %v11661_v25, 0.0 }
 0x10f   : > { %v806_v35 = vsel %vm752_vm1, %v633_v29, 0.0  ;;  %9953 = vrot.lane.b32.xlu1 %v9947_v16, %s11438_s20  ;;  %v701_v59 = vsel %vm406_vm0, %v633_v29, 0.0  ;;  %v10007_v29 = vpack.i.bf16 %v11652_v18, %v11631_v6 }
 0x110   : > { %v807_v37 = vadd.f32 %v806_v35, %v805_v27  ;;  %v702_v0 = vadd.f32 %v701_v59, %v700_v56  ;;  %v857_v16 = vmax.f32 %v660_v14, 1e-24  ;;  %v11722_v27 = vpop.f32.mrf.mxu0 }
 0x111   : > { %9963 = vrot.lane.b32.xlu0 %v9962_v38, %s11437_s19  ;;  %v10853_v36 = vpop.eup %10852 }
 0x112   : > { %v809_v46 = vadd.f32 %v808_v34, %v807_v37  ;;  %v704_v11 = vadd.f32 %v703_v2, %v702_v0  ;;  %10854 = vrsqrt.f32 %v857_v16  ;;  %v9218_v31 = vpop.f32.mrf.mxu0  ;;  %v11729_v34 = vadd.f32 %v9217_v13, %v11558_v20 }
 0x113   : > { %9973 = vrot.lane.b32.xlu1 %v9962_v38, %s11439_s22  ;;  %v11732_v35 = vadd.f32 %v9218_v31, %v11558_v20  ;;  %v775_v37 = vrot.slane %v774_v30, 2  ;;  %v11740_v42 = vmul.f32 %v10853_v36, %v11567_v24  ;;  %v11743_v43 = vmul.f32 %v10853_v36, %v11564_v23 }
 0x114   : > { %v11697_v52 = vadd.f32 %v810_v41, %v809_v46  ;;  %v706_v19 = vadd.f32 %v705_v15, %v704_v11  ;;  %16438 = vst [vmem:[#allocation26_spill] sm:$0xff] %v11729_v34  ;;  %v625_v46 = vmul.f32 %v11638_v9, %v11638_v9  ;;  %v572_v55 = vpop.f32.mrf.mxu0  ;;  %v11751_v56 = vmul.f32 %v10853_v36, %v11561_v22 }
 0x115   : > { %9968 = vrot.lane.b32.xlu0 %v9962_v38, %s11438_s20  ;;  %16439 = vst [vmem:[#allocation27_spill] sm:$0xff] %v11732_v35  ;;  %v10022_v38 = vpack.i.bf16 %v11732_v35, %v11729_v34  ;;  %v776_v53 = vadd.f32 %v775_v37, %v774_v30  ;;  %v11754_v59 = vmul.f32 %v10853_v36, %v11570_v26  ;;  %v661_v13 = vsel %vm406_vm0, %v11657_v21, 0.0 }
 0x116   : > { %16437 = vst [vmem:[#allocation25_spill] sm:$0xff] %v11697_v52  ;;  %v707_v28 = vrot.slane %v706_v19, 4  ;;  %v11758_v63 = vpop.f32.mrf.mxu0  ;;  %v10042_v0 = vpack.i.bf16 %v11743_v43, %v11740_v42  ;;  %v663_v16 = vadd.f32 %v662_v1, %v661_v13  ;;  %v674_v36 = vsel %vm406_vm0, %v624_v44, 0.0 }
 0x117   : > { %9978 = vrot.lane.b32.xlu1 %v9977_v60, %s11437_s19  ;;  %v777_v4 = vrot.slane %v776_v53, 1  ;;  %v10037_v11 = vpack.i.bf16 %v11754_v59, %v11751_v56  ;;  %v675_v37 = vsel %vm406_vm0, %v625_v46, 0.0  ;;  %v677_v44 = vsel %vm406_vm0, %v626_v62, 0.0 }
 0x118   : > { %v708_v41 = vadd.f32 %v707_v28, %v706_v19  ;;  %v585_v19 = vpop.f32.mrf.mxu0  ;;  %v11806_v1 = vmul.f32 %v11670_v32, %v11670_v32  ;;  %v666_v62 = vsel %vm406_vm0, %v11709_v61, 0.0 }
 0x119   : > { %9988 = vrot.lane.b32.xlu0 %v9977_v60, %s11439_s22  ;;  %v778_v28 = vadd.f32 %v777_v4, %v776_v53  ;;  %v11810_v4 = vadd.f32 %v11558_v20, %v11722_v27 }
 0x11a   : > { %v709_v49 = vrot.slane %v708_v41, 2  ;;  %v690_v61 = vsel %vm406_vm0, %v11806_v1, 0.0 }
 0x11b   : > { %9983 = vrot.lane.b32.xlu1 %v9977_v60, %s11438_s20  ;;  %16440 = vst [vmem:[#allocation28_spill] sm:$0xff] %v11810_v4 }
 0x11c   : > { %v710_v60 = vadd.f32 %v709_v49, %v708_v41  ;;  %v11792_v41 = vmul.f32 %v11692_v50, %v11692_v50  ;;  %v11796_v49 = vmul.f32 %v11695_v51, %v11695_v51 }
 0x11d   : > { %9993 = vrot.lane.b32.xlu0 %v9992_v10, %s11437_s19 }
 0x11e   : > { %v711_v3 = vrot.slane %v710_v60, 1  ;;  %v688_v13 = vsel %vm406_vm0, %v11796_v49, 0.0 }
 0x11f   : > { %10003 = vrot.lane.b32.xlu1 %v9992_v10, %s11439_s22  ;;  %v10855_v58 = vpop.eup %10854 }
 0x120   : > { %v11765_v2 = vmul.f32 0.35355338, %v10855_v58  ;;  %v712_v15 = vadd.f32 %v711_v3, %v710_v60  ;;  %v676_v60 = vadd.f32 %v675_v37, %v674_v36  ;;  %v914_v3 = vmax.f32 %v778_v28, 1e-24 }
 0x121   : > { %9998 = vrot.lane.b32.xlu0 %v9992_v10, %s11438_s20  ;;  %v780_v10 = vsel %vm752_vm1, %v625_v46, 0.0  ;;  %v11800_v46 = vpop.f32.mrf.mxu0  ;;  %v11842_v28 = vadd.f32 %v11558_v20, %v585_v19 }
 0x122   : > { %v11776_v14 = vmul.f32 %v11765_v2, %v11561_v22  ;;  %v882_v25 = vmul.f32 %v11765_v2, %v11570_v26  ;;  %v781_v30 = vadd.f32 %v780_v10, %v779_v7  ;;  %v861_v31 = vmax.f32 %v712_v15, 1e-24 }
 0x123   : > { %10008 = vrot.lane.b32.xlu1 %v10007_v29, %s11437_s19  ;;  %v11813_v7 = vadd.f32 %v11558_v20, %v572_v55  ;;  %v687_v10 = vsel %vm406_vm0, %v11792_v41, 0.0  ;;  %16444 = vst [vmem:[#allocation32_spill] sm:$0xff] %v11842_v28 }
 0x124   : > { %v1281_v21 = vpack.c.bf16 %v882_v25, %v11776_v14  ;;  %10856 = vrsqrt.f32 %v861_v31  ;;  %v783_v58 = vadd.f32 %v782_v17, %v781_v30  ;;  %v678_v17 = vadd.f32 %v677_v44, %v676_v60 }
 0x125   : > { %10018 = vrot.lane.b32.xlu0 %v10007_v29, %s11439_s22  ;;  %16441 = vst [vmem:[#allocation29_spill] sm:$0xff] %v11813_v7  ;;  %v10067_v27 = vpack.i.bf16 %v11813_v7, %v11810_v4  ;;  %v11830_v30 = vmul.f32 %v11673_v33, %v11673_v33  ;;  %10858 = vrsqrt.f32 %v914_v3  ;;  %v11839_v31 = vmul.f32 %v11813_v7, %v11813_v7 }
 0x126   : > { %9231 = vmatprep.mubr.msk.bf16.mxu1 %vm2247_vm2, %v1281_v21  ;;  %v689_v21 = vadd.f32 %v688_v13, %v687_v10  ;;  %v10082_v3 = vpack.i.bf16 %v882_v25, %v11776_v14  ;;  %v11872_v13 = vadd.f32 %v11758_v63, %v11558_v20 }
 0x127   : > { %10013 = vrot.lane.b32.xlu1 %v10007_v29, %s11438_s20  ;;  %v627_v29 = vmul.f32 %v11612_v54, %v11612_v54  ;;  %16443 = vst [vmem:[#allocation31_spill] sm:$0xff] %v11839_v31  ;;  %v692_v19 = vsel %vm406_vm0, %v11830_v30, 0.0 }
 0x128   : > { %16448 = vst [vmem:[#allocation36_spill] sm:$0xff] %v11872_v13 }
 0x129   : > { %10023 = vrot.lane.b32.xlu0 %v10022_v38, %s11437_s19  ;;  %v679_v15 = vsel %vm406_vm0, %v627_v29, 0.0 }
 0x12b   : > { %10033 = vrot.lane.b32.xlu1 %v10022_v38, %s11439_s22 }
 0x12d   : > { %10028 = vrot.lane.b32.xlu0 %v10022_v38, %s11438_s20  ;;  %v664_v38 = vsel %vm406_vm0, %v11689_v48, 0.0  ;;  %v784_v48 = vsel %vm752_vm1, %v627_v29, 0.0 }
 0x12e   : > { %v665_v53 = vadd.f32 %v664_v38, %v663_v16  ;;  %v588_v16 = vpop.f32.mrf.mxu0  ;;  %v11852_v38 = vmul.f32 %v11765_v2, %v11567_v24  ;;  %v11896_v24 = vmul.f32 %v11872_v13, %v11872_v13 }
 0x12f   : > { %10043 = vrot.lane.b32.xlu1 %v10042_v0, %s11437_s19  ;;  %v11845_v36 = vadd.f32 %v11558_v20, %v588_v16 }
 0x130   : > { %v667_v55 = vadd.f32 %v666_v62, %v665_v53  ;;  %v11847_v37 = vpop.f32.mrf.mxu0  ;;  %16446 = vst [vmem:[#allocation34_spill] sm:$0xff] %v11852_v38  ;;  %v11856_v53 = vmul.f32 %v11765_v2, %v11564_v23  ;;  %v714_v2 = vsel %vm406_vm0, %v11839_v31, 0.0 }
 0x131   : > { %10038 = vrot.lane.b32.xlu0 %v10037_v11, %s11437_s19  ;;  %16445 = vst [vmem:[#allocation33_spill] sm:$0xff] %v11845_v36  ;;  %v11880_v14 = vmul.f32 %v11845_v36, %v11845_v36 }
 0x132   : > { %v668_v29 = vrot.slane %v667_v55, 4  ;;  %v601_v16 = vpop.f32.mrf.mxu0  ;;  %v10097_v25 = vpack.i.bf16 %v11856_v53, %v11852_v38 }
 0x133   : > { %10053 = vrot.lane.b32.xlu1 %v10042_v0, %s11438_s20  ;;  %16450 = vst [vmem:[#allocation38_spill] sm:$0xff] %v11880_v14 }
 0x134   : > { %v669_v44 = vadd.f32 %v668_v29, %v667_v55  ;;  %v680_v55 = vadd.f32 %v679_v15, %v678_v17  ;;  %v10857_v29 = vpop.eup %10856  ;;  %v11889_v15 = vmul.f32 %v11732_v35, %v11732_v35 }
 0x135   : > { %10048 = vrot.lane.b32.xlu0 %v10037_v11, %s11438_s20  ;;  %v11891_v17 = vmul.f32 0.35355338, %v10857_v29 }
 0x136   : > { %v670_v62 = vrot.slane %v669_v44, 2 }
 0x137   : > { %10063 = vrot.lane.b32.xlu1 %v10042_v0, %s11439_s22  ;;  %v785_v0 = vadd.f32 %v784_v48, %v783_v58  ;;  %v11862_v48 = vmul.f32 %v11729_v34, %v11729_v34  ;;  %v691_v58 = vadd.f32 %v690_v61, %v689_v21  ;;  %v11876_v61 = vmul.f32 %v11842_v28, %v11842_v28 }
 0x138   : > { %v681_v21 = vrot.slane %v680_v55, 4 }
 0x139   : > { %10058 = vrot.lane.b32.xlu0 %v10037_v11, %s11439_s22  ;;  %v11835_v11 = vmul.f32 %v11810_v4, %v11810_v4  ;;  %16447 = vst [vmem:[#allocation35_spill] sm:$0xff] %v11862_v48  ;;  %v786_v60 = vrot.slane %v785_v0, 4  ;;  %16449 = vst [vmem:[#allocation37_spill] sm:$0xff] %v11876_v61  ;;  %v716_v63 = vsel %vm406_vm0, %v11862_v48, 0.0  ;;  %v693_v23 = vadd.f32 %v692_v19, %v691_v58  ;;  %v11902_v48 = vpop.f32.mrf.mxu0 }
 0x13a   : > { %v682_v29 = vadd.f32 %v681_v21, %v680_v55  ;;  %v11911_v58 = vadd.f32 %v11800_v46, %v11558_v20  ;;  %v10859_v21 = vpop.eup %10858  ;;  %v729_v46 = vsel %vm406_vm0, %v11896_v24, 0.0 }
 0x13b   : > { %10068 = vrot.lane.b32.xlu1 %v10067_v27, %s11437_s19  ;;  %16442 = vst [vmem:[#allocation30_spill] sm:$0xff] %v11835_v11  ;;  %v713_v10 = vsel %vm406_vm0, %v11835_v11, 0.0  ;;  %v787_v11 = vadd.f32 %v786_v60, %v785_v0  ;;  %v694_v55 = vrot.slane %v693_v23, 4  ;;  %v1666_v0 = vpack.c.bf16 %v11743_v43, %v11740_v42 }
 0x13c   : > { %v715_v26 = vadd.f32 %v714_v2, %v713_v10  ;;  %v726_v10 = vsel %vm406_vm0, %v11876_v61, 0.0  ;;  %v727_v2 = vsel %vm406_vm0, %v11880_v14, 0.0  ;;  %16451 = vst [vmem:[#allocation39_spill] sm:$0xff] %v11911_v58  ;;  %v683_v31 = vrot.slane %v682_v29, 2 }
 0x13d   : > { %10078 = vrot.lane.b32.xlu0 %v10067_v27, %s11439_s22  ;;  %v718_v61 = vsel %vm406_vm0, %v11889_v15, 0.0  ;;  %v728_v14 = vadd.f32 %v727_v2, %v726_v10  ;;  %v695_v60 = vadd.f32 %v694_v55, %v693_v23  ;;  %v11961_v55 = vadd.f32 %v11847_v37, %v11558_v20 }
 0x13e   : > { %v717_v52 = vadd.f32 %v716_v63, %v715_v26  ;;  %v11927_v26 = vadd.f32 %v11558_v20, %v601_v16 }
 0x13f   : > { %10073 = vrot.lane.b32.xlu1 %v10067_v27, %s11438_s20  ;;  %v671_v27 = vadd.f32 %v670_v62, %v669_v44  ;;  %v897_v44 = vmul.f32 %v11891_v17, %v11631_v6  ;;  %v898_v62 = vmul.f32 %v11891_v17, %v11652_v18  ;;  %v696_v23 = vrot.slane %v695_v60, 2  ;;  %16454 = vst [vmem:[#allocation42_spill] sm:$0xff] %v11961_v55 }
 0x140   : > { %16452 = vst [vmem:[#allocation40_spill] sm:$0xff] %v11927_v26  ;;  %v719_v42 = vadd.f32 %v718_v61, %v717_v52  ;;  %v730_v43 = vadd.f32 %v729_v46, %v728_v14  ;;  %v11950_v52 = vmul.f32 %v11927_v26, %v11927_v26 }
 0x141   : > { %10083 = vrot.lane.b32.xlu0 %v10082_v3, %s11437_s19  ;;  %v672_v22 = vrot.slane %v671_v27, 1  ;;  %v1289_v6 = vpack.c.bf16 %v898_v62, %v897_v44  ;;  %v11929_v63 = vpack.i.bf16 %v898_v62, %v897_v44  ;;  %v11942_v44 = vmul.f32 %v10859_v21, %v11591_v40 }
 0x142   : > { %v697_v62 = vadd.f32 %v696_v23, %v695_v60  ;;  %v788_v60 = vrot.slane %v787_v11, 2  ;;  %v11973_v23 = vmul.f32 %v11961_v55, %v11961_v55 }
 0x143   : > { %10098 = vrot.lane.b32.xlu1 %v10097_v25, %s11438_s20  ;;  %v673_v19 = vadd.f32 %v672_v22, %v671_v27  ;;  %9263 = vmatprep.mubr.msk.bf16.mxu0 %vm2247_vm2, %v1289_v6  ;;  %v604_v22 = vpop.f32.mrf.mxu0  ;;  %v684_v27 = vadd.f32 %v683_v31, %v682_v29  ;;  %v11938_v29 = vmul.f32 %v10859_v21, %v11588_v39 }
 0x144   : > { %v11932_v31 = vadd.f32 %v11558_v20, %v604_v22 }
 0x145   : > { %10088 = vrot.lane.b32.xlu0 %v10097_v25, %s11437_s19  ;;  %v858_v18 = vmax.f32 %v673_v19, 1e-24  ;;  %v685_v6 = vrot.slane %v684_v27, 1  ;;  %v698_v19 = vrot.slane %v697_v62, 1 }
 0x146   : > { %16453 = vst [vmem:[#allocation41_spill] sm:$0xff] %v11932_v31  ;;  %v11954_v14 = vmul.f32 %v11932_v31, %v11932_v31 }
 0x147   : > { %10108 = vrot.lane.b32.xlu1 %v10097_v25, %s11439_s22  ;;  %10860 = vrsqrt.f32 %v858_v18  ;;  %v11924_v25 = vmul.f32 %v11911_v58, %v11911_v58  ;;  %v10122_v18 = vpack.i.bf16 %v11911_v58, %v11872_v13  ;;  %v686_v16 = vadd.f32 %v685_v6, %v684_v27 }
 0x148   : > { %v10132_v27 = vpack.i.bf16 %v11942_v44, %v11938_v29  ;;  %v699_v46 = vadd.f32 %v698_v19, %v697_v62  ;;  %v739_v6 = vsel %vm406_vm0, %v11950_v52, 0.0  ;;  %v11985_v19 = vmul.f32 %v10859_v21, %v11598_v45 }
 0x149   : > { %10093 = vrot.lane.b32.xlu0 %v10082_v3, %s11438_s20  ;;  %v731_v2 = vsel %vm406_vm0, %v11924_v25, 0.0  ;;  %v859_v61 = vmax.f32 %v686_v16, 1e-24 }
 0x14a   : > { %v732_v22 = vadd.f32 %v731_v2, %v730_v43  ;;  %v11977_v43 = vadd.f32 %v11902_v48, %v11558_v20  ;;  %v742_v20 = vsel %vm406_vm0, %v11973_v23, 0.0 }
 0x14b   : > { %2245 = vrot.lane.b32.xlu1 %v1666_v0, %s11440_s23  ;;  %10862 = vrsqrt.f32 %v859_v61  ;;  %v720_v0 = vrot.slane %v719_v42, 4  ;;  %v789_v61 = vadd.f32 %v788_v60, %v787_v11 }
 0x14c   : > { %16455 = vst [vmem:[#allocation43_spill] sm:$0xff] %v11977_v43  ;;  %v733_v62 = vrot.slane %v732_v22, 4  ;;  %v11991_v48 = vmul.f32 %v11977_v43, %v11977_v43 }
 0x14d   : > { %10103 = vrot.lane.b32.xlu0 %v10082_v3, %s11439_s22  ;;  %v1665_v3 = vpack.c.bf16 %v11754_v59, %v11751_v56  ;;  %v740_v56 = vsel %vm406_vm0, %v11954_v14, 0.0  ;;  %v860_v59 = vmax.f32 %v699_v46, 1e-24  ;;  %v721_v37 = vadd.f32 %v720_v0, %v719_v42 }
 0x14e   : > { %v11982_v42 = vmul.f32 %v10859_v21, %v11602_v47  ;;  %16456 = vst [vmem:[#allocation44_spill] sm:$0xff] %v11991_v48 }
 0x14f   : > { %10123 = vrot.lane.b32.xlu1 %v10122_v18, %s11439_s22  ;;  %10864 = vrsqrt.f32 %v860_v59  ;;  %v722_v16 = vrot.slane %v721_v37, 2  ;;  %v734_v59 = vadd.f32 %v733_v62, %v732_v22  ;;  %v744_v22 = vsel %vm406_vm0, %v11991_v48, 0.0 }
 0x150   : > { %v793_v62 = vsel %vm752_vm1, %v11796_v49, 0.0 }
 0x151   : > { %2243 = vrot.lane.b32.xlu0 %v1665_v3, %s11440_s23  ;;  %v741_v3 = vadd.f32 %v740_v56, %v739_v6  ;;  %v723_v0 = vadd.f32 %v722_v16, %v721_v37  ;;  %v790_v56 = vrot.slane %v789_v61, 1  ;;  %v735_v16 = vrot.slane %v734_v59, 2 }
 0x153   : > { %10133 = vrot.lane.b32.xlu1 %v10132_v27, %s11437_s19  ;;  %v724_v37 = vrot.slane %v723_v0, 1 }
 0x154   : > { %v10861_v2 = vpop.eup %10860 }
 0x155   : > { %10113 = vrot.lane.b32.xlu0 %v10122_v18, %s11437_s19  ;;  %v874_v46 = vmul.f32 0.35355338, %v10861_v2  ;;  %v743_v2 = vadd.f32 %v742_v20, %v741_v3  ;;  %v725_v10 = vadd.f32 %v724_v37, %v723_v0  ;;  %v791_v20 = vadd.f32 %v790_v56, %v789_v61 }
 0x156   : > { %v795_v56 = vsel %vm752_vm1, %v11806_v1, 0.0 }
 0x157   : > { %10143 = vrot.lane.b32.xlu1 %v10132_v27, %s11438_s20  ;;  %v11995_v11 = vmul.f32 %v874_v46, %v11602_v47  ;;  %v11998_v60 = vmul.f32 %v874_v46, %v11598_v45  ;;  %v12001_v21 = vmul.f32 %v874_v46, %v11588_v39  ;;  %v12004_v6 = vmul.f32 %v874_v46, %v11591_v40 }
 0x158   : > { %v10863_v45 = vpop.eup %10862  ;;  %v10157_v46 = vpack.i.bf16 %v11845_v36, %v11842_v28  ;;  %v792_v47 = vsel %vm752_vm1, %v11792_v41, 0.0  ;;  %v862_v39 = vmax.f32 %v725_v10, 1e-24  ;;  %v745_v0 = vadd.f32 %v744_v22, %v743_v2 }
 0x159   : > { %10118 = vrot.lane.b32.xlu0 %v10122_v18, %s11438_s20  ;;  %16457 = vst [vmem:[#allocation45_spill] sm:$0xff] %v12001_v21  ;;  %16458 = vst [vmem:[#allocation46_spill] sm:$0xff] %v12004_v6  ;;  %v10127_v18 = vpack.i.bf16 %v11985_v19, %v11982_v42  ;;  %v875_v40 = vmul.f32 0.35355338, %v10863_v45  ;;  %v915_v49 = vmax.f32 %v791_v20, 1e-24 }
 0x15a   : > { %10866 = vrsqrt.f32 %v862_v39  ;;  %v746_v2 = vrot.slane %v745_v0, 4  ;;  %v797_v22 = vsel %vm752_vm1, %v11830_v30, 0.0  ;;  %v10172_v39 = vpack.i.bf16 %v11998_v60, %v11995_v11 }
 0x15b   : > { %10153 = vrot.lane.b32.xlu1 %v10132_v27, %s11439_s22  ;;  %v736_v27 = vadd.f32 %v735_v16, %v734_v59  ;;  %v12029_v61 = vmul.f32 %v875_v40, %v11635_v8  ;;  %v12032_v41 = vmul.f32 %v875_v40, %v11638_v9  ;;  %v794_v59 = vadd.f32 %v793_v62, %v792_v47 }
 0x15c   : > { %v10865_v10 = vpop.eup %10864  ;;  %10868 = vrsqrt.f32 %v915_v49  ;;  %v12055_v30 = vmul.f32 %v875_v40, %v11612_v54  ;;  %v747_v47 = vadd.f32 %v746_v2, %v745_v0  ;;  %v12080_v0 = vmul.f32 %v11891_v17, %v11644_v12 }
 0x15d   : > { %10128 = vrot.lane.b32.xlu0 %v10127_v18, %s11437_s19  ;;  %v737_v48 = vrot.slane %v736_v27, 1  ;;  %v796_v62 = vadd.f32 %v795_v56, %v794_v59 }
 0x15e   : > { %16465 = vst [vmem:[#allocation53_spill] sm:$0xff] %v12055_v30 }
 0x15f   : > { %v12022_v37 = vpop.permute.xlu0 %9873  ;;  %10158 = vrot.lane.b32.xlu1 %v10157_v46, %s11437_s19  ;;  %v738_v45 = vadd.f32 %v737_v48, %v736_v27  ;;  %v876_v48 = vmul.f32 0.35355338, %v10865_v10  ;;  %v12049_v27 = vmul.f32 %v875_v40, %v11616_v57  ;;  %v10177_v40 = vpack.i.bf16 %v12004_v6, %v12001_v21 }
 0x160   : > { %16459 = vst [vmem:[#allocation47_spill] sm:$0xff] %v12022_v37  ;;  %v798_v2 = vadd.f32 %v797_v22, %v796_v62  ;;  %v1667_v6 = vpack.c.bf16 %v11985_v19, %v11982_v42 }
 0x161   : > { %v12025_v38 = vpop.permute.xlu1 %9888  ;;  %10138 = vrot.lane.b32.xlu0 %v10127_v18, %s11438_s20  ;;  %v863_v1 = vmax.f32 %v738_v45, 1e-24  ;;  %16463 = vst [vmem:[#allocation51_spill] sm:$0xff] %v12049_v27  ;;  %v12061_v10 = vmul.f32 %v876_v48, %v11695_v51  ;;  %v12065_v45 = vmul.f32 %v11891_v17, %v11628_v5  ;;  %v12073_v59 = vmul.f32 %v876_v48, %v11670_v32 }
 0x162   : > { %16460 = vst [vmem:[#allocation48_spill] sm:$0xff] %v12025_v38  ;;  %v12076_v56 = vmul.f32 %v876_v48, %v11673_v33 }
 0x163   : > { %v12036_v16 = vpop.permute.xlu0 %9878  ;;  %10163 = vrot.lane.b32.xlu1 %v10157_v46, %s11438_s20  ;;  %10870 = vrsqrt.f32 %v863_v1  ;;  %16467 = vst [vmem:[#allocation55_spill] sm:$0xff] %v12073_v59  ;;  %v748_v1 = vrot.slane %v747_v47, 2 }
 0x164   : > { %16461 = vst [vmem:[#allocation49_spill] sm:$0xff] %v12036_v16  ;;  %16468 = vst [vmem:[#allocation56_spill] sm:$0xff] %v12076_v56  ;;  %v799_v16 = vrot.slane %v798_v2, 4 }
 0x165   : > { %v12041_v3 = vpop.permute.xlu1 %9893  ;;  %10148 = vrot.lane.b32.xlu0 %v10127_v18, %s11439_s22  ;;  %v12058_v18 = vmul.f32 %v876_v48, %v11692_v50  ;;  %v749_v48 = vadd.f32 %v748_v1, %v747_v47 }
 0x166   : > { %16462 = vst [vmem:[#allocation50_spill] sm:$0xff] %v12041_v3 }
 0x167   : > { %v12051_v20 = vpop.permute.xlu0 %9883  ;;  %10173 = vrot.lane.b32.xlu1 %v10172_v39, %s11437_s19  ;;  %v10867_v62 = vpop.eup %10866 }
 0x168   : > { %16464 = vst [vmem:[#allocation52_spill] sm:$0xff] %v12051_v20 }
 0x169   : > { %v12067_v49 = vpop.permute.xlu1 %9898  ;;  %10168 = vrot.lane.b32.xlu0 %v10157_v46, %s11439_s22  ;;  %v878_v46 = vmul.f32 0.35355338, %v10867_v62  ;;  %v10869_v62 = vpop.eup %10868 }
 0x16a   : > { %16466 = vst [vmem:[#allocation54_spill] sm:$0xff] %v12067_v49 }
 0x16b   : > { %v12082_v20 = vpop.permute.xlu0 %9903  ;;  %10178 = vrot.lane.b32.xlu1 %v10177_v40, %s11437_s19  ;;  %v12103_v47 = vmul.f32 %v878_v46, %v11729_v34  ;;  %v12106_v1 = vmul.f32 %v878_v46, %v11732_v35  ;;  %v12109_v22 = vmul.f32 %v878_v46, %v11810_v4  ;;  %v12112_v17 = vmul.f32 %v878_v46, %v11813_v7 }
 0x16c   : > { %16469 = vst [vmem:[#allocation57_spill] sm:$0xff] %v12082_v20  ;;  %v750_v20 = vrot.slane %v749_v48, 1 }
 0x16d   : > { %v12089_v3 = vpop.permute.xlu1 %9923  ;;  %10183 = vrot.lane.b32.xlu0 %v10172_v39, %s11438_s20 }
 0x16e   : > { %16470 = vst [vmem:[#allocation58_spill] sm:$0xff] %v12089_v3  ;;  %v800_v3 = vadd.f32 %v799_v16, %v798_v2  ;;  %v12158_v16 = vmul.f32 %v10869_v62, %v11635_v8 }
 0x16f   : > { %v12096_v38 = vpop.permute.xlu0 %9908  ;;  %10188 = vrot.lane.b32.xlu1 %v10177_v40, %s11438_s20 }
 0x170   : > { %16471 = vst [vmem:[#allocation59_spill] sm:$0xff] %v12096_v38  ;;  %v751_v38 = vadd.f32 %v750_v20, %v749_v48  ;;  %v801_v2 = vrot.slane %v800_v3, 2 }
 0x171   : > { %v12099_v49 = vpop.permute.xlu1 %9928  ;;  %10193 = vrot.lane.b32.xlu0 %v10172_v39, %s11439_s22  ;;  %v1668_v39 = vpack.c.bf16 %v11942_v44, %v11938_v29  ;;  %v10202_v29 = vpack.i.bf16 %v11977_v43, %v11961_v55  ;;  %v12134_v44 = vmul.f32 %v10869_v62, %v11616_v57 }
 0x172   : > { %16472 = vst [vmem:[#allocation60_spill] sm:$0xff] %v12099_v49  ;;  %v10871_v49 = vpop.eup %10870  ;;  %v864_v46 = vmax.f32 %v751_v38, 1e-24  ;;  %v12137_v38 = vmul.f32 %v10869_v62, %v11612_v54 }
 0x173   : > { %v12114_v37 = vpop.permute.xlu0 %9913  ;;  %10198 = vrot.lane.b32.xlu1 %v10177_v40, %s11439_s22  ;;  %v879_v40 = vmul.f32 0.35355338, %v10871_v49 }
 0x174   : > { %16473 = vst [vmem:[#allocation61_spill] sm:$0xff] %v12114_v37  ;;  %10872 = vrsqrt.f32 %v864_v46  ;;  %v802_v46 = vadd.f32 %v801_v2, %v800_v3 }
 0x175   : > { %v12119_v21 = vpop.permute.xlu1 %9933  ;;  %2313 = vrot.lane.b32.xlu0 %v1668_v39, %s11440_s23  ;;  %v12143_v19 = vmul.f32 %v879_v40, %v11872_v13  ;;  %v12146_v49 = vmul.f32 %v879_v40, %v11911_v58  ;;  %v12152_v39 = vmul.f32 %v879_v40, %v11845_v36 }
 0x176   : > { %16474 = vst [vmem:[#allocation62_spill] sm:$0xff] %v12119_v21  ;;  %v10222_v21 = vpack.i.bf16 %v12137_v38, %v12134_v44 }
 0x177   : > { %v12128_v48 = vpop.permute.xlu0 %9918  ;;  %2311 = vrot.lane.b32.xlu1 %v1667_v6, %s11440_s23  ;;  %v12149_v6 = vmul.f32 %v879_v40, %v11842_v28  ;;  %v803_v40 = vrot.slane %v802_v46, 1 }
 0x178   : > { %16475 = vst [vmem:[#allocation63_spill] sm:$0xff] %v12128_v48 }
 0x179   : > { %v12139_v42 = vpop.permute.xlu1 %9943  ;;  %10203 = vrot.lane.b32.xlu0 %v10202_v29, %s11437_s19 }
 0x17a   : > { %16476 = vst [vmem:[#allocation64_spill] sm:$0xff] %v12139_v42  ;;  %v12161_v42 = vmul.f32 %v10869_v62, %v11638_v9 }
 0x17b   : > { %v12154_v20 = vpop.permute.xlu0 %9938  ;;  %10213 = vrot.lane.b32.xlu1 %v10202_v29, %s11439_s22 }
 0x17c   : > { %16477 = vst [vmem:[#allocation65_spill] sm:$0xff] %v12154_v20  ;;  %v10217_v62 = vpack.i.bf16 %v12161_v42, %v12158_v16 }
 0x17d   : > { %v12163_v37 = vpop.permute.xlu1 %9948  ;;  %10208 = vrot.lane.b32.xlu0 %v10202_v29, %s11438_s20  ;;  %v804_v29 = vadd.f32 %v803_v40, %v802_v46 }
 0x17e   : > { %16478 = vst [vmem:[#allocation66_spill] sm:$0xff] %v12163_v37 }
 0x17f   : > { %v12172_v20 = vpop.permute.xlu0 %9958  ;;  %10223 = vrot.lane.b32.xlu1 %v10222_v21, %s11437_s19 }
 0x180   : > { %16479 = vst [vmem:[#allocation67_spill] sm:$0xff] %v12172_v20  ;;  %v916_v20 = vmax.f32 %v804_v29, 1e-24 }
 0x181   : > { %v12177_v37 = vpop.permute.xlu1 %9953  ;;  %10218 = vrot.lane.b32.xlu0 %v10217_v62, %s11437_s19  ;;  %v10873_v3 = vpop.eup %10872 }
 0x182   : > { %16480 = vst [vmem:[#allocation68_spill] sm:$0xff] %v12177_v37  ;;  %v880_v2 = vmul.f32 0.35355338, %v10873_v3  ;;  %v10247_v3 = vpack.i.bf16 %v11932_v31, %v11927_v26  ;;  %10874 = vrsqrt.f32 %v916_v20  ;;  %v10262_v20 = vpack.i.bf16 %v12032_v41, %v12029_v61 }
 0x183   : > { %v12180_v48 = vpop.permute.xlu0 %9963  ;;  %10233 = vrot.lane.b32.xlu1 %v10222_v21, %s11438_s20 }
 0x184   : > { %16481 = vst [vmem:[#allocation69_spill] sm:$0xff] %v12180_v48  ;;  %v12190_v37 = vmul.f32 %v880_v2, %v11961_v55  ;;  %v12193_v46 = vmul.f32 %v880_v2, %v11977_v43  ;;  %v12196_v40 = vmul.f32 %v880_v2, %v11927_v26  ;;  %v12199_v48 = vmul.f32 %v880_v2, %v11932_v31 }
 0x185   : > { %v12183_v9 = vpop.permute.xlu1 %9973  ;;  %10228 = vrot.lane.b32.xlu0 %v10217_v62, %s11438_s20  ;;  %v10267_v2 = vpack.i.bf16 %v12055_v30, %v12049_v27 }
 0x186   : > { %16482 = vst [vmem:[#allocation70_spill] sm:$0xff] %v12183_v9  ;;  %16484 = vst [vmem:[#allocation72_spill] sm:$0xff] %v12190_v37 }
 0x187   : > { %v12186_v8 = vpop.permute.xlu0 %9968  ;;  %10243 = vrot.lane.b32.xlu1 %v10222_v21, %s11439_s22  ;;  %16485 = vst [vmem:[#allocation73_spill] sm:$0xff] %v12193_v46  ;;  %16486 = vst [vmem:[#allocation74_spill] sm:$0xff] %v12196_v40  ;;  %v16489_v21 = vld [vmem:[#allocation25_spill] sm:$0xff] }
 0x188   : > { %16483 = vst [vmem:[#allocation71_spill] sm:$0xff] %v12186_v8  ;;  %16487 = vst [vmem:[#allocation75_spill] sm:$0xff] %v12199_v48  ;;  %v812_v29 = vrot.slane %v16489_v21, 4 }
 0x189   : > { %v12201_v9 = vpop.permute.xlu1 %9978  ;;  %10238 = vrot.lane.b32.xlu0 %v10217_v62, %s11439_s22 }
 0x18a   : > { %16488 = vst [vmem:[#allocation76_spill] sm:$0xff] %v12201_v9  ;;  %v813_v62 = vadd.f32 %v812_v29, %v16489_v21 }
 0x18b   : > { %v12207_v8 = vpop.permute.xlu0 %9988  ;;  %10248 = vrot.lane.b32.xlu1 %v10247_v3, %s11437_s19 }
 0x18c   : > { %16490 = vst [vmem:[#allocation25_spill] sm:$0xff] %v12207_v8  ;;  %v814_v54 = vrot.slane %v813_v62, 2 }
 0x18d   : > { %v12214_v57 = vpop.permute.xlu1 %9983  ;;  %10258 = vrot.lane.b32.xlu0 %v10247_v3, %s11439_s22 }
 0x18e   : > { %16491 = vst [vmem:[#allocation77_spill] sm:$0xff] %v12214_v57  ;;  %v815_v48 = vadd.f32 %v814_v54, %v813_v62  ;;  %v1669_v54 = vpack.c.bf16 %v12161_v42, %v12158_v16  ;;  %v823_v16 = vsel %vm752_vm1, %v11889_v15, 0.0 }
 0x18f   : > { %v12218_v9 = vpop.permute.xlu0 %9993  ;;  %10253 = vrot.lane.b32.xlu1 %v10247_v3, %s11438_s20  ;;  %v16496_v3 = vld [vmem:[#allocation30_spill] sm:$0xff]  ;;  %v10875_v27 = vpop.eup %10874 }
 0x190   : > { %16492 = vst [vmem:[#allocation78_spill] sm:$0xff] %v12218_v9  ;;  %v818_v29 = vsel %vm752_vm1, %v16496_v3, 0.0  ;;  %v16497_v9 = vld [vmem:[#allocation31_spill] sm:$0xff]  ;;  %v816_v37 = vrot.slane %v815_v48, 1 }
 0x191   : > { %v12223_v8 = vpop.permute.xlu1 %10003  ;;  %10263 = vrot.lane.b32.xlu0 %v10262_v20, %s11437_s19 }
 0x192   : > { %16493 = vst [vmem:[#allocation79_spill] sm:$0xff] %v12223_v8  ;;  %v819_v8 = vsel %vm752_vm1, %v16497_v9, 0.0  ;;  %v12252_v9 = vmul.f32 %v10875_v27, %v11692_v50  ;;  %v817_v42 = vadd.f32 %v816_v37, %v815_v48 }
 0x193   : > { %v12228_v57 = vpop.permute.xlu0 %9998  ;;  %10268 = vrot.lane.b32.xlu1 %v10267_v2, %s11437_s19  ;;  %v820_v30 = vadd.f32 %v819_v8, %v818_v29  ;;  %v942_v8 = vmul.f32 %v10875_v27, %v11695_v51 }
 0x194   : > { %16494 = vst [vmem:[#allocation80_spill] sm:$0xff] %v12228_v57 }
 0x195   : > { %v12231_v21 = vpop.permute.xlu1 %10008  ;;  %10273 = vrot.lane.b32.xlu0 %v10262_v20, %s11438_s20 }
 0x196   : > { %16495 = vst [vmem:[#allocation81_spill] sm:$0xff] %v12231_v21  ;;  %v16500_v21 = vld [vmem:[#allocation35_spill] sm:$0xff] }
 0x197   : > { %v12238_v40 = vpop.permute.xlu0 %10018  ;;  %10278 = vrot.lane.b32.xlu1 %v10267_v2, %s11438_s20  ;;  %v821_v46 = vsel %vm752_vm1, %v16500_v21, 0.0  ;;  %v943_v21 = vmul.f32 %v10875_v27, %v11670_v32 }
 0x198   : > { %16498 = vst [vmem:[#allocation30_spill] sm:$0xff] %v12238_v40  ;;  %v822_v62 = vadd.f32 %v821_v46, %v820_v30  ;;  %v10292_v30 = vpack.i.bf16 %v942_v8, %v12252_v9 }
 0x199   : > { %v12241_v57 = vpop.permute.xlu1 %10013  ;;  %10283 = vrot.lane.b32.xlu0 %v10262_v20, %s11439_s22  ;;  %v1670_v20 = vpack.c.bf16 %v12137_v38, %v12134_v44  ;;  %v917_v38 = vmax.f32 %v817_v42, 1e-24 }
 0x19a   : > { %16499 = vst [vmem:[#allocation31_spill] sm:$0xff] %v12241_v57  ;;  %v824_v46 = vadd.f32 %v823_v16, %v822_v62  ;;  %v10322_v16 = vpack.i.bf16 %v12061_v10, %v12058_v18 }
 0x19b   : > { %v12246_v31 = vpop.permute.xlu0 %10023  ;;  %10288 = vrot.lane.b32.xlu1 %v10267_v2, %s11439_s22  ;;  %v944_v2 = vmul.f32 %v10875_v27, %v11673_v33  ;;  %10876 = vrsqrt.f32 %v917_v38  ;;  %v10327_v38 = vpack.i.bf16 %v12076_v56, %v12073_v59  ;;  %v16510_v33 = vld [vmem:[#allocation16_spill] sm:$0xff] }
 0x19c   : > { %16501 = vst [vmem:[#allocation35_spill] sm:$0xff] %v12246_v31  ;;  %v825_v27 = vrot.slane %v824_v46, 4  ;;  %v16509_v31 = vld [vmem:[#allocation38_spill] sm:$0xff] }
 0x19d   : > { %v12255_v3 = vpop.permute.xlu1 %10033  ;;  %2378 = vrot.lane.b32.xlu0 %v1669_v54, %s11440_s23  ;;  %v10297_v44 = vpack.i.bf16 %v944_v2, %v943_v21  ;;  %v832_v51 = vsel %vm752_vm1, %v16509_v31, 0.0  ;;  %v834_v31 = vsel %vm752_vm1, %v11896_v24, 0.0  ;;  %v836_v24 = vsel %vm752_vm1, %v11924_v25, 0.0 }
 0x19e   : > { %16502 = vst [vmem:[#allocation82_spill] sm:$0xff] %v12255_v3  ;;  %v826_v48 = vadd.f32 %v825_v27, %v824_v46 }
 0x19f   : > { %v12264_v29 = vpop.permute.xlu0 %10028  ;;  %2380 = vrot.lane.b32.xlu1 %v1670_v20, %s11440_s23 }
 0x1a0   : > { %16503 = vst [vmem:[#allocation83_spill] sm:$0xff] %v12264_v29  ;;  %v827_v42 = vrot.slane %v826_v48, 2  ;;  %v16508_v29 = vld [vmem:[#allocation37_spill] sm:$0xff] }
 0x1a1   : > { %v12268_v3 = vpop.permute.xlu1 %10043  ;;  %10293 = vrot.lane.b32.xlu0 %v10292_v30, %s11437_s19 }
 0x1a3   : > { %v12271_v54 = vpop.permute.xlu0 %10038  ;;  %10298 = vrot.lane.b32.xlu1 %v10297_v44, %s11437_s19 }
 0x1a5   : > { %v12274_v15 = vpop.permute.xlu1 %10053  ;;  %10303 = vrot.lane.b32.xlu0 %v10292_v30, %s11438_s20 }
 0x1a7   : > { %v12277_v37 = vpop.permute.xlu0 %10048  ;;  %10308 = vrot.lane.b32.xlu1 %v10297_v44, %s11438_s20 }
 0x1a8   : > { %v10877_v57 = vpop.eup %10876 }
 0x1a9   : > { %v12280_v62 = vpop.permute.xlu1 %10063  ;;  %10313 = vrot.lane.b32.xlu0 %v10292_v30, %s11439_s22  ;;  %v828_v30 = vadd.f32 %v827_v42, %v826_v48  ;;  %v12313_v32 = vmul.f32 %v10877_v57, %v16510_v33 }
 0x1ab   : > { %v12283_v20 = vpop.permute.xlu0 %10058  ;;  %10318 = vrot.lane.b32.xlu1 %v10297_v44, %s11439_s22  ;;  %v829_v50 = vrot.slane %v828_v30, 1 }
 0x1ad   : > { %v12288_v40 = vpop.permute.xlu1 %10068  ;;  %10323 = vrot.lane.b32.xlu0 %v10322_v16, %s11437_s19 }
 0x1ae   : > { %16504 = vst [vmem:[#allocation84_spill] sm:$0xff] %v12288_v40  ;;  %v831_v40 = vsel %vm752_vm1, %v16508_v29, 0.0  ;;  %v830_v29 = vadd.f32 %v829_v50, %v828_v30 }
 0x1af   : > { %v12293_v46 = vpop.permute.xlu0 %10078  ;;  %10328 = vrot.lane.b32.xlu1 %v10327_v38, %s11437_s19  ;;  %v833_v48 = vadd.f32 %v832_v51, %v831_v40  ;;  %v1671_v51 = vpack.c.bf16 %v942_v8, %v12252_v9  ;;  %v947_v40 = vmul.f32 %v10877_v57, %v11628_v5 }
 0x1b0   : > { %16505 = vst [vmem:[#allocation85_spill] sm:$0xff] %v12293_v46  ;;  %v918_v50 = vmax.f32 %v830_v29, 1e-24 }
 0x1b1   : > { %v12296_v27 = vpop.permute.xlu1 %10073  ;;  %10333 = vrot.lane.b32.xlu0 %v10322_v16, %s11438_s20 }
 0x1b2   : > { %16506 = vst [vmem:[#allocation86_spill] sm:$0xff] %v12296_v27  ;;  %v1672_v27 = vpack.c.bf16 %v944_v2, %v943_v21  ;;  %v948_v21 = vmul.f32 %v10877_v57, %v11644_v12  ;;  %v835_v2 = vadd.f32 %v834_v31, %v833_v48  ;;  %10878 = vrsqrt.f32 %v918_v50 }
 0x1b3   : > { %10338 = vrot.lane.b32.xlu1 %v10327_v38, %s11438_s20  ;;  %v12300_v44 = vpop.permute.xlu0 %10083 }
 0x1b4   : > { %16507 = vst [vmem:[#allocation87_spill] sm:$0xff] %v12300_v44  ;;  %v16511_v44 = vld [vmem:[#allocation20_spill] sm:$0xff]  ;;  %v10357_v9 = vpack.i.bf16 %v948_v21, %v947_v40  ;;  %v837_v8 = vadd.f32 %v836_v24, %v835_v2 }
 0x1b5   : > { %v12306_v46 = vpop.permute.xlu1 %10098  ;;  %10343 = vrot.lane.b32.xlu0 %v10322_v16, %s11439_s22  ;;  %v12316_v59 = vmul.f32 %v10877_v57, %v16511_v44 }
 0x1b6   : > { %v838_v25 = vrot.slane %v837_v8, 4 }
 0x1b7   : > { %10348 = vrot.lane.b32.xlu1 %v10327_v38, %s11439_s22  ;;  %v12310_v42 = vpop.permute.xlu0 %10088  ;;  %v10352_v38 = vpack.i.bf16 %v12316_v59, %v12313_v32 }
 0x1b8   : > { %v839_v2 = vadd.f32 %v838_v25, %v837_v8 }
 0x1b9   : > { %v12320_v56 = vpop.permute.xlu1 %10108  ;;  %2447 = vrot.lane.b32.xlu0 %v1672_v27, %s11440_s23 }
 0x1ba   : > { %16512 = vst [vmem:[#allocation37_spill] sm:$0xff] %v12320_v56  ;;  %v840_v8 = vrot.slane %v839_v2, 2  ;;  %v16547_v56 = vld [vmem:[#allocation51_spill] sm:$0xff] }
 0x1bb   : > { %2445 = vrot.lane.b32.xlu1 %v1671_v51, %s11440_s23  ;;  %v12327_v16 = vpop.permute.xlu0 %10093 }
 0x1bd   : > { %v2246_v30 = vpop.permute.xlu1 %2245  ;;  %10353 = vrot.lane.b32.xlu0 %v10352_v38, %s11437_s19 }
 0x1be   : > { %9779 = vmatprep.subr.msk.bf16.mxu1 %vm2247_vm2, %v2246_v30  ;;  %v2258_v57 = vsel %vm2247_vm2, %v2246_v30, 0  ;;  %v10387_v30 = vpack.i.bf16 %v12080_v0, %v12065_v45 }
 0x1bf   : > { %10358 = vrot.lane.b32.xlu1 %v10357_v9, %s11437_s19  ;;  %9228 = vmatpush3.bf16.xpose.msra.mxu1 %v2258_v57  ;;  %v12337_v27 = vpop.permute.xlu0 %10103  ;;  %v844_v57 = vsel %vm752_vm1, %v11950_v52, 0.0  ;;  %v16517_v52 = vld [vmem:[#allocation34_spill] sm:$0xff] }
 0x1c0   : > { %16513 = vst [vmem:[#allocation38_spill] sm:$0xff] %v12337_v27 }
 0x1c1   : > { %v12339_v48 = vpop.permute.xlu1 %10123  ;;  %10363 = vrot.lane.b32.xlu0 %v10352_v38, %s11438_s20 }
 0x1c2   : > { %16514 = vst [vmem:[#allocation88_spill] sm:$0xff] %v12339_v48  ;;  %v847_v48 = vsel %vm752_vm1, %v11973_v23, 0.0 }
 0x1c3   : > { %10368 = vrot.lane.b32.xlu1 %v10357_v9, %s11438_s20  ;;  %v2244_v31 = vpop.permute.xlu0 %2243 }
 0x1c4   : > { %9780 = vmatprep.subr.msk.bf16.mxu1 %vm2247_vm2, %v2244_v31  ;;  %v2255_v51 = vsel %vm2247_vm2, %v2244_v31, 0 }
 0x1c5   : > { %v12344_v29 = vpop.permute.xlu1 %10133  ;;  %10373 = vrot.lane.b32.xlu0 %v10352_v38, %s11439_s22  ;;  %v845_v38 = vsel %vm752_vm1, %v11954_v14, 0.0  ;;  %v841_v14 = vadd.f32 %v840_v8, %v839_v2  ;;  %v16521_v2 = vld [vmem:[#allocation44_spill] sm:$0xff] }
 0x1c6   : > { %v846_v25 = vadd.f32 %v845_v38, %v844_v57  ;;  %v16519_v57 = vpack.c.bf16 %v11998_v60, %v11995_v11  ;;  %v1674_v11 = vpack.c.bf16 %v948_v21, %v947_v40 }
 0x1c7   : > { %10378 = vrot.lane.b32.xlu1 %v10357_v9, %s11439_s22  ;;  %9230 = vmatpush3.bf16.xpose.msra.mxu1 %v2255_v51  ;;  %v12349_v24 = vpop.permute.xlu0 %10113  ;;  %v10879_v51 = vpop.eup %10878  ;;  %v842_v8 = vrot.slane %v841_v14, 1 }
 0x1c8   : > { %16515 = vst [vmem:[#allocation89_spill] sm:$0xff] %v12349_v24  ;;  %v16518_v24 = vpack.c.bf16 %v11856_v53, %v16517_v52  ;;  %v848_v38 = vadd.f32 %v847_v48, %v846_v25  ;;  %v951_v53 = vmul.f32 %v10879_v51, %v11729_v34  ;;  %v952_v23 = vmul.f32 %v10879_v51, %v11732_v35 }
 0x1c9   : > { %v12351_v50 = vpop.permute.xlu1 %10143  ;;  %10383 = vrot.lane.b32.xlu0 %v11929_v63, %s11437_s19 }
 0x1ca   : > { %v10417_v25 = vpack.i.bf16 %v952_v23, %v951_v53 }
 0x1cb   : > { %10388 = vrot.lane.b32.xlu1 %v10387_v30, %s11437_s19  ;;  %v12362_v9 = vpop.permute.xlu0 %10118 }
 0x1cc   : > { %16516 = vst [vmem:[#allocation90_spill] sm:$0xff] %v12362_v9 }
 0x1cd   : > { %v12364_v31 = vpop.permute.xlu1 %10153  ;;  %10393 = vrot.lane.b32.xlu0 %v11929_v63, %s11438_s20 }
 0x1ce   : > { %9232 = vmatmul.mubr.msk.bf16.vlgmr.msra.gmra.mxu1 %vm2247_vm2, %v16518_v24  ;;  %v849_v24 = vsel %vm752_vm1, %v16521_v2, 0.0  ;;  %v1673_v2 = vpack.c.bf16 %v12316_v59, %v12313_v32 }
 0x1cf   : > { %10398 = vrot.lane.b32.xlu1 %v10387_v30, %s11438_s20  ;;  %v12375_v44 = vpop.permute.xlu0 %10128  ;;  %9239 = vmatprep.mubr.msk.bf16.mxu1 %vm2247_vm2, %v16519_v57  ;;  %v850_v60 = vadd.f32 %v849_v24, %v848_v38 }
 0x1d1   : > { %v12381_v9 = vpop.permute.xlu1 %10158  ;;  %10403 = vrot.lane.b32.xlu0 %v11929_v63, %s11439_s22  ;;  %v843_v63 = vadd.f32 %v842_v8, %v841_v14  ;;  %v851_v33 = vrot.slane %v850_v60, 4 }
 0x1d2   : > { %16520 = vst [vmem:[#allocation34_spill] sm:$0xff] %v12381_v9  ;;  %v949_v9 = vmul.f32 %v10879_v51, %v11810_v4  ;;  %v1676_v4 = vpack.c.bf16 %v952_v23, %v951_v53 }
 0x1d3   : > { %10408 = vrot.lane.b32.xlu1 %v10387_v30, %s11439_s22  ;;  %v12390_v52 = vpop.permute.xlu0 %10138  ;;  %v950_v30 = vmul.f32 %v10879_v51, %v11813_v7  ;;  %v919_v21 = vmax.f32 %v843_v63, 1e-24  ;;  %v852_v24 = vadd.f32 %v851_v33, %v850_v60 }
 0x1d5   : > { %v12392_v48 = vpop.permute.xlu1 %10163  ;;  %2514 = vrot.lane.b32.xlu0 %v1674_v11, %s11440_s23  ;;  %v10412_v38 = vpack.i.bf16 %v950_v30, %v949_v9  ;;  %10880 = vrsqrt.f32 %v919_v21  ;;  %v853_v59 = vrot.slane %v852_v24, 2  ;;  %v10447_v11 = vpack.i.bf16 %v12106_v1, %v12103_v47 }
 0x1d6   : > { %16522 = vst [vmem:[#allocation44_spill] sm:$0xff] %v12392_v48 }
 0x1d7   : > { %10418 = vrot.lane.b32.xlu1 %v10417_v25, %s11437_s19  ;;  %v12396_v57 = vpop.permute.xlu0 %10148  ;;  %v854_v60 = vadd.f32 %v853_v59, %v852_v24 }
 0x1d9   : > { %v12402_v40 = vpop.permute.xlu1 %10173  ;;  %2512 = vrot.lane.b32.xlu0 %v1673_v2, %s11440_s23  ;;  %v10442_v2 = vpack.i.bf16 %v12112_v17, %v12109_v22 }
 0x1db   : > { %10428 = vrot.lane.b32.xlu1 %v10417_v25, %s11438_s20  ;;  %v12406_v14 = vpop.permute.xlu0 %10168 }
 0x1dc   : > { %16523 = vst [vmem:[#allocation91_spill] sm:$0xff] %v12406_v14  ;;  %v855_v14 = vrot.slane %v854_v60, 1 }
 0x1dd   : > { %v12408_v8 = vpop.permute.xlu1 %10178  ;;  %10413 = vrot.lane.b32.xlu0 %v10412_v38, %s11437_s19 }
 0x1de   : > { %v856_v59 = vadd.f32 %v855_v14, %v854_v60  ;;  %v1675_v14 = vpack.c.bf16 %v950_v30, %v949_v9  ;;  %v16531_v30 = vld [vmem:[#allocation46_spill] sm:$0xff] }
 0x1df   : > { %10438 = vrot.lane.b32.xlu1 %v10417_v25, %s11439_s22  ;;  %v12412_v32 = vpop.permute.xlu0 %10183 }
 0x1e0   : > { %16524 = vst [vmem:[#allocation92_spill] sm:$0xff] %v12412_v32  ;;  %v10046_v32 = vunpack.i.h.bf16 %v12268_v3 }
 0x1e1   : > { %v12414_v51 = vpop.permute.xlu1 %10188  ;;  %10423 = vrot.lane.b32.xlu0 %v10412_v38, %s11438_s20 }
 0x1e2   : > { %16525 = vst [vmem:[#allocation93_spill] sm:$0xff] %v12414_v51  ;;  %v10881_v24 = vpop.eup %10880 }
 0x1e3   : > { %10448 = vrot.lane.b32.xlu1 %v10447_v11, %s11437_s19  ;;  %v12420_v33 = vpop.permute.xlu0 %10193  ;;  %v12442_v12 = vmul.f32 %v10881_v24, %v11842_v28  ;;  %v955_v53 = vmul.f32 %v10881_v24, %v11872_v13  ;;  %v16541_v13 = vld [vmem:[#allocation41_spill] sm:$0xff] }
 0x1e4   : > { %16526 = vst [vmem:[#allocation94_spill] sm:$0xff] %v12420_v33 }
 0x1e5   : > { %v12422_v63 = vpop.permute.xlu1 %10198  ;;  %10433 = vrot.lane.b32.xlu0 %v10412_v38, %s11439_s22 }
 0x1e6   : > { %16527 = vst [vmem:[#allocation95_spill] sm:$0xff] %v12422_v63 }
 0x1e7   : > { %10458 = vrot.lane.b32.xlu1 %v10447_v11, %s11438_s20  ;;  %v2314_v25 = vpop.permute.xlu0 %2313 }
 0x1e8   : > { %9781 = vmatprep.subr.msk.bf16.mxu1 %vm2247_vm2, %v2314_v25  ;;  %v2325_v21 = vsel %vm2247_vm2, %v2314_v25, 0 }
 0x1e9   : > { %v2312_v48 = vpop.permute.xlu1 %2311  ;;  %10443 = vrot.lane.b32.xlu0 %v10442_v2, %s11437_s19  ;;  %9236 = vmatpush3.bf16.xpose.msra.mxu1 %v2325_v21  ;;  %v12445_v21 = vmul.f32 %v10881_v24, %v11845_v36 }
 0x1ea   : > { %9782 = vmatprep.subr.msk.bf16.mxu1 %vm2247_vm2, %v2312_v48 }
 0x1eb   : > { %10468 = vrot.lane.b32.xlu1 %v10447_v11, %s11439_s22  ;;  %v12433_v38 = vpop.permute.xlu0 %10203  ;;  %v2322_v11 = vsel %vm2247_vm2, %v2312_v48, 0  ;;  %v10472_v60 = vpack.i.bf16 %v12445_v21, %v12442_v12 }
 0x1ec   : > { %16528 = vst [vmem:[#allocation96_spill] sm:$0xff] %v12433_v38  ;;  %v920_v38 = vmax.f32 %v856_v59, 1e-24 }
 0x1ed   : > { %v12435_v7 = vpop.permute.xlu1 %10213  ;;  %10453 = vrot.lane.b32.xlu0 %v10442_v2, %s11438_s20 }
 0x1ee   : > { %16529 = vst [vmem:[#allocation97_spill] sm:$0xff] %v12435_v7  ;;  %10882 = vrsqrt.f32 %v920_v38  ;;  %v16534_v38 = vpack.c.bf16 %v12032_v41, %v12029_v61 }
 0x1ef   : > { %2581 = vrot.lane.b32.xlu1 %v1676_v4, %s11440_s23  ;;  %v12439_v25 = vpop.permute.xlu0 %10208  ;;  %v956_v4 = vmul.f32 %v10881_v24, %v11911_v58 }
 0x1f0   : > { %16530 = vst [vmem:[#allocation98_spill] sm:$0xff] %v12439_v25 }
 0x1f1   : > { %v12448_v5 = vpop.permute.xlu1 %10223  ;;  %10463 = vrot.lane.b32.xlu0 %v10442_v2, %s11439_s22  ;;  %9238 = vmatpush3.bf16.xpose.msra.mxu1 %v2322_v11  ;;  %v10477_v59 = vpack.i.bf16 %v956_v4, %v955_v53  ;;  %v16532_v2 = vld [vmem:[#allocation45_spill] sm:$0xff] }
 0x1f2   : > { %v16533_v24 = vpack.c.bf16 %v16531_v30, %v16532_v2  ;;  %v10507_v30 = vpack.i.bf16 %v12146_v49, %v12143_v19 }
 0x1f3   : > { %2579 = vrot.lane.b32.xlu1 %v1675_v14, %s11440_s23  ;;  %v12454_v23 = vpop.permute.xlu0 %10218 }
 0x1f5   : > { %v12458_v48 = vpop.permute.xlu1 %10233  ;;  %10473 = vrot.lane.b32.xlu0 %v10472_v60, %s11437_s19 }
 0x1f7   : > { %10478 = vrot.lane.b32.xlu1 %v10477_v59, %s11437_s19  ;;  %v12462_v9 = vpop.permute.xlu0 %10228 }
 0x1f8   : > { %9240 = vmatmul.mubr.msk.bf16.vlgmr.msra.gmra.mxu1 %vm2247_vm2, %v16533_v24 }
 0x1f9   : > { %v12468_v11 = vpop.permute.xlu1 %10243  ;;  %10483 = vrot.lane.b32.xlu0 %v10472_v60, %s11438_s20  ;;  %9247 = vmatprep.mubr.msk.bf16.mxu1 %vm2247_vm2, %v16534_v38  ;;  %v10502_v38 = vpack.i.bf16 %v12152_v39, %v12149_v6 }
 0x1fb   : > { %10488 = vrot.lane.b32.xlu1 %v10477_v59, %s11438_s20  ;;  %v12476_v14 = vpop.permute.xlu0 %10238  ;;  %v10883_v61 = vpop.eup %10882 }
 0x1fc   : > { %v959_v25 = vmul.f32 %v10883_v61, %v11961_v55  ;;  %v957_v58 = vmul.f32 %v10883_v61, %v11927_v26  ;;  %v1678_v55 = vpack.c.bf16 %v956_v4, %v955_v53  ;;  %v16543_v4 = vld [vmem:[#allocation73_spill] sm:$0xff]  ;;  %v16545_v26 = vld [vmem:[#allocation75_spill] sm:$0xff] }
 0x1fd   : > { %v12478_v7 = vpop.permute.xlu1 %10248  ;;  %10493 = vrot.lane.b32.xlu0 %v10472_v60, %s11439_s22 }
 0x1fe   : > { %16535 = vst [vmem:[#allocation46_spill] sm:$0xff] %v12478_v7 }
 0x1ff   : > { %10508 = vrot.lane.b32.xlu1 %v10507_v30, %s11437_s19  ;;  %v12484_v2 = vpop.permute.xlu0 %10258 }
 0x200   : > { %16536 = vst [vmem:[#allocation45_spill] sm:$0xff] %v12484_v2  ;;  %v960_v2 = vmul.f32 %v10883_v61, %v11977_v43  ;;  %v958_v43 = vmul.f32 %v10883_v61, %v16541_v13  ;;  %v1677_v61 = vpack.c.bf16 %v12445_v21, %v12442_v12 }
 0x201   : > { %v12486_v24 = vpop.permute.xlu1 %10253  ;;  %10498 = vrot.lane.b32.xlu0 %v10477_v59, %s11439_s22 }
 0x202   : > { %16537 = vst [vmem:[#allocation99_spill] sm:$0xff] %v12486_v24  ;;  %v10537_v7 = vpack.i.bf16 %v960_v2, %v959_v25  ;;  %v10552_v34 = vpack.i.bf16 %v958_v43, %v957_v58 }
 0x203   : > { %10518 = vrot.lane.b32.xlu1 %v10507_v30, %s11438_s20  ;;  %v12490_v41 = vpop.permute.xlu0 %10263 }
 0x205   : > { %v12494_v60 = vpop.permute.xlu1 %10268  ;;  %10503 = vrot.lane.b32.xlu0 %v10502_v38, %s11437_s19 }
 0x207   : > { %10528 = vrot.lane.b32.xlu1 %v10507_v30, %s11439_s22  ;;  %v12500_v24 = vpop.permute.xlu0 %10273 }
 0x209   : > { %v12502_v59 = vpop.permute.xlu1 %10278  ;;  %10513 = vrot.lane.b32.xlu0 %v10502_v38, %s11438_s20 }
 0x20a   : > { %16538 = vst [vmem:[#allocation100_spill] sm:$0xff] %v12502_v59  ;;  %v1680_v59 = vpack.c.bf16 %v960_v2, %v959_v25  ;;  %v10136_v2 = vunpack.i.h.bf16 %v12344_v29 }
 0x20b   : > { %10538 = vrot.lane.b32.xlu1 %v10537_v7, %s11437_s19  ;;  %v12506_v36 = vpop.permute.xlu0 %10283 }
 0x20c   : > { %16539 = vst [vmem:[#allocation101_spill] sm:$0xff] %v12506_v36 }
 0x20d   : > { %v12508_v28 = vpop.permute.xlu1 %10288  ;;  %10523 = vrot.lane.b32.xlu0 %v10502_v38, %s11439_s22 }
 0x20e   : > { %16540 = vst [vmem:[#allocation102_spill] sm:$0xff] %v12508_v28 }
 0x20f   : > { %10548 = vrot.lane.b32.xlu1 %v10537_v7, %s11438_s20  ;;  %v2379_v30 = vpop.permute.xlu0 %2378 }
 0x210   : > { %v2389_v13 = vsel %vm2247_vm2, %v2379_v30, 0 }
 0x211   : > { %v2381_v35 = vpop.permute.xlu1 %2380  ;;  %2648 = vrot.lane.b32.xlu0 %v1678_v55, %s11440_s23 }
 0x212   : > { %9783 = vmatprep.subr.msk.bf16.mxu1 %vm2247_vm2, %v2381_v35  ;;  %v2392_v63 = vsel %vm2247_vm2, %v2381_v35, 0  ;;  %v16542_v35 = vld [vmem:[#allocation72_spill] sm:$0xff] }
 0x213   : > { %10553 = vrot.lane.b32.xlu1 %v10552_v34, %s11439_s22  ;;  %v12518_v28 = vpop.permute.xlu0 %10293  ;;  %9244 = vmatpush3.bf16.xpose.msra.mxu1 %v2392_v63  ;;  %v10567_v63 = vpack.i.bf16 %v16543_v4, %v16542_v35 }
 0x214   : > { %9784 = vmatprep.subr.msk.bf16.mxu1 %vm2247_vm2, %v2379_v30  ;;  %v16546_v30 = vld [vmem:[#allocation53_spill] sm:$0xff] }
 0x215   : > { %v12523_v38 = vpop.permute.xlu1 %10298  ;;  %2646 = vrot.lane.b32.xlu0 %v1677_v61, %s11440_s23  ;;  %v16544_v61 = vld [vmem:[#allocation74_spill] sm:$0xff]  ;;  %v16548_v27 = vpack.c.bf16 %v16546_v30, %v16547_v56  ;;  %v10045_v56 = vunpack.i.l.bf16 %v12268_v3  ;;  %v10041_v30 = vunpack.i.h.bf16 %v12271_v54 }
 0x216   : > { %v10562_v33 = vpack.i.bf16 %v16545_v26, %v16544_v61 }
 0x217   : > { %10558 = vrot.lane.b32.xlu1 %v10537_v7, %s11439_s22  ;;  %v12527_v55 = vpop.permute.xlu0 %10303 }
 0x219   : > { %v12529_v53 = vpop.permute.xlu1 %10308  ;;  %10533 = vrot.lane.b32.xlu0 %v10552_v34, %s11437_s19 }
 0x21b   : > { %10568 = vrot.lane.b32.xlu1 %v10567_v63, %s11437_s19  ;;  %v12536_v12 = vpop.permute.xlu0 %10313  ;;  %9246 = vmatpush3.bf16.xpose.msra.mxu1 %v2389_v13 }
 0x21d   : > { %v12538_v21 = vpop.permute.xlu1 %10318  ;;  %10543 = vrot.lane.b32.xlu0 %v10552_v34, %s11438_s20  ;;  %v16549_v34 = vpack.c.bf16 %v12061_v10, %v12058_v18  ;;  %v1679_v18 = vpack.c.bf16 %v958_v43, %v957_v58  ;;  %v1682_v10 = vpack.c.bf16 %v10046_v32, %v10045_v56  ;;  %v16551_v58 = vld [vmem:[#allocation7_spill] sm:$0xff]  ;;  %v16552_v43 = vld [vmem:[#allocation6_spill] sm:$0xff]  ;;  %v10055_v56 = vunpack.i.l.bf16 %v12274_v15 }
 0x21e   : > { %v2050_v32 = vpack.c.bf16 %v16552_v43, %v16551_v58 }
 0x21f   : > { %10578 = vrot.lane.b32.xlu1 %v10567_v63, %s11438_s20  ;;  %v12542_v7 = vpop.permute.xlu0 %10323 }
 0x221   : > { %v12546_v36 = vpop.permute.xlu1 %10328  ;;  %10563 = vrot.lane.b32.xlu0 %v10562_v33, %s11437_s19 }
 0x222   : > { %9248 = vmatmul.mubr.msk.bf16.vlgmr.msra.gmra.mxu1 %vm2247_vm2, %v16548_v27 }
 0x223   : > { %10588 = vrot.lane.b32.xlu1 %v10567_v63, %s11439_s22  ;;  %v12554_v13 = vpop.permute.xlu0 %10333  ;;  %9255 = vmatprep.mubr.msk.bf16.mxu1 %vm2247_vm2, %v16549_v34  ;;  %v10040_v34 = vunpack.i.l.bf16 %v12271_v54 }
 0x225   : > { %v12560_v51 = vpop.permute.xlu1 %10338  ;;  %10573 = vrot.lane.b32.xlu0 %v10562_v33, %s11438_s20  ;;  %v1681_v54 = vpack.c.bf16 %v10041_v30, %v10040_v34  ;;  %v10051_v30 = vunpack.i.h.bf16 %v12277_v37  ;;  %v10050_v34 = vunpack.i.l.bf16 %v12277_v37  ;;  %v10065_v37 = vunpack.i.l.bf16 %v12280_v62 }
 0x227   : > { %2715 = vrot.lane.b32.xlu1 %v1680_v59, %s11440_s23  ;;  %v12566_v27 = vpop.permute.xlu0 %10343  ;;  %v10135_v59 = vunpack.i.l.bf16 %v12344_v29 }
 0x229   : > { %v12568_v63 = vpop.permute.xlu1 %10348  ;;  %10583 = vrot.lane.b32.xlu0 %v10562_v33, %s11439_s22  ;;  %v10056_v33 = vunpack.i.h.bf16 %v12274_v15  ;;  %v1684_v29 = vpack.c.bf16 %v10136_v2, %v10135_v59  ;;  %v10146_v2 = vunpack.i.h.bf16 %v12351_v50  ;;  %v10145_v59 = vunpack.i.l.bf16 %v12351_v50 }
 0x22a   : > { %16550 = vst [vmem:[#allocation72_spill] sm:$0xff] %v12568_v63  ;;  %v10140_v50 = vunpack.i.l.bf16 %v12390_v52 }
 0x22b   : > { %2713 = vrot.lane.b32.xlu1 %v1679_v18, %s11440_s23  ;;  %v2448_v25 = vpop.permute.xlu0 %2447  ;;  %v1698_v58 = vpack.c.bf16 %v10056_v33, %v10055_v56  ;;  %v10066_v33 = vunpack.i.h.bf16 %v12280_v62  ;;  %v16553_v62 = vld [vmem:[#allocation56_spill] sm:$0xff] }
 0x22c   : > { %9785 = vmatprep.subr.msk.bf16.mxu1 %vm2247_vm2, %v2448_v25  ;;  %v2459_v3 = vsel %vm2247_vm2, %v2448_v25, 0  ;;  %v10131_v25 = vunpack.i.h.bf16 %v12375_v44 }
 0x22d   : > { %v2446_v63 = vpop.permute.xlu1 %2445  ;;  %2782 = vrot.lane.b32.xlu0 %v1682_v10, %s11440_s23  ;;  %9252 = vmatpush3.bf16.xpose.msra.mxu1 %v2459_v3  ;;  %v10130_v10 = vunpack.i.l.bf16 %v12375_v44 }
 0x22e   : > { %9786 = vmatprep.subr.msk.bf16.mxu1 %vm2247_vm2, %v2446_v63  ;;  %v2456_v43 = vsel %vm2247_vm2, %v2446_v63, 0  ;;  %v1700_v63 = vpack.c.bf16 %v10146_v2, %v10145_v59  ;;  %v10155_v59 = vunpack.i.l.bf16 %v12364_v31 }
 0x22f   : > { %5862 = vrot.lane.b32.xlu1 %v2050_v32, %s11441_s24  ;;  %v12585_v18 = vpop.permute.xlu0 %10353  ;;  %v1683_v44 = vpack.c.bf16 %v10131_v25, %v10130_v10  ;;  %v1714_v10 = vpack.c.bf16 %v10066_v33, %v10065_v37  ;;  %v10226_v37 = vunpack.i.h.bf16 %v12448_v5 }
 0x231   : > { %v12589_v3 = vpop.permute.xlu1 %10358  ;;  %2780 = vrot.lane.b32.xlu0 %v1681_v54, %s11440_s23  ;;  %v1697_v54 = vpack.c.bf16 %v10051_v30, %v10050_v34  ;;  %v10060_v30 = vunpack.i.l.bf16 %v12283_v20 }
 0x233   : > { %2849 = vrot.lane.b32.xlu1 %v1684_v29, %s11440_s23  ;;  %v12595_v15 = vpop.permute.xlu0 %10363  ;;  %v10141_v29 = vunpack.i.h.bf16 %v12390_v52  ;;  %v10156_v52 = vunpack.i.h.bf16 %v12364_v31 }
 0x235   : > { %v12600_v32 = vpop.permute.xlu1 %10368  ;;  %3318 = vrot.lane.b32.xlu0 %v1698_v58, %s11440_s23  ;;  %9254 = vmatpush3.bf16.xpose.msra.mxu1 %v2456_v43  ;;  %v10061_v58 = vunpack.i.h.bf16 %v12283_v20  ;;  %v16554_v43 = vld [vmem:[#allocation55_spill] sm:$0xff]  ;;  %v16556_v20 = vpack.c.bf16 %v12112_v17, %v12109_v22  ;;  %v1716_v31 = vpack.c.bf16 %v10156_v52, %v10155_v59  ;;  %v10221_v22 = vunpack.i.h.bf16 %v12454_v23 }
 0x236   : > { %v16555_v2 = vpack.c.bf16 %v16553_v62, %v16554_v43  ;;  %v10301_v43 = vunpack.i.h.bf16 %v12523_v38  ;;  %v10236_v59 = vunpack.i.h.bf16 %v12458_v48 }
 0x237   : > { %v12605_v56 = vpop.permute.xlu0 %10373  ;;  %2847 = vrot.lane.b32.xlu1 %v1683_v44, %s11440_s23  ;;  %v1699_v44 = vpack.c.bf16 %v10141_v29, %v10140_v50  ;;  %v1713_v33 = vpack.c.bf16 %v10061_v58, %v10060_v30  ;;  %v10151_v29 = vunpack.i.h.bf16 %v12396_v57  ;;  %v10150_v50 = vunpack.i.l.bf16 %v12396_v57 }
 0x238   : > { %v10220_v58 = vunpack.i.l.bf16 %v12454_v23 }
 0x239   : > { %v12610_v25 = vpop.permute.xlu1 %10378  ;;  %3316 = vrot.lane.b32.xlu0 %v1697_v54, %s11440_s23 }
 0x23a   : > { %v1685_v57 = vpack.c.bf16 %v10221_v22, %v10220_v58  ;;  %v10311_v22 = vunpack.i.h.bf16 %v12529_v53 }
 0x23b   : > { %v12615_v34 = vpop.permute.xlu0 %10383  ;;  %3385 = vrot.lane.b32.xlu1 %v1700_v63, %s11440_s23  ;;  %v10225_v63 = vunpack.i.l.bf16 %v12448_v5  ;;  %v1715_v5 = vpack.c.bf16 %v10151_v29, %v10150_v50  ;;  %v10230_v29 = vunpack.i.l.bf16 %v12462_v9 }
 0x23c   : > { %9256 = vmatmul.mubr.msk.bf16.vlgmr.msra.gmra.mxu1 %vm2247_vm2, %v16555_v2  ;;  %v10300_v2 = vunpack.i.l.bf16 %v12523_v38  ;;  %v10295_v38 = vunpack.i.l.bf16 %v12518_v28 }
 0x23d   : > { %v12624_v54 = vpop.permute.xlu1 %10388  ;;  %3854 = vrot.lane.b32.xlu0 %v1714_v10, %s11440_s23  ;;  %9271 = vmatprep.mubr.msk.bf16.mxu1 %vm2247_vm2, %v16556_v20  ;;  %v1686_v17 = vpack.c.bf16 %v10226_v37, %v10225_v63 }
 0x23e   : > { %v1688_v37 = vpack.c.bf16 %v10301_v43, %v10300_v2  ;;  %v10246_v43 = vunpack.i.h.bf16 %v12468_v11  ;;  %v10245_v2 = vunpack.i.l.bf16 %v12468_v11  ;;  %v10240_v11 = vunpack.i.l.bf16 %v12476_v14 }
 0x23f   : > { %v12633_v62 = vpop.permute.xlu0 %10393  ;;  %3383 = vrot.lane.b32.xlu1 %v1699_v44, %s11440_s23  ;;  %v10235_v44 = vunpack.i.l.bf16 %v12458_v48  ;;  %v10231_v48 = vunpack.i.h.bf16 %v12462_v9 }
 0x241   : > { %v12638_v10 = vpop.permute.xlu1 %10398  ;;  %3852 = vrot.lane.b32.xlu0 %v1713_v33, %s11440_s23  ;;  %v10296_v33 = vunpack.i.h.bf16 %v12518_v28  ;;  %v10310_v28 = vunpack.i.l.bf16 %v12529_v53 }
 0x243   : > { %v12643_v30 = vpop.permute.xlu0 %10403  ;;  %3921 = vrot.lane.b32.xlu1 %v1716_v31, %s11440_s23  ;;  %v1702_v31 = vpack.c.bf16 %v10236_v59, %v10235_v44  ;;  %v10306_v59 = vunpack.i.h.bf16 %v12527_v55  ;;  %v10305_v44 = vunpack.i.l.bf16 %v12527_v55  ;;  %v10320_v55 = vunpack.i.l.bf16 %v12538_v21 }
 0x245   : > { %v12648_v52 = vpop.permute.xlu1 %10408  ;;  %2916 = vrot.lane.b32.xlu0 %v1686_v17, %s11440_s23  ;;  %v1687_v17 = vpack.c.bf16 %v10296_v33, %v10295_v38  ;;  %v10241_v33 = vunpack.i.h.bf16 %v12476_v14  ;;  %v16557_v14 = vpack.c.bf16 %v12080_v0, %v12065_v45  ;;  %v10355_v45 = vunpack.i.l.bf16 %v12585_v18 }
 0x247   : > { %v2515_v20 = vpop.permute.xlu0 %2514  ;;  %3919 = vrot.lane.b32.xlu1 %v1715_v5, %s11440_s23  ;;  %v1701_v5 = vpack.c.bf16 %v10231_v48, %v10230_v29  ;;  %v1717_v29 = vpack.c.bf16 %v10241_v33, %v10240_v11 }
 0x248   : > { %9787 = vmatprep.subr.msk.bf16.mxu0 %vm2247_vm2, %v2515_v20  ;;  %v2526_v23 = vsel %vm2247_vm2, %v2515_v20, 0  ;;  %v1704_v20 = vpack.c.bf16 %v10311_v22, %v10310_v28  ;;  %v10315_v28 = vunpack.i.l.bf16 %v12536_v12 }
 0x249   : > { %v12658_v63 = vpop.permute.xlu1 %10418  ;;  %9260 = vmatpush3.bf16.xpose.msra.mxu0 %v2526_v23  ;;  %2914 = vrot.lane.b32.xlu0 %v1685_v57, %s11440_s23  ;;  %v1718_v23 = vpack.c.bf16 %v10246_v43, %v10245_v2  ;;  %v16558_v2 = vpack.c.bf16 %v12152_v39, %v12149_v6  ;;  %v10371_v39 = vunpack.i.h.bf16 %v12600_v32 }
 0x24b   : > { %v2513_v50 = vpop.permute.xlu0 %2512  ;;  %2983 = vrot.lane.b32.xlu1 %v1688_v37, %s11440_s23  ;;  %v1703_v37 = vpack.c.bf16 %v10306_v59, %v10305_v44  ;;  %v10421_v59 = vunpack.i.h.bf16 %v12658_v63  ;;  %v10420_v44 = vunpack.i.l.bf16 %v12658_v63 }
 0x24c   : > { %9788 = vmatprep.subr.msk.bf16.mxu0 %vm2247_vm2, %v2513_v50  ;;  %v2523_v57 = vsel %vm2247_vm2, %v2513_v50, 0  ;;  %v10361_v50 = vunpack.i.h.bf16 %v12589_v3 }
 0x24d   : > { %v12667_v58 = vpop.permute.xlu1 %10428  ;;  %3452 = vrot.lane.b32.xlu0 %v1702_v31, %s11440_s23  ;;  %v10321_v31 = vunpack.i.h.bf16 %v12538_v21  ;;  %v10316_v21 = vunpack.i.h.bf16 %v12536_v12  ;;  %v1692_v33 = vpack.c.bf16 %v10421_v59, %v10420_v44  ;;  %v10376_v59 = vunpack.i.h.bf16 %v12605_v56 }
 0x24e   : > { %v10375_v44 = vunpack.i.l.bf16 %v12605_v56 }
 0x24f   : > { %v10414_v9 = vpop.permute.xlu0 %10413  ;;  %2981 = vrot.lane.b32.xlu1 %v1687_v17, %s11440_s23  ;;  %v10360_v17 = vunpack.i.l.bf16 %v12589_v3  ;;  %v10356_v3 = vunpack.i.h.bf16 %v12585_v18  ;;  %v1719_v12 = vpack.c.bf16 %v10316_v21, %v10315_v28 }
 0x250   : > { %v10416_v11 = vunpack.i.h.bf16 %v10414_v9 }
 0x251   : > { %v12676_v53 = vpop.permute.xlu1 %10438  ;;  %9262 = vmatpush3.bf16.xpose.msra.mxu0 %v2523_v57  ;;  %3450 = vrot.lane.b32.xlu0 %v1701_v5, %s11440_s23  ;;  %v1720_v5 = vpack.c.bf16 %v10321_v31, %v10320_v55  ;;  %v1690_v0 = vpack.c.bf16 %v10361_v50, %v10360_v17  ;;  %v1689_v6 = vpack.c.bf16 %v10356_v3, %v10355_v45  ;;  %v10366_v55 = vunpack.i.h.bf16 %v12595_v15 }
 0x252   : > { %v10431_v17 = vunpack.i.h.bf16 %v12667_v58 }
 0x253   : > { %v12681_v38 = vpop.permute.xlu0 %10423  ;;  %3519 = vrot.lane.b32.xlu1 %v1704_v20, %s11440_s23 }
 0x254   : > { %v10426_v45 = vunpack.i.h.bf16 %v12681_v38 }
 0x255   : > { %v12686_v48 = vpop.permute.xlu1 %10448  ;;  %3988 = vrot.lane.b32.xlu0 %v1718_v23, %s11440_s23  ;;  %v10370_v23 = vunpack.i.l.bf16 %v12600_v32 }
 0x257   : > { %v12691_v22 = vpop.permute.xlu0 %10433  ;;  %3517 = vrot.lane.b32.xlu1 %v1703_v37, %s11440_s23  ;;  %v10415_v37 = vunpack.i.l.bf16 %v10414_v9  ;;  %v1706_v50 = vpack.c.bf16 %v10371_v39, %v10370_v23  ;;  %v10430_v9 = vunpack.i.l.bf16 %v12667_v58  ;;  %v10440_v23 = vunpack.i.l.bf16 %v12676_v53 }
 0x258   : > { %9264 = vmatmul.mubr.msk.bf16.vlgmr.msra.gmra.mxu0 %vm2247_vm2, %v16557_v14 }
 0x259   : > { %v12700_v43 = vpop.permute.xlu1 %10458  ;;  %9279 = vmatprep.mubr.msk.bf16.mxu0 %vm2247_vm2, %v16558_v2  ;;  %3986 = vrot.lane.b32.xlu0 %v1717_v29, %s11440_s23  ;;  %v10365_v29 = vunpack.i.l.bf16 %v12595_v15  ;;  %v1691_v14 = vpack.c.bf16 %v10416_v11, %v10415_v37  ;;  %v10380_v15 = vunpack.i.l.bf16 %v12610_v25  ;;  %v1708_v3 = vpack.c.bf16 %v10431_v17, %v10430_v9 }
 0x25a   : > { %v1721_v11 = vpack.c.bf16 %v10376_v59, %v10375_v44 }
 0x25b   : > { %v12709_v57 = vpop.permute.xlu0 %10443  ;;  %4055 = vrot.lane.b32.xlu1 %v1720_v5, %s11440_s23  ;;  %v1705_v28 = vpack.c.bf16 %v10366_v55, %v10365_v29  ;;  %v10381_v5 = vunpack.i.h.bf16 %v12610_v25  ;;  %v10441_v25 = vunpack.i.h.bf16 %v12676_v53  ;;  %v10436_v55 = vunpack.i.h.bf16 %v12691_v22 }
 0x25c   : > { %v10435_v29 = vunpack.i.l.bf16 %v12691_v22  ;;  %v16559_v53 = vpack.c.bf16 %v12106_v1, %v12103_v47 }
 0x25d   : > { %v12714_v20 = vpop.permute.xlu1 %10468  ;;  %3050 = vrot.lane.b32.xlu0 %v1690_v0, %s11440_s23  ;;  %v10425_v0 = vunpack.i.l.bf16 %v12681_v38  ;;  %v1724_v56 = vpack.c.bf16 %v10441_v25, %v10440_v23 }
 0x25e   : > { %v1723_v22 = vpack.c.bf16 %v10436_v55, %v10435_v29 }
 0x25f   : > { %v12719_v18 = vpop.permute.xlu0 %10453  ;;  %4053 = vrot.lane.b32.xlu1 %v1719_v12, %s11440_s23 }
 0x261   : > { %v2582_v31 = vpop.permute.xlu1 %2581  ;;  %3048 = vrot.lane.b32.xlu0 %v1689_v6, %s11440_s23  ;;  %v1722_v6 = vpack.c.bf16 %v10381_v5, %v10380_v15 }
 0x262   : > { %9789 = vmatprep.subr.msk.bf16.mxu1 %vm2247_vm2, %v2582_v31  ;;  %v2593_v63 = vsel %vm2247_vm2, %v2582_v31, 0 }
 0x263   : > { %v12727_v32 = vpop.permute.xlu0 %10463  ;;  %3117 = vrot.lane.b32.xlu1 %v1692_v33, %s11440_s23  ;;  %9268 = vmatpush3.bf16.xpose.msra.mxu1 %v2593_v63  ;;  %v1707_v33 = vpack.c.bf16 %v10426_v45, %v10425_v0 }
 0x265   : > { %v2580_v21 = vpop.permute.xlu1 %2579  ;;  %3586 = vrot.lane.b32.xlu0 %v1706_v50, %s11440_s23 }
 0x266   : > { %9790 = vmatprep.subr.msk.bf16.mxu1 %vm2247_vm2, %v2580_v21  ;;  %v2590_v12 = vsel %vm2247_vm2, %v2580_v21, 0 }
 0x267   : > { %v10474_v2 = vpop.permute.xlu0 %10473  ;;  %3115 = vrot.lane.b32.xlu1 %v1691_v14, %s11440_s23 }
 0x268   : > { %v10476_v17 = vunpack.i.h.bf16 %v10474_v2  ;;  %v10475_v9 = vunpack.i.l.bf16 %v10474_v2 }
 0x269   : > { %v10479_v58 = vpop.permute.xlu1 %10478  ;;  %3584 = vrot.lane.b32.xlu0 %v1705_v28, %s11440_s23  ;;  %v16560_v28 = vpack.c.bf16 %v16545_v26, %v16544_v61 }
 0x26a   : > { %v10481_v37 = vunpack.i.h.bf16 %v10479_v58  ;;  %v10480_v31 = vunpack.i.l.bf16 %v10479_v58  ;;  %v1693_v15 = vpack.c.bf16 %v10476_v17, %v10475_v9 }
 0x26b   : > { %v10484_v39 = vpop.permute.xlu0 %10483  ;;  %3653 = vrot.lane.b32.xlu1 %v1708_v3, %s11440_s23  ;;  %9270 = vmatpush3.bf16.xpose.msra.mxu1 %v2590_v12 }
 0x26c   : > { %v1694_v14 = vpack.c.bf16 %v10481_v37, %v10480_v31  ;;  %v10486_v45 = vunpack.i.h.bf16 %v10484_v39  ;;  %v10485_v26 = vunpack.i.l.bf16 %v10484_v39 }
 0x26d   : > { %v10489_v38 = vpop.permute.xlu1 %10488  ;;  %4122 = vrot.lane.b32.xlu0 %v1722_v6, %s11440_s23 }
 0x26e   : > { %v10491_v47 = vunpack.i.h.bf16 %v10489_v38  ;;  %v10490_v1 = vunpack.i.l.bf16 %v10489_v38  ;;  %v1709_v44 = vpack.c.bf16 %v10486_v45, %v10485_v26 }
 0x26f   : > { %v10494_v63 = vpop.permute.xlu0 %10493  ;;  %3651 = vrot.lane.b32.xlu1 %v1707_v33, %s11440_s23 }
 0x270   : > { %v1710_v61 = vpack.c.bf16 %v10491_v47, %v10490_v1  ;;  %v10496_v39 = vunpack.i.h.bf16 %v10494_v63 }
 0x271   : > { %v12750_v50 = vpop.permute.xlu1 %10508  ;;  %4120 = vrot.lane.b32.xlu0 %v1721_v11, %s11440_s23  ;;  %v10495_v11 = vunpack.i.l.bf16 %v10494_v63  ;;  %v16562_v63 = vld [vmem:[#allocation8_spill] sm:$0xff] }
 0x272   : > { %9272 = vmatmul.mubr.msk.bf16.vlgmr.msra.gmra.mxu1 %vm2247_vm2, %v16559_v53 }
 0x273   : > { %v10499_v21 = vpop.permute.xlu0 %10498  ;;  %4189 = vrot.lane.b32.xlu1 %v1724_v56, %s11440_s23  ;;  %9287 = vmatprep.mubr.msk.bf16.mxu1 %vm2247_vm2, %v16560_v28  ;;  %v1725_v29 = vpack.c.bf16 %v10496_v39, %v10495_v11 }
 0x274   : > { %v10501_v6 = vunpack.i.h.bf16 %v10499_v21  ;;  %v10500_v25 = vunpack.i.l.bf16 %v10499_v21 }
 0x275   : > { %v12762_v5 = vpop.permute.xlu1 %10518  ;;  %3184 = vrot.lane.b32.xlu0 %v1694_v14, %s11440_s23  ;;  %v16561_v14 = vld [vmem:[#allocation5_spill] sm:$0xff] }
 0x276   : > { %v1726_v37 = vpack.c.bf16 %v10501_v6, %v10500_v25  ;;  %v2049_v21 = vpack.c.bf16 %v16562_v63, %v16561_v14  ;;  %v16565_v6 = vld [vmem:[#allocation13_spill] sm:$0xff] }
 0x277   : > { %v12765_v3 = vpop.permute.xlu0 %10503  ;;  %4187 = vrot.lane.b32.xlu1 %v1723_v22, %s11440_s23 }
 0x279   : > { %v12768_v2 = vpop.permute.xlu1 %10528  ;;  %3182 = vrot.lane.b32.xlu0 %v1693_v15, %s11440_s23 }
 0x27b   : > { %v12771_v0 = vpop.permute.xlu0 %10513 }
 0x27d   : > { %v10539_v58 = vpop.permute.xlu1 %10538  ;;  %3720 = vrot.lane.b32.xlu0 %v1710_v61, %s11440_s23  ;;  %v16563_v61 = vld [vmem:[#allocation87_spill] sm:$0xff] }
 0x27e   : > { %v10541_v12 = vunpack.i.h.bf16 %v10539_v58  ;;  %v10540_v59 = vunpack.i.l.bf16 %v10539_v58  ;;  %v10086_v58 = vunpack.i.h.bf16 %v16563_v61 }
 0x27f   : > { %v12774_v23 = vpop.permute.xlu0 %10523 }
 0x280   : > { %v1696_v33 = vpack.c.bf16 %v10541_v12, %v10540_v59  ;;  %v10085_v12 = vunpack.i.l.bf16 %v16563_v61 }
 0x281   : > { %v10549_v38 = vpop.permute.xlu1 %10548  ;;  %3718 = vrot.lane.b32.xlu0 %v1709_v44, %s11440_s23  ;;  %v16564_v44 = vld [vmem:[#allocation14_spill] sm:$0xff] }
 0x282   : > { %3251 = vrot.lane.b32.xlu1 %v1696_v33, %s11440_s23  ;;  %v10551_v1 = vunpack.i.h.bf16 %v10549_v38  ;;  %v10550_v45 = vunpack.i.l.bf16 %v10549_v38  ;;  %v2054_v25 = vpack.c.bf16 %v16565_v6, %v16564_v44  ;;  %v10176_v6 = vunpack.i.h.bf16 %v12402_v40 }
 0x283   : > { %v2649_v31 = vpop.permute.xlu0 %2648 }
 0x284   : > { %9791 = vmatprep.subr.msk.bf16.mxu0 %vm2247_vm2, %v2649_v31  ;;  %v2660_v56 = vsel %vm2247_vm2, %v2649_v31, 0  ;;  %v1712_v39 = vpack.c.bf16 %v10551_v1, %v10550_v45  ;;  %v1297_v31 = vpack.c.bf16 %v10086_v58, %v10085_v12  ;;  %v16567_v58 = vld [vmem:[#allocation9_spill] sm:$0xff]  ;;  %v16568_v12 = vld [vmem:[#allocation10_spill] sm:$0xff] }
 0x285   : > { %v10554_v55 = vpop.permute.xlu1 %10553  ;;  %9276 = vmatpush3.bf16.xpose.msra.mxu0 %v2660_v56  ;;  %4256 = vrot.lane.b32.xlu0 %v1726_v37, %s11440_s23  ;;  %v16566_v56 = vpack.c.bf16 %v12146_v49, %v12143_v19 }
 0x287   : > { %v2647_v53 = vpop.permute.xlu0 %2646 }
 0x288   : > { %9792 = vmatprep.subr.msk.bf16.mxu0 %vm2247_vm2, %v2647_v53  ;;  %v2657_v15 = vsel %vm2247_vm2, %v2647_v53, 0 }
 0x289   : > { %v10559_v17 = vpop.permute.xlu1 %10558  ;;  %4254 = vrot.lane.b32.xlu0 %v1725_v29, %s11440_s23 }
 0x28a   : > { %v10561_v53 = vunpack.i.h.bf16 %v10559_v17 }
 0x28b   : > { %v10534_v9 = vpop.permute.xlu0 %10533 }
 0x28c   : > { %v10536_v28 = vunpack.i.h.bf16 %v10534_v9  ;;  %v10535_v22 = vunpack.i.l.bf16 %v10534_v9  ;;  %v10560_v9 = vunpack.i.l.bf16 %v10559_v17 }
 0x28d   : > { %v12786_v47 = vpop.permute.xlu1 %10568  ;;  %9278 = vmatpush3.bf16.xpose.msra.mxu0 %v2657_v15  ;;  %5860 = vrot.lane.b32.xlu0 %v2049_v21, %s11441_s24 }
 0x28e   : > { %v1695_v26 = vpack.c.bf16 %v10536_v28, %v10535_v22  ;;  %v10556_v28 = vunpack.i.h.bf16 %v10554_v55  ;;  %v10555_v22 = vunpack.i.l.bf16 %v10554_v55  ;;  %v1728_v15 = vpack.c.bf16 %v10561_v53, %v10560_v9  ;;  %v2115_v53 = vld [vmem:[#allocation2 + $0x10] sm:$0xff]  ;;  %v9233_v9 = vpop.f32.mrf.mxu1 }
 0x28f   : > { %v10544_v59 = vpop.permute.xlu0 %10543 }
 0x290   : > { %3249 = vrot.lane.b32.xlu1 %v1695_v26, %s11440_s23  ;;  %v10546_v11 = vunpack.i.h.bf16 %v10544_v59  ;;  %v10545_v37 = vunpack.i.l.bf16 %v10544_v59  ;;  %v1727_v17 = vpack.c.bf16 %v10556_v28, %v10555_v22  ;;  %v2052_v59 = vpack.c.bf16 %v16568_v12, %v16567_v58 }
 0x291   : > { %v12794_v33 = vpop.permute.xlu1 %10578  ;;  %5988 = vrot.lane.b32.xlu0 %v2054_v25, %s11441_s24  ;;  %v10175_v25 = vunpack.i.l.bf16 %v12402_v40  ;;  %v10091_v22 = vunpack.i.h.bf16 %v12310_v42  ;;  %v10090_v40 = vunpack.i.l.bf16 %v12310_v42  ;;  %v12846_v58 = vadd.f32 %v9233_v9, %v2115_v53  ;;  %v2294_v42 = vpop.f32.mrf.mxu1 }
 0x292   : > { %v1711_v14 = vpack.c.bf16 %v10546_v11, %v10545_v37  ;;  %v16569_v11 = vld [vmem:[#allocation12_spill] sm:$0xff]  ;;  %v16570_v37 = vld [vmem:[#allocation11_spill] sm:$0xff] }
 0x293   : > { %v12797_v38 = vpop.permute.xlu0 %10563 }
 0x294   : > { %9280 = vmatmul.mubr.msk.bf16.vlgmr.msra.gmra.mxu0 %vm2247_vm2, %v16566_v56  ;;  %3787 = vrot.lane.b32.xlu1 %v1712_v39, %s11440_s23 }
 0x295   : > { %v12804_v29 = vpop.permute.xlu1 %10588  ;;  %9295 = vmatprep.mubr.msk.bf16.mxu0 %vm2247_vm2, %v1297_v31  ;;  %v2051_v31 = vpack.c.bf16 %v16570_v37, %v16569_v11  ;;  %v9234_v11 = vpop.f32.mrf.mxu1 }
 0x297   : > { %v12807_v63 = vpop.permute.xlu0 %10573 }
 0x298   : > { %3785 = vrot.lane.b32.xlu1 %v1711_v14, %s11440_s23 }
 0x299   : > { %v2716_v21 = vpop.permute.xlu1 %2715 }
 0x29a   : > { %9793 = vmatprep.subr.msk.bf16.mxu1 %vm2247_vm2, %v2716_v21  ;;  %v2727_v19 = vsel %vm2247_vm2, %v2716_v21, 0  ;;  %v1299_v21 = vpack.c.bf16 %v10176_v6, %v10175_v25  ;;  %v4392_v25 = vsel %vm406_vm0, %v12846_v58, -inf }
 0x29b   : > { %v12812_v49 = vpop.permute.xlu0 %10583  ;;  %9284 = vmatpush3.bf16.xpose.msra.mxu1 %v2727_v19 }
 0x29c   : > { %4323 = vrot.lane.b32.xlu1 %v1728_v15, %s11440_s23  ;;  %v16571_v15 = vpack.c.bf16 %v16543_v4, %v16542_v35  ;;  %v2113_v35 = vld [vmem:[#allocation2] sm:$0xff] }
 0x29d   : > { %v2714_v1 = vpop.permute.xlu1 %2713  ;;  %v12855_v6 = vadd.f32 %v2294_v42, %v2113_v35 }
 0x29e   : > { %9794 = vmatprep.subr.msk.bf16.mxu1 %vm2247_vm2, %v2714_v1  ;;  %v2724_v61 = vsel %vm2247_vm2, %v2714_v1, 0  ;;  %v16572_v1 = vld [vmem:[#allocation21_spill] sm:$0xff] }
 0x29f   : > { %v2783_v45 = vpop.permute.xlu0 %2782 }
 0x2a0   : > { %9795 = vmatprep.subr.msk.bf16.mxu0 %vm2247_vm2, %v2783_v45  ;;  %4321 = vrot.lane.b32.xlu1 %v1727_v17, %s11440_s23  ;;  %v2794_v55 = vsel %vm2247_vm2, %v2783_v45, 0  ;;  %v16573_v17 = vld [vmem:[#allocation22_spill] sm:$0xff] }
 0x2a1   : > { %v12819_v26 = vpop.permute.xlu1 %5862  ;;  %9292 = vmatpush3.bf16.xpose.msra.mxu0 %v2794_v55  ;;  %v2056_v45 = vpack.c.bf16 %v16573_v17, %v16572_v1  ;;  %v10266_v55 = vunpack.i.h.bf16 %v12490_v41 }
 0x2a3   : > { %v2781_v44 = vpop.permute.xlu0 %2780  ;;  %9286 = vmatpush3.bf16.xpose.msra.mxu1 %v2724_v61  ;;  %v10265_v61 = vunpack.i.l.bf16 %v12490_v41 }
 0x2a4   : > { %9796 = vmatprep.subr.msk.bf16.mxu0 %vm2247_vm2, %v2781_v44  ;;  %5925 = vrot.lane.b32.xlu1 %v2052_v59, %s11441_s24  ;;  %v2791_v14 = vsel %vm2247_vm2, %v2781_v44, 0  ;;  %v1298_v59 = vpack.c.bf16 %v10091_v22, %v10090_v40  ;;  %v10180_v22 = vunpack.i.l.bf16 %v12408_v8  ;;  %v10326_v40 = vunpack.i.h.bf16 %v12542_v7 }
 0x2a5   : > { %v2850_v39 = vpop.permute.xlu1 %2849  ;;  %v1301_v44 = vpack.c.bf16 %v10266_v55, %v10265_v61 }
 0x2a6   : > { %9797 = vmatprep.subr.msk.bf16.mxu1 %vm2247_vm2, %v2850_v39  ;;  %v2861_v19 = vsel %vm2247_vm2, %v2850_v39, 0  ;;  %v2116_v39 = vld [vmem:[#allocation2 + $0x18] sm:$0xff] }
 0x2a7   : > { %v12831_v56 = vpop.permute.xlu0 %3318  ;;  %v12866_v53 = vadd.f32 %v9234_v11, %v2116_v39 }
 0x2a8   : > { %5923 = vrot.lane.b32.xlu1 %v2051_v31, %s11441_s24 }
 0x2a9   : > { %9294 = vmatpush3.bf16.xpose.msra.mxu0 %v2791_v14  ;;  %v2848_v28 = vpop.permute.xlu1 %2847  ;;  %16574 = vst [vmem:[#allocation73_spill] sm:$0xff] %v12866_v53  ;;  %v4386_v14 = vsel %vm406_vm0, %v12855_v6, -inf  ;;  %v4395_v17 = vsel %vm406_vm0, %v12866_v53, -inf }
 0x2aa   : > { %9288 = vmatmul.mubr.msk.bf16.vlgmr.msra.gmra.mxu1 %vm2247_vm2, %v16571_v15  ;;  %v2858_v31 = vsel %vm2247_vm2, %v2848_v28, 0  ;;  %v10325_v15 = vunpack.i.l.bf16 %v12542_v7  ;;  %v2120_v7 = vld [vmem:[#allocation2 + $0x38] sm:$0xff] }
 0x2ab   : > { %v12848_v12 = vpop.permute.xlu0 %3316  ;;  %9300 = vmatpush3.bf16.xpose.msra.mxu1 %v2861_v19  ;;  %9303 = vmatprep.mubr.msk.bf16.mxu1 %vm2247_vm2, %v1299_v21  ;;  %v10181_v21 = vunpack.i.h.bf16 %v12408_v8 }
 0x2ac   : > { %6051 = vrot.lane.b32.xlu1 %v2056_v45, %s11441_s24  ;;  %9798 = vmatprep.subr.msk.bf16.mxu1 %vm2247_vm2, %v2848_v28  ;;  %v2297_v28 = vpop.f32.mrf.mxu1  ;;  %v1303_v8 = vpack.c.bf16 %v10326_v40, %v10325_v15 }
 0x2ad   : > { %v12853_v4 = vpop.permute.xlu1 %3385  ;;  %v1300_v45 = vpack.c.bf16 %v10181_v21, %v10180_v22 }
 0x2af   : > { %v12857_v41 = vpop.permute.xlu0 %3854 }
 0x2b0   : > { %9296 = vmatmul.mubr.msk.bf16.vlgmr.msra.gmra.mxu0 %vm2247_vm2, %v1298_v59  ;;  %4393 = vmax.xlane.f32.xlu0 %v4392_v25  ;;  %v2118_v25 = vld [vmem:[#allocation2 + $0x28] sm:$0xff] }
 0x2b1   : > { %v12862_v37 = vpop.permute.xlu1 %3383  ;;  %9311 = vmatprep.mubr.msk.bf16.mxu0 %vm2247_vm2, %v1301_v44 }
 0x2b3   : > { %v12868_v9 = vpop.permute.xlu0 %3852  ;;  %9302 = vmatpush3.bf16.xpose.msra.mxu1 %v2858_v31 }
 0x2b4   : > { %4387 = vmax.xlane.f32.xlu0 %v4386_v14 }
 0x2b5   : > { %v12876_v19 = vpop.permute.xlu1 %3921 }
 0x2b7   : > { %v2917_v1 = vpop.permute.xlu0 %2916 }
 0x2b8   : > { %v9241_v55 = vpop.f32.mrf.mxu1  ;;  %9799 = vmatprep.subr.msk.bf16.mxu0 %vm2247_vm2, %v2917_v1  ;;  %4396 = vmax.xlane.f32.xlu0 %v4395_v17  ;;  %v2928_v61 = vsel %vm2247_vm2, %v2917_v1, 0  ;;  %v10271_v17 = vunpack.i.h.bf16 %v12494_v60 }
 0x2b9   : > { %v12882_v42 = vpop.permute.xlu1 %3919  ;;  %9308 = vmatpush3.bf16.xpose.msra.mxu0 %v2928_v61  ;;  %v10386_v61 = vunpack.i.h.bf16 %v12615_v34 }
 0x2ba   : > { %v2361_v35 = vpop.f32.mrf.mxu1  ;;  %9304 = vmatmul.mubr.msk.bf16.vlgmr.msra.gmra.mxu1 %vm2247_vm2, %v1300_v45  ;;  %v10270_v45 = vunpack.i.l.bf16 %v12494_v60  ;;  %v10331_v60 = vunpack.i.h.bf16 %v12546_v36 }
 0x2bb   : > { %v2915_v59 = vpop.permute.xlu0 %2914  ;;  %9319 = vmatprep.mubr.msk.bf16.mxu1 %vm2247_vm2, %v1303_v8  ;;  %v10385_v8 = vunpack.i.l.bf16 %v12615_v34  ;;  %v2114_v34 = vld [vmem:[#allocation2 + $0x8] sm:$0xff] }
 0x2bc   : > { %v9242_v44 = vpop.f32.mrf.mxu1  ;;  %9800 = vmatprep.subr.msk.bf16.mxu0 %vm2247_vm2, %v2915_v59  ;;  %v2925_v15 = vsel %vm2247_vm2, %v2915_v59, 0  ;;  %v1302_v59 = vpack.c.bf16 %v10271_v17, %v10270_v45 }
 0x2bd   : > { %v12887_v39 = vadd.f32 %v9242_v44, %v2120_v7  ;;  %v2984_v11 = vpop.permute.xlu1 %2983 }
 0x2be   : > { %v2364_v31 = vpop.f32.mrf.mxu1  ;;  %9801 = vmatprep.subr.msk.bf16.mxu1 %vm2247_vm2, %v2984_v11  ;;  %v2995_v14 = vsel %vm2247_vm2, %v2984_v11, 0 }
 0x2bf   : > { %16575 = vst [vmem:[#allocation74_spill] sm:$0xff] %v12887_v39  ;;  %v12891_v21 = vadd.f32 %v2364_v31, %v2118_v25  ;;  %v12893_v22 = vpop.permute.xlu0 %3452  ;;  %9316 = vmatpush3.bf16.xpose.msra.mxu1 %v2995_v14  ;;  %v4407_v40 = vsel %vm406_vm0, %v12887_v39, -inf  ;;  %v1305_v31 = vpack.c.bf16 %v10386_v61, %v10385_v8  ;;  %v2119_v61 = vld [vmem:[#allocation2 + $0x30] sm:$0xff] }
 0x2c0   : > { %4408 = vmax.xlane.f32.xlu0 %v4407_v40  ;;  %v10330_v40 = vunpack.i.l.bf16 %v12546_v36  ;;  %v12927_v36 = vadd.f32 %v9241_v55, %v2119_v61  ;;  %v2123_v39 = vld [vmem:[#allocation2 + $0x50] sm:$0xff] }
 0x2c1   : > { %16576 = vst [vmem:[#allocation75_spill] sm:$0xff] %v12891_v21  ;;  %v2982_v1 = vpop.permute.xlu1 %2981  ;;  %9310 = vmatpush3.bf16.xpose.msra.mxu0 %v2925_v15  ;;  %v4401_v44 = vsel %vm406_vm0, %v12891_v21, -inf  ;;  %v10446_v15 = vunpack.i.h.bf16 %v12709_v57 }
 0x2c2   : > { %9802 = vmatprep.subr.msk.bf16.mxu1 %vm2247_vm2, %v2982_v1  ;;  %v2992_v11 = vsel %vm2247_vm2, %v2982_v1, 0  ;;  %v12920_v1 = vadd.f32 %v2297_v28, %v2114_v34  ;;  %v1304_v45 = vpack.c.bf16 %v10331_v60, %v10330_v40  ;;  %16578 = vst [vmem:[#allocation51_spill] sm:$0xff] %v12927_v36  ;;  %v4404_v55 = vsel %vm406_vm0, %v12927_v36, -inf }
 0x2c3   : > { %v12903_v7 = vpop.permute.xlu0 %3450  ;;  %v10565_v36 = vunpack.i.l.bf16 %v12797_v38 }
 0x2c4   : > { %4402 = vmax.xlane.f32.xlu0 %v4401_v44  ;;  %v10445_v44 = vunpack.i.l.bf16 %v12709_v57  ;;  %16577 = vst [vmem:[#allocation53_spill] sm:$0xff] %v12920_v1  ;;  %v4389_v57 = vsel %vm406_vm0, %v12920_v1, -inf }
 0x2c5   : > { %v12907_v25 = vpop.permute.xlu1 %3519 }
 0x2c6   : > { %v1307_v8 = vpack.c.bf16 %v10446_v15, %v10445_v44 }
 0x2c7   : > { %v12910_v14 = vpop.permute.xlu0 %3988  ;;  %9318 = vmatpush3.bf16.xpose.msra.mxu1 %v2992_v11 }
 0x2c8   : > { %9312 = vmatmul.mubr.msk.bf16.vlgmr.msra.gmra.mxu0 %vm2247_vm2, %v1302_v59 }
 0x2c9   : > { %v12917_v21 = vpop.permute.xlu1 %3517  ;;  %9327 = vmatprep.mubr.msk.bf16.mxu0 %vm2247_vm2, %v1305_v31  ;;  %v2117_v31 = vld [vmem:[#allocation2 + $0x20] sm:$0xff] }
 0x2ca   : > { %v12936_v40 = vadd.f32 %v2361_v35, %v2117_v31  ;;  %v10506_v31 = vunpack.i.h.bf16 %v12765_v3 }
 0x2cb   : > { %v12922_v17 = vpop.permute.xlu0 %3986 }
 0x2cc   : > { %16579 = vst [vmem:[#allocation7_spill] sm:$0xff] %v12936_v40  ;;  %v4398_v61 = vsel %vm406_vm0, %v12936_v40, -inf }
 0x2cd   : > { %v12924_v11 = vpop.permute.xlu1 %4055 }
 0x2ce   : > { %9320 = vmatmul.mubr.msk.bf16.vlgmr.msra.gmra.mxu1 %vm2247_vm2, %v1304_v45 }
 0x2cf   : > { %v3051_v59 = vpop.permute.xlu0 %3050  ;;  %9335 = vmatprep.mubr.msk.bf16.mxu1 %vm2247_vm2, %v1307_v8 }
 0x2d0   : > { %9803 = vmatprep.subr.msk.bf16.mxu0 %vm2247_vm2, %v3051_v59  ;;  %4390 = vmax.xlane.f32.xlu1 %v4389_v57  ;;  %v3062_v28 = vsel %vm2247_vm2, %v3051_v59, 0  ;;  %v10391_v59 = vunpack.i.h.bf16 %v12624_v54  ;;  %v10390_v57 = vunpack.i.l.bf16 %v12624_v54  ;;  %v10450_v54 = vunpack.i.l.bf16 %v12686_v48 }
 0x2d1   : > { %v12934_v60 = vpop.permute.xlu1 %4053  ;;  %9324 = vmatpush3.bf16.xpose.msra.mxu0 %v3062_v28  ;;  %v10505_v28 = vunpack.i.l.bf16 %v12765_v3  ;;  %v10566_v3 = vunpack.i.h.bf16 %v12797_v38 }
 0x2d3   : > { %v3049_v34 = vpop.permute.xlu0 %3048  ;;  %v1311_v1 = vpack.c.bf16 %v10566_v3, %v10565_v36 }
 0x2d4   : > { %9804 = vmatprep.subr.msk.bf16.mxu0 %vm2247_vm2, %v3049_v34  ;;  %4405 = vmax.xlane.f32.xlu1 %v4404_v55  ;;  %v3059_v35 = vsel %vm2247_vm2, %v3049_v34, 0  ;;  %v1309_v34 = vpack.c.bf16 %v10506_v31, %v10505_v28 }
 0x2d5   : > { %v3118_v15 = vpop.permute.xlu1 %3117 }
 0x2d6   : > { %9805 = vmatprep.subr.msk.bf16.mxu1 %vm2247_vm2, %v3118_v15  ;;  %v3129_v44 = vsel %vm2247_vm2, %v3118_v15, 0  ;;  %v1306_v15 = vpack.c.bf16 %v10391_v59, %v10390_v57 }
 0x2d7   : > { %v12943_v45 = vpop.permute.xlu0 %3586  ;;  %9332 = vmatpush3.bf16.xpose.msra.mxu1 %v3129_v44 }
 0x2d8   : > { %4399 = vmax.xlane.f32.xlu1 %v4398_v61 }
 0x2d9   : > { %v3116_v8 = vpop.permute.xlu1 %3115  ;;  %9326 = vmatpush3.bf16.xpose.msra.mxu0 %v3059_v35  ;;  %v10451_v35 = vunpack.i.h.bf16 %v12686_v48  ;;  %v2124_v48 = vld [vmem:[#allocation2 + $0x58] sm:$0xff] }
 0x2da   : > { %9806 = vmatprep.subr.msk.bf16.mxu1 %vm2247_vm2, %v3116_v8  ;;  %v3126_v61 = vsel %vm2247_vm2, %v3116_v8, 0 }
 0x2db   : > { %v12953_v55 = vpop.permute.xlu0 %3584  ;;  %v1308_v31 = vpack.c.bf16 %v10451_v35, %v10450_v54 }
 0x2dd   : > { %v12955_v44 = vpop.permute.xlu1 %3653 }
 0x2df   : > { %v12958_v40 = vpop.permute.xlu0 %4122  ;;  %9334 = vmatpush3.bf16.xpose.msra.mxu1 %v3126_v61 }
 0x2e0   : > { %9328 = vmatmul.mubr.msk.bf16.vlgmr.msra.gmra.mxu0 %vm2247_vm2, %v1306_v15 }
 0x2e1   : > { %9343 = vmatprep.mubr.msk.bf16.mxu0 %vm2247_vm2, %v1309_v34  ;;  %v12970_v28 = vpop.permute.xlu1 %3651 }
 0x2e2   : > { %v9249_v59 = vpop.f32.mrf.mxu1 }
 0x2e3   : > { %v12966_v57 = vadd.f32 %v9249_v59, %v2123_v39  ;;  %v12968_v8 = vpop.permute.xlu0 %4120  ;;  %v10510_v59 = vunpack.i.l.bf16 %v12750_v50 }
 0x2e4   : > { %v12972_v61 = vpop.f32.mrf.mxu1 }
 0x2e5   : > { %v4416_v15 = vsel %vm406_vm0, %v12966_v57, -inf  ;;  %v12984_v35 = vpop.permute.xlu1 %4189 }
 0x2e6   : > { %v9250_v53 = vpop.f32.mrf.mxu1  ;;  %9336 = vmatmul.mubr.msk.bf16.vlgmr.msra.gmra.mxu1 %vm2247_vm2, %v1308_v31  ;;  %4417 = vmax.xlane.f32.xlu1 %v4416_v15  ;;  %v10096_v31 = vunpack.i.h.bf16 %v12327_v16 }
 0x2e7   : > { %v12977_v38 = vadd.f32 %v9250_v53, %v2124_v48  ;;  %v3185_v39 = vpop.permute.xlu0 %3184  ;;  %9351 = vmatprep.mubr.msk.bf16.mxu1 %vm2247_vm2, %v1311_v1  ;;  %v10511_v1 = vunpack.i.h.bf16 %v12750_v50  ;;  %v10095_v48 = vunpack.i.l.bf16 %v12327_v16  ;;  %v3330_v50 = vsel %vm2247_vm2, %v12831_v56, 0 }
 0x2e8   : > { %9807 = vmatprep.subr.msk.bf16.mxu0 %vm2247_vm2, %v3185_v39  ;;  %v3196_v34 = vsel %vm2247_vm2, %v3185_v39, 0  ;;  %v3327_v16 = vsel %vm2247_vm2, %v12848_v12, 0 }
 0x2e9   : > { %9340 = vmatpush3.bf16.xpose.msra.mxu0 %v3196_v34  ;;  %v4419_v36 = vsel %vm406_vm0, %v12977_v38, -inf  ;;  %v12987_v3 = vpop.permute.xlu1 %4187  ;;  %v1310_v34 = vpack.c.bf16 %v10511_v1, %v10510_v59  ;;  %v10275_v59 = vunpack.i.l.bf16 %v12500_v24 }
 0x2ea   : > { %4420 = vmax.xlane.f32.xlu0 %v4419_v36  ;;  %v1313_v36 = vpack.c.bf16 %v10096_v31, %v10095_v48  ;;  %v10570_v48 = vunpack.i.l.bf16 %v12786_v47 }
 0x2eb   : > { %v3183_v54 = vpop.permute.xlu0 %3182 }
 0x2ec   : > { %9808 = vmatprep.subr.msk.bf16.mxu0 %vm2247_vm2, %v3183_v54  ;;  %v3193_v53 = vsel %vm2247_vm2, %v3183_v54, 0  ;;  %v10101_v54 = vunpack.i.h.bf16 %v12306_v46 }
 0x2f1   : > { %9342 = vmatpush3.bf16.xpose.msra.mxu0 %v3193_v53  ;;  %v10100_v53 = vunpack.i.l.bf16 %v12306_v46 }
 0x2f2   : > { %9811 = vmatprep.subr.msk.bf16.mxu0 %vm2247_vm2, %v12831_v56  ;;  %v10276_v56 = vunpack.i.h.bf16 %v12500_v24  ;;  %v3464_v24 = vsel %vm2247_vm2, %v12893_v22, 0 }
 0x2f3   : > { %v1314_v46 = vpack.c.bf16 %v10101_v54, %v10100_v53  ;;  %v16581_v54 = vld [vmem:[#allocation100_spill] sm:$0xff] }
 0x2f4   : > { %v3252_v15 = vpop.permute.xlu1 %3251  ;;  %v10281_v53 = vunpack.i.h.bf16 %v16581_v54 }
 0x2f5   : > { %9809 = vmatprep.subr.msk.bf16.mxu1 %vm2247_vm2, %v3252_v15  ;;  %v3263_v39 = vsel %vm2247_vm2, %v3252_v15, 0  ;;  %v16580_v15 = vld [vmem:[#allocation92_spill] sm:$0xff] }
 0x2f6   : > { %9348 = vmatpush3.bf16.xpose.msra.mxu1 %v3263_v39  ;;  %v10186_v39 = vunpack.i.h.bf16 %v16580_v15 }
 0x2f8   : > { %9344 = vmatmul.mubr.msk.bf16.vlgmr.msra.gmra.mxu0 %vm2247_vm2, %v1310_v34  ;;  %v10185_v34 = vunpack.i.l.bf16 %v16580_v15  ;;  %v10335_v15 = vunpack.i.l.bf16 %v12554_v13 }
 0x2f9   : > { %9356 = vmatpush3.bf16.xpose.msra.mxu0 %v3330_v50  ;;  %9359 = vmatprep.mubr.msk.bf16.mxu0 %vm2247_vm2, %v1313_v36  ;;  %v1317_v36 = vpack.c.bf16 %v10276_v56, %v10275_v59  ;;  %v10396_v56 = vunpack.i.h.bf16 %v12633_v62  ;;  %v3394_v59 = vsel %vm2247_vm2, %v12862_v37, 0 }
 0x2fa   : > { %9812 = vmatprep.subr.msk.bf16.mxu0 %vm2247_vm2, %v12848_v12  ;;  %v10571_v12 = vunpack.i.h.bf16 %v12786_v47  ;;  %v3397_v47 = vsel %vm2247_vm2, %v12853_v4, 0 }
 0x2fc   : > { %v1312_v50 = vpack.c.bf16 %v10571_v12, %v10570_v48 }
 0x301   : > { %9358 = vmatpush3.bf16.xpose.msra.mxu0 %v3327_v16  ;;  %v1315_v16 = vpack.c.bf16 %v10186_v39, %v10185_v34  ;;  %v2131_v39 = vld [vmem:[#allocation2 + $0x90] sm:$0xff] }
 0x302   : > { %v3250_v1 = vpop.permute.xlu1 %3249  ;;  %9815 = vmatprep.subr.msk.bf16.mxu0 %vm2247_vm2, %v12893_v22  ;;  %v3461_v22 = vsel %vm2247_vm2, %v12903_v7, 0 }
 0x303   : > { %9810 = vmatprep.subr.msk.bf16.mxu1 %vm2247_vm2, %v3250_v1  ;;  %v3260_v31 = vsel %vm2247_vm2, %v3250_v1, 0  ;;  %v10280_v1 = vunpack.i.l.bf16 %v16581_v54  ;;  %v3531_v54 = vsel %vm2247_vm2, %v12907_v25, 0 }
 0x304   : > { %9350 = vmatpush3.bf16.xpose.msra.mxu1 %v3260_v31  ;;  %v16582_v31 = vld [vmem:[#allocation93_spill] sm:$0xff] }
 0x305   : > { %9813 = vmatprep.subr.msk.bf16.mxu1 %vm2247_vm2, %v12853_v4  ;;  %v10395_v4 = vunpack.i.l.bf16 %v12633_v62  ;;  %v10191_v12 = vunpack.i.h.bf16 %v16582_v31  ;;  %v1318_v48 = vpack.c.bf16 %v10281_v53, %v10280_v1  ;;  %v3598_v62 = vsel %vm2247_vm2, %v12943_v45, 0  ;;  %v2122_v1 = vld [vmem:[#allocation2 + $0x48] sm:$0xff] }
 0x307   : > { %v1321_v34 = vpack.c.bf16 %v10396_v56, %v10395_v4 }
 0x308   : > { %9360 = vmatmul.mubr.msk.bf16.vlgmr.msra.gmra.mxu0 %vm2247_vm2, %v1314_v46  ;;  %v10336_v46 = vunpack.i.h.bf16 %v12554_v13  ;;  %v2132_v13 = vld [vmem:[#allocation2 + $0x98] sm:$0xff] }
 0x309   : > { %9372 = vmatpush3.bf16.xpose.msra.mxu0 %v3464_v24  ;;  %9375 = vmatprep.mubr.msk.bf16.mxu0 %vm2247_vm2, %v1317_v36  ;;  %v2121_v24 = vld [vmem:[#allocation2 + $0x40] sm:$0xff] }
 0x30a   : > { %9816 = vmatprep.subr.msk.bf16.mxu0 %vm2247_vm2, %v12903_v7  ;;  %v10190_v7 = vunpack.i.l.bf16 %v16582_v31  ;;  %v13062_v53 = vadd.f32 %v12972_v61, %v2121_v24 }
 0x30b   : > { %9352 = vmatmul.mubr.msk.bf16.vlgmr.msra.gmra.mxu1 %vm2247_vm2, %v1312_v50 }
 0x30c   : > { %9364 = vmatpush3.bf16.xpose.msra.mxu1 %v3397_v47  ;;  %9367 = vmatprep.mubr.msk.bf16.mxu1 %vm2247_vm2, %v1315_v16  ;;  %v1319_v16 = vpack.c.bf16 %v10336_v46, %v10335_v15  ;;  %v4410_v46 = vsel %vm406_vm0, %v13062_v53, -inf  ;;  %v3595_v15 = vsel %vm2247_vm2, %v12953_v55, 0 }
 0x30d   : > { %9814 = vmatprep.subr.msk.bf16.mxu1 %vm2247_vm2, %v12862_v37  ;;  %v1316_v37 = vpack.c.bf16 %v10191_v12, %v10190_v7 }
 0x311   : > { %9374 = vmatpush3.bf16.xpose.msra.mxu0 %v3461_v22  ;;  %v2431_v22 = vpop.f32.mrf.mxu1 }
 0x312   : > { %9819 = vmatprep.subr.msk.bf16.mxu0 %vm2247_vm2, %v12943_v45 }
 0x313   : > { %v9257_v4 = vpop.f32.mrf.mxu1 }
 0x314   : > { %9366 = vmatpush3.bf16.xpose.msra.mxu1 %v3394_v59  ;;  %v2129_v59 = vld [vmem:[#allocation2 + $0x80] sm:$0xff] }
 0x315   : > { %9817 = vmatprep.subr.msk.bf16.mxu1 %vm2247_vm2, %v12907_v25  ;;  %v13069_v25 = vadd.f32 %v2431_v22, %v2122_v1  ;;  %v2128_v1 = vld [vmem:[#allocation2 + $0x78] sm:$0xff] }
 0x318   : > { %v9265_v36 = vpop.f32.mrf.mxu0  ;;  %9376 = vmatmul.mubr.msk.bf16.vlgmr.msra.gmra.mxu0 %vm2247_vm2, %v1318_v48  ;;  %v2130_v48 = vld [vmem:[#allocation2 + $0x88] sm:$0xff] }
 0x319   : > { %v13051_v50 = vadd.f32 %v9265_v36, %v2131_v39  ;;  %9388 = vmatpush3.bf16.xpose.msra.mxu0 %v3598_v62  ;;  %9391 = vmatprep.mubr.msk.bf16.mxu0 %vm2247_vm2, %v1321_v34  ;;  %v3721_v39 = vpop.permute.xlu0 %3720  ;;  %v2127_v34 = vld [vmem:[#allocation2 + $0x70] sm:$0xff]  ;;  %v13079_v36 = vpop.f32.mrf.mxu1  ;;  %v10401_v62 = vunpack.i.h.bf16 %v12638_v10 }
 0x31a   : > { %v2562_v47 = vpop.f32.mrf.mxu0  ;;  %9820 = vmatprep.subr.msk.bf16.mxu0 %vm2247_vm2, %v12953_v55  ;;  %v4413_v55 = vsel %vm406_vm0, %v13069_v25, -inf  ;;  %v13092_v22 = vadd.f32 %v9257_v4, %v2127_v34  ;;  %v10455_v4 = vunpack.i.l.bf16 %v12719_v18 }
 0x31b   : > { %9368 = vmatmul.mubr.msk.bf16.vlgmr.msra.gmra.mxu1 %vm2247_vm2, %v1316_v37  ;;  %v4440_v45 = vsel %vm406_vm0, %v13051_v50, -inf  ;;  %v13073_v61 = vadd.f32 %v2562_v47, %v2129_v59  ;;  %v10400_v37 = vunpack.i.l.bf16 %v12638_v10  ;;  %v10516_v47 = vunpack.i.h.bf16 %v12771_v0 }
 0x31c   : > { %v9266_v56 = vpop.f32.mrf.mxu0  ;;  %9380 = vmatpush3.bf16.xpose.msra.mxu1 %v3531_v54  ;;  %9383 = vmatprep.mubr.msk.bf16.mxu1 %vm2247_vm2, %v1319_v16  ;;  %v3528_v16 = vsel %vm2247_vm2, %v12917_v21, 0  ;;  %v10341_v54 = vunpack.i.h.bf16 %v12560_v51 }
 0x31d   : > { %v13065_v31 = vadd.f32 %v9266_v56, %v2132_v13  ;;  %4441 = vmax.xlane.f32.xlu1 %v4440_v45  ;;  %9818 = vmatprep.subr.msk.bf16.mxu1 %vm2247_vm2, %v12917_v21  ;;  %v10515_v13 = vunpack.i.l.bf16 %v12771_v0  ;;  %v4434_v10 = vsel %vm406_vm0, %v13073_v61, -inf  ;;  %v10340_v45 = vunpack.i.l.bf16 %v12560_v51  ;;  %v9258_v21 = vpop.f32.mrf.mxu1 }
 0x31e   : > { %v2565_v7 = vpop.f32.mrf.mxu0  ;;  %v1322_v56 = vpack.c.bf16 %v10401_v62, %v10400_v37  ;;  %v10456_v0 = vunpack.i.h.bf16 %v12719_v18  ;;  %v4428_v51 = vsel %vm406_vm0, %v13092_v22, -inf  ;;  %v3665_v18 = vsel %vm2247_vm2, %v12955_v44, 0 }
 0x31f   : > { %v4443_v12 = vsel %vm406_vm0, %v13065_v31, -inf  ;;  %v13084_v24 = vadd.f32 %v2565_v7, %v2130_v48  ;;  %v13104_v7 = vadd.f32 %v9258_v21, %v2128_v1  ;;  %v3732_v48 = vsel %vm2247_vm2, %v3721_v39, 0 }
 0x320   : > { %4444 = vmax.xlane.f32.xlu0 %v4443_v12  ;;  %v1325_v12 = vpack.c.bf16 %v10516_v47, %v10515_v13  ;;  %v1323_v34 = vpack.c.bf16 %v10456_v0, %v10455_v4  ;;  %v10521_v37 = vunpack.i.h.bf16 %v12762_v5  ;;  %v3662_v13 = vsel %vm2247_vm2, %v12970_v28, 0 }
 0x321   : > { %4411 = vmax.xlane.f32.xlu1 %v4410_v46  ;;  %9390 = vmatpush3.bf16.xpose.msra.mxu0 %v3595_v15  ;;  %v4437_v59 = vsel %vm406_vm0, %v13084_v24, -inf  ;;  %v1320_v46 = vpack.c.bf16 %v10341_v54, %v10340_v45  ;;  %v3719_v15 = vpop.permute.xlu0 %3718  ;;  %v10461_v54 = vunpack.i.h.bf16 %v12700_v43  ;;  %v10460_v45 = vunpack.i.l.bf16 %v12700_v43 }
 0x322   : > { %9823 = vmatprep.subr.msk.bf16.mxu0 %vm2247_vm2, %v3721_v39  ;;  %v4431_v39 = vsel %vm406_vm0, %v13104_v7, -inf  ;;  %v3729_v62 = vsel %vm2247_vm2, %v3719_v15, 0  ;;  %v10575_v21 = vunpack.i.l.bf16 %v12807_v63  ;;  %v3866_v0 = vsel %vm2247_vm2, %v12857_v41, 0 }
 0x324   : > { %9382 = vmatpush3.bf16.xpose.msra.mxu1 %v3528_v16  ;;  %4414 = vmax.xlane.f32.xlu0 %v4413_v55  ;;  %v10520_v16 = vunpack.i.l.bf16 %v12762_v5  ;;  %v10576_v5 = vunpack.i.h.bf16 %v12807_v63  ;;  %v3863_v63 = vsel %vm2247_vm2, %v12868_v9, 0 }
 0x325   : > { %4435 = vmax.xlane.f32.xlu1 %v4434_v10  ;;  %9821 = vmatprep.subr.msk.bf16.mxu1 %vm2247_vm2, %v12955_v44  ;;  %v16583_v44 = vld [vmem:[#allocation38_spill] sm:$0xff]  ;;  %v3788_v10 = vpop.permute.xlu1 %3787 }
 0x326   : > { %v10106_v55 = vunpack.i.h.bf16 %v16583_v44  ;;  %v10105_v47 = vunpack.i.l.bf16 %v16583_v44  ;;  %v1326_v1 = vpack.c.bf16 %v10521_v37, %v10520_v16  ;;  %v1327_v4 = vpack.c.bf16 %v10576_v5, %v10575_v21 }
 0x327   : > { %v3799_v43 = vsel %vm2247_vm2, %v3788_v10, 0  ;;  %v10405_v5 = vunpack.i.l.bf16 %v12643_v30  ;;  %v3930_v21 = vsel %vm2247_vm2, %v12882_v42, 0 }
 0x328   : > { %9392 = vmatmul.mubr.msk.bf16.vlgmr.msra.gmra.mxu0 %vm2247_vm2, %v1322_v56  ;;  %4438 = vmax.xlane.f32.xlu0 %v4437_v59  ;;  %v1329_v56 = vpack.c.bf16 %v10106_v55, %v10105_v47  ;;  %v4000_v55 = vsel %vm2247_vm2, %v12910_v14, 0 }
 0x329   : > { %4429 = vmax.xlane.f32.xlu1 %v4428_v51  ;;  %9404 = vmatpush3.bf16.xpose.msra.mxu0 %v3732_v48  ;;  %v3786_v59 = vpop.permute.xlu1 %3785  ;;  %v16585_v48 = vld [vmem:[#allocation101_spill] sm:$0xff] }
 0x32a   : > { %9407 = vmatprep.mubr.msk.bf16.mxu0 %vm2247_vm2, %v1325_v12  ;;  %9824 = vmatprep.subr.msk.bf16.mxu0 %vm2247_vm2, %v3719_v15  ;;  %v10285_v15 = vunpack.i.l.bf16 %v16585_v48 }
 0x32b   : > { %9384 = vmatmul.mubr.msk.bf16.vlgmr.msra.gmra.mxu1 %vm2247_vm2, %v1320_v46  ;;  %v10286_v46 = vunpack.i.h.bf16 %v16585_v48 }
 0x32c   : > { %9396 = vmatpush3.bf16.xpose.msra.mxu1 %v3665_v18  ;;  %9399 = vmatprep.mubr.msk.bf16.mxu1 %vm2247_vm2, %v1323_v34  ;;  %v3796_v34 = vsel %vm2247_vm2, %v3786_v59, 0  ;;  %v10581_v18 = vunpack.i.h.bf16 %v12794_v33 }
 0x32d   : > { %4432 = vmax.xlane.f32.xlu0 %v4431_v39  ;;  %9822 = vmatprep.subr.msk.bf16.mxu1 %vm2247_vm2, %v12970_v28  ;;  %v1324_v28 = vpack.c.bf16 %v10461_v54, %v10460_v45  ;;  %v10580_v39 = vunpack.i.l.bf16 %v12794_v33  ;;  %v1333_v44 = vpack.c.bf16 %v10286_v46, %v10285_v15  ;;  %v3933_v33 = vsel %vm2247_vm2, %v12876_v19, 0  ;;  %v2498_v46 = vpop.f32.mrf.mxu1 }
 0x32f   : > { %v1328_v47 = vpack.c.bf16 %v10581_v18, %v10580_v39  ;;  %v2126_v39 = vld [vmem:[#allocation2 + $0x68] sm:$0xff] }
 0x331   : > { %9406 = vmatpush3.bf16.xpose.msra.mxu0 %v3729_v62  ;;  %v16586_v62 = vld [vmem:[#allocation94_spill] sm:$0xff] }
 0x332   : > { %9827 = vmatprep.subr.msk.bf16.mxu0 %vm2247_vm2, %v12857_v41  ;;  %v16584_v41 = vld [vmem:[#allocation37_spill] sm:$0xff]  ;;  %v10196_v37 = vunpack.i.h.bf16 %v16586_v62  ;;  %v10195_v16 = vunpack.i.l.bf16 %v16586_v62 }
 0x333   : > { %v10111_v12 = vunpack.i.h.bf16 %v16584_v41  ;;  %v10110_v51 = vunpack.i.l.bf16 %v16584_v41 }
 0x334   : > { %9398 = vmatpush3.bf16.xpose.msra.mxu1 %v3662_v13  ;;  %v1331_v13 = vpack.c.bf16 %v10196_v37, %v10195_v16  ;;  %v9273_v37 = vpop.f32.mrf.mxu1  ;;  %v13207_v16 = vadd.f32 %v2498_v46, %v2126_v39 }
 0x335   : > { %9825 = vmatprep.subr.msk.bf16.mxu1 %vm2247_vm2, %v3788_v10  ;;  %v16587_v10 = vld [vmem:[#allocation102_spill] sm:$0xff] }
 0x336   : > { %v10291_v54 = vunpack.i.h.bf16 %v16587_v10  ;;  %v10290_v45 = vunpack.i.l.bf16 %v16587_v10 }
 0x338   : > { %9408 = vmatmul.mubr.msk.bf16.vlgmr.msra.gmra.mxu0 %vm2247_vm2, %v1326_v1  ;;  %v2139_v1 = vld [vmem:[#allocation2 + $0xd0] sm:$0xff] }
 0x339   : > { %9420 = vmatpush3.bf16.xpose.msra.mxu0 %v3866_v0  ;;  %9423 = vmatprep.mubr.msk.bf16.mxu0 %vm2247_vm2, %v1329_v56  ;;  %v16588_v0 = vld [vmem:[#allocation95_spill] sm:$0xff] }
 0x33a   : > { %9828 = vmatprep.subr.msk.bf16.mxu0 %vm2247_vm2, %v12868_v9  ;;  %v1330_v9 = vpack.c.bf16 %v10111_v12, %v10110_v51  ;;  %v2140_v12 = vld [vmem:[#allocation2 + $0xd8] sm:$0xff] }
 0x33b   : > { %9400 = vmatmul.mubr.msk.bf16.vlgmr.msra.gmra.mxu1 %vm2247_vm2, %v1324_v28  ;;  %v10200_v28 = vunpack.i.l.bf16 %v16588_v0 }
 0x33c   : > { %9412 = vmatpush3.bf16.xpose.msra.mxu1 %v3799_v43  ;;  %9415 = vmatprep.mubr.msk.bf16.mxu1 %vm2247_vm2, %v1327_v4  ;;  %v2125_v4 = vld [vmem:[#allocation2 + $0x60] sm:$0xff] }
 0x33d   : > { %9826 = vmatprep.subr.msk.bf16.mxu1 %vm2247_vm2, %v3786_v59  ;;  %v1334_v59 = vpack.c.bf16 %v10291_v54, %v10290_v45  ;;  %v13192_v48 = vadd.f32 %v13079_v36, %v2125_v4  ;;  %v4067_v36 = vsel %vm2247_vm2, %v12924_v11, 0  ;;  %v4425_v45 = vsel %vm406_vm0, %v13207_v16, -inf }
 0x341   : > { %9422 = vmatpush3.bf16.xpose.msra.mxu0 %v3863_v63  ;;  %v10346_v63 = vunpack.i.h.bf16 %v12566_v27 }
 0x342   : > { %9831 = vmatprep.subr.msk.bf16.mxu0 %vm2247_vm2, %v12910_v14  ;;  %v3997_v14 = vsel %vm2247_vm2, %v12922_v17, 0 }
 0x344   : > { %9414 = vmatpush3.bf16.xpose.msra.mxu1 %v3796_v34  ;;  %v4134_v34 = vsel %vm2247_vm2, %v12958_v40, 0 }
 0x345   : > { %9829 = vmatprep.subr.msk.bf16.mxu1 %vm2247_vm2, %v12876_v19  ;;  %v10406_v19 = vunpack.i.h.bf16 %v12643_v30  ;;  %v10345_v30 = vunpack.i.l.bf16 %v12566_v27  ;;  %v2137_v27 = vld [vmem:[#allocation2 + $0xc0] sm:$0xff] }
 0x347   : > { %v1335_v62 = vpack.c.bf16 %v10346_v63, %v10345_v30  ;;  %v10526_v63 = vunpack.i.h.bf16 %v12774_v23  ;;  %v10525_v30 = vunpack.i.l.bf16 %v12774_v23 }
 0x348   : > { %9424 = vmatmul.mubr.msk.bf16.vlgmr.msra.gmra.mxu0 %vm2247_vm2, %v1330_v9 }
 0x349   : > { %9436 = vmatpush3.bf16.xpose.msra.mxu0 %v4000_v55  ;;  %9439 = vmatprep.mubr.msk.bf16.mxu0 %vm2247_vm2, %v1333_v44  ;;  %v4422_v55 = vsel %vm406_vm0, %v13192_v48, -inf  ;;  %v1341_v39 = vpack.c.bf16 %v10526_v63, %v10525_v30  ;;  %v4324_v63 = vpop.permute.xlu1 %4323 }
 0x34a   : > { %9832 = vmatprep.subr.msk.bf16.mxu0 %vm2247_vm2, %v12922_v17  ;;  %v10201_v17 = vunpack.i.h.bf16 %v16588_v0  ;;  %v10411_v0 = vunpack.i.h.bf16 %v12648_v52 }
 0x34b   : > { %9416 = vmatmul.mubr.msk.bf16.vlgmr.msra.gmra.mxu1 %vm2247_vm2, %v1328_v47  ;;  %v2135_v47 = vld [vmem:[#allocation2 + $0xb0] sm:$0xff] }
 0x34c   : > { %9428 = vmatpush3.bf16.xpose.msra.mxu1 %v3933_v33  ;;  %9431 = vmatprep.mubr.msk.bf16.mxu1 %vm2247_vm2, %v1331_v13  ;;  %v1332_v18 = vpack.c.bf16 %v10201_v17, %v10200_v28  ;;  %v2138_v33 = vld [vmem:[#allocation2 + $0xc8] sm:$0xff]  ;;  %v10410_v17 = vunpack.i.l.bf16 %v12648_v52  ;;  %v4064_v28 = vsel %vm2247_vm2, %v12934_v60, 0  ;;  %v16589_v52 = vld [vmem:[#allocation72_spill] sm:$0xff] }
 0x34d   : > { %9830 = vmatprep.subr.msk.bf16.mxu1 %vm2247_vm2, %v12882_v42  ;;  %v1337_v42 = vpack.c.bf16 %v10406_v19, %v10405_v5  ;;  %v4131_v19 = vsel %vm2247_vm2, %v12968_v8, 0  ;;  %v4257_v5 = vpop.permute.xlu0 %4256 }
 0x34e   : > { %v1338_v46 = vpack.c.bf16 %v10411_v0, %v10410_v17 }
 0x351   : > { %9438 = vmatpush3.bf16.xpose.msra.mxu0 %v3997_v14  ;;  %v2629_v14 = vpop.f32.mrf.mxu1 }
 0x352   : > { %9835 = vmatprep.subr.msk.bf16.mxu0 %vm2247_vm2, %v12958_v40 }
 0x354   : > { %v9281_v56 = vpop.f32.mrf.mxu0  ;;  %9430 = vmatpush3.bf16.xpose.msra.mxu1 %v3930_v21  ;;  %v2136_v21 = vld [vmem:[#allocation2 + $0xb8] sm:$0xff] }
 0x355   : > { %v13183_v43 = vadd.f32 %v9281_v56, %v2139_v1  ;;  %9833 = vmatprep.subr.msk.bf16.mxu1 %vm2247_vm2, %v12924_v11  ;;  %v13216_v11 = vadd.f32 %v9273_v37, %v2135_v47  ;;  %v2133_v1 = vld [vmem:[#allocation2 + $0xa0] sm:$0xff]  ;;  %v9274_v56 = vpop.f32.mrf.mxu1  ;;  %v4268_v37 = vsel %vm2247_vm2, %v4257_v5, 0 }
 0x356   : > { %v2696_v41 = vpop.f32.mrf.mxu0  ;;  %v13231_v4 = vadd.f32 %v2629_v14, %v2133_v1  ;;  %v4201_v14 = vsel %vm2247_vm2, %v12984_v35, 0 }
 0x357   : > { %v4464_v51 = vsel %vm406_vm0, %v13183_v43, -inf  ;;  %v13209_v44 = vadd.f32 %v2696_v41, %v2137_v27  ;;  %v13239_v41 = vadd.f32 %v9274_v56, %v2136_v21  ;;  %v2142_v21 = vld [vmem:[#allocation2 + $0xe8] sm:$0xff] }
 0x358   : > { %v9282_v15 = vpop.f32.mrf.mxu0  ;;  %9440 = vmatmul.mubr.msk.bf16.vlgmr.msra.gmra.mxu0 %vm2247_vm2, %v1334_v59  ;;  %4465 = vmax.xlane.f32.xlu1 %v4464_v51  ;;  %v4452_v59 = vsel %vm406_vm0, %v13216_v11, -inf  ;;  %v2134_v51 = vld [vmem:[#allocation2 + $0xa8] sm:$0xff]  ;;  %v4446_v23 = vsel %vm406_vm0, %v13231_v4, -inf }
 0x359   : > { %v13197_v9 = vadd.f32 %v9282_v15, %v2140_v12  ;;  %9452 = vmatpush3.bf16.xpose.msra.mxu0 %v4134_v34  ;;  %9455 = vmatprep.mubr.msk.bf16.mxu0 %vm2247_vm2, %v1337_v42  ;;  %v4458_v54 = vsel %vm406_vm0, %v13209_v44, -inf  ;;  %v10351_v12 = vunpack.i.h.bf16 %v16589_v52  ;;  %v2632_v42 = vpop.f32.mrf.mxu1  ;;  %v10466_v15 = vunpack.i.h.bf16 %v12727_v32 }
 0x35a   : > { %9836 = vmatprep.subr.msk.bf16.mxu0 %vm2247_vm2, %v12968_v8  ;;  %v2699_v13 = vpop.f32.mrf.mxu0  ;;  %v10465_v34 = vunpack.i.l.bf16 %v12727_v32  ;;  %v13249_v27 = vadd.f32 %v2632_v42, %v2134_v51  ;;  %v10531_v42 = vunpack.i.h.bf16 %v12768_v2  ;;  %v10530_v51 = vunpack.i.l.bf16 %v12768_v2 }
 0x35b   : > { %9432 = vmatmul.mubr.msk.bf16.vlgmr.msra.gmra.mxu1 %vm2247_vm2, %v1332_v18  ;;  %v4467_v40 = vsel %vm406_vm0, %v13197_v9, -inf  ;;  %v13218_v10 = vadd.f32 %v2699_v13, %v2138_v33  ;;  %v2143_v18 = vld [vmem:[#allocation2 + $0xf0] sm:$0xff]  ;;  %v2141_v13 = vld [vmem:[#allocation2 + $0xe0] sm:$0xff] }
 0x35c   : > { %9444 = vmatpush3.bf16.xpose.msra.mxu1 %v4067_v36  ;;  %9447 = vmatprep.mubr.msk.bf16.mxu1 %vm2247_vm2, %v1335_v62  ;;  %v4455_v62 = vsel %vm406_vm0, %v13239_v41, -inf }
 0x35d   : > { %4423 = vmax.xlane.f32.xlu1 %v4422_v55  ;;  %4468 = vmax.xlane.f32.xlu0 %v4467_v40  ;;  %v4461_v8 = vsel %vm406_vm0, %v13218_v10, -inf  ;;  %v4255_v40 = vpop.permute.xlu0 %4254  ;;  %v1339_v55 = vpack.c.bf16 %v10466_v15, %v10465_v34  ;;  %v4198_v34 = vsel %vm2247_vm2, %v12987_v3, 0 }
 0x35e   : > { %9834 = vmatprep.subr.msk.bf16.mxu1 %vm2247_vm2, %v12934_v60  ;;  %v10350_v60 = vunpack.i.l.bf16 %v16589_v52 }
 0x360   : > { %v1336_v36 = vpack.c.bf16 %v10351_v12, %v10350_v60  ;;  %v2148_v60 = vld [vmem:[#allocation2 + $0x118] sm:$0xff] }
 0x361   : > { %4459 = vmax.xlane.f32.xlu1 %v4458_v54  ;;  %4426 = vmax.xlane.f32.xlu0 %v4425_v45  ;;  %v2144_v54 = vld [vmem:[#allocation2 + $0xf8] sm:$0xff]  ;;  %v4449_v45 = vsel %vm406_vm0, %v13249_v27, -inf }
 0x362   : > { %9454 = vmatpush3.bf16.xpose.msra.mxu0 %v4131_v19 }
 0x363   : > { %9839 = vmatprep.subr.msk.bf16.mxu0 %vm2247_vm2, %v4257_v5 }
 0x364   : > { %9446 = vmatpush3.bf16.xpose.msra.mxu1 %v4064_v28 }
 0x365   : > { %4453 = vmax.xlane.f32.xlu1 %v4452_v59  ;;  %4462 = vmax.xlane.f32.xlu0 %v4461_v8  ;;  %v4265_v59 = vsel %vm2247_vm2, %v4255_v40, 0 }
 0x366   : > { %9837 = vmatprep.subr.msk.bf16.mxu1 %vm2247_vm2, %v12984_v35  ;;  %v2147_v35 = vld [vmem:[#allocation2 + $0x110] sm:$0xff] }
 0x369   : > { %9456 = vmatmul.mubr.msk.bf16.vlgmr.msra.gmra.mxu0 %vm2247_vm2, %v1338_v46  ;;  %4447 = vmax.xlane.f32.xlu1 %v4446_v23  ;;  %v2145_v46 = vld [vmem:[#allocation2 + $0x100] sm:$0xff] }
 0x36a   : > { %4456 = vmax.xlane.f32.xlu0 %v4455_v62  ;;  %9468 = vmatpush3.bf16.xpose.msra.mxu0 %v4268_v37  ;;  %v9289_v32 = vpop.f32.mrf.mxu1  ;;  %v10470_v62 = vunpack.i.l.bf16 %v12714_v20 }
 0x36b   : > { %9471 = vmatprep.mubr.msk.bf16.mxu0 %vm2247_vm2, %v1341_v39  ;;  %v13256_v47 = vadd.f32 %v9289_v32, %v2143_v18  ;;  %9840 = vmatprep.subr.msk.bf16.mxu0 %vm2247_vm2, %v4255_v40  ;;  %v10471_v39 = vunpack.i.h.bf16 %v12714_v20  ;;  %v10585_v40 = vunpack.i.l.bf16 %v12812_v49  ;;  %v4322_v32 = vpop.permute.xlu1 %4321 }
 0x36c   : > { %9448 = vmatmul.mubr.msk.bf16.vlgmr.msra.gmra.mxu1 %vm2247_vm2, %v1336_v36  ;;  %v2763_v33 = vpop.f32.mrf.mxu1  ;;  %v1342_v36 = vpack.c.bf16 %v10531_v42, %v10530_v51  ;;  %v2150_v51 = vld [vmem:[#allocation2 + $0x128] sm:$0xff] }
 0x36d   : > { %9460 = vmatpush3.bf16.xpose.msra.mxu1 %v4201_v14  ;;  %9463 = vmatprep.mubr.msk.bf16.mxu1 %vm2247_vm2, %v1339_v55  ;;  %v4476_v1 = vsel %vm406_vm0, %v13256_v47, -inf  ;;  %v13267_v19 = vadd.f32 %v2763_v33, %v2141_v13  ;;  %v2146_v13 = vld [vmem:[#allocation2 + $0x108] sm:$0xff]  ;;  %v2151_v33 = vld [vmem:[#allocation2 + $0x130] sm:$0xff]  ;;  %v1340_v14 = vpack.c.bf16 %v10471_v39, %v10470_v62  ;;  %v10591_v62 = vunpack.i.h.bf16 %v12804_v29 }
 0x36e   : > { %4450 = vmax.xlane.f32.xlu0 %v4449_v45  ;;  %9838 = vmatprep.subr.msk.bf16.mxu1 %vm2247_vm2, %v12987_v3  ;;  %v9290_v5 = vpop.f32.mrf.mxu1  ;;  %v10586_v3 = vunpack.i.h.bf16 %v12812_v49 }
 0x36f   : > { %v13271_v56 = vadd.f32 %v9290_v5, %v2144_v54  ;;  %4477 = vmax.xlane.f32.xlu1 %v4476_v1  ;;  %v4470_v12 = vsel %vm406_vm0, %v13267_v19, -inf  ;;  %v5861_v54 = vpop.permute.xlu0 %5860 }
 0x370   : > { %v2766_v0 = vpop.f32.mrf.mxu1  ;;  %v9297_v17 = vpop.f32.mrf.mxu0  ;;  %v1343_v49 = vpack.c.bf16 %v10586_v3, %v10585_v40 }
 0x371   : > { %v13273_v28 = vadd.f32 %v2766_v0, %v2142_v21  ;;  %v4479_v8 = vsel %vm406_vm0, %v13271_v56, -inf  ;;  %v13278_v30 = vadd.f32 %v9297_v17, %v2147_v35  ;;  %v2149_v35 = vld [vmem:[#allocation2 + $0x120] sm:$0xff]  ;;  %v4335_v17 = vsel %vm2247_vm2, %v4324_v63, 0 }
 0x372   : > { %9470 = vmatpush3.bf16.xpose.msra.mxu0 %v4265_v59  ;;  %v2830_v52 = vpop.f32.mrf.mxu0  ;;  %4480 = vmax.xlane.f32.xlu0 %v4479_v8  ;;  %v2152_v59 = vld [vmem:[#allocation2 + $0x138] sm:$0xff]  ;;  %v13315_v8 = vpop.permute.xlu1 %5925 }
 0x373   : > { %9483 = vmatprep.subr.bf16.mxu0 %v12819_v26  ;;  %4471 = vmax.xlane.f32.xlu1 %v4470_v12  ;;  %v4473_v18 = vsel %vm406_vm0, %v13273_v28, -inf  ;;  %v13293_v37 = vadd.f32 %v2830_v52, %v2145_v46  ;;  %v4488_v2 = vsel %vm406_vm0, %v13278_v30, -inf  ;;  %v5989_v39 = vpop.permute.xlu0 %5988 }
 0x374   : > { %v9298_v15 = vpop.f32.mrf.mxu0 }
 0x375   : > { %v13287_v23 = vadd.f32 %v9298_v15, %v2148_v60  ;;  %9462 = vmatpush3.bf16.xpose.msra.mxu1 %v4198_v34  ;;  %v4482_v1 = vsel %vm406_vm0, %v13293_v37, -inf }
 0x376   : > { %9841 = vmatprep.subr.msk.bf16.mxu1 %vm2247_vm2, %v4324_v63  ;;  %4474 = vmax.xlane.f32.xlu0 %v4473_v18  ;;  %v2833_v55 = vpop.f32.mrf.mxu0  ;;  %v4332_v18 = vsel %vm2247_vm2, %v4322_v32, 0 }
 0x377   : > { %4489 = vmax.xlane.f32.xlu1 %v4488_v2  ;;  %v4491_v20 = vsel %vm406_vm0, %v13287_v23, -inf  ;;  %v13306_v5 = vadd.f32 %v2833_v55, %v2146_v13  ;;  %v10590_v2 = vunpack.i.l.bf16 %v12804_v29  ;;  %v2153_v55 = vld [vmem:[#allocation2 + $0x140] sm:$0xff] }
 0x379   : > { %9472 = vmatmul.mubr.msk.bf16.vlgmr.msra.gmra.mxu0 %vm2247_vm2, %v1342_v36  ;;  %v4485_v63 = vsel %vm406_vm0, %v13306_v5, -inf  ;;  %v2155_v36 = vld [vmem:[#allocation2 + $0x150] sm:$0xff] }
 0x37a   : > { %9484 = vmatpush3.bf16.msra.mxu0 %v12819_v26  ;;  %v9305_v45 = vpop.f32.mrf.mxu1  ;;  %4492 = vmax.xlane.f32.xlu0 %v4491_v20 }
 0x37b   : > { %v13308_v21 = vadd.f32 %v9305_v45, %v2151_v33  ;;  %9485 = vmatprep.subr.bf16.mxu0 %v5861_v54  ;;  %4483 = vmax.xlane.f32.xlu1 %v4482_v1  ;;  %v1344_v33 = vpack.c.bf16 %v10591_v62, %v10590_v2  ;;  %v2154_v45 = vld [vmem:[#allocation2 + $0x148] sm:$0xff]  ;;  %v2159_v1 = vld [vmem:[#allocation2 + $0x170] sm:$0xff] }
 0x37c   : > { %9464 = vmatmul.mubr.msk.bf16.vlgmr.msra.gmra.mxu1 %vm2247_vm2, %v1340_v14  ;;  %v2897_v0 = vpop.f32.mrf.mxu1  ;;  %v2156_v14 = vld [vmem:[#allocation2 + $0x158] sm:$0xff] }
 0x37d   : > { %9476 = vmatpush3.bf16.xpose.msra.mxu1 %v4335_v17  ;;  %9479 = vmatprep.mubr.msk.bf16.mxu1 %vm2247_vm2, %v1343_v49  ;;  %v4500_v26 = vsel %vm406_vm0, %v13308_v21, -inf  ;;  %v13317_v52 = vadd.f32 %v2897_v0, %v2149_v35  ;;  %v4394_v17 = vpop.xlane.xlu0 %4393 }
 0x37e   : > { %9842 = vmatprep.subr.msk.bf16.mxu1 %vm2247_vm2, %v4322_v32  ;;  %9486 = vmatpush3.bf16.msra.mxu0 %v5861_v54  ;;  %v9306_v12 = vpop.f32.mrf.mxu1 }
 0x37f   : > { %v13320_v60 = vadd.f32 %v9306_v12, %v2152_v59  ;;  %9491 = vmatprep.subr.bf16.mxu0 %v13315_v8  ;;  %4501 = vmax.xlane.f32.xlu1 %v4500_v26  ;;  %v4494_v15 = vsel %vm406_vm0, %v13317_v52, -inf }
 0x380   : > { %4486 = vmax.xlane.f32.xlu0 %v4485_v63  ;;  %v2900_v42 = vpop.f32.mrf.mxu1 }
 0x381   : > { %v4503_v46 = vsel %vm406_vm0, %v13320_v60, -inf  ;;  %v13329_v34 = vadd.f32 %v2900_v42, %v2150_v51  ;;  %v2157_v51 = vld [vmem:[#allocation2 + $0x160] sm:$0xff] }
 0x383   : > { %4495 = vmax.xlane.f32.xlu1 %v4494_v15  ;;  %v4497_v3 = vsel %vm406_vm0, %v13329_v34, -inf }
 0x384   : > { %4504 = vmax.xlane.f32.xlu0 %v4503_v46  ;;  %v2160_v46 = vld [vmem:[#allocation2 + $0x178] sm:$0xff] }
 0x385   : > { %9478 = vmatpush3.bf16.xpose.msra.mxu1 %v4332_v18 }
 0x386   : > { %9499 = vmatprep.subr.bf16.mxu1 %v5989_v39 }
 0x388   : > { %4498 = vmax.xlane.f32.xlu0 %v4497_v3  ;;  %v9313_v40 = vpop.f32.mrf.mxu0  ;;  %v2158_v3 = vld [vmem:[#allocation2 + $0x168] sm:$0xff] }
 0x389   : > { %v13336_v13 = vadd.f32 %v9313_v40, %v2155_v36  ;;  %v4388_v40 = vpop.xlane.xlu0 %4387 }
 0x38a   : > { %v2964_v20 = vpop.f32.mrf.mxu0 }
 0x38b   : > { %16590 = vst [vmem:[#allocation6_spill] sm:$0xff] %v13336_v13  ;;  %v13338_v32 = vadd.f32 %v2964_v20, %v2153_v55  ;;  %v4512_v54 = vsel %vm406_vm0, %v13336_v13, -inf  ;;  %v13361_v55 = vpop.permute.xlu1 %5923 }
 0x38c   : > { %9480 = vmatmul.mubr.msk.bf16.vlgmr.msra.gmra.mxu1 %vm2247_vm2, %v1344_v33  ;;  %v9314_v29 = vpop.f32.mrf.mxu0  ;;  %4513 = vmax.xlane.f32.xlu1 %v4512_v54  ;;  %v4772_v54 = vsub.f32 %v12846_v58, %v4394_v17 }
 0x38d   : > { %16591 = vst [vmem:[#allocation56_spill] sm:$0xff] %v13338_v32  ;;  %v13343_v49 = vadd.f32 %v9314_v29, %v2156_v14  ;;  %9500 = vmatpush3.bf16.msra.mxu1 %v5989_v39  ;;  %v4506_v12 = vsel %vm406_vm0, %v13338_v32, -inf  ;;  %v4397_v29 = vpop.xlane.xlu0 %4396  ;;  %v2180_v32 = vld [vmem:[#allocation2 + $0x218] sm:$0xff] }
 0x38e   : > { %v2967_v35 = vpop.f32.mrf.mxu0  ;;  %v9321_v0 = vpop.f32.mrf.mxu1 }
 0x38f   : > { %16592 = vst [vmem:[#allocation55_spill] sm:$0xff] %v13343_v49  ;;  %v13345_v59 = vadd.f32 %v2967_v35, %v2154_v45  ;;  %v13347_v26 = vadd.f32 %v9321_v0, %v2159_v1  ;;  %v4515_v63 = vsel %vm406_vm0, %v13343_v49, -inf  ;;  %v13372_v1 = vpop.permute.xlu1 %6051  ;;  %v4770_v35 = vsub.f32 %v12855_v6, %v4388_v40  ;;  %v16598_v0 = vld [vmem:[#allocation73_spill] sm:$0xff] }
 0x390   : > { %v3031_v42 = vpop.f32.mrf.mxu1  ;;  %4507 = vmax.xlane.f32.xlu1 %v4506_v12  ;;  %4516 = vmax.xlane.f32.xlu0 %v4515_v63  ;;  %v4773_v12 = vsub.f32 %v16598_v0, %v4397_v29  ;;  %v2163_v63 = vld [vmem:[#allocation2 + $0x190] sm:$0xff] }
 0x391   : > { %16593 = vst [vmem:[#allocation5_spill] sm:$0xff] %v13345_v59  ;;  %16594 = vst [vmem:[#allocation8_spill] sm:$0xff] %v13347_v26  ;;  %v13353_v18 = vadd.f32 %v3031_v42, %v2157_v51  ;;  %v4524_v62 = vsel %vm406_vm0, %v13347_v26, -inf  ;;  %v4509_v2 = vsel %vm406_vm0, %v13345_v59, -inf  ;;  %v4902_v42 = vmul.f32 1.442695, %v4772_v54 }
 0x392   : > { %v9322_v15 = vpop.f32.mrf.mxu1  ;;  %v4904_v58 = vmul.f32 1.442695, %v4773_v12  ;;  %v2162_v54 = vld [vmem:[#allocation2 + $0x188] sm:$0xff] }
 0x393   : > { %16595 = vst [vmem:[#allocation87_spill] sm:$0xff] %v13353_v18  ;;  %v13355_v39 = vadd.f32 %v9322_v15, %v2160_v46  ;;  %v4518_v20 = vsel %vm406_vm0, %v13353_v18, -inf  ;;  %v4391_v51 = vpop.xlane.xlu1 %4390  ;;  %v2161_v15 = vld [vmem:[#allocation2 + $0x180] sm:$0xff]  ;;  %10884 = vpow2.f32 %v4902_v42 }
 0x394   : > { %v3034_v36 = vpop.f32.mrf.mxu1  ;;  %4525 = vmax.xlane.f32.xlu1 %v4524_v62  ;;  %4510 = vmax.xlane.f32.xlu0 %v4509_v2  ;;  %v4898_v62 = vmul.f32 1.442695, %v4770_v35 }
 0x395   : > { %16596 = vst [vmem:[#allocation14_spill] sm:$0xff] %v13355_v39  ;;  %v13363_v33 = vadd.f32 %v3034_v36, %v2158_v3  ;;  %v4527_v14 = vsel %vm406_vm0, %v13355_v39, -inf  ;;  %v2164_v36 = vld [vmem:[#allocation2 + $0x198] sm:$0xff]  ;;  %v16600_v3 = vld [vmem:[#allocation53_spill] sm:$0xff] }
 0x396   : > { %10886 = vpow2.f32 %v4898_v62 }
 0x397   : > { %16597 = vst [vmem:[#allocation13_spill] sm:$0xff] %v13363_v33  ;;  %v4521_v45 = vsel %vm406_vm0, %v13363_v33, -inf  ;;  %10888 = vpow2.f32 %v4904_v58  ;;  %v2183_v33 = vld [vmem:[#allocation2 + $0x230] sm:$0xff] }
 0x398   : > { %4519 = vmax.xlane.f32.xlu1 %v4518_v20  ;;  %4528 = vmax.xlane.f32.xlu0 %v4527_v14  ;;  %v4771_v20 = vsub.f32 %v16600_v3, %v4391_v51 }
 0x39a   : > { %v4900_v0 = vmul.f32 1.442695, %v4771_v20 }
 0x39c   : > { %4522 = vmax.xlane.f32.xlu0 %v4521_v45  ;;  %v2167_v45 = vld [vmem:[#allocation2 + $0x1b0] sm:$0xff]  ;;  %10890 = vpow2.f32 %v4900_v0 }
 0x3a0   : > { %v9329_v46 = vpop.f32.mrf.mxu0 }
 0x3a1   : > { %v13376_v2 = vadd.f32 %v9329_v46, %v2163_v63 }
 0x3a2   : > { %v3098_v17 = vpop.f32.mrf.mxu0 }
 0x3a3   : > { %16599 = vst [vmem:[#allocation9_spill] sm:$0xff] %v13376_v2  ;;  %v13379_v14 = vadd.f32 %v3098_v17, %v2161_v15  ;;  %v4536_v6 = vsel %vm406_vm0, %v13376_v2, -inf  ;;  %v2165_v15 = vld [vmem:[#allocation2 + $0x1a0] sm:$0xff]  ;;  %v2168_v17 = vld [vmem:[#allocation2 + $0x1b8] sm:$0xff] }
 0x3a4   : > { %v9330_v40 = vpop.f32.mrf.mxu0  ;;  %4537 = vmax.xlane.f32.xlu1 %v4536_v6  ;;  %v2172_v2 = vld [vmem:[#allocation2 + $0x1d8] sm:$0xff] }
 0x3a5   : > { %16601 = vst [vmem:[#allocation10_spill] sm:$0xff] %v13379_v14  ;;  %v13383_v29 = vadd.f32 %v9330_v40, %v2164_v36  ;;  %v4530_v42 = vsel %vm406_vm0, %v13379_v14, -inf  ;;  %v2166_v40 = vld [vmem:[#allocation2 + $0x1a8] sm:$0xff]  ;;  %v4409_v14 = vpop.xlane.xlu0 %4408 }
 0x3a6   : > { %v3101_v35 = vpop.f32.mrf.mxu0  ;;  %v9337_v63 = vpop.f32.mrf.mxu1 }
 0x3a7   : > { %16602 = vst [vmem:[#allocation12_spill] sm:$0xff] %v13383_v29  ;;  %v13385_v12 = vadd.f32 %v3101_v35, %v2162_v54  ;;  %v4539_v51 = vsel %vm406_vm0, %v13383_v29, -inf  ;;  %v13391_v46 = vadd.f32 %v9337_v63, %v2167_v45  ;;  %v13407_v63 = vpop.eup %10884  ;;  %v16611_v29 = vld [vmem:[#allocation51_spill] sm:$0xff] }
 0x3a8   : > { %4531 = vmax.xlane.f32.xlu1 %v4530_v42  ;;  %4540 = vmax.xlane.f32.xlu0 %v4539_v51  ;;  %v3165_v62 = vpop.f32.mrf.mxu1  ;;  %v13409_v42 = vpop.eup %10886 }
 0x3a9   : > { %16603 = vst [vmem:[#allocation11_spill] sm:$0xff] %v13385_v12  ;;  %16604 = vst [vmem:[#allocation21_spill] sm:$0xff] %v13391_v46  ;;  %v13393_v58 = vadd.f32 %v3165_v62, %v2165_v15  ;;  %v4548_v3 = vsel %vm406_vm0, %v13391_v46, -inf  ;;  %v4533_v20 = vsel %vm406_vm0, %v13385_v12, -inf  ;;  %v13411_v51 = vpop.eup %10888  ;;  %v5160_v15 = vsel %vm406_vm0, %v13407_v63, 0.0 }
 0x3aa   : > { %v9338_v36 = vpop.f32.mrf.mxu1 }
 0x3ab   : > { %16605 = vst [vmem:[#allocation22_spill] sm:$0xff] %v13393_v58  ;;  %v13399_v6 = vadd.f32 %v9338_v36, %v2168_v17  ;;  %v4542_v35 = vsel %vm406_vm0, %v13393_v58, -inf  ;;  %v2171_v17 = vld [vmem:[#allocation2 + $0x1d0] sm:$0xff]  ;;  %v5154_v36 = vsel %vm406_vm0, %v13409_v42, 0.0 }
 0x3ac   : > { %4549 = vmax.xlane.f32.xlu1 %v4548_v3  ;;  %4534 = vmax.xlane.f32.xlu0 %v4533_v20  ;;  %v3168_v54 = vpop.f32.mrf.mxu1  ;;  %v5163_v3 = vsel %vm406_vm0, %v13411_v51, 0.0  ;;  %v13421_v20 = vpop.eup %10890 }
 0x3ad   : > { %16606 = vst [vmem:[#allocation92_spill] sm:$0xff] %v13399_v6  ;;  %v13401_v45 = vadd.f32 %v3168_v54, %v2166_v40  ;;  %v4551_v0 = vsel %vm406_vm0, %v13399_v6, -inf  ;;  %v2169_v54 = vld [vmem:[#allocation2 + $0x1c0] sm:$0xff]  ;;  %v5157_v58 = vsel %vm406_vm0, %v13421_v20, 0.0 }
 0x3af   : > { %16607 = vst [vmem:[#allocation100_spill] sm:$0xff] %v13401_v45  ;;  %v4545_v62 = vsel %vm406_vm0, %v13401_v45, -inf }
 0x3b0   : > { %4543 = vmax.xlane.f32.xlu1 %v4542_v35  ;;  %4552 = vmax.xlane.f32.xlu0 %v4551_v0  ;;  %v4406_v35 = vpop.xlane.xlu1 %4405 }
 0x3b4   : > { %5161 = vadd.xlane.f32.xlu1 %v5160_v15  ;;  %4546 = vmax.xlane.f32.xlu0 %v4545_v62  ;;  %v4400_v45 = vpop.xlane.xlu1 %4399 }
 0x3b8   : > { %v9345_v40 = vpop.f32.mrf.mxu0  ;;  %5155 = vadd.xlane.f32.xlu1 %v5154_v36  ;;  %5164 = vadd.xlane.f32.xlu0 %v5163_v3  ;;  %v2170_v36 = vld [vmem:[#allocation2 + $0x1c8] sm:$0xff]  ;;  %v4418_v13 = vpop.xlane.xlu1 %4417 }
 0x3b9   : > { %v13423_v0 = vadd.f32 %v9345_v40, %v2171_v17  ;;  %v4776_v17 = vsub.f32 %v16611_v29, %v4406_v35 }
 0x3ba   : > { %v3232_v46 = vpop.f32.mrf.mxu0 }
 0x3bb   : > { %16608 = vst [vmem:[#allocation93_spill] sm:$0xff] %v13423_v0  ;;  %v13425_v15 = vadd.f32 %v3232_v46, %v2169_v54  ;;  %v4560_v62 = vsel %vm406_vm0, %v13423_v0, -inf  ;;  %v16613_v0 = vld [vmem:[#allocation74_spill] sm:$0xff]  ;;  %v4910_v26 = vmul.f32 1.442695, %v4776_v17 }
 0x3bc   : > { %v9346_v6 = vpop.f32.mrf.mxu0  ;;  %4561 = vmax.xlane.f32.xlu1 %v4560_v62  ;;  %5158 = vadd.xlane.f32.xlu0 %v5157_v58  ;;  %v4777_v62 = vsub.f32 %v16613_v0, %v4409_v14  ;;  %v4403_v58 = vpop.xlane.xlu0 %4402  ;;  %v2173_v0 = vld [vmem:[#allocation2 + $0x1e0] sm:$0xff] }
 0x3bd   : > { %16609 = vst [vmem:[#allocation38_spill] sm:$0xff] %v13425_v15  ;;  %v13431_v3 = vadd.f32 %v9346_v6, %v2172_v2  ;;  %v4554_v46 = vsel %vm406_vm0, %v13425_v15, -inf  ;;  %v16614_v2 = vld [vmem:[#allocation7_spill] sm:$0xff]  ;;  %10892 = vpow2.f32 %v4910_v26 }
 0x3be   : > { %v3235_v40 = vpop.f32.mrf.mxu0  ;;  %v4774_v6 = vsub.f32 %v16614_v2, %v4400_v45  ;;  %v4912_v35 = vmul.f32 1.442695, %v4777_v62  ;;  %v2176_v2 = vld [vmem:[#allocation2 + $0x1f8] sm:$0xff] }
 0x3bf   : > { %16610 = vst [vmem:[#allocation37_spill] sm:$0xff] %v13431_v3  ;;  %v13434_v12 = vadd.f32 %v3235_v40, %v2170_v36  ;;  %v4563_v54 = vsel %vm406_vm0, %v13431_v3, -inf  ;;  %v16615_v36 = vld [vmem:[#allocation75_spill] sm:$0xff] }
 0x3c0   : > { %4555 = vmax.xlane.f32.xlu1 %v4554_v46  ;;  %4564 = vmax.xlane.f32.xlu0 %v4563_v54  ;;  %v4775_v40 = vsub.f32 %v16615_v36, %v4403_v58  ;;  %v4906_v15 = vmul.f32 1.442695, %v4774_v6  ;;  %10894 = vpow2.f32 %v4912_v35  ;;  %v2175_v46 = vld [vmem:[#allocation2 + $0x1f0] sm:$0xff]  ;;  %v4442_v54 = vpop.xlane.xlu1 %4441  ;;  %v4421_v17 = vpop.xlane.xlu0 %4420  ;;  %v2174_v58 = vld [vmem:[#allocation2 + $0x1e8] sm:$0xff] }
 0x3c1   : > { %16612 = vst [vmem:[#allocation101_spill] sm:$0xff] %v13434_v12  ;;  %v4557_v29 = vsel %vm406_vm0, %v13434_v12, -inf }
 0x3c2   : > { %v4908_v3 = vmul.f32 1.442695, %v4775_v40  ;;  %10896 = vpow2.f32 %v4906_v15  ;;  %v4788_v40 = vsub.f32 %v13051_v50, %v4442_v54 }
 0x3c4   : > { %4558 = vmax.xlane.f32.xlu0 %v4557_v29  ;;  %10898 = vpow2.f32 %v4908_v3  ;;  %v13451_v6 = vpop.xlane.xlu0 %4444  ;;  %v4412_v35 = vpop.xlane.xlu1 %4411 }
 0x3cb   : > { %v9353_v14 = vpop.f32.mrf.mxu1 }
 0x3cc   : > { %v13445_v18 = vadd.f32 %v9353_v14, %v2175_v46 }
 0x3cd   : > { %v3299_v45 = vpop.f32.mrf.mxu1 }
 0x3ce   : > { %16616 = vst [vmem:[#allocation94_spill] sm:$0xff] %v13445_v18  ;;  %v13447_v29 = vadd.f32 %v3299_v45, %v2173_v0  ;;  %v4572_v26 = vsel %vm406_vm0, %v13445_v18, -inf  ;;  %v13462_v0 = vpop.eup %10892  ;;  %v9361_v45 = vpop.f32.mrf.mxu0 }
 0x3cf   : > { %v9354_v62 = vpop.f32.mrf.mxu1  ;;  %4573 = vmax.xlane.f32.xlu1 %v4572_v26  ;;  %v13464_v26 = vpop.eup %10894  ;;  %v5172_v50 = vsel %vm406_vm0, %v13462_v0, 0.0 }
 0x3d0   : > { %16617 = vst [vmem:[#allocation102_spill] sm:$0xff] %v13447_v29  ;;  %v13453_v15 = vadd.f32 %v9354_v62, %v2176_v2  ;;  %v4566_v3 = vsel %vm406_vm0, %v13447_v29, -inf  ;;  %v4780_v2 = vsub.f32 %v12966_v57, %v4418_v13  ;;  %v4934_v62 = vmul.f32 1.442695, %v4788_v40  ;;  %v13467_v18 = vpop.xlane.xlu0 %4414  ;;  %v2179_v29 = vld [vmem:[#allocation2 + $0x210] sm:$0xff]  ;;  %v3366_v12 = vpop.f32.mrf.mxu0 }
 0x3d1   : > { %v3302_v36 = vpop.f32.mrf.mxu1  ;;  %v5175_v57 = vsel %vm406_vm0, %v13464_v26, 0.0 }
 0x3d2   : > { %16618 = vst [vmem:[#allocation95_spill] sm:$0xff] %v13453_v15  ;;  %v13456_v46 = vadd.f32 %v3302_v36, %v2174_v58  ;;  %v4575_v14 = vsel %vm406_vm0, %v13453_v15, -inf  ;;  %v13473_v58 = vpop.eup %10896  ;;  %v4436_v36 = vpop.xlane.xlu1 %4435  ;;  %v4918_v40 = vmul.f32 1.442695, %v4780_v2  ;;  %10900 = vpow2.f32 %v4934_v62 }
 0x3d3   : > { %4567 = vmax.xlane.f32.xlu1 %v4566_v3  ;;  %4576 = vmax.xlane.f32.xlu0 %v4575_v14  ;;  %v4778_v3 = vsub.f32 %v13062_v53, %v4412_v35  ;;  %v13478_v13 = vpop.eup %10898  ;;  %v13480_v14 = vadd.f32 %v9361_v45, %v2179_v29  ;;  %v5166_v15 = vsel %vm406_vm0, %v13473_v58, 0.0  ;;  %v9362_v39 = vpop.f32.mrf.mxu0  ;;  %v4781_v53 = vsub.f32 %v12977_v38, %v4421_v17 }
 0x3d4   : > { %16619 = vst [vmem:[#allocation72_spill] sm:$0xff] %v13456_v46  ;;  %v4569_v54 = vsel %vm406_vm0, %v13456_v46, -inf  ;;  %v2177_v46 = vld [vmem:[#allocation2 + $0x200] sm:$0xff]  ;;  %v5169_v29 = vsel %vm406_vm0, %v13478_v13, 0.0  ;;  %10902 = vpow2.f32 %v4918_v40  ;;  %v13492_v2 = vadd.f32 %v9362_v39, %v2180_v32 }
 0x3d5   : > { %16620 = vst [vmem:[#allocation73_spill] sm:$0xff] %v13480_v14  ;;  %v4914_v35 = vmul.f32 1.442695, %v4778_v3  ;;  %v13490_v45 = vadd.f32 %v3366_v12, %v2177_v46  ;;  %v3369_v62 = vpop.f32.mrf.mxu0  ;;  %v4789_v17 = vsub.f32 %v13065_v31, %v13451_v6  ;;  %v4779_v6 = vsub.f32 %v13069_v25, %v13467_v18 }
 0x3d6   : > { %v13486_v49 = vpop.xlane.xlu1 %4429  ;;  %16622 = vst [vmem:[#allocation51_spill] sm:$0xff] %v13492_v2  ;;  %v4587_v40 = vsel %vm406_vm0, %v13492_v2, -inf }
 0x3d7   : > { %5173 = vadd.xlane.f32.xlu1 %v5172_v50  ;;  %4570 = vmax.xlane.f32.xlu0 %v4569_v54  ;;  %v4439_v50 = vpop.xlane.xlu0 %4438  ;;  %v4786_v54 = vsub.f32 %v13073_v61, %v4436_v36  ;;  %16621 = vst [vmem:[#allocation53_spill] sm:$0xff] %v13490_v45  ;;  %v4920_v61 = vmul.f32 1.442695, %v4781_v53  ;;  %10904 = vpow2.f32 %v4914_v35  ;;  %v4578_v46 = vsel %vm406_vm0, %v13490_v45, -inf  ;;  %v2181_v35 = vld [vmem:[#allocation2 + $0x220] sm:$0xff] }
 0x3d8   : > { %v4936_v31 = vmul.f32 1.442695, %v4789_v17  ;;  %v4916_v25 = vmul.f32 1.442695, %v4779_v6  ;;  %v4787_v18 = vsub.f32 %v13084_v24, %v4439_v50 }
 0x3d9   : > { %v4930_v36 = vmul.f32 1.442695, %v4786_v54  ;;  %10906 = vpow2.f32 %v4920_v61 }
 0x3db   : > { %5167 = vadd.xlane.f32.xlu1 %v5166_v15  ;;  %5176 = vadd.xlane.f32.xlu0 %v5175_v57  ;;  %v4584_v15 = vsel %vm406_vm0, %v13480_v14, -inf  ;;  %v2178_v57 = vld [vmem:[#allocation2 + $0x208] sm:$0xff]  ;;  %v9369_v38 = vpop.f32.mrf.mxu1  ;;  %v13500_v12 = vpop.xlane.xlu0 %4432  ;;  %10908 = vpow2.f32 %v4930_v36 }
 0x3dc   : > { %v13502_v32 = vadd.f32 %v3369_v62, %v2178_v57  ;;  %v13504_v39 = vadd.f32 %v9369_v38, %v2183_v33  ;;  %v2184_v38 = vld [vmem:[#allocation2 + $0x238] sm:$0xff]  ;;  %10910 = vpow2.f32 %v4936_v31  ;;  %v4932_v31 = vmul.f32 1.442695, %v4787_v18  ;;  %v9377_v14 = vpop.f32.mrf.mxu0 }
 0x3dd   : > { %v3433_v53 = vpop.f32.mrf.mxu1  ;;  %10912 = vpow2.f32 %v4916_v25  ;;  %v4784_v25 = vsub.f32 %v13092_v22, %v13486_v49 }
 0x3de   : > { %16623 = vst [vmem:[#allocation74_spill] sm:$0xff] %v13502_v32  ;;  %16624 = vst [vmem:[#allocation7_spill] sm:$0xff] %v13504_v39  ;;  %v13512_v54 = vadd.f32 %v3433_v53, %v2181_v35  ;;  %v4581_v62 = vsel %vm406_vm0, %v13502_v32, -inf  ;;  %10914 = vpow2.f32 %v4932_v31  ;;  %v3500_v2 = vpop.f32.mrf.mxu0 }
 0x3df   : > { %4585 = vmax.xlane.f32.xlu1 %v4584_v15  ;;  %5170 = vadd.xlane.f32.xlu0 %v5169_v29  ;;  %v4596_v15 = vsel %vm406_vm0, %v13504_v39, -inf  ;;  %v13522_v57 = vpop.eup %10900  ;;  %v9370_v61 = vpop.f32.mrf.mxu1  ;;  %v4926_v22 = vmul.f32 1.442695, %v4784_v25 }
 0x3e0   : > { %16625 = vst [vmem:[#allocation75_spill] sm:$0xff] %v13512_v54  ;;  %16626 = vst [vmem:[#allocation103_spill] sm:$0xff] %v13522_v57  ;;  %v13525_v17 = vadd.f32 %v9370_v61, %v2184_v38  ;;  %v5208_v53 = vsel %vm406_vm0, %v13522_v57, 0.0 }
 0x3e1   : > { %v13498_v3 = vpop.xlane.xlu1 %4465  ;;  %v13533_v35 = vpop.eup %10902  ;;  %10916 = vpow2.f32 %v4926_v22 }
 0x3e2   : > { %16627 = vst [vmem:[#allocation104_spill] sm:$0xff] %v13525_v17  ;;  %16628 = vst [vmem:[#allocation105_spill] sm:$0xff] %v13533_v35  ;;  %v3436_v39 = vpop.f32.mrf.mxu1  ;;  %v5184_v38 = vsel %vm406_vm0, %v13533_v35, 0.0  ;;  %v4599_v61 = vsel %vm406_vm0, %v13525_v17, -inf }
 0x3e3   : > { %4579 = vmax.xlane.f32.xlu1 %v4578_v46  ;;  %4588 = vmax.xlane.f32.xlu0 %v4587_v40  ;;  %v4590_v40 = vsel %vm406_vm0, %v13512_v54, -inf }
 0x3e4   : > { %v13535_v24 = vpop.eup %10904 }
 0x3e6   : > { %v13514_v33 = vpop.xlane.xlu1 %4423  ;;  %v13516_v29 = vpop.xlane.xlu0 %4468 }
 0x3e7   : > { %4597 = vmax.xlane.f32.xlu1 %v4596_v15  ;;  %4582 = vmax.xlane.f32.xlu0 %v4581_v62  ;;  %v2182_v15 = vld [vmem:[#allocation2 + $0x228] sm:$0xff]  ;;  %v13549_v18 = vpop.eup %10906 }
 0x3e8   : > { %v13537_v50 = vadd.f32 %v3436_v39, %v2182_v15  ;;  %16630 = vst [vmem:[#allocation107_spill] sm:$0xff] %v13549_v18  ;;  %v5178_v39 = vsel %vm406_vm0, %v13535_v24, 0.0  ;;  %v2187_v15 = vld [vmem:[#allocation2 + $0x250] sm:$0xff]  ;;  %v5187_v17 = vsel %vm406_vm0, %v13549_v18, 0.0  ;;  %v2197_v18 = vld [vmem:[#allocation2 + $0x2a0] sm:$0xff] }
 0x3e9   : > { %v13563_v31 = vadd.f32 %v9377_v14, %v2187_v15  ;;  %v4782_v14 = vsub.f32 %v13192_v48, %v13514_v33 }
 0x3ea   : > { %v4460_v36 = vpop.xlane.xlu1 %4459  ;;  %v13527_v46 = vpop.xlane.xlu0 %4426  ;;  %16629 = vst [vmem:[#allocation106_spill] sm:$0xff] %v13537_v50 }
 0x3eb   : > { %4591 = vmax.xlane.f32.xlu1 %v4590_v40  ;;  %5209 = vadd.xlane.f32.xlu0 %v5208_v53  ;;  %v4593_v40 = vsel %vm406_vm0, %v13537_v50, -inf  ;;  %v13555_v53 = vpop.eup %10908  ;;  %16633 = vst [vmem:[#allocation110_spill] sm:$0xff] %v13563_v31  ;;  %v2185_v50 = vld [vmem:[#allocation2 + $0x240] sm:$0xff]  ;;  %v4794_v45 = vsub.f32 %v13209_v44, %v4460_v36  ;;  %v9385_v57 = vpop.f32.mrf.mxu1  ;;  %v4922_v33 = vmul.f32 1.442695, %v4782_v14  ;;  %v4785_v14 = vsub.f32 %v13104_v7, %v13500_v12 }
 0x3ec   : > { %16631 = vst [vmem:[#allocation108_spill] sm:$0xff] %v13555_v53  ;;  %v13561_v49 = vpop.eup %10910  ;;  %v5202_v32 = vsel %vm406_vm0, %v13555_v53, 0.0 }
 0x3ed   : > { %16632 = vst [vmem:[#allocation109_spill] sm:$0xff] %v13561_v49  ;;  %v4946_v44 = vmul.f32 1.442695, %v4794_v45 }
 0x3ee   : > { %v13539_v6 = vpop.xlane.xlu1 %4453  ;;  %v13541_v62 = vpop.xlane.xlu0 %4462 }
 0x3ef   : > { %5185 = vadd.xlane.f32.xlu1 %v5184_v38  ;;  %4600 = vmax.xlane.f32.xlu0 %v4599_v61  ;;  %v4796_v61 = vsub.f32 %v13183_v43, %v13498_v3  ;;  %v5211_v43 = vsel %vm406_vm0, %v13561_v49, 0.0  ;;  %v13579_v3 = vpop.eup %10912 }
 0x3f0   : > { %v5181_v49 = vsel %vm406_vm0, %v13579_v3, 0.0 }
 0x3f1   : > { %v4950_v15 = vmul.f32 1.442695, %v4796_v61 }
 0x3f2   : > { %v13559_v38 = vpop.xlane.xlu1 %4447 }
 0x3f3   : > { %v13557_v54 = vpop.xlane.xlu0 %4456  ;;  %5179 = vadd.xlane.f32.xlu1 %v5178_v39  ;;  %4594 = vmax.xlane.f32.xlu0 %v4593_v40  ;;  %v13581_v40 = vadd.f32 %v3500_v2, %v2185_v50  ;;  %v13592_v2 = vpop.eup %10914  ;;  %10918 = vpow2.f32 %v4950_v15 }
 0x3f4   : > { %16635 = vst [vmem:[#allocation112_spill] sm:$0xff] %v13592_v2  ;;  %v9378_v50 = vpop.f32.mrf.mxu0  ;;  %10920 = vpow2.f32 %v4922_v33  ;;  %v5205_v45 = vsel %vm406_vm0, %v13592_v2, 0.0  ;;  %v13614_v12 = vpop.eup %10916 }
 0x3f5   : > { %16634 = vst [vmem:[#allocation111_spill] sm:$0xff] %v13581_v40  ;;  %v4602_v61 = vsel %vm406_vm0, %v13581_v40, -inf  ;;  %10922 = vpow2.f32 %v4946_v44  ;;  %v4928_v40 = vmul.f32 1.442695, %v4785_v14  ;;  %16639 = vst [vmem:[#allocation116_spill] sm:$0xff] %v13614_v12  ;;  %v4783_v14 = vsub.f32 %v13207_v16, %v13527_v46  ;;  %v2195_v16 = vld [vmem:[#allocation2 + $0x290] sm:$0xff] }
 0x3f7   : > { %v13571_v39 = vpop.xlane.xlu0 %4450  ;;  %5203 = vadd.xlane.f32.xlu1 %v5202_v32  ;;  %5188 = vadd.xlane.f32.xlu0 %v5187_v17  ;;  %v4608_v32 = vsel %vm406_vm0, %v13563_v31, -inf  ;;  %v2191_v17 = vld [vmem:[#allocation2 + $0x270] sm:$0xff]  ;;  %v2189_v31 = vld [vmem:[#allocation2 + $0x260] sm:$0xff]  ;;  %10924 = vpow2.f32 %v4928_v40 }
 0x3f8   : > { %v13573_v25 = vpop.xlane.xlu1 %4477  ;;  %v13594_v36 = vadd.f32 %v9385_v57, %v2191_v17 }
 0x3fa   : > { %16636 = vst [vmem:[#allocation113_spill] sm:$0xff] %v13594_v36  ;;  %v4620_v17 = vsel %vm406_vm0, %v13594_v36, -inf }
 0x3fb   : > { %4609 = vmax.xlane.f32.xlu1 %v4608_v32  ;;  %5212 = vadd.xlane.f32.xlu0 %v5211_v43  ;;  %v13586_v22 = vpop.xlane.xlu0 %4480  ;;  %v2188_v32 = vld [vmem:[#allocation2 + $0x258] sm:$0xff]  ;;  %v3567_v43 = vpop.f32.mrf.mxu1 }
 0x3fc   : > { %v13588_v48 = vpop.xlane.xlu1 %4471  ;;  %v13606_v57 = vadd.f32 %v9378_v50, %v2188_v32  ;;  %v13608_v15 = vadd.f32 %v3567_v43, %v2189_v31  ;;  %v4797_v50 = vsub.f32 %v13197_v9, %v13516_v29  ;;  %v2192_v32 = vld [vmem:[#allocation2 + $0x278] sm:$0xff]  ;;  %v5196_v9 = vsel %vm406_vm0, %v13614_v12, 0.0 }
 0x3fd   : > { %v9386_v43 = vpop.f32.mrf.mxu1 }
 0x3fe   : > { %16637 = vst [vmem:[#allocation114_spill] sm:$0xff] %v13606_v57  ;;  %16638 = vst [vmem:[#allocation115_spill] sm:$0xff] %v13608_v15  ;;  %v4614_v31 = vsel %vm406_vm0, %v13608_v15, -inf  ;;  %v4611_v44 = vsel %vm406_vm0, %v13606_v57, -inf }
 0x3ff   : > { %4603 = vmax.xlane.f32.xlu1 %v4602_v61  ;;  %5182 = vadd.xlane.f32.xlu0 %v5181_v49  ;;  %v13598_v53 = vpop.xlane.xlu0 %4474  ;;  %v3503_v49 = vpop.f32.mrf.mxu0  ;;  %v2186_v61 = vld [vmem:[#allocation2 + $0x248] sm:$0xff] }
 0x400   : > { %v13602_v35 = vpop.xlane.xlu1 %4489  ;;  %v13616_v33 = vadd.f32 %v3503_v49, %v2186_v61  ;;  %v13628_v49 = vadd.f32 %v9386_v43, %v2192_v32  ;;  %v13634_v61 = vpop.eup %10918 }
 0x401   : > { %16642 = vst [vmem:[#allocation119_spill] sm:$0xff] %v13634_v61  ;;  %v9393_v46 = vpop.f32.mrf.mxu0  ;;  %v5232_v32 = vsel %vm406_vm0, %v13634_v61, 0.0 }
 0x402   : > { %16640 = vst [vmem:[#allocation117_spill] sm:$0xff] %v13616_v33  ;;  %16641 = vst [vmem:[#allocation118_spill] sm:$0xff] %v13628_v49  ;;  %v4605_v29 = vsel %vm406_vm0, %v13616_v33, -inf  ;;  %v4623_v43 = vsel %vm406_vm0, %v13628_v49, -inf  ;;  %v2193_v49 = vld [vmem:[#allocation2 + $0x280] sm:$0xff] }
 0x403   : > { %4621 = vmax.xlane.f32.xlu1 %v4620_v17  ;;  %5206 = vadd.xlane.f32.xlu0 %v5205_v45  ;;  %v13612_v7 = vpop.xlane.xlu0 %4492  ;;  %v4952_v45 = vmul.f32 1.442695, %v4797_v50  ;;  %v4795_v50 = vsub.f32 %v13218_v10, %v13541_v62  ;;  %v3634_v33 = vpop.f32.mrf.mxu0 }
 0x404   : > { %v13624_v17 = vpop.xlane.xlu1 %4483 }
 0x405   : > { %10926 = vpow2.f32 %v4952_v45  ;;  %v4948_v57 = vmul.f32 1.442695, %v4795_v50 }
 0x407   : > { %4615 = vmax.xlane.f32.xlu1 %v4614_v31  ;;  %4612 = vmax.xlane.f32.xlu0 %v4611_v44  ;;  %v4924_v31 = vmul.f32 1.442695, %v4783_v14  ;;  %v13640_v44 = vpop.eup %10920  ;;  %v2190_v14 = vld [vmem:[#allocation2 + $0x268] sm:$0xff] }
 0x408   : > { %v13638_v40 = vpop.xlane.xlu1 %4501  ;;  %v13648_v15 = vpop.eup %10922  ;;  %v5190_v62 = vsel %vm406_vm0, %v13640_v44, 0.0 }
 0x409   : > { %v13636_v36 = vpop.xlane.xlu0 %4486  ;;  %16643 = vst [vmem:[#allocation120_spill] sm:$0xff] %v13648_v15  ;;  %10928 = vpow2.f32 %v4924_v31  ;;  %v5226_v61 = vsel %vm406_vm0, %v13648_v15, 0.0  ;;  %v13664_v31 = vadd.f32 %v3634_v33, %v2193_v49  ;;  %v4792_v33 = vsub.f32 %v13216_v11, %v13539_v6 }
 0x40a   : > { %10930 = vpow2.f32 %v4948_v57 }
 0x40b   : > { %5197 = vadd.xlane.f32.xlu1 %v5196_v9  ;;  %4606 = vmax.xlane.f32.xlu0 %v4605_v29  ;;  %v3570_v9 = vpop.f32.mrf.mxu1  ;;  %v13650_v29 = vadd.f32 %v9393_v46, %v2195_v16  ;;  %v13662_v16 = vpop.eup %10924  ;;  %16647 = vst [vmem:[#allocation124_spill] sm:$0xff] %v13664_v31  ;;  %v4626_v57 = vsel %vm406_vm0, %v13664_v31, -inf }
 0x40c   : > { %v13654_v10 = vadd.f32 %v3570_v9, %v2190_v14  ;;  %v13660_v2 = vpop.xlane.xlu1 %4495  ;;  %16646 = vst [vmem:[#allocation123_spill] sm:$0xff] %v13662_v16  ;;  %v9394_v46 = vpop.f32.mrf.mxu0  ;;  %v2199_v9 = vld [vmem:[#allocation2 + $0x2b0] sm:$0xff] }
 0x40d   : > { %16644 = vst [vmem:[#allocation121_spill] sm:$0xff] %v13650_v29  ;;  %v13652_v45 = vpop.xlane.xlu0 %4504  ;;  %v9401_v50 = vpop.f32.mrf.mxu1 }
 0x40e   : > { %16645 = vst [vmem:[#allocation122_spill] sm:$0xff] %v13654_v10  ;;  %v3637_v49 = vpop.f32.mrf.mxu0 }
 0x40f   : > { %5233 = vadd.xlane.f32.xlu1 %v5232_v32  ;;  %4624 = vmax.xlane.f32.xlu0 %v4623_v43  ;;  %v4632_v32 = vsel %vm406_vm0, %v13650_v29, -inf  ;;  %v4617_v43 = vsel %vm406_vm0, %v13654_v10, -inf  ;;  %v3701_v10 = vpop.f32.mrf.mxu1 }
 0x411   : > { %v13670_v14 = vpop.xlane.xlu0 %4498 }
 0x412   : > { %v13682_v29 = vpop.eup %10926 }
 0x413   : > { %5191 = vadd.xlane.f32.xlu1 %v5190_v62  ;;  %5227 = vadd.xlane.f32.xlu0 %v5226_v61  ;;  %v13676_v61 = vadd.f32 %v9401_v50, %v2199_v9  ;;  %v5199_v62 = vsel %vm406_vm0, %v13662_v16, 0.0  ;;  %16650 = vst [vmem:[#allocation127_spill] sm:$0xff] %v13682_v29  ;;  %v4800_v50 = vsub.f32 %v13256_v47, %v13573_v25  ;;  %v2203_v16 = vld [vmem:[#allocation2 + $0x2d0] sm:$0xff]  ;;  %v2196_v47 = vld [vmem:[#allocation2 + $0x298] sm:$0xff] }
 0x414   : > { %v13692_v9 = vadd.f32 %v3701_v10, %v2197_v18 }
 0x415   : > { %v13672_v15 = vpop.xlane.xlu1 %4513  ;;  %16649 = vst [vmem:[#allocation126_spill] sm:$0xff] %v13676_v61  ;;  %v4644_v31 = vsel %vm406_vm0, %v13676_v61, -inf  ;;  %v4958_v18 = vmul.f32 1.442695, %v4800_v50 }
 0x416   : > { %16648 = vst [vmem:[#allocation125_spill] sm:$0xff] %v13672_v15  ;;  %v13688_v6 = vpop.eup %10928  ;;  %16653 = vst [vmem:[#allocation130_spill] sm:$0xff] %v13692_v9  ;;  %v5235_v15 = vsel %vm406_vm0, %v13682_v29, 0.0  ;;  %v4638_v10 = vsel %vm406_vm0, %v13692_v9, -inf }
 0x417   : > { %4633 = vmax.xlane.f32.xlu1 %v4632_v32  ;;  %4618 = vmax.xlane.f32.xlu0 %v4617_v43  ;;  %v9409_v32 = vpop.f32.mrf.mxu0  ;;  %v4942_v43 = vmul.f32 1.442695, %v4792_v33  ;;  %v9402_v33 = vpop.f32.mrf.mxu1  ;;  %v5193_v61 = vsel %vm406_vm0, %v13688_v6, 0.0 }
 0x418   : > { %v13702_v25 = vadd.f32 %v9409_v32, %v2203_v16  ;;  %v2194_v32 = vld [vmem:[#allocation2 + $0x288] sm:$0xff] }
 0x419   : > { %v13684_v12 = vpop.xlane.xlu0 %4516  ;;  %v13686_v11 = vpop.xlane.xlu1 %4507  ;;  %10932 = vpow2.f32 %v4942_v43  ;;  %v13716_v43 = vadd.f32 %v9394_v46, %v2196_v47  ;;  %v13728_v46 = vadd.f32 %v3637_v49, %v2194_v32 }
 0x41a   : > { %16651 = vst [vmem:[#allocation128_spill] sm:$0xff] %v13684_v12  ;;  %16652 = vst [vmem:[#allocation129_spill] sm:$0xff] %v13686_v11  ;;  %10934 = vpow2.f32 %v4958_v18  ;;  %v4656_v12 = vsel %vm406_vm0, %v13702_v25, -inf }
 0x41b   : > { %4627 = vmax.xlane.f32.xlu1 %v4626_v57  ;;  %5200 = vadd.xlane.f32.xlu0 %v5199_v62  ;;  %v3768_v57 = vpop.f32.mrf.mxu0  ;;  %v4790_v62 = vsub.f32 %v13231_v4, %v13559_v38  ;;  %16654 = vst [vmem:[#allocation131_spill] sm:$0xff] %v13702_v25  ;;  %v13714_v38 = vpop.f32.mrf.mxu1  ;;  %16657 = vst [vmem:[#allocation134_spill] sm:$0xff] %v13716_v43 }
 0x41c   : > { %16660 = vst [vmem:[#allocation137_spill] sm:$0xff] %v13728_v46 }
 0x41d   : > { %v13700_v11 = vpop.xlane.xlu0 %4510  ;;  %v13710_v29 = vpop.xlane.xlu1 %4525  ;;  %v4938_v16 = vmul.f32 1.442695, %v4790_v62 }
 0x41e   : > { %16656 = vst [vmem:[#allocation133_spill] sm:$0xff] %v13710_v29  ;;  %v13712_v4 = vpop.f32.mrf.mxu0  ;;  %v9417_v9 = vpop.f32.mrf.mxu1 }
 0x41f   : > { %4645 = vmax.xlane.f32.xlu1 %v4644_v31  ;;  %5236 = vadd.xlane.f32.xlu0 %v5235_v15  ;;  %v13708_v31 = vpop.eup %10930  ;;  %v2201_v15 = vld [vmem:[#allocation2 + $0x2c0] sm:$0xff]  ;;  %10936 = vpow2.f32 %v4938_v16 }
 0x420   : > { %16655 = vst [vmem:[#allocation132_spill] sm:$0xff] %v13708_v31  ;;  %v13718_v50 = vadd.f32 %v3768_v57, %v2201_v15  ;;  %v5229_v29 = vsel %vm406_vm0, %v13708_v31, 0.0  ;;  %v13726_v59 = vpop.f32.mrf.mxu0  ;;  %v4793_v57 = vsub.f32 %v13239_v41, %v13557_v54  ;;  %v3835_v15 = vpop.f32.mrf.mxu1 }
 0x421   : > { %v13732_v62 = vpop.xlane.xlu1 %4519 }
 0x422   : > { %16658 = vst [vmem:[#allocation135_spill] sm:$0xff] %v13718_v50  ;;  %16661 = vst [vmem:[#allocation138_spill] sm:$0xff] %v13732_v62  ;;  %v9425_v47 = vpop.f32.mrf.mxu0  ;;  %v4650_v25 = vsel %vm406_vm0, %v13718_v50, -inf  ;;  %v4944_v49 = vmul.f32 1.442695, %v4793_v57  ;;  %v13750_v50 = vpop.f32.mrf.mxu1  ;;  %v2200_v57 = vld [vmem:[#allocation2 + $0x2b8] sm:$0xff] }
 0x423   : > { %4639 = vmax.xlane.f32.xlu1 %v4638_v10  ;;  %5194 = vadd.xlane.f32.xlu0 %v5193_v61  ;;  %v2207_v10 = vld [vmem:[#allocation2 + $0x2f0] sm:$0xff]  ;;  %v13724_v61 = vpop.xlane.xlu0 %4528 }
 0x424   : > { %16659 = vst [vmem:[#allocation136_spill] sm:$0xff] %v13724_v61  ;;  %v13734_v18 = vadd.f32 %v9417_v9, %v2207_v10  ;;  %v4791_v9 = vsub.f32 %v13249_v27, %v13571_v39  ;;  %v3902_v16 = vpop.f32.mrf.mxu0  ;;  %10938 = vpow2.f32 %v4944_v49  ;;  %v13760_v39 = vadd.f32 %v9402_v33, %v2200_v57  ;;  %v2211_v49 = vld [vmem:[#allocation2 + $0x310] sm:$0xff] }
 0x426   : > { %16662 = vst [vmem:[#allocation139_spill] sm:$0xff] %v13734_v18  ;;  %v13744_v54 = vpop.eup %10932  ;;  %v4940_v27 = vmul.f32 1.442695, %v4791_v9  ;;  %16668 = vst [vmem:[#allocation145_spill] sm:$0xff] %v13760_v39  ;;  %v13776_v9 = vadd.f32 %v9425_v47, %v2211_v49 }
 0x427   : > { %4657 = vmax.xlane.f32.xlu1 %v4656_v12  ;;  %5230 = vadd.xlane.f32.xlu0 %v5229_v29  ;;  %v4635_v12 = vsel %vm406_vm0, %v13716_v43, -inf  ;;  %v2205_v29 = vld [vmem:[#allocation2 + $0x2e0] sm:$0xff]  ;;  %v13740_v32 = vpop.xlane.xlu0 %4522  ;;  %16664 = vst [vmem:[#allocation141_spill] sm:$0xff] %v13744_v54  ;;  %v4668_v43 = vsel %vm406_vm0, %v13734_v18, -inf }
 0x428   : > { %v13748_v10 = vadd.f32 %v3835_v15, %v2205_v29  ;;  %v13762_v15 = vpop.f32.mrf.mxu0  ;;  %v13764_v29 = vpop.f32.mrf.mxu1  ;;  %10940 = vpow2.f32 %v4940_v27  ;;  %16672 = vst [vmem:[#allocation149_spill] sm:$0xff] %v13776_v9 }
 0x42a   : > { %16665 = vst [vmem:[#allocation142_spill] sm:$0xff] %v13748_v10  ;;  %v4662_v18 = vsel %vm406_vm0, %v13748_v10, -inf  ;;  %v13778_v57 = vpop.f32.mrf.mxu0 }
 0x42b   : > { %4651 = vmax.xlane.f32.xlu1 %v4650_v25  ;;  %4636 = vmax.xlane.f32.xlu0 %v4635_v12  ;;  %v4629_v25 = vsel %vm406_vm0, %v13728_v46, -inf  ;;  %v5220_v46 = vsel %vm406_vm0, %v13744_v54, 0.0  ;;  %v4647_v54 = vsel %vm406_vm0, %v13760_v39, -inf  ;;  %v4680_v39 = vsel %vm406_vm0, %v13776_v9, -inf }
 0x42d   : > { %v13742_v41 = vpop.xlane.xlu1 %4537 }
 0x42e   : > { %16663 = vst [vmem:[#allocation140_spill] sm:$0xff] %v13742_v41 }
 0x42f   : > { %4669 = vmax.xlane.f32.xlu1 %v4668_v43  ;;  %4630 = vmax.xlane.f32.xlu0 %v4629_v25  ;;  %v13770_v43 = vpop.eup %10934  ;;  %v9433_v25 = vpop.f32.mrf.mxu1 }
 0x430   : > { %16669 = vst [vmem:[#allocation146_spill] sm:$0xff] %v13770_v43  ;;  %v5244_v10 = vsel %vm406_vm0, %v13770_v43, 0.0 }
 0x431   : > { %v13756_v12 = vpop.xlane.xlu1 %4531  ;;  %v13758_v31 = vpop.xlane.xlu0 %4540 }
 0x432   : > { %16666 = vst [vmem:[#allocation143_spill] sm:$0xff] %v13756_v12  ;;  %16667 = vst [vmem:[#allocation144_spill] sm:$0xff] %v13758_v31  ;;  %v13784_v12 = vpop.eup %10936  ;;  %v3969_v31 = vpop.f32.mrf.mxu1 }
 0x433   : > { %4663 = vmax.xlane.f32.xlu1 %v4662_v18  ;;  %5221 = vadd.xlane.f32.xlu0 %v5220_v46  ;;  %16673 = vst [vmem:[#allocation150_spill] sm:$0xff] %v13784_v12  ;;  %v2198_v18 = vld [vmem:[#allocation2 + $0x2a8] sm:$0xff]  ;;  %v2209_v46 = vld [vmem:[#allocation2 + $0x300] sm:$0xff] }
 0x434   : > { %v13791_v47 = vadd.f32 %v13714_v38, %v2198_v18  ;;  %v13793_v49 = vadd.f32 %v3902_v16, %v2209_v46  ;;  %v13803_v62 = vpop.f32.mrf.mxu1  ;;  %v13805_v16 = vpop.eup %10938 }
 0x435   : > { %v13772_v41 = vpop.xlane.xlu1 %4549  ;;  %v13774_v33 = vpop.xlane.xlu0 %4534  ;;  %16678 = vst [vmem:[#allocation155_spill] sm:$0xff] %v13805_v16 }
 0x436   : > { %16670 = vst [vmem:[#allocation147_spill] sm:$0xff] %v13772_v41  ;;  %16671 = vst [vmem:[#allocation148_spill] sm:$0xff] %v13774_v33  ;;  %v13786_v41 = vpop.f32.mrf.mxu0  ;;  %v5214_v33 = vsel %vm406_vm0, %v13784_v12, 0.0  ;;  %v4674_v9 = vsel %vm406_vm0, %v13793_v49, -inf  ;;  %v2204_v12 = vld [vmem:[#allocation2 + $0x2d8] sm:$0xff] }
 0x437   : > { %5245 = vadd.xlane.f32.xlu1 %v5244_v10  ;;  %4648 = vmax.xlane.f32.xlu0 %v4647_v54  ;;  %16675 = vst [vmem:[#allocation152_spill] sm:$0xff] %v13791_v47  ;;  %16676 = vst [vmem:[#allocation153_spill] sm:$0xff] %v13793_v49  ;;  %v4798_v54 = vsub.f32 %v13267_v19, %v13588_v48  ;;  %v2215_v10 = vld [vmem:[#allocation2 + $0x330] sm:$0xff]  ;;  %v2213_v48 = vld [vmem:[#allocation2 + $0x320] sm:$0xff]  ;;  %v5223_v49 = vsel %vm406_vm0, %v13805_v16, 0.0 }
 0x438   : > { %v13807_v18 = vadd.f32 %v9433_v25, %v2215_v10  ;;  %v13819_v61 = vadd.f32 %v3969_v31, %v2213_v48  ;;  %v13830_v31 = vadd.f32 %v13712_v4, %v2204_v12  ;;  %v2221_v12 = vld [vmem:[#allocation2 + $0x360] sm:$0xff] }
 0x439   : > { %v13788_v27 = vpop.xlane.xlu1 %4543  ;;  %v13795_v43 = vpop.xlane.xlu0 %4552  ;;  %v4954_v19 = vmul.f32 1.442695, %v4798_v54 }
 0x43a   : > { %16674 = vst [vmem:[#allocation151_spill] sm:$0xff] %v13788_v27  ;;  %16677 = vst [vmem:[#allocation154_spill] sm:$0xff] %v13795_v43  ;;  %v4036_v27 = vpop.f32.mrf.mxu0  ;;  %v4641_v43 = vsel %vm406_vm0, %v13791_v47, -inf  ;;  %v13825_v47 = vpop.eup %10940  ;;  %v4686_v16 = vsel %vm406_vm0, %v13819_v61, -inf }
 0x43b   : > { %4681 = vmax.xlane.f32.xlu1 %v4680_v39  ;;  %5215 = vadd.xlane.f32.xlu0 %v5214_v33  ;;  %16679 = vst [vmem:[#allocation156_spill] sm:$0xff] %v13807_v18  ;;  %v13817_v33 = vpop.f32.mrf.mxu1  ;;  %16681 = vst [vmem:[#allocation158_spill] sm:$0xff] %v13819_v61  ;;  %10942 = vpow2.f32 %v4954_v19  ;;  %v5217_v19 = vsel %vm406_vm0, %v13825_v47, 0.0  ;;  %v2225_v61 = vld [vmem:[#allocation2 + $0x380] sm:$0xff] }
 0x43c   : > { %v13815_v39 = vpop.f32.mrf.mxu0  ;;  %16682 = vst [vmem:[#allocation159_spill] sm:$0xff] %v13830_v31 }
 0x43d   : > { %v5162_v38 = vpop.xlane.xlu1 %5161  ;;  %v13809_v46 = vpop.xlane.xlu0 %4546 }
 0x43e   : > { %16680 = vst [vmem:[#allocation157_spill] sm:$0xff] %v13809_v46  ;;  %v4692_v46 = vsel %vm406_vm0, %v13807_v18, -inf  ;;  %v13832_v54 = vpop.f32.mrf.mxu0 }
 0x43f   : > { %4675 = vmax.xlane.f32.xlu1 %v4674_v9  ;;  %4642 = vmax.xlane.f32.xlu0 %v4641_v43  ;;  %v2217_v9 = vld [vmem:[#allocation2 + $0x340] sm:$0xff]  ;;  %v13827_v43 = vpop.f32.mrf.mxu1 }
 0x440   : > { %v13834_v48 = vadd.f32 %v4036_v27, %v2217_v9  ;;  %v4802_v27 = vsub.f32 %v13293_v37, %v13624_v17 }
 0x441   : > { %v5156_v25 = vpop.xlane.xlu1 %5155  ;;  %v5165_v10 = vpop.xlane.xlu0 %5164 }
 0x442   : > { %10944 = vrcp.f32 %v5165_v10  ;;  %16683 = vst [vmem:[#allocation160_spill] sm:$0xff] %v13834_v48  ;;  %v13842_v10 = vpop.f32.mrf.mxu0  ;;  %v4103_v4 = vpop.f32.mrf.mxu1  ;;  %v4698_v9 = vsel %vm406_vm0, %v13834_v48, -inf  ;;  %v4962_v37 = vmul.f32 1.442695, %v4802_v27 }
 0x443   : > { %4693 = vmax.xlane.f32.xlu1 %v4692_v46  ;;  %5224 = vadd.xlane.f32.xlu0 %v5223_v49  ;;  %10946 = vrcp.f32 %v5156_v25  ;;  %v4801_v49 = vsub.f32 %v13271_v56, %v13586_v22  ;;  %v2202_v46 = vld [vmem:[#allocation2 + $0x2c8] sm:$0xff]  ;;  %v13849_v25 = vadd.f32 %v4103_v4, %v2221_v12  ;;  %v4659_v56 = vsel %vm406_vm0, %v13830_v31, -inf  ;;  %v2228_v12 = vld [vmem:[#allocation2 + $0x398] sm:$0xff] }
 0x444   : > { %10948 = vrcp.f32 %v5162_v38  ;;  %v13847_v38 = vadd.f32 %v13726_v59, %v2202_v46  ;;  %v4803_v59 = vsub.f32 %v13306_v5, %v13636_v36 }
 0x445   : > { %v5159_v18 = vpop.xlane.xlu0 %5158  ;;  %16685 = vst [vmem:[#allocation162_spill] sm:$0xff] %v13849_v25  ;;  %v4960_v22 = vmul.f32 1.442695, %v4801_v49  ;;  %v13864_v4 = vpop.xlane.xlu1 %4561  ;;  %v4710_v49 = vsel %vm406_vm0, %v13849_v25, -inf }
 0x446   : > { %10950 = vrcp.f32 %v5159_v18  ;;  %16684 = vst [vmem:[#allocation161_spill] sm:$0xff] %v13847_v38  ;;  %v4799_v18 = vsub.f32 %v13273_v28, %v13598_v53  ;;  %v4653_v28 = vsel %vm406_vm0, %v13847_v38, -inf }
 0x447   : > { %4687 = vmax.xlane.f32.xlu1 %v4686_v16  ;;  %5218 = vadd.xlane.f32.xlu0 %v5217_v19  ;;  %v2208_v16 = vld [vmem:[#allocation2 + $0x2f8] sm:$0xff]  ;;  %v4170_v19 = vpop.f32.mrf.mxu0  ;;  %10952 = vpow2.f32 %v4960_v22 }
 0x448   : > { %v13860_v17 = vadd.f32 %v13750_v50, %v2208_v16  ;;  %v13862_v46 = vadd.f32 %v4170_v19, %v2225_v61  ;;  %v4956_v53 = vmul.f32 1.442695, %v4799_v18  ;;  %v13870_v5 = vpop.eup %10942  ;;  %10954 = vpow2.f32 %v4962_v37  ;;  %v13872_v61 = vpop.f32.mrf.mxu1 }
 0x449   : > { %v9458_v27 = vpop.f32.mrf.mxu0  ;;  %v4964_v50 = vmul.f32 1.442695, %v4803_v59  ;;  %v13878_v19 = vpop.xlane.xlu0 %4564  ;;  %v2226_v59 = vld [vmem:[#allocation2 + $0x388] sm:$0xff]  ;;  %v5238_v25 = vsel %vm406_vm0, %v13870_v5, 0.0 }
 0x44a   : > { %16686 = vst [vmem:[#allocation163_spill] sm:$0xff] %v13860_v17  ;;  %16687 = vst [vmem:[#allocation164_spill] sm:$0xff] %v13862_v46  ;;  %v13876_v16 = vadd.f32 %v9458_v27, %v2228_v12  ;;  %v4722_v22 = vsel %vm406_vm0, %v13862_v46, -inf  ;;  %v4671_v18 = vsel %vm406_vm0, %v13860_v17, -inf  ;;  %10956 = vpow2.f32 %v4956_v53  ;;  %v13886_v12 = vpop.xlane.xlu1 %4555  ;;  %v13889_v46 = vpop.f32.mrf.mxu1 }
 0x44b   : > { %4699 = vmax.xlane.f32.xlu1 %v4698_v9  ;;  %4660 = vmax.xlane.f32.xlu0 %v4659_v56  ;;  %v4807_v56 = vsub.f32 %v13329_v34, %v13670_v14  ;;  %v4173_v37 = vpop.f32.mrf.mxu0  ;;  %v4805_v34 = vsub.f32 %v13287_v23, %v13612_v7  ;;  %v2206_v14 = vld [vmem:[#allocation2 + $0x2e8] sm:$0xff]  ;;  %10958 = vpow2.f32 %v4964_v50 }
 0x44c   : > { %16688 = vst [vmem:[#allocation165_spill] sm:$0xff] %v13876_v16  ;;  %v13895_v48 = vadd.f32 %v4173_v37, %v2226_v59  ;;  %v4731_v23 = vsel %vm406_vm0, %v13876_v16, -inf  ;;  %v9465_v50 = vpop.f32.mrf.mxu1 }
 0x44d   : > { %v13903_v17 = vpop.xlane.xlu0 %4558 }
 0x44e   : > { %16689 = vst [vmem:[#allocation166_spill] sm:$0xff] %v13895_v48 }
 0x44f   : > { %4711 = vmax.xlane.f32.xlu1 %v4710_v49  ;;  %4654 = vmax.xlane.f32.xlu0 %v4653_v28  ;;  %v10945_v36 = vpop.eup %10944 }
 0x450   : > { %v10947_v9 = vpop.eup %10946  ;;  %v5669_v27 = vmul.f32 %v10945_v36, %v13411_v51  ;;  %v13901_v51 = vadd.f32 %v13764_v29, %v2206_v14  ;;  %v2231_v36 = vld [vmem:[#allocation2 + $0x3b0] sm:$0xff]  ;;  %v4725_v29 = vsel %vm406_vm0, %v13895_v48, -inf }
 0x451   : > { %v10949_v49 = vpop.eup %10948  ;;  %v5666_v53 = vmul.f32 %v10947_v9, %v13409_v42  ;;  %v4968_v9 = vmul.f32 1.442695, %v4805_v34  ;;  %v2212_v34 = vld [vmem:[#allocation2 + $0x318] sm:$0xff] }
 0x452   : > { %v5668_v7 = vmul.f32 %v10949_v49, %v13407_v63  ;;  %16690 = vst [vmem:[#allocation167_spill] sm:$0xff] %v13901_v51  ;;  %v13910_v63 = vadd.f32 %v9465_v50, %v2231_v36 }
 0x453   : > { %4723 = vmax.xlane.f32.xlu1 %v4722_v22  ;;  %4672 = vmax.xlane.f32.xlu0 %v4671_v18  ;;  %v10951_v28 = vpop.eup %10950  ;;  %v4972_v18 = vmul.f32 1.442695, %v4807_v56  ;;  %v4809_v56 = vsub.f32 %v13320_v60, %v13652_v45 }
 0x454   : > { %v5667_v22 = vmul.f32 %v10951_v28, %v13421_v20  ;;  %v5795_v20 = vpack.c.bf16 %v5669_v27, %v5668_v7  ;;  %16691 = vst [vmem:[#allocation168_spill] sm:$0xff] %v13910_v63  ;;  %v13918_v49 = vpop.eup %10952 }
 0x455   : > { %10960 = vpow2.f32 %v4972_v18  ;;  %v4976_v37 = vmul.f32 1.442695, %v4809_v56  ;;  %v5247_v59 = vsel %vm406_vm0, %v13918_v49, 0.0  ;;  %v2216_v56 = vld [vmem:[#allocation2 + $0x338] sm:$0xff] }
 0x456   : > { %v5794_v38 = vpack.c.bf16 %v5667_v22, %v5666_v53  ;;  %10962 = vpow2.f32 %v4968_v9 }
 0x457   : > { %4732 = vmax.xlane.f32.xlu1 %v4731_v23  ;;  %5239 = vadd.xlane.f32.xlu0 %v5238_v25  ;;  %v4665_v25 = vsel %vm406_vm0, %v13901_v51, -inf  ;;  %10964 = vpow2.f32 %v4976_v37  ;;  %v2210_v23 = vld [vmem:[#allocation2 + $0x308] sm:$0xff] }
 0x458   : > { %v13905_v42 = vpop.xlane.xlu1 %4573  ;;  %9487 = vmatprep.mubr.msk.bf16.mxu0 %vm406_vm0, %v5794_v38  ;;  %v13925_v38 = vpop.eup %10954  ;;  %v13951_v9 = vadd.f32 %v13778_v57, %v2210_v23  ;;  %v13962_v57 = vadd.f32 %v13803_v62, %v2216_v56 }
 0x459   : > { %9488 = vmatmul.mubr.msk.bf16.vlgmr.msra.gmra.mxu0 %vm406_vm0, %v5795_v20  ;;  %16692 = vst [vmem:[#allocation169_spill] sm:$0xff] %v13925_v38  ;;  %v13932_v28 = vpop.eup %10956  ;;  %v5250_v22 = vsel %vm406_vm0, %v13925_v38, 0.0 }
 0x45a   : > { %9492 = vmatpush3.bf16.msra.mxu0 %v13315_v8  ;;  %v4740_v8 = vsel %vm406_vm0, %v13910_v63, -inf  ;;  %v13937_v53 = vpop.eup %10958  ;;  %v5241_v18 = vsel %vm406_vm0, %v13932_v28, 0.0  ;;  %16695 = vst [vmem:[#allocation172_spill] sm:$0xff] %v13951_v9  ;;  %16697 = vst [vmem:[#allocation174_spill] sm:$0xff] %v13962_v57  ;;  %v4695_v62 = vsel %vm406_vm0, %v13962_v57, -inf  ;;  %v2218_v57 = vld [vmem:[#allocation2 + $0x348] sm:$0xff] }
 0x45b   : > { %4726 = vmax.xlane.f32.xlu1 %v4725_v29  ;;  %9493 = vmatprep.subr.bf16.mxu0 %v13361_v55  ;;  %16693 = vst [vmem:[#allocation170_spill] sm:$0xff] %v13937_v53  ;;  %v5253_v50 = vsel %vm406_vm0, %v13937_v53, 0.0  ;;  %v16778_v53 = vld [vmem:[#allocation138_spill] sm:$0xff] }
 0x45c   : > { %4666 = vmax.xlane.f32.xlu0 %v4665_v25  ;;  %v13921_v60 = vpop.xlane.xlu1 %4567  ;;  %v13923_v45 = vpop.xlane.xlu0 %4576 }
 0x45e   : > { %9494 = vmatpush3.bf16.msra.mxu0 %v13361_v55  ;;  %v13942_v55 = vadd.f32 %v13762_v15, %v2212_v34  ;;  %v2214_v34 = vld [vmem:[#allocation2 + $0x328] sm:$0xff] }
 0x45f   : > { %4741 = vmax.xlane.f32.xlu1 %v4740_v8  ;;  %9507 = vmatprep.subr.bf16.mxu0 %v13372_v1 }
 0x460   : > { %5248 = vadd.xlane.f32.xlu0 %v5247_v59  ;;  %v5174_v14 = vpop.xlane.xlu1 %5173  ;;  %v13935_v27 = vpop.xlane.xlu0 %4570  ;;  %16694 = vst [vmem:[#allocation171_spill] sm:$0xff] %v13942_v55  ;;  %v4683_v15 = vsel %vm406_vm0, %v13942_v55, -inf  ;;  %v4677_v59 = vsel %vm406_vm0, %v13951_v9, -inf }
 0x462   : > { %v13948_v20 = vpop.eup %10960 }
 0x463   : > { %5251 = vadd.xlane.f32.xlu1 %v5250_v22  ;;  %v5265_v37 = vsel %vm406_vm0, %v13948_v20, 0.0  ;;  %v13959_v8 = vpop.eup %10962 }
 0x464   : > { %5242 = vadd.xlane.f32.xlu0 %v5241_v18  ;;  %v5168_v7 = vpop.xlane.xlu1 %5167  ;;  %v5177_v36 = vpop.xlane.xlu0 %5176  ;;  %16696 = vst [vmem:[#allocation173_spill] sm:$0xff] %v13959_v8  ;;  %v5259_v18 = vsel %vm406_vm0, %v13959_v8, 0.0 }
 0x465   : > { %10966 = vrcp.f32 %v5168_v7  ;;  %v13972_v23 = vpop.eup %10964  ;;  %v13975_v7 = vadd.f32 %v13817_v33, %v2214_v34  ;;  %v2220_v34 = vld [vmem:[#allocation2 + $0x358] sm:$0xff] }
 0x466   : > { %10968 = vrcp.f32 %v5177_v36  ;;  %16698 = vst [vmem:[#allocation175_spill] sm:$0xff] %v13972_v23  ;;  %v2219_v36 = vld [vmem:[#allocation2 + $0x350] sm:$0xff]  ;;  %v5271_v56 = vsel %vm406_vm0, %v13972_v23, 0.0  ;;  %v13996_v9 = vadd.f32 %v13815_v39, %v2220_v34  ;;  %v14008_v39 = vadd.f32 %v13832_v54, %v2218_v57  ;;  %v2234_v23 = vld [vmem:[#allocation2 + $0x3c8] sm:$0xff] }
 0x467   : > { %5254 = vadd.xlane.f32.xlu1 %v5253_v50  ;;  %10970 = vrcp.f32 %v5174_v14  ;;  %16699 = vst [vmem:[#allocation176_spill] sm:$0xff] %v13975_v7  ;;  %v4689_v33 = vsel %vm406_vm0, %v13975_v7, -inf  ;;  %v16704_v57 = vld [vmem:[#allocation23_spill] sm:$0xff] }
 0x468   : > { %4684 = vmax.xlane.f32.xlu0 %v4683_v15  ;;  %v13955_v29 = vpop.xlane.xlu1 %4585  ;;  %v5171_v25 = vpop.xlane.xlu0 %5170  ;;  %16701 = vst [vmem:[#allocation178_spill] sm:$0xff] %v13996_v9  ;;  %16702 = vst [vmem:[#allocation179_spill] sm:$0xff] %v14008_v39  ;;  %v4701_v54 = vsel %vm406_vm0, %v14008_v39, -inf }
 0x469   : > { %10972 = vrcp.f32 %v5171_v25 }
 0x46b   : > { %5266 = vadd.xlane.f32.xlu1 %v5265_v37  ;;  %v13986_v37 = vadd.f32 %v13786_v41, %v2219_v36 }
 0x46c   : > { %4678 = vmax.xlane.f32.xlu0 %v4677_v59  ;;  %v13966_v14 = vpop.xlane.xlu1 %4579  ;;  %v13968_v22 = vpop.xlane.xlu0 %4588 }
 0x46d   : > { %16700 = vst [vmem:[#allocation177_spill] sm:$0xff] %v13986_v37  ;;  %v4704_v41 = vsel %vm406_vm0, %v13986_v37, -inf }
 0x46f   : > { %5260 = vadd.xlane.f32.xlu1 %v5259_v18 }
 0x470   : > { %4696 = vmax.xlane.f32.xlu0 %v4695_v62  ;;  %v13979_v50 = vpop.xlane.xlu1 %4597  ;;  %v13981_v15 = vpop.xlane.xlu0 %4582 }
 0x472   : > { %v10967_v25 = vpop.eup %10966 }
 0x473   : > { %5272 = vadd.xlane.f32.xlu1 %v5271_v56  ;;  %v10969_v59 = vpop.eup %10968  ;;  %v5670_v36 = vmul.f32 %v10967_v25, %v13473_v58  ;;  %v2223_v58 = vld [vmem:[#allocation2 + $0x370] sm:$0xff] }
 0x474   : > { %4690 = vmax.xlane.f32.xlu0 %v4689_v33  ;;  %v13990_v18 = vpop.xlane.xlu1 %4591  ;;  %v13992_v62 = vpop.xlane.xlu0 %5209  ;;  %v5673_v16 = vmul.f32 %v10969_v59, %v13464_v26  ;;  %v4707_v59 = vsel %vm406_vm0, %v13996_v9, -inf }
 0x475   : > { %v10971_v63 = vpop.eup %10970 }
 0x476   : > { %v10973_v48 = vpop.eup %10972  ;;  %v5672_v7 = vmul.f32 %v10971_v63, %v13462_v0  ;;  %v14018_v0 = vadd.f32 %v13827_v43, %v2223_v58  ;;  %v2222_v43 = vld [vmem:[#allocation2 + $0x368] sm:$0xff] }
 0x477   : > { %v5671_v56 = vmul.f32 %v10973_v48, %v13478_v13 }
 0x478   : > { %4705 = vmax.xlane.f32.xlu0 %v4704_v41  ;;  %v14002_v33 = vpop.xlane.xlu1 %5185  ;;  %v14004_v55 = vpop.xlane.xlu0 %4600  ;;  %v5797_v26 = vpack.c.bf16 %v5673_v16, %v5672_v7  ;;  %16703 = vst [vmem:[#allocation180_spill] sm:$0xff] %v14018_v0  ;;  %v2224_v16 = vld [vmem:[#allocation2 + $0x378] sm:$0xff] }
 0x479   : > { %v5796_v31 = vpack.c.bf16 %v5671_v56, %v5670_v36  ;;  %v16705_v7 = vld [vmem:[#allocation24_spill] sm:$0xff]  ;;  %v14029_v34 = vadd.f32 %v13872_v61, %v2224_v16  ;;  %v4806_v56 = vsub.f32 %v13317_v52, %v13660_v2  ;;  %v4804_v16 = vsub.f32 %v13278_v30, %v13602_v35  ;;  %v4237_v52 = vpop.f32.mrf.mxu1 }
 0x47a   : > { %v2055_v25 = vpack.c.bf16 %v16705_v7, %v16704_v57 }
 0x47b   : > { %9495 = vmatprep.mubr.msk.bf16.mxu0 %vm406_vm0, %v5796_v31  ;;  %16706 = vst [vmem:[#allocation23_spill] sm:$0xff] %v14029_v34  ;;  %v4719_v61 = vsel %vm406_vm0, %v14029_v34, -inf  ;;  %v4970_v57 = vmul.f32 1.442695, %v4806_v56  ;;  %v9466_v35 = vpop.f32.mrf.mxu1  ;;  %v2232_v56 = vld [vmem:[#allocation2 + $0x3b8] sm:$0xff] }
 0x47c   : > { %4708 = vmax.xlane.f32.xlu0 %v4707_v59  ;;  %v5180_v13 = vpop.xlane.xlu1 %5179  ;;  %9496 = vmatmul.mubr.msk.bf16.vlgmr.msra.gmra.mxu0 %vm406_vm0, %v5797_v26  ;;  %v14014_v48 = vpop.xlane.xlu0 %4594  ;;  %v14041_v26 = vadd.f32 %v13889_v46, %v2222_v43  ;;  %v2227_v59 = vld [vmem:[#allocation2 + $0x390] sm:$0xff]  ;;  %v2229_v46 = vld [vmem:[#allocation2 + $0x3a0] sm:$0xff]  ;;  %v4808_v43 = vsub.f32 %v13308_v21, %v13638_v40  ;;  %v2230_v40 = vld [vmem:[#allocation2 + $0x3a8] sm:$0xff] }
 0x47d   : > { %9508 = vmatpush3.bf16.msra.mxu0 %v13372_v1  ;;  %v4716_v1 = vsel %vm406_vm0, %v14018_v0, -inf  ;;  %10974 = vrcp.f32 %v5180_v13  ;;  %v14050_v7 = vadd.f32 %v13842_v10, %v2227_v59  ;;  %v14060_v30 = vadd.f32 %v4237_v52, %v2229_v46  ;;  %v14086_v0 = vpop.f32.mrf.mxu0 }
 0x47e   : > { %16708 = vst [vmem:[#allocation181_spill] sm:$0xff] %v14041_v26  ;;  %v4713_v2 = vsel %vm406_vm0, %v14041_v26, -inf }
 0x47f   : > { %16709 = vst [vmem:[#allocation182_spill] sm:$0xff] %v14050_v7  ;;  %16711 = vst [vmem:[#allocation184_spill] sm:$0xff] %v14060_v30  ;;  %v4728_v10 = vsel %vm406_vm0, %v14050_v7, -inf  ;;  %v4734_v21 = vsel %vm406_vm0, %v14060_v30, -inf }
 0x480   : > { %4702 = vmax.xlane.f32.xlu0 %v4701_v54  ;;  %v14022_v63 = vpop.xlane.xlu1 %5203  ;;  %v14024_v31 = vpop.xlane.xlu0 %5188 }
 0x484   : > { %4717 = vmax.xlane.f32.xlu0 %v4716_v1  ;;  %v14033_v41 = vpop.xlane.xlu1 %4609  ;;  %6049 = vrot.lane.b32.xlu1 %v2055_v25, %s11441_s24  ;;  %v14036_v36 = vpop.xlane.xlu0 %5212  ;;  %v4966_v1 = vmul.f32 1.442695, %v4804_v16 }
 0x485   : > { %16707 = vst [vmem:[#allocation24_spill] sm:$0xff] %v14033_v41  ;;  %v4240_v16 = vpop.f32.mrf.mxu1 }
 0x486   : > { %v14076_v7 = vadd.f32 %v4240_v16, %v2230_v40 }
 0x488   : > { %4720 = vmax.xlane.f32.xlu0 %v4719_v61  ;;  %v14045_v58 = vpop.xlane.xlu1 %4603  ;;  %v5183_v54 = vpop.xlane.xlu0 %5182  ;;  %16716 = vst [vmem:[#allocation189_spill] sm:$0xff] %v14076_v7 }
 0x489   : > { %10976 = vrcp.f32 %v5183_v54  ;;  %v4974_v54 = vmul.f32 1.442695, %v4808_v43 }
 0x48a   : > { %10978 = vpow2.f32 %v4970_v57  ;;  %v10975_v46 = vpop.eup %10974 }
 0x48b   : > { %10980 = vpow2.f32 %v4966_v1 }
 0x48c   : > { %4714 = vmax.xlane.f32.xlu0 %v4713_v2  ;;  %v14054_v25 = vpop.xlane.xlu1 %4621  ;;  %v14056_v13 = vpop.xlane.xlu0 %5206  ;;  %v14068_v2 = vadd.f32 %v9466_v35, %v2232_v56  ;;  %10982 = vpow2.f32 %v4974_v54  ;;  %v5674_v56 = vmul.f32 %v10975_v46, %v13535_v24  ;;  %v4737_v54 = vsel %vm406_vm0, %v14076_v7, -inf }
 0x48d   : > { %16710 = vst [vmem:[#allocation183_spill] sm:$0xff] %v14054_v25 }
 0x48e   : > { %16714 = vst [vmem:[#allocation187_spill] sm:$0xff] %v14068_v2  ;;  %v4743_v1 = vsel %vm406_vm0, %v14068_v2, -inf  ;;  %v4304_v2 = vpop.f32.mrf.mxu0 }
 0x490   : > { %4729 = vmax.xlane.f32.xlu0 %v4728_v10  ;;  %v14064_v61 = vpop.xlane.xlu1 %4615  ;;  %v14066_v59 = vpop.xlane.xlu0 %4612 }
 0x491   : > { %16712 = vst [vmem:[#allocation185_spill] sm:$0xff] %v14064_v61  ;;  %16713 = vst [vmem:[#allocation186_spill] sm:$0xff] %v14066_v59  ;;  %v16784_v59 = vld [vmem:[#allocation6_spill] sm:$0xff] }
 0x494   : > { %4735 = vmax.xlane.f32.xlu0 %v4734_v21  ;;  %v14072_v57 = vpop.xlane.xlu1 %5197  ;;  %v14074_v52 = vpop.xlane.xlu0 %4606 }
 0x495   : > { %16715 = vst [vmem:[#allocation188_spill] sm:$0xff] %v14074_v52 }
 0x496   : > { %v10977_v10 = vpop.eup %10976 }
 0x497   : > { %v5675_v21 = vmul.f32 %v10977_v10, %v13579_v3  ;;  %v14090_v16 = vpop.eup %10978  ;;  %v2233_v3 = vld [vmem:[#allocation2 + $0x3c0] sm:$0xff] }
 0x498   : > { %4744 = vmax.xlane.f32.xlu0 %v4743_v1  ;;  %v14080_v43 = vpop.xlane.xlu1 %5233  ;;  %v14082_v35 = vpop.xlane.xlu0 %4624  ;;  %v5262_v24 = vsel %vm406_vm0, %v14090_v16, 0.0 }
 0x499   : > { %16717 = vst [vmem:[#allocation190_spill] sm:$0xff] %v14082_v35  ;;  %v5798_v30 = vpack.c.bf16 %v5675_v21, %v5674_v56  ;;  %v14097_v46 = vpop.eup %10980  ;;  %v14103_v21 = vadd.f32 %v4304_v2, %v2233_v3 }
 0x49a   : > { %16718 = vst [vmem:[#allocation191_spill] sm:$0xff] %v14097_v46 }
 0x49b   : > { %9503 = vmatprep.mubr.msk.bf16.mxu1 %vm406_vm0, %v5798_v30  ;;  %16720 = vst [vmem:[#allocation193_spill] sm:$0xff] %v14103_v21  ;;  %v5256_v30 = vsel %vm406_vm0, %v14097_v46, 0.0  ;;  %v16733_v46 = vld [vmem:[#allocation17_spill] sm:$0xff] }
 0x49c   : > { %4738 = vmax.xlane.f32.xlu0 %v4737_v54  ;;  %v5192_v40 = vpop.xlane.xlu1 %5191  ;;  %v14093_v1 = vpop.xlane.xlu0 %5227 }
 0x49d   : > { %v14107_v54 = vpop.eup %10982  ;;  %10984 = vrcp.f32 %v5192_v40 }
 0x49e   : > { %16721 = vst [vmem:[#allocation194_spill] sm:$0xff] %v14107_v54  ;;  %v5268_v39 = vsel %vm406_vm0, %v14107_v54, 0.0 }
 0x4a0   : > { %5263 = vadd.xlane.f32.xlu0 %v5262_v24  ;;  %v14099_v10 = vpop.xlane.xlu1 %4633  ;;  %v14101_v56 = vpop.xlane.xlu0 %4618  ;;  %v4746_v24 = vsel %vm406_vm0, %v14103_v21, -inf  ;;  %v16728_v21 = vld [vmem:[#allocation26_spill] sm:$0xff] }
 0x4a1   : > { %16719 = vst [vmem:[#allocation192_spill] sm:$0xff] %v14099_v10 }
 0x4a4   : > { %5257 = vadd.xlane.f32.xlu0 %v5256_v30  ;;  %v14109_v7 = vpop.xlane.xlu1 %4627  ;;  %v14111_v37 = vpop.xlane.xlu0 %5200 }
 0x4a5   : > { %16722 = vst [vmem:[#allocation195_spill] sm:$0xff] %v14109_v7  ;;  %v16734_v7 = vld [vmem:[#allocation18_spill] sm:$0xff] }
 0x4a8   : > { %5269 = vadd.xlane.f32.xlu0 %v5268_v39  ;;  %v14117_v34 = vpop.xlane.xlu1 %4645  ;;  %4747 = vmax.xlane.f32.xlu1 %v4746_v24  ;;  %v14119_v2 = vpop.xlane.xlu0 %5236  ;;  %v16729_v39 = vld [vmem:[#allocation27_spill] sm:$0xff] }
 0x4a9   : > { %16723 = vst [vmem:[#allocation196_spill] sm:$0xff] %v14117_v34  ;;  %v2060_v8 = vpack.c.bf16 %v16729_v39, %v16728_v21 }
 0x4aa   : > { %v10985_v40 = vpop.eup %10984 }
 0x4ac   : > { %v14121_v3 = vpop.xlane.xlu1 %4639  ;;  %v5195_v30 = vpop.xlane.xlu0 %5194 }
 0x4ad   : > { %16724 = vst [vmem:[#allocation197_spill] sm:$0xff] %v14121_v3  ;;  %10986 = vrcp.f32 %v5195_v30 }
 0x4b0   : > { %v14123_v9 = vpop.xlane.xlu1 %4657  ;;  %v14125_v26 = vpop.xlane.xlu0 %5230 }
 0x4b1   : > { %16725 = vst [vmem:[#allocation198_spill] sm:$0xff] %v14123_v9 }
 0x4b4   : > { %v14127_v51 = vpop.xlane.xlu1 %4651  ;;  %v14129_v10 = vpop.xlane.xlu0 %4636 }
 0x4b5   : > { %16726 = vst [vmem:[#allocation199_spill] sm:$0xff] %v14127_v51  ;;  %16727 = vst [vmem:[#allocation200_spill] sm:$0xff] %v14129_v10  ;;  %v2053_v51 = vpack.c.bf16 %v16734_v7, %v16733_v46  ;;  %v5678_v10 = vmul.f32 %v10985_v40, %v13640_v44  ;;  %v16743_v40 = vld [vmem:[#allocation55_spill] sm:$0xff] }
 0x4b8   : > { %v14133_v34 = vpop.xlane.xlu1 %4669  ;;  %v14135_v24 = vpop.xlane.xlu0 %4630 }
 0x4b9   : > { %16730 = vst [vmem:[#allocation26_spill] sm:$0xff] %v14133_v34  ;;  %16731 = vst [vmem:[#allocation27_spill] sm:$0xff] %v14135_v24  ;;  %6177 = vrot.lane.b32.xlu1 %v2060_v8, %s11441_s24  ;;  %v16737_v24 = vld [vmem:[#allocation5_spill] sm:$0xff] }
 0x4ba   : > { %v10987_v3 = vpop.eup %10986  ;;  %v4811_v41 = vsub.f32 %v16737_v24, %v13700_v11  ;;  %v14170_v24 = vpop.f32.mrf.mxu0 }
 0x4bb   : > { %v5679_v25 = vmul.f32 %v10987_v3, %v13688_v6  ;;  %v16742_v3 = vld [vmem:[#allocation128_spill] sm:$0xff] }
 0x4bc   : > { %v14138_v30 = vpop.xlane.xlu1 %4663  ;;  %v14140_v9 = vpop.xlane.xlu0 %5221  ;;  %v4980_v6 = vmul.f32 1.442695, %v4811_v41  ;;  %v16746_v41 = vld [vmem:[#allocation14_spill] sm:$0xff] }
 0x4bd   : > { %16732 = vst [vmem:[#allocation201_spill] sm:$0xff] %v14138_v30  ;;  %v5800_v21 = vpack.c.bf16 %v5679_v25, %v5678_v10  ;;  %v4307_v52 = vpop.f32.mrf.mxu0 }
 0x4be   : > { %5986 = vrot.lane.b32.xlu0 %v2053_v51, %s11441_s24  ;;  %v16740_v51 = vld [vmem:[#allocation13_spill] sm:$0xff]  ;;  %10988 = vpow2.f32 %v4980_v6 }
 0x4bf   : > { %9511 = vmatprep.mubr.msk.bf16.mxu0 %vm406_vm0, %v5800_v21  ;;  %v4815_v25 = vsub.f32 %v16740_v51, %v13740_v32  ;;  %v4813_v21 = vsub.f32 %v16743_v40, %v16742_v3  ;;  %v14181_v3 = vadd.f32 %v4307_v52, %v2234_v23 }
 0x4c0   : > { %v14148_v39 = vpop.xlane.xlu1 %5245  ;;  %v14150_v8 = vpop.xlane.xlu0 %4648 }
 0x4c1   : > { %16735 = vst [vmem:[#allocation17_spill] sm:$0xff] %v14150_v8  ;;  %16750 = vst [vmem:[#allocation203_spill] sm:$0xff] %v14181_v3 }
 0x4c4   : > { %v14152_v34 = vpop.xlane.xlu1 %4681  ;;  %v5216_v30 = vpop.xlane.xlu0 %5215 }
 0x4c5   : > { %16736 = vst [vmem:[#allocation18_spill] sm:$0xff] %v14152_v34  ;;  %v4988_v34 = vmul.f32 1.442695, %v4815_v25 }
 0x4c7   : > { %10990 = vpow2.f32 %v4988_v34 }
 0x4c8   : > { %v14156_v7 = vpop.xlane.xlu1 %4675  ;;  %v14158_v44 = vpop.xlane.xlu0 %4642 }
 0x4c9   : > { %16738 = vst [vmem:[#allocation5_spill] sm:$0xff] %v14156_v7  ;;  %16739 = vst [vmem:[#allocation202_spill] sm:$0xff] %v14158_v44  ;;  %v4984_v7 = vmul.f32 1.442695, %v4813_v21  ;;  %v16745_v44 = vld [vmem:[#allocation136_spill] sm:$0xff] }
 0x4ca   : > { %v4817_v61 = vsub.f32 %v16746_v41, %v16745_v44  ;;  %v4749_v44 = vsel %vm406_vm0, %v14181_v3, -inf }
 0x4cb   : > { %10992 = vpow2.f32 %v4984_v7  ;;  %v14195_v7 = vpop.eup %10988 }
 0x4cc   : > { %v14162_v46 = vpop.xlane.xlu1 %4693  ;;  %v14164_v10 = vpop.xlane.xlu0 %5224  ;;  %v4992_v6 = vmul.f32 1.442695, %v4817_v61  ;;  %16755 = vst [vmem:[#allocation208_spill] sm:$0xff] %v14195_v7  ;;  %v5277_v52 = vsel %vm406_vm0, %v14195_v7, 0.0  ;;  %v16774_v7 = vld [vmem:[#allocation129_spill] sm:$0xff] }
 0x4cd   : > { %16741 = vst [vmem:[#allocation13_spill] sm:$0xff] %v14162_v46  ;;  %v2235_v46 = vld [vmem:[#allocation2 + $0x3d0] sm:$0xff] }
 0x4ce   : > { %v14179_v25 = vadd.f32 %v14086_v0, %v2235_v46  ;;  %10994 = vpow2.f32 %v4992_v6 }
 0x4cf   : > { %10996 = vrcp.f32 %v14111_v37 }
 0x4d0   : > { %v14168_v8 = vpop.xlane.xlu1 %4687  ;;  %v5219_v11 = vpop.xlane.xlu0 %5218  ;;  %16749 = vst [vmem:[#allocation14_spill] sm:$0xff] %v14179_v25  ;;  %v4752_v61 = vsel %vm406_vm0, %v14179_v25, -inf }
 0x4d1   : > { %16744 = vst [vmem:[#allocation128_spill] sm:$0xff] %v14168_v8  ;;  %10998 = vrcp.f32 %v5219_v11  ;;  %v16766_v8 = vld [vmem:[#allocation15_spill] sm:$0xff] }
 0x4d2   : > { %11000 = vrcp.f32 %v14072_v57  ;;  %v16772_v57 = vld [vmem:[#allocation28_spill] sm:$0xff] }
 0x4d3   : > { %11002 = vrcp.f32 %v5216_v30 }
 0x4d4   : > { %v14174_v32 = vpop.xlane.xlu1 %4699  ;;  %v14176_v51 = vpop.xlane.xlu0 %4660 }
 0x4d5   : > { %16747 = vst [vmem:[#allocation55_spill] sm:$0xff] %v14174_v32  ;;  %16748 = vst [vmem:[#allocation136_spill] sm:$0xff] %v14176_v51  ;;  %v14203_v46 = vpop.eup %10990 }
 0x4d6   : > { %16757 = vst [vmem:[#allocation210_spill] sm:$0xff] %v14203_v46  ;;  %v5289_v3 = vsel %vm406_vm0, %v14203_v46, 0.0  ;;  %v16777_v46 = vld [vmem:[#allocation123_spill] sm:$0xff] }
 0x4d8   : > { %v14183_v40 = vpop.xlane.xlu1 %4711  ;;  %v14185_v21 = vpop.xlane.xlu0 %4654 }
 0x4d9   : > { %16751 = vst [vmem:[#allocation204_spill] sm:$0xff] %v14183_v40  ;;  %16752 = vst [vmem:[#allocation205_spill] sm:$0xff] %v14185_v21  ;;  %v14209_v25 = vpop.eup %10992  ;;  %v16767_v21 = vld [vmem:[#allocation19_spill] sm:$0xff] }
 0x4da   : > { %16759 = vst [vmem:[#allocation212_spill] sm:$0xff] %v14209_v25 }
 0x4dc   : > { %v14187_v34 = vpop.xlane.xlu1 %4723  ;;  %v14191_v41 = vpop.xlane.xlu0 %4672 }
 0x4dd   : > { %16753 = vst [vmem:[#allocation206_spill] sm:$0xff] %v14187_v34  ;;  %16754 = vst [vmem:[#allocation207_spill] sm:$0xff] %v14191_v41  ;;  %4750 = vmax.xlane.f32.xlu0 %v4749_v44  ;;  %4753 = vmax.xlane.f32.xlu1 %v4752_v61  ;;  %v5283_v61 = vsel %vm406_vm0, %v14209_v25, 0.0 }
 0x4e0   : > { %v14197_v23 = vpop.xlane.xlu1 %4732  ;;  %v14199_v0 = vpop.xlane.xlu0 %5239 }
 0x4e1   : > { %16756 = vst [vmem:[#allocation209_spill] sm:$0xff] %v14197_v23  ;;  %5278 = vadd.xlane.f32.xlu1 %v5277_v52  ;;  %v14217_v23 = vpop.eup %10994 }
 0x4e2   : > { %16762 = vst [vmem:[#allocation215_spill] sm:$0xff] %v14217_v23  ;;  %v10997_v11 = vpop.eup %10996 }
 0x4e4   : > { %v14205_v6 = vpop.xlane.xlu1 %4726 }
 0x4e5   : > { %16758 = vst [vmem:[#allocation211_spill] sm:$0xff] %v14205_v6  ;;  %v14211_v34 = vpop.xlane.xlu0 %4666  ;;  %5290 = vadd.xlane.f32.xlu1 %v5289_v3  ;;  %v5295_v6 = vsel %vm406_vm0, %v14217_v23, 0.0  ;;  %v10999_v23 = vpop.eup %10998 }
 0x4e6   : > { %16760 = vst [vmem:[#allocation213_spill] sm:$0xff] %v14211_v34  ;;  %v16773_v34 = vld [vmem:[#allocation29_spill] sm:$0xff] }
 0x4e8   : > { %v14213_v44 = vpop.xlane.xlu1 %4741 }
 0x4e9   : > { %16761 = vst [vmem:[#allocation214_spill] sm:$0xff] %v14213_v44  ;;  %v14219_v40 = vpop.xlane.xlu0 %5248  ;;  %5284 = vadd.xlane.f32.xlu1 %v5283_v61  ;;  %v2058_v61 = vpack.c.bf16 %v16767_v21, %v16766_v8  ;;  %v16775_v8 = vld [vmem:[#allocation56_spill] sm:$0xff] }
 0x4ea   : > { %v4810_v30 = vsub.f32 %v16775_v8, %v16774_v7  ;;  %v16782_v8 = vld [vmem:[#allocation150_spill] sm:$0xff] }
 0x4ec   : > { %v14221_v52 = vpop.xlane.xlu1 %5251  ;;  %v4978_v38 = vmul.f32 1.442695, %v4810_v30 }
 0x4ed   : > { %16763 = vst [vmem:[#allocation216_spill] sm:$0xff] %v14221_v52  ;;  %v14225_v32 = vpop.xlane.xlu0 %5242  ;;  %5296 = vadd.xlane.f32.xlu1 %v5295_v6 }
 0x4ee   : > { %11004 = vpow2.f32 %v4978_v38 }
 0x4f0   : > { %v14228_v3 = vpop.xlane.xlu1 %5254 }
 0x4f1   : > { %16764 = vst [vmem:[#allocation217_spill] sm:$0xff] %v14228_v3  ;;  %v14231_v44 = vpop.xlane.xlu0 %4684  ;;  %v16783_v3 = vld [vmem:[#allocation125_spill] sm:$0xff] }
 0x4f2   : > { %16765 = vst [vmem:[#allocation218_spill] sm:$0xff] %v14231_v44  ;;  %v2059_v44 = vpack.c.bf16 %v16773_v34, %v16772_v57  ;;  %v16781_v57 = vld [vmem:[#allocation116_spill] sm:$0xff] }
 0x4f3   : > { %6114 = vrot.lane.b32.xlu0 %v2058_v61, %s11441_s24  ;;  %v11001_v61 = vpop.eup %11000 }
 0x4f4   : > { %v14236_v25 = vpop.xlane.xlu1 %5266  ;;  %v5680_v7 = vmul.f32 %v11001_v61, %v16781_v57 }
 0x4f5   : > { %v14238_v41 = vpop.xlane.xlu0 %4678 }
 0x4f6   : > { %16768 = vst [vmem:[#allocation15_spill] sm:$0xff] %v14238_v41  ;;  %v11003_v41 = vpop.eup %11002 }
 0x4f8   : > { %v14240_v6 = vpop.xlane.xlu1 %5260 }
 0x4f9   : > { %16769 = vst [vmem:[#allocation19_spill] sm:$0xff] %v14240_v6  ;;  %v14242_v37 = vpop.xlane.xlu0 %4696  ;;  %v5681_v6 = vmul.f32 %v10997_v11, %v16777_v46  ;;  %v4812_v46 = vsub.f32 %v16784_v59, %v16783_v3 }
 0x4fa   : > { %16770 = vst [vmem:[#allocation219_spill] sm:$0xff] %v14242_v37  ;;  %v5687_v37 = vmul.f32 %v10999_v23, %v13825_v47  ;;  %v16787_v23 = vld [vmem:[#allocation8_spill] sm:$0xff] }
 0x4fb   : > { %v5801_v52 = vpack.c.bf16 %v5681_v6, %v5680_v7  ;;  %v14280_v3 = vpop.eup %11004 }
 0x4fc   : > { %v14244_v51 = vpop.xlane.xlu1 %5272 }
 0x4fd   : > { %16771 = vst [vmem:[#allocation220_spill] sm:$0xff] %v14244_v51  ;;  %v14250_v21 = vpop.xlane.xlu0 %4690  ;;  %v16779_v51 = vld [vmem:[#allocation87_spill] sm:$0xff] }
 0x4fe   : > { %16776 = vst [vmem:[#allocation28_spill] sm:$0xff] %v14250_v21  ;;  %6175 = vrot.lane.b32.xlu1 %v2059_v44, %s11441_s24  ;;  %v4814_v35 = vsub.f32 %v16779_v51, %v16778_v53  ;;  %v5686_v21 = vmul.f32 %v11003_v41, %v16782_v8  ;;  %v4982_v53 = vmul.f32 1.442695, %v4812_v46  ;;  %v16786_v51 = vld [vmem:[#allocation133_spill] sm:$0xff]  ;;  %v2236_v41 = vld [vmem:[#allocation2 + $0x3d8] sm:$0xff] }
 0x4ff   : > { %v4816_v30 = vsub.f32 %v16787_v23, %v16786_v51  ;;  %v14272_v59 = vadd.f32 %v14170_v24, %v2236_v41  ;;  %v14288_v24 = vpop.f32.mrf.mxu1  ;;  %v2237_v46 = vld [vmem:[#allocation2 + $0x3e0] sm:$0xff] }
 0x500   : > { %v6050_v54 = vpop.permute.xlu1 %6049  ;;  %v5804_v44 = vpack.c.bf16 %v5687_v37, %v5686_v21  ;;  %v4986_v11 = vmul.f32 1.442695, %v4814_v35  ;;  %v5274_v21 = vsel %vm406_vm0, %v14280_v3, 0.0 }
 0x501   : > { %v14257_v34 = vpop.xlane.xlu0 %4705  ;;  %9509 = vmatprep.subr.bf16.mxu0 %v6050_v54  ;;  %v4990_v6 = vmul.f32 1.442695, %v4816_v30  ;;  %16789 = vst [vmem:[#allocation123_spill] sm:$0xff] %v14272_v59 }
 0x502   : > { %16780 = vst [vmem:[#allocation29_spill] sm:$0xff] %v14257_v34  ;;  %9510 = vmatpush3.bf16.msra.mxu0 %v6050_v54  ;;  %11006 = vpow2.f32 %v4986_v11  ;;  %v16805_v34 = vld [vmem:[#allocation20_spill] sm:$0xff] }
 0x503   : > { %11008 = vpow2.f32 %v4982_v53 }
 0x504   : > { %11010 = vpow2.f32 %v4990_v6 }
 0x505   : > { %v14263_v47 = vpop.xlane.xlu0 %4708  ;;  %9512 = vmatmul.mubr.msk.bf16.vlgmr.msra.gmra.mxu0 %vm406_vm0, %v5801_v52  ;;  %v4755_v52 = vsel %vm406_vm0, %v14272_v59, -inf  ;;  %11012 = vrcp.f32 %v14024_v31 }
 0x506   : > { %16785 = vst [vmem:[#allocation129_spill] sm:$0xff] %v14263_v47  ;;  %9527 = vmatprep.mubr.msk.bf16.mxu0 %vm406_vm0, %v5804_v44  ;;  %v4371_v44 = vpop.f32.mrf.mxu1  ;;  %11014 = vrcp.f32 %v14056_v13 }
 0x507   : > { %v14296_v11 = vadd.f32 %v4371_v44, %v2237_v46  ;;  %11016 = vrcp.f32 %v14002_v33  ;;  %v16802_v33 = vld [vmem:[#allocation107_spill] sm:$0xff] }
 0x508   : > { %11018 = vrcp.f32 %v14022_v63 }
 0x509   : > { %v14269_v54 = vpop.xlane.xlu0 %4702  ;;  %16795 = vst [vmem:[#allocation6_spill] sm:$0xff] %v14296_v11  ;;  %v4758_v6 = vsel %vm406_vm0, %v14296_v11, -inf }
 0x50a   : > { %16788 = vst [vmem:[#allocation56_spill] sm:$0xff] %v14269_v54 }
 0x50d   : > { %v14274_v38 = vpop.xlane.xlu0 %4717 }
 0x50e   : > { %16790 = vst [vmem:[#allocation138_spill] sm:$0xff] %v14274_v38  ;;  %v16804_v38 = vld [vmem:[#allocation16_spill] sm:$0xff] }
 0x50f   : > { %v14286_v61 = vpop.eup %11006  ;;  %v2057_v54 = vpack.c.bf16 %v16805_v34, %v16804_v38  ;;  %v16811_v34 = vld [vmem:[#allocation100_spill] sm:$0xff] }
 0x510   : > { %v5286_v7 = vsel %vm406_vm0, %v14286_v61, 0.0  ;;  %v14294_v8 = vpop.eup %11008 }
 0x511   : > { %v14276_v35 = vpop.xlane.xlu0 %4720  ;;  %16794 = vst [vmem:[#allocation125_spill] sm:$0xff] %v14294_v8  ;;  %v5280_v51 = vsel %vm406_vm0, %v14294_v8, 0.0  ;;  %v14302_v23 = vpop.eup %11010  ;;  %v16834_v8 = vld [vmem:[#allocation22_spill] sm:$0xff] }
 0x512   : > { %16791 = vst [vmem:[#allocation87_spill] sm:$0xff] %v14276_v35  ;;  %4756 = vmax.xlane.f32.xlu0 %v4755_v52  ;;  %v5292_v41 = vsel %vm406_vm0, %v14302_v23, 0.0  ;;  %v11013_v44 = vpop.eup %11012 }
 0x513   : > { %v11015_v11 = vpop.eup %11014 }
 0x514   : > { %v11017_v13 = vpop.eup %11016 }
 0x515   : > { %v14282_v37 = vpop.xlane.xlu0 %4714  ;;  %v11019_v59 = vpop.eup %11018 }
 0x516   : > { %16792 = vst [vmem:[#allocation116_spill] sm:$0xff] %v14282_v37  ;;  %5275 = vadd.xlane.f32.xlu0 %v5274_v21  ;;  %v16810_v37 = vld [vmem:[#allocation157_spill] sm:$0xff] }
 0x517   : > { %v4823_v38 = vsub.f32 %v16811_v34, %v16810_v37 }
 0x519   : > { %v14290_v57 = vpop.xlane.xlu0 %4729 }
 0x51a   : > { %16793 = vst [vmem:[#allocation150_spill] sm:$0xff] %v14290_v57  ;;  %5287 = vadd.xlane.f32.xlu0 %v5286_v7 }
 0x51d   : > { %v14298_v53 = vpop.xlane.xlu0 %4735 }
 0x51e   : > { %16796 = vst [vmem:[#allocation133_spill] sm:$0xff] %v14298_v53  ;;  %5281 = vadd.xlane.f32.xlu0 %v5280_v51  ;;  %v16803_v53 = vld [vmem:[#allocation112_spill] sm:$0xff] }
 0x51f   : > { %v5683_v57 = vmul.f32 %v11015_v11, %v16803_v53  ;;  %v16808_v11 = vld [vmem:[#allocation148_spill] sm:$0xff]  ;;  %v16809_v53 = vld [vmem:[#allocation11_spill] sm:$0xff] }
 0x521   : > { %v14304_v30 = vpop.xlane.xlu0 %4744 }
 0x522   : > { %16797 = vst [vmem:[#allocation8_spill] sm:$0xff] %v14304_v30  ;;  %5293 = vadd.xlane.f32.xlu0 %v5292_v41  ;;  %4759 = vmax.xlane.f32.xlu1 %v4758_v6  ;;  %v16800_v41 = vld [vmem:[#allocation42_spill] sm:$0xff]  ;;  %v16801_v6 = vld [vmem:[#allocation43_spill] sm:$0xff] }
 0x523   : > { %v2064_v31 = vpack.c.bf16 %v16801_v6, %v16800_v41  ;;  %v16807_v41 = vld [vmem:[#allocation108_spill] sm:$0xff] }
 0x524   : > { %v5682_v6 = vmul.f32 %v11019_v59, %v16807_v41  ;;  %v5004_v59 = vmul.f32 1.442695, %v4823_v38 }
 0x525   : > { %v14312_v52 = vpop.xlane.xlu0 %4738 }
 0x526   : > { %16798 = vst [vmem:[#allocation221_spill] sm:$0xff] %v14312_v52  ;;  %v5677_v52 = vmul.f32 %v11013_v44, %v16802_v33  ;;  %v5802_v47 = vpack.c.bf16 %v5683_v57, %v5682_v6  ;;  %v4819_v44 = vsub.f32 %v16809_v53, %v16808_v11  ;;  %v16815_v57 = vld [vmem:[#allocation92_spill] sm:$0xff]  ;;  %v2238_v6 = vld [vmem:[#allocation2 + $0x3e8] sm:$0xff] }
 0x528   : > { %v4996_v33 = vmul.f32 1.442695, %v4819_v44 }
 0x529   : > { %v14316_v21 = vpop.xlane.xlu0 %5263 }
 0x52a   : > { %11020 = vpow2.f32 %v4996_v33 }
 0x52b   : > { %11022 = vpow2.f32 %v5004_v59 }
 0x52d   : > { %v14318_v7 = vpop.xlane.xlu0 %5257 }
 0x531   : > { %v14320_v46 = vpop.xlane.xlu0 %5269  ;;  %v14322_v51 = vpop.xlane.xlu1 %4747 }
 0x532   : > { %16799 = vst [vmem:[#allocation222_spill] sm:$0xff] %v14322_v51  ;;  %v16806_v51 = vld [vmem:[#allocation105_spill] sm:$0xff] }
 0x533   : > { %6303 = vrot.lane.b32.xlu1 %v2064_v31, %s11441_s24  ;;  %v5676_v35 = vmul.f32 %v11017_v13, %v16806_v51  ;;  %v16812_v51 = vld [vmem:[#allocation144_spill] sm:$0xff] }
 0x534   : > { %v16813_v13 = vld [vmem:[#allocation12_spill] sm:$0xff] }
 0x535   : > { %v5987_v63 = vpop.permute.xlu0 %5986  ;;  %v6178_v30 = vpop.permute.xlu1 %6177  ;;  %v5799_v31 = vpack.c.bf16 %v5677_v52, %v5676_v35  ;;  %v16814_v35 = vld [vmem:[#allocation154_spill] sm:$0xff] }
 0x536   : > { %9501 = vmatprep.subr.bf16.mxu1 %v5987_v63  ;;  %9523 = vmatprep.subr.bf16.mxu0 %v6178_v30  ;;  %v4825_v52 = vsub.f32 %v16815_v57, %v16814_v35 }
 0x537   : > { %9502 = vmatpush3.bf16.msra.mxu1 %v5987_v63  ;;  %9524 = vmatpush3.bf16.msra.mxu0 %v6178_v30  ;;  %v4821_v30 = vsub.f32 %v16813_v13, %v16812_v51  ;;  %v14342_v63 = vpop.f32.mrf.mxu1  ;;  %v14355_v33 = vpop.eup %11020 }
 0x538   : > { %6112 = vrot.lane.b32.xlu0 %v2057_v54, %s11441_s24  ;;  %16818 = vst [vmem:[#allocation107_spill] sm:$0xff] %v14355_v33  ;;  %v5301_v34 = vsel %vm406_vm0, %v14355_v33, 0.0  ;;  %v14359_v38 = vpop.eup %11022  ;;  %v16833_v33 = vld [vmem:[#allocation151_spill] sm:$0xff] }
 0x539   : > { %v5000_v54 = vmul.f32 1.442695, %v4821_v30  ;;  %v4374_v41 = vpop.f32.mrf.mxu1  ;;  %16819 = vst [vmem:[#allocation112_spill] sm:$0xff] %v14359_v38 }
 0x53a   : > { %9504 = vmatmul.mubr.msk.bf16.vlgmr.msra.gmra.mxu1 %vm406_vm0, %v5799_v31  ;;  %v5008_v31 = vmul.f32 1.442695, %v4825_v52  ;;  %v14349_v37 = vadd.f32 %v4374_v41, %v2238_v6  ;;  %v16825_v41 = vld [vmem:[#allocation39_spill] sm:$0xff] }
 0x53b   : > { %9519 = vmatprep.mubr.msk.bf16.mxu1 %vm406_vm0, %v5802_v47  ;;  %v2239_v47 = vld [vmem:[#allocation2 + $0x3f0] sm:$0xff]  ;;  %11024 = vpow2.f32 %v5000_v54 }
 0x53c   : > { %v14347_v11 = vadd.f32 %v14288_v24, %v2239_v47  ;;  %16817 = vst [vmem:[#allocation43_spill] sm:$0xff] %v14349_v37  ;;  %11026 = vpow2.f32 %v5008_v31  ;;  %v4761_v53 = vsel %vm406_vm0, %v14349_v37, -inf  ;;  %v5313_v24 = vsel %vm406_vm0, %v14359_v38, 0.0  ;;  %v16824_v47 = vld [vmem:[#allocation36_spill] sm:$0xff]  ;;  %v16832_v37 = vld [vmem:[#allocation155_spill] sm:$0xff] }
 0x53d   : > { %11028 = vrcp.f32 %v14164_v10  ;;  %v2062_v6 = vpack.c.bf16 %v16825_v41, %v16824_v47  ;;  %v16830_v41 = vld [vmem:[#allocation143_spill] sm:$0xff]  ;;  %v16836_v38 = vld [vmem:[#allocation140_spill] sm:$0xff] }
 0x53e   : > { %16816 = vst [vmem:[#allocation42_spill] sm:$0xff] %v14347_v11  ;;  %v4764_v44 = vsel %vm406_vm0, %v14347_v11, -inf  ;;  %11030 = vrcp.f32 %v14225_v32  ;;  %v16827_v32 = vld [vmem:[#allocation47_spill] sm:$0xff] }
 0x53f   : > { %11032 = vrcp.f32 %v14140_v9  ;;  %v16828_v9 = vld [vmem:[#allocation40_spill] sm:$0xff] }
 0x540   : > { %11034 = vrcp.f32 %v14199_v0  ;;  %v16831_v0 = vld [vmem:[#allocation10_spill] sm:$0xff] }
 0x548   : > { %v14363_v51 = vpop.eup %11024 }
 0x549   : > { %16820 = vst [vmem:[#allocation16_spill] sm:$0xff] %v14363_v51  ;;  %v5307_v13 = vsel %vm406_vm0, %v14363_v51, 0.0  ;;  %v14367_v30 = vpop.eup %11026 }
 0x54a   : > { %16821 = vst [vmem:[#allocation20_spill] sm:$0xff] %v14367_v30  ;;  %v5319_v35 = vsel %vm406_vm0, %v14367_v30, 0.0  ;;  %v11029_v10 = vpop.eup %11028 }
 0x54b   : > { %v11031_v47 = vpop.eup %11030 }
 0x54c   : > { %v11033_v11 = vpop.eup %11032  ;;  %v5695_v30 = vmul.f32 %v11031_v47, %v13932_v28 }
 0x557   : > { %4762 = vmax.xlane.f32.xlu0 %v4761_v53  ;;  %4765 = vmax.xlane.f32.xlu1 %v4764_v44  ;;  %v9876_v44 = vunpack.i.h.bf16 %v16827_v32 }
 0x55b   : > { %5302 = vadd.xlane.f32.xlu1 %v5301_v34  ;;  %v9875_v34 = vunpack.i.l.bf16 %v16827_v32 }
 0x55f   : > { %5314 = vadd.xlane.f32.xlu1 %v5313_v24 }
 0x563   : > { %5308 = vadd.xlane.f32.xlu1 %v5307_v13  ;;  %v16829_v13 = vld [vmem:[#allocation41_spill] sm:$0xff] }
 0x566   : > { %v14369_v59 = vpop.xlane.xlu0 %4750  ;;  %v14371_v54 = vpop.xlane.xlu1 %4753 }
 0x567   : > { %16822 = vst [vmem:[#allocation105_spill] sm:$0xff] %v14369_v59  ;;  %16823 = vst [vmem:[#allocation108_spill] sm:$0xff] %v14371_v54  ;;  %5320 = vadd.xlane.f32.xlu1 %v5319_v35  ;;  %v2063_v35 = vpack.c.bf16 %v16829_v13, %v16828_v9  ;;  %v5689_v54 = vmul.f32 %v11029_v10, %v16832_v37  ;;  %v2066_v59 = vpack.c.bf16 %v9876_v44, %v9875_v34  ;;  %v16835_v9 = vld [vmem:[#allocation141_spill] sm:$0xff] }
 0x568   : > { %v5688_v13 = vmul.f32 %v11033_v11, %v16835_v9  ;;  %v16837_v37 = vld [vmem:[#allocation9_spill] sm:$0xff] }
 0x569   : > { %v4820_v10 = vsub.f32 %v16837_v37, %v16836_v38 }
 0x56a   : > { %v6115_v57 = vpop.permute.xlu0 %6114  ;;  %v14377_v52 = vpop.xlane.xlu1 %5278 }
 0x56b   : > { %9515 = vmatprep.subr.bf16.mxu1 %v6115_v57  ;;  %v4998_v28 = vmul.f32 1.442695, %v4820_v10 }
 0x56c   : > { %9516 = vmatpush3.bf16.msra.mxu1 %v6115_v57  ;;  %v4818_v57 = vsub.f32 %v16831_v0, %v16830_v41 }
 0x56d   : > { %6240 = vrot.lane.b32.xlu0 %v2062_v6, %s11441_s24  ;;  %v11035_v6 = vpop.eup %11034 }
 0x56e   : > { %v14384_v31 = vpop.xlane.xlu1 %5290  ;;  %v4994_v32 = vmul.f32 1.442695, %v4818_v57  ;;  %v5694_v41 = vmul.f32 %v11035_v6, %v13870_v5  ;;  %v16840_v5 = vld [vmem:[#allocation38_spill] sm:$0xff]  ;;  %v16843_v6 = vld [vmem:[#allocation37_spill] sm:$0xff] }
 0x570   : > { %v5808_v0 = vpack.c.bf16 %v5695_v30, %v5694_v41  ;;  %11036 = vpow2.f32 %v4994_v32  ;;  %v4826_v30 = vsub.f32 %v16840_v5, %v13886_v12  ;;  %v4829_v32 = vsub.f32 %v16843_v6, %v13878_v19 }
 0x572   : > { %v14386_v53 = vpop.xlane.xlu1 %5284  ;;  %v5010_v38 = vmul.f32 1.442695, %v4826_v30 }
 0x573   : > { %16826 = vst [vmem:[#allocation148_spill] sm:$0xff] %v14386_v53  ;;  %v4822_v53 = vsub.f32 %v16834_v8, %v16833_v33  ;;  %v16838_v8 = vld [vmem:[#allocation147_spill] sm:$0xff]  ;;  %v16839_v33 = vld [vmem:[#allocation21_spill] sm:$0xff] }
 0x574   : > { %v4824_v11 = vsub.f32 %v16839_v33, %v16838_v8 }
 0x575   : > { %v5002_v44 = vmul.f32 1.442695, %v4822_v53  ;;  %v16842_v53 = vld [vmem:[#allocation72_spill] sm:$0xff] }
 0x576   : > { %v14390_v24 = vpop.xlane.xlu1 %5296  ;;  %v4831_v34 = vsub.f32 %v16842_v53, %v13935_v27  ;;  %v16844_v27 = vld [vmem:[#allocation95_spill] sm:$0xff] }
 0x577   : > { %11038 = vpow2.f32 %v5002_v44  ;;  %v4833_v41 = vsub.f32 %v16844_v27, %v13923_v45  ;;  %v16848_v27 = vld [vmem:[#allocation132_spill] sm:$0xff] }
 0x578   : > { %6301 = vrot.lane.b32.xlu1 %v2063_v35, %s11441_s24  ;;  %v5805_v35 = vpack.c.bf16 %v5689_v54, %v5688_v13  ;;  %11040 = vpow2.f32 %v4998_v28  ;;  %v5020_v9 = vmul.f32 1.442695, %v4831_v34  ;;  %v5016_v13 = vmul.f32 1.442695, %v4829_v32  ;;  %v16847_v32 = vld [vmem:[#allocation109_spill] sm:$0xff] }
 0x579   : > { %v5024_v19 = vmul.f32 1.442695, %v4833_v41 }
 0x57a   : > { %v6176_v51 = vpop.permute.xlu1 %6175 }
 0x57b   : > { %9525 = vmatprep.subr.bf16.mxu0 %v6176_v51 }
 0x57c   : > { %6366 = vrot.lane.b32.xlu1 %v2066_v59, %s11441_s24  ;;  %9526 = vmatpush3.bf16.msra.mxu0 %v6176_v51  ;;  %v2240_v59 = vld [vmem:[#allocation2 + $0x3f8] sm:$0xff]  ;;  %v5006_v51 = vmul.f32 1.442695, %v4824_v11 }
 0x57d   : > { %v14413_v54 = vadd.f32 %v14342_v63, %v2240_v59  ;;  %v14419_v57 = vpop.eup %11036 }
 0x57e   : > { %11042 = vpow2.f32 %v5006_v51  ;;  %v5298_v12 = vsel %vm406_vm0, %v14419_v57, 0.0 }
 0x57f   : > { %9528 = vmatmul.mubr.msk.bf16.vlgmr.msra.gmra.mxu0 %vm406_vm0, %v5805_v35  ;;  %16841 = vst [vmem:[#allocation11_spill] sm:$0xff] %v14413_v54  ;;  %v4767_v47 = vsel %vm406_vm0, %v14413_v54, -inf  ;;  %11044 = vpow2.f32 %v5010_v38 }
 0x580   : > { %9543 = vmatprep.mubr.msk.bf16.mxu0 %vm406_vm0, %v5808_v0  ;;  %11046 = vpow2.f32 %v5020_v9 }
 0x581   : > { %11048 = vpow2.f32 %v5016_v13 }
 0x582   : > { %11050 = vpow2.f32 %v5024_v19 }
 0x583   : > { %11052 = vrcp.f32 %v14036_v36 }
 0x584   : > { %v14425_v63 = vpop.eup %11038  ;;  %11054 = vrcp.f32 %v14125_v26 }
 0x585   : > { %v5310_v35 = vsel %vm406_vm0, %v14425_v63, 0.0  ;;  %v14431_v0 = vpop.eup %11040  ;;  %11056 = vrcp.f32 %v13992_v62 }
 0x586   : > { %v5304_v37 = vsel %vm406_vm0, %v14431_v0, 0.0  ;;  %11058 = vrcp.f32 %v14093_v1 }
 0x58b   : > { %v14435_v10 = vpop.eup %11042 }
 0x58c   : > { %4768 = vmax.xlane.f32.xlu0 %v4767_v47  ;;  %v5316_v45 = vsel %vm406_vm0, %v14435_v10, 0.0  ;;  %v14441_v28 = vpop.eup %11044 }
 0x58d   : > { %v5322_v33 = vsel %vm406_vm0, %v14441_v28, 0.0  ;;  %v14449_v11 = vpop.eup %11046 }
 0x58e   : > { %v5337_v51 = vsel %vm406_vm0, %v14449_v11, 0.0  ;;  %v14457_v36 = vpop.eup %11048 }
 0x58f   : > { %v5331_v5 = vsel %vm406_vm0, %v14457_v36, 0.0  ;;  %v14463_v30 = vpop.eup %11050 }
 0x590   : > { %5299 = vadd.xlane.f32.xlu0 %v5298_v12  ;;  %v11053_v62 = vpop.eup %11052  ;;  %v5343_v53 = vsel %vm406_vm0, %v14463_v30, 0.0 }
 0x591   : > { %v11055_v34 = vpop.eup %11054  ;;  %v5685_v9 = vmul.f32 %v11053_v62, %v16847_v32 }
 0x592   : > { %v11057_v47 = vpop.eup %11056  ;;  %v5691_v41 = vmul.f32 %v11055_v34, %v16848_v27  ;;  %v16854_v27 = vld [vmem:[#allocation63_spill] sm:$0xff] }
 0x593   : > { %v11059_v6 = vpop.eup %11058 }
 0x594   : > { %5311 = vadd.xlane.f32.xlu0 %v5310_v35  ;;  %v16849_v35 = vld [vmem:[#allocation57_spill] sm:$0xff] }
 0x595   : > { %v9906_v19 = vunpack.i.h.bf16 %v16849_v35 }
 0x598   : > { %5305 = vadd.xlane.f32.xlu0 %v5304_v37  ;;  %v9905_v37 = vunpack.i.l.bf16 %v16849_v35  ;;  %v9921_v35 = vunpack.i.h.bf16 %v16854_v27 }
 0x59a   : > { %v2068_v34 = vpack.c.bf16 %v9906_v19, %v9905_v37  ;;  %v16858_v37 = vld [vmem:[#allocation93_spill] sm:$0xff] }
 0x59b   : > { %v14437_v44 = vpop.xlane.xlu0 %4756 }
 0x59c   : > { %16845 = vst [vmem:[#allocation157_spill] sm:$0xff] %v14437_v44  ;;  %5317 = vadd.xlane.f32.xlu0 %v5316_v45  ;;  %v16850_v45 = vld [vmem:[#allocation32_spill] sm:$0xff] }
 0x59f   : > { %v14445_v8 = vpop.xlane.xlu0 %5275 }
 0x5a0   : > { %5323 = vadd.xlane.f32.xlu1 %v5322_v33  ;;  %v16851_v33 = vld [vmem:[#allocation33_spill] sm:$0xff] }
 0x5a3   : > { %v14453_v59 = vpop.xlane.xlu0 %5287 }
 0x5a4   : > { %5338 = vadd.xlane.f32.xlu1 %v5337_v51  ;;  %v2061_v51 = vpack.c.bf16 %v16851_v33, %v16850_v45  ;;  %v9920_v45 = vunpack.i.l.bf16 %v16854_v27  ;;  %v16856_v33 = vld [vmem:[#allocation101_spill] sm:$0xff] }
 0x5a7   : > { %v14459_v26 = vpop.xlane.xlu0 %5281 }
 0x5a8   : > { %5332 = vadd.xlane.f32.xlu1 %v5331_v5  ;;  %v16852_v5 = vld [vmem:[#allocation103_spill] sm:$0xff] }
 0x5a9   : > { %v5684_v54 = vmul.f32 %v11057_v47, %v16852_v5  ;;  %v16855_v47 = vld [vmem:[#allocation62_spill] sm:$0xff] }
 0x5ab   : > { %v14465_v38 = vpop.xlane.xlu0 %5293  ;;  %v14467_v1 = vpop.xlane.xlu1 %4759  ;;  %v5803_v62 = vpack.c.bf16 %v5685_v9, %v5684_v54  ;;  %v4827_v54 = vsub.f32 %v16856_v33, %v13903_v17 }
 0x5ac   : > { %16846 = vst [vmem:[#allocation100_spill] sm:$0xff] %v14467_v1  ;;  %5344 = vadd.xlane.f32.xlu1 %v5343_v53  ;;  %v16853_v53 = vld [vmem:[#allocation120_spill] sm:$0xff] }
 0x5ad   : > { %v5690_v1 = vmul.f32 %v11059_v6, %v16853_v53  ;;  %v2067_v6 = vpack.c.bf16 %v9921_v35, %v9920_v45  ;;  %v5012_v9 = vmul.f32 1.442695, %v4827_v54 }
 0x5af   : > { %v6113_v12 = vpop.permute.xlu0 %6112  ;;  %v6304_v13 = vpop.permute.xlu1 %6303  ;;  %v5806_v32 = vpack.c.bf16 %v5691_v41, %v5690_v1  ;;  %v16857_v41 = vld [vmem:[#allocation102_spill] sm:$0xff]  ;;  %11060 = vpow2.f32 %v5012_v9 }
 0x5b0   : > { %9517 = vmatprep.subr.bf16.mxu1 %v6113_v12  ;;  %9539 = vmatprep.subr.bf16.mxu0 %v6304_v13  ;;  %v4830_v19 = vsub.f32 %v16857_v41, %v13921_v60  ;;  %v16861_v60 = vld [vmem:[#allocation106_spill] sm:$0xff] }
 0x5b1   : > { %9518 = vmatpush3.bf16.msra.mxu1 %v6113_v12  ;;  %9540 = vmatpush3.bf16.msra.mxu0 %v6304_v13  ;;  %v9936_v12 = vunpack.i.h.bf16 %v16855_v47  ;;  %v9935_v13 = vunpack.i.l.bf16 %v16855_v47  ;;  %v4839_v45 = vsub.f32 %v16861_v60, %v14014_v48 }
 0x5b2   : > { %6238 = vrot.lane.b32.xlu0 %v2061_v51, %s11441_s24  ;;  %v4828_v51 = vsub.f32 %v16858_v37, %v13864_v4  ;;  %v5018_v5 = vmul.f32 1.442695, %v4830_v19  ;;  %v16862_v4 = vld [vmem:[#allocation51_spill] sm:$0xff] }
 0x5b3   : > { %v2070_v1 = vpack.c.bf16 %v9936_v12, %v9935_v13  ;;  %v4837_v12 = vsub.f32 %v16862_v4, %v13968_v22  ;;  %v5036_v13 = vmul.f32 1.442695, %v4839_v45  ;;  %v16866_v4 = vld [vmem:[#allocation48_spill] sm:$0xff] }
 0x5b4   : > { %9520 = vmatmul.mubr.msk.bf16.vlgmr.msra.gmra.mxu1 %vm406_vm0, %v5803_v62  ;;  %v5014_v53 = vmul.f32 1.442695, %v4828_v51  ;;  %v16859_v62 = vld [vmem:[#allocation94_spill] sm:$0xff]  ;;  %11062 = vpow2.f32 %v5018_v5 }
 0x5b5   : > { %9535 = vmatprep.mubr.msk.bf16.mxu1 %vm406_vm0, %v5806_v32  ;;  %v4832_v32 = vsub.f32 %v16859_v62, %v13905_v42  ;;  %v5032_v33 = vmul.f32 1.442695, %v4837_v12  ;;  %v9891_v12 = vunpack.i.h.bf16 %v16866_v4 }
 0x5b6   : > { %6429 = vrot.lane.b32.xlu0 %v2068_v34, %s11441_s24  ;;  %11064 = vpow2.f32 %v5014_v53  ;;  %v16860_v34 = vld [vmem:[#allocation53_spill] sm:$0xff] }
 0x5b7   : > { %v5022_v17 = vmul.f32 1.442695, %v4832_v32  ;;  %v4834_v27 = vsub.f32 %v16860_v34, %v13966_v14  ;;  %v16863_v14 = vld [vmem:[#allocation104_spill] sm:$0xff] }
 0x5b8   : > { %v4841_v54 = vsub.f32 %v16863_v14, %v14004_v55 }
 0x5b9   : > { %11066 = vpow2.f32 %v5022_v17  ;;  %v5026_v35 = vmul.f32 1.442695, %v4834_v27 }
 0x5ba   : > { %v5040_v22 = vmul.f32 1.442695, %v4841_v54 }
 0x5bb   : > { %11068 = vpow2.f32 %v5026_v35 }
 0x5bc   : > { %v14501_v47 = vpop.eup %11060  ;;  %11070 = vpow2.f32 %v5036_v13  ;;  %v9890_v13 = vunpack.i.l.bf16 %v16866_v4 }
 0x5bd   : > { %6427 = vrot.lane.b32.xlu1 %v2067_v6, %s11441_s24  ;;  %v5325_v42 = vsel %vm406_vm0, %v14501_v47, 0.0  ;;  %11072 = vpow2.f32 %v5032_v33 }
 0x5be   : > { %11074 = vpow2.f32 %v5040_v22  ;;  %v2065_v22 = vpack.c.bf16 %v9891_v12, %v9890_v13  ;;  %v16870_v12 = vld [vmem:[#allocation78_spill] sm:$0xff] }
 0x5bf   : > { %11076 = vrcp.f32 %v14219_v40  ;;  %v9996_v13 = vunpack.i.h.bf16 %v16870_v12 }
 0x5c0   : > { %11078 = vrcp.f32 %v14316_v21 }
 0x5c1   : > { %6492 = vrot.lane.b32.xlu1 %v2070_v1, %s11441_s24  ;;  %v14507_v6 = vpop.eup %11062  ;;  %11080 = vrcp.f32 %v14148_v39 }
 0x5c2   : > { %v5334_v48 = vsel %vm406_vm0, %v14507_v6, 0.0  ;;  %11082 = vrcp.f32 %v14236_v25 }
 0x5c3   : > { %v14513_v1 = vpop.eup %11064 }
 0x5c4   : > { %v5328_v9 = vsel %vm406_vm0, %v14513_v1, 0.0 }
 0x5c6   : > { %v14517_v41 = vpop.eup %11066 }
 0x5c7   : > { %v5340_v55 = vsel %vm406_vm0, %v14517_v41, 0.0 }
 0x5c8   : > { %v14525_v51 = vpop.eup %11068 }
 0x5c9   : > { %v5346_v62 = vsel %vm406_vm0, %v14525_v51, 0.0  ;;  %v14533_v32 = vpop.eup %11070 }
 0x5ca   : > { %v5361_v40 = vsel %vm406_vm0, %v14533_v32, 0.0  ;;  %v14541_v21 = vpop.eup %11072 }
 0x5cb   : > { %v5355_v27 = vsel %vm406_vm0, %v14541_v21, 0.0  ;;  %v14547_v35 = vpop.eup %11074 }
 0x5cc   : > { %v11077_v39 = vpop.eup %11076  ;;  %v5367_v25 = vsel %vm406_vm0, %v14547_v35, 0.0 }
 0x5cd   : > { %v11079_v45 = vpop.eup %11078  ;;  %v5697_v14 = vmul.f32 %v11077_v39, %v13918_v49  ;;  %v16869_v49 = vld [vmem:[#allocation76_spill] sm:$0xff] }
 0x5ce   : > { %v9980_v39 = vunpack.i.l.bf16 %v16869_v49 }
 0x5d5   : > { %5326 = vadd.xlane.f32.xlu0 %v5325_v42  ;;  %v11081_v42 = vpop.eup %11080 }
 0x5d6   : > { %v11083_v33 = vpop.eup %11082 }
 0x5d9   : > { %5335 = vadd.xlane.f32.xlu0 %v5334_v48  ;;  %v5702_v48 = vmul.f32 %v11079_v45, %v14090_v16  ;;  %v9981_v16 = vunpack.i.h.bf16 %v16869_v49 }
 0x5db   : > { %v2071_v45 = vpack.c.bf16 %v9981_v16, %v9980_v39 }
 0x5dd   : > { %5329 = vadd.xlane.f32.xlu0 %v5328_v9  ;;  %v16867_v9 = vld [vmem:[#allocation69_spill] sm:$0xff] }
 0x5e0   : > { %v14519_v19 = vpop.xlane.xlu0 %4762  ;;  %v14521_v37 = vpop.xlane.xlu1 %4765 }
 0x5e1   : > { %16864 = vst [vmem:[#allocation144_spill] sm:$0xff] %v14519_v19  ;;  %16865 = vst [vmem:[#allocation12_spill] sm:$0xff] %v14521_v37  ;;  %5341 = vadd.xlane.f32.xlu0 %v5340_v55  ;;  %v9966_v55 = vunpack.i.h.bf16 %v16867_v9 }
 0x5e4   : > { %v6241_v5 = vpop.permute.xlu0 %6240  ;;  %v14529_v53 = vpop.xlane.xlu1 %5302 }
 0x5e5   : > { %9531 = vmatprep.subr.bf16.mxu1 %v6241_v5  ;;  %5347 = vadd.xlane.f32.xlu1 %v5346_v62  ;;  %v16868_v62 = vld [vmem:[#allocation146_spill] sm:$0xff] }
 0x5e6   : > { %9532 = vmatpush3.bf16.msra.mxu1 %v6241_v5  ;;  %v9965_v5 = vunpack.i.l.bf16 %v16867_v9 }
 0x5e8   : > { %v14537_v17 = vpop.xlane.xlu1 %5314  ;;  %v2072_v37 = vpack.c.bf16 %v9966_v55, %v9965_v5 }
 0x5e9   : > { %5362 = vadd.xlane.f32.xlu1 %v5361_v40  ;;  %v5696_v40 = vmul.f32 %v11081_v42, %v16868_v62  ;;  %v16871_v42 = vld [vmem:[#allocation74_spill] sm:$0xff]  ;;  %v16874_v62 = vld [vmem:[#allocation7_spill] sm:$0xff] }
 0x5ec   : > { %v14543_v34 = vpop.xlane.xlu1 %5308 }
 0x5ed   : > { %5356 = vadd.xlane.f32.xlu1 %v5355_v27  ;;  %v5703_v27 = vmul.f32 %v11083_v33, %v13948_v20  ;;  %v9995_v20 = vunpack.i.l.bf16 %v16870_v12  ;;  %v4835_v33 = vsub.f32 %v16871_v42, %v13981_v15  ;;  %v16875_v15 = vld [vmem:[#allocation111_spill] sm:$0xff]  ;;  %v16879_v12 = vld [vmem:[#allocation114_spill] sm:$0xff]  ;;  %v16880_v42 = vld [vmem:[#allocation217_spill] sm:$0xff] }
 0x5ef   : > { %v5812_v4 = vpack.c.bf16 %v5703_v27, %v5702_v48  ;;  %v16872_v48 = vld [vmem:[#allocation75_spill] sm:$0xff]  ;;  %v4842_v27 = vsub.f32 %v16875_v15, %v14045_v58 }
 0x5f0   : > { %v14549_v60 = vpop.xlane.xlu1 %5320 }
 0x5f1   : > { %5368 = vadd.xlane.f32.xlu1 %v5367_v25  ;;  %v5809_v25 = vpack.c.bf16 %v5697_v14, %v5696_v40  ;;  %v2074_v14 = vpack.c.bf16 %v9996_v13, %v9995_v20  ;;  %v4840_v40 = vsub.f32 %v16874_v62, %v13979_v50 }
 0x5f4   : > { %v6302_v54 = vpop.permute.xlu1 %6301 }
 0x5f5   : > { %9541 = vmatprep.subr.bf16.mxu0 %v6302_v54 }
 0x5f6   : > { %9542 = vmatpush3.bf16.msra.mxu0 %v6302_v54  ;;  %v5028_v54 = vmul.f32 1.442695, %v4835_v33 }
 0x5f7   : > { %6364 = vrot.lane.b32.xlu0 %v2065_v22, %s11441_s24  ;;  %v4838_v22 = vsub.f32 %v16872_v48, %v13990_v18  ;;  %v16883_v48 = vld [vmem:[#allocation118_spill] sm:$0xff] }
 0x5f8   : > { %11084 = vpow2.f32 %v5028_v54  ;;  %v16882_v54 = vld [vmem:[#allocation190_spill] sm:$0xff]  ;;  %v6367_v15 = vpop.permute.xlu1 %6366 }
 0x5f9   : > { %9544 = vmatmul.mubr.msk.bf16.vlgmr.msra.gmra.mxu0 %vm406_vm0, %v5809_v25  ;;  %v5034_v55 = vmul.f32 1.442695, %v4838_v22  ;;  %v5038_v25 = vmul.f32 1.442695, %v4840_v40  ;;  %v4849_v22 = vsub.f32 %v16883_v48, %v16882_v54  ;;  %v16888_v48 = vld [vmem:[#allocation169_spill] sm:$0xff] }
 0x5fa   : > { %9559 = vmatprep.mubr.msk.bf16.mxu0 %vm406_vm0, %v5812_v4  ;;  %v5042_v4 = vmul.f32 1.442695, %v4842_v27 }
 0x5fb   : > { %6555 = vrot.lane.b32.xlu0 %v2072_v37, %s11441_s24  ;;  %v16873_v37 = vld [vmem:[#allocation73_spill] sm:$0xff]  ;;  %11086 = vpow2.f32 %v5034_v55 }
 0x5fc   : > { %v4836_v9 = vsub.f32 %v16873_v37, %v13955_v29  ;;  %v16877_v29 = vld [vmem:[#allocation122_spill] sm:$0xff] }
 0x5fd   : > { %v4847_v16 = vsub.f32 %v16877_v29, %v14101_v56  ;;  %v16881_v56 = vld [vmem:[#allocation216_spill] sm:$0xff] }
 0x5fe   : > { %v5030_v5 = vmul.f32 1.442695, %v4836_v9 }
 0x5ff   : > { %v5052_v20 = vmul.f32 1.442695, %v4847_v16  ;;  %v16884_v16 = vld [vmem:[#allocation127_spill] sm:$0xff] }
 0x600   : > { %11088 = vpow2.f32 %v5030_v5  ;;  %v5056_v5 = vmul.f32 1.442695, %v4849_v22 }
 0x601   : > { %11090 = vpow2.f32 %v5038_v25 }
 0x602   : > { %6553 = vrot.lane.b32.xlu1 %v2071_v45, %s11441_s24  ;;  %11092 = vpow2.f32 %v5042_v4  ;;  %v16878_v45 = vld [vmem:[#allocation186_spill] sm:$0xff] }
 0x603   : > { %11094 = vrcp.f32 %v14119_v2  ;;  %v4845_v13 = vsub.f32 %v16879_v12, %v16878_v45 }
 0x604   : > { %11096 = vrcp.f32 %v14080_v43 }
 0x605   : > { %v14583_v49 = vpop.eup %11084  ;;  %11098 = vrcp.f32 %v16880_v42  ;;  %v16885_v42 = vld [vmem:[#allocation220_spill] sm:$0xff] }
 0x606   : > { %6618 = vrot.lane.b32.xlu1 %v2074_v14, %s11441_s24  ;;  %v5349_v58 = vsel %vm406_vm0, %v14583_v49, 0.0  ;;  %11100 = vrcp.f32 %v16881_v56  ;;  %v5048_v14 = vmul.f32 1.442695, %v4845_v13  ;;  %v16886_v56 = vld [vmem:[#allocation119_spill] sm:$0xff] }
 0x607   : > { %11102 = vpow2.f32 %v5052_v20 }
 0x608   : > { %v14593_v39 = vpop.eup %11086  ;;  %11104 = vpow2.f32 %v5048_v14  ;;  %v16887_v14 = vld [vmem:[#allocation170_spill] sm:$0xff] }
 0x609   : > { %v5358_v43 = vsel %vm406_vm0, %v14593_v39, 0.0  ;;  %11106 = vpow2.f32 %v5056_v5 }
 0x60a   : > { %11108 = vrcp.f32 %v14320_v46 }
 0x60b   : > { %11110 = vrcp.f32 %v14453_v59 }
 0x60c   : > { %11112 = vrcp.f32 %v16885_v42 }
 0x60d   : > { %v14603_v2 = vpop.eup %11088  ;;  %11114 = vrcp.f32 %v14384_v31 }
 0x60e   : > { %v5352_v9 = vsel %vm406_vm0, %v14603_v2, 0.0  ;;  %v14611_v55 = vpop.eup %11090 }
 0x60f   : > { %v14613_v62 = vpop.eup %11092  ;;  %v5364_v25 = vsel %vm406_vm0, %v14611_v55, 0.0 }
 0x610   : > { %v11095_v40 = vpop.eup %11094  ;;  %v5370_v20 = vsel %vm406_vm0, %v14613_v62, 0.0 }
 0x611   : > { %v11097_v4 = vpop.eup %11096 }
 0x612   : > { %v11099_v29 = vpop.eup %11098 }
 0x613   : > { %v11101_v45 = vpop.eup %11100  ;;  %v5699_v54 = vmul.f32 %v11099_v29, %v16887_v14 }
 0x614   : > { %v14629_v46 = vpop.eup %11102  ;;  %v5698_v22 = vmul.f32 %v11101_v45, %v16888_v48 }
 0x615   : > { %v14581_v18 = vpop.xlane.xlu0 %4768 }
 0x616   : > { %16876 = vst [vmem:[#allocation154_spill] sm:$0xff] %v14581_v18  ;;  %v16894_v18 = vld [vmem:[#allocation175_spill] sm:$0xff] }
 0x619   : > { %v14589_v50 = vpop.xlane.xlu0 %5299 }
 0x61a   : > { %5350 = vadd.xlane.f32.xlu0 %v5349_v58  ;;  %v5693_v58 = vmul.f32 %v11095_v40, %v16884_v16  ;;  %v5385_v40 = vsel %vm406_vm0, %v14629_v46, 0.0 }
 0x61d   : > { %v14599_v33 = vpop.xlane.xlu0 %5311 }
 0x61e   : > { %5359 = vadd.xlane.f32.xlu0 %v5358_v43  ;;  %v5692_v43 = vmul.f32 %v11097_v4, %v16886_v56  ;;  %v14638_v4 = vpop.eup %11104 }
 0x61f   : > { %16889 = vst [vmem:[#allocation92_spill] sm:$0xff] %v14638_v4  ;;  %v5379_v29 = vsel %vm406_vm0, %v14638_v4, 0.0  ;;  %v14645_v16 = vpop.eup %11106 }
 0x620   : > { %v5807_v59 = vpack.c.bf16 %v5693_v58, %v5692_v43  ;;  %16890 = vst [vmem:[#allocation36_spill] sm:$0xff] %v14645_v16  ;;  %v11109_v58 = vpop.eup %11108 }
 0x621   : > { %v14607_v37 = vpop.xlane.xlu0 %5305 }
 0x622   : > { %5353 = vadd.xlane.f32.xlu0 %v5352_v9 }
 0x625   : > { %v14615_v27 = vpop.xlane.xlu0 %5317 }
 0x626   : > { %5365 = vadd.xlane.f32.xlu0 %v5364_v25  ;;  %v5810_v25 = vpack.c.bf16 %v5699_v54, %v5698_v22  ;;  %v16892_v54 = vld [vmem:[#allocation194_spill] sm:$0xff] }
 0x629   : > { %v6239_v12 = vpop.permute.xlu0 %6238  ;;  %v14622_v13 = vpop.xlane.xlu1 %5323 }
 0x62a   : > { %9533 = vmatprep.subr.bf16.mxu1 %v6239_v12  ;;  %5371 = vadd.xlane.f32.xlu1 %v5370_v20  ;;  %v16891_v20 = vld [vmem:[#allocation66_spill] sm:$0xff] }
 0x62b   : > { %9534 = vmatpush3.bf16.msra.mxu1 %v6239_v12  ;;  %v11111_v12 = vpop.eup %11110  ;;  %v9951_v42 = vunpack.i.h.bf16 %v16891_v20  ;;  %v9950_v56 = vunpack.i.l.bf16 %v16891_v20  ;;  %v16895_v20 = vld [vmem:[#allocation210_spill] sm:$0xff] }
 0x62c   : > { %9547 = vmatprep.subr.bf16.mxu1 %v6367_v15  ;;  %v11113_v43 = vpop.eup %11112  ;;  %v5710_v22 = vmul.f32 %v11111_v12, %v14286_v61  ;;  %v16896_v61 = vld [vmem:[#allocation84_spill] sm:$0xff] }
 0x62d   : > { %v6430_v9 = vpop.permute.xlu0 %6429  ;;  %v14633_v5 = vpop.xlane.xlu1 %5338  ;;  %v5705_v19 = vmul.f32 %v11113_v43, %v16894_v18  ;;  %v10070_v12 = vunpack.i.l.bf16 %v16896_v61  ;;  %v16897_v18 = vld [vmem:[#allocation89_spill] sm:$0xff] }
 0x62e   : > { %9536 = vmatmul.mubr.msk.bf16.vlgmr.msra.gmra.mxu1 %vm406_vm0, %v5807_v59  ;;  %9555 = vmatprep.subr.bf16.mxu0 %v6430_v9  ;;  %v11115_v14 = vpop.eup %11114  ;;  %v5704_v59 = vmul.f32 %v11109_v58, %v16892_v54  ;;  %v10071_v58 = vunpack.i.h.bf16 %v16896_v61  ;;  %v10115_v43 = vunpack.i.l.bf16 %v16897_v18  ;;  %v16899_v54 = vld [vmem:[#allocation117_spill] sm:$0xff] }
 0x62f   : > { %5386 = vadd.xlane.f32.xlu1 %v5385_v40  ;;  %9548 = vmatpush3.bf16.msra.mxu1 %v6367_v15  ;;  %v5391_v15 = vsel %vm406_vm0, %v14645_v16, 0.0  ;;  %v16893_v40 = vld [vmem:[#allocation35_spill] sm:$0xff]  ;;  %v5711_v44 = vmul.f32 %v11115_v14, %v16895_v20  ;;  %v16898_v14 = vld [vmem:[#allocation188_spill] sm:$0xff] }
 0x630   : > { %9551 = vmatprep.mubr.msk.bf16.mxu1 %vm406_vm0, %v5810_v25  ;;  %9556 = vmatpush3.bf16.msra.mxu0 %v6430_v9  ;;  %v2069_v9 = vpack.c.bf16 %v9951_v42, %v9950_v56  ;;  %v10026_v25 = vunpack.i.h.bf16 %v16893_v40  ;;  %v2075_v42 = vpack.c.bf16 %v10071_v58, %v10070_v12  ;;  %v10116_v56 = vunpack.i.h.bf16 %v16897_v18  ;;  %v16904_v20 = vld [vmem:[#allocation183_spill] sm:$0xff]  ;;  %v16907_v12 = vld [vmem:[#allocation124_spill] sm:$0xff] }
 0x631   : > { %v14641_v31 = vpop.xlane.xlu1 %5332  ;;  %v5816_v4 = vpack.c.bf16 %v5711_v44, %v5710_v22  ;;  %v16906_v58 = vld [vmem:[#allocation195_spill] sm:$0xff] }
 0x632   : > { %v2078_v44 = vpack.c.bf16 %v10116_v56, %v10115_v43 }
 0x633   : > { %5380 = vadd.xlane.f32.xlu1 %v5379_v29  ;;  %v10025_v29 = vunpack.i.l.bf16 %v16893_v40 }
 0x635   : > { %v14647_v45 = vpop.xlane.xlu1 %5344  ;;  %v2076_v16 = vpack.c.bf16 %v10026_v25, %v10025_v29 }
 0x637   : > { %5392 = vadd.xlane.f32.xlu1 %v5391_v15  ;;  %v5813_v15 = vpack.c.bf16 %v5705_v19, %v5704_v59  ;;  %v4843_v19 = vsub.f32 %v16899_v54, %v16898_v14  ;;  %v16900_v59 = vld [vmem:[#allocation185_spill] sm:$0xff]  ;;  %v16908_v14 = vld [vmem:[#allocation202_spill] sm:$0xff]  ;;  %v16909_v54 = vld [vmem:[#allocation152_spill] sm:$0xff] }
 0x639   : > { %v6428_v48 = vpop.permute.xlu1 %6427  ;;  %v5044_v22 = vmul.f32 1.442695, %v4843_v19  ;;  %v4855_v19 = vsub.f32 %v16909_v54, %v16908_v14 }
 0x63a   : > { %9557 = vmatprep.subr.bf16.mxu0 %v6428_v48 }
 0x63b   : > { %9558 = vmatpush3.bf16.msra.mxu0 %v6428_v48  ;;  %v16901_v48 = vld [vmem:[#allocation115_spill] sm:$0xff]  ;;  %11116 = vpow2.f32 %v5044_v22  ;;  %v16911_v22 = vld [vmem:[#allocation200_spill] sm:$0xff] }
 0x63c   : > { %6490 = vrot.lane.b32.xlu0 %v2069_v9, %s11441_s24  ;;  %v16903_v9 = vld [vmem:[#allocation110_spill] sm:$0xff] }
 0x63d   : > { %v6493_v14 = vpop.permute.xlu1 %6492 }
 0x63e   : > { %9560 = vmatmul.mubr.msk.bf16.vlgmr.msra.gmra.mxu0 %vm406_vm0, %v5813_v15  ;;  %v16905_v15 = vld [vmem:[#allocation113_spill] sm:$0xff] }
 0x63f   : > { %9575 = vmatprep.mubr.msk.bf16.mxu0 %vm406_vm0, %v5816_v4  ;;  %v4846_v4 = vsub.f32 %v16901_v48, %v16900_v59  ;;  %v4848_v61 = vsub.f32 %v16905_v15, %v16904_v20  ;;  %v16914_v15 = vld [vmem:[#allocation17_spill] sm:$0xff] }
 0x640   : > { %6681 = vrot.lane.b32.xlu0 %v2076_v16, %s11441_s24  ;;  %v16902_v16 = vld [vmem:[#allocation24_spill] sm:$0xff] }
 0x641   : > { %v4844_v40 = vsub.f32 %v16903_v9, %v16902_v16  ;;  %v5050_v25 = vmul.f32 1.442695, %v4846_v4  ;;  %v5054_v18 = vmul.f32 1.442695, %v4848_v61  ;;  %v16912_v16 = vld [vmem:[#allocation134_spill] sm:$0xff]  ;;  %v16915_v61 = vld [vmem:[#allocation145_spill] sm:$0xff] }
 0x642   : > { %v4853_v9 = vsub.f32 %v16912_v16, %v16911_v22  ;;  %v16918_v22 = vld [vmem:[#allocation191_spill] sm:$0xff] }
 0x643   : > { %v5046_v29 = vmul.f32 1.442695, %v4844_v40  ;;  %11118 = vpow2.f32 %v5050_v25  ;;  %v5068_v40 = vmul.f32 1.442695, %v4855_v19 }
 0x644   : > { %v5064_v20 = vmul.f32 1.442695, %v4853_v9 }
 0x645   : > { %11120 = vpow2.f32 %v5046_v29 }
 0x646   : > { %11122 = vpow2.f32 %v5054_v18 }
 0x648   : > { %6679 = vrot.lane.b32.xlu1 %v2075_v42, %s11441_s24  ;;  %v4850_v42 = vsub.f32 %v16907_v12, %v16906_v58  ;;  %v14679_v43 = vpop.eup %11116  ;;  %v4857_v58 = vsub.f32 %v16915_v61, %v16914_v15  ;;  %v16919_v15 = vld [vmem:[#allocation173_spill] sm:$0xff] }
 0x649   : > { %v5373_v48 = vsel %vm406_vm0, %v14679_v43, 0.0 }
 0x64a   : > { %v5058_v56 = vmul.f32 1.442695, %v4850_v42 }
 0x64c   : > { %6744 = vrot.lane.b32.xlu1 %v2078_v44, %s11441_s24  ;;  %11124 = vpow2.f32 %v5058_v56  ;;  %v16910_v44 = vld [vmem:[#allocation19_spill] sm:$0xff] }
 0x64d   : > { %11126 = vrcp.f32 %v14318_v7 }
 0x64e   : > { %11128 = vrcp.f32 %v16910_v44 }
 0x64f   : > { %11130 = vrcp.f32 %v14445_v8 }
 0x650   : > { %v14689_v4 = vpop.eup %11118  ;;  %11132 = vrcp.f32 %v14377_v52  ;;  %v5072_v52 = vmul.f32 1.442695, %v4857_v58 }
 0x651   : > { %v5382_v7 = vsel %vm406_vm0, %v14689_v4, 0.0  ;;  %11134 = vpow2.f32 %v5068_v40 }
 0x652   : > { %v14699_v29 = vpop.eup %11120  ;;  %11136 = vpow2.f32 %v5064_v20 }
 0x653   : > { %16913 = vst [vmem:[#allocation39_spill] sm:$0xff] %v14699_v29  ;;  %v5376_v8 = vsel %vm406_vm0, %v14699_v29, 0.0  ;;  %v14707_v42 = vpop.eup %11122  ;;  %11138 = vpow2.f32 %v5072_v52 }
 0x654   : > { %16916 = vst [vmem:[#allocation47_spill] sm:$0xff] %v14707_v42  ;;  %v5388_v19 = vsel %vm406_vm0, %v14707_v42, 0.0  ;;  %11140 = vrcp.f32 %v14465_v38 }
 0x655   : > { %11142 = vrcp.f32 %v14599_v33  ;;  %v16921_v33 = vld [vmem:[#allocation208_spill] sm:$0xff] }
 0x656   : > { %11144 = vrcp.f32 %v14390_v24 }
 0x657   : > { %11146 = vrcp.f32 %v14537_v17 }
 0x659   : > { %v14709_v18 = vpop.eup %11124 }
 0x65a   : > { %16917 = vst [vmem:[#allocation40_spill] sm:$0xff] %v14709_v18  ;;  %v11127_v56 = vpop.eup %11126  ;;  %v5394_v20 = vsel %vm406_vm0, %v14709_v18, 0.0  ;;  %v16926_v18 = vld [vmem:[#allocation215_spill] sm:$0xff] }
 0x65b   : > { %v11129_v44 = vpop.eup %11128  ;;  %v5700_v16 = vmul.f32 %v11127_v56, %v16918_v22 }
 0x65c   : > { %v5701_v61 = vmul.f32 %v11129_v44, %v16919_v15 }
 0x65e   : > { %v14685_v59 = vpop.xlane.xlu0 %5326  ;;  %v5811_v38 = vpack.c.bf16 %v5701_v61, %v5700_v16 }
 0x65f   : > { %5374 = vadd.xlane.f32.xlu0 %v5373_v48  ;;  %v11131_v48 = vpop.eup %11130 }
 0x660   : > { %v11133_v9 = vpop.eup %11132  ;;  %v5706_v58 = vmul.f32 %v11131_v48, %v14280_v3 }
 0x661   : > { %v5707_v52 = vmul.f32 %v11133_v9, %v16921_v33 }
 0x662   : > { %v14695_v25 = vpop.xlane.xlu0 %5335 }
 0x663   : > { %5383 = vadd.xlane.f32.xlu0 %v5382_v7  ;;  %v5814_v3 = vpack.c.bf16 %v5707_v52, %v5706_v58 }
 0x666   : > { %v14703_v12 = vpop.xlane.xlu0 %5329 }
 0x667   : > { %5377 = vadd.xlane.f32.xlu0 %v5376_v8  ;;  %v14725_v8 = vpop.eup %11134 }
 0x668   : > { %16920 = vst [vmem:[#allocation41_spill] sm:$0xff] %v14725_v8  ;;  %v14734_v44 = vpop.eup %11136 }
 0x669   : > { %16922 = vst [vmem:[#allocation143_spill] sm:$0xff] %v14734_v44  ;;  %v5403_v48 = vsel %vm406_vm0, %v14734_v44, 0.0  ;;  %v14741_v22 = vpop.eup %11138 }
 0x66a   : > { %v14711_v54 = vpop.xlane.xlu0 %5341  ;;  %16923 = vst [vmem:[#allocation10_spill] sm:$0xff] %v14741_v22  ;;  %v11141_v16 = vpop.eup %11140 }
 0x66b   : > { %5389 = vadd.xlane.f32.xlu0 %v5388_v19  ;;  %v5409_v19 = vsel %vm406_vm0, %v14725_v8, 0.0  ;;  %v5712_v33 = vmul.f32 %v11141_v16, %v14302_v23  ;;  %v16928_v23 = vld [vmem:[#allocation46_spill] sm:$0xff] }
 0x66c   : > { %v10250_v16 = vunpack.i.l.bf16 %v16928_v23 }
 0x66e   : > { %v6365_v40 = vpop.permute.xlu0 %6364  ;;  %v14718_v7 = vpop.xlane.xlu1 %5347 }
 0x66f   : > { %9549 = vmatprep.subr.bf16.mxu1 %v6365_v40 }
 0x670   : > { %5395 = vadd.xlane.f32.xlu1 %v5394_v20  ;;  %9550 = vmatpush3.bf16.msra.mxu1 %v6365_v40  ;;  %v11143_v40 = vpop.eup %11142  ;;  %v16924_v20 = vld [vmem:[#allocation81_spill] sm:$0xff] }
 0x671   : > { %9563 = vmatprep.subr.bf16.mxu1 %v6493_v14  ;;  %v10011_v15 = vunpack.i.h.bf16 %v16924_v20  ;;  %v10010_v61 = vunpack.i.l.bf16 %v16924_v20  ;;  %v11145_v58 = vpop.eup %11144  ;;  %v16927_v20 = vld [vmem:[#allocation112_spill] sm:$0xff] }
 0x672   : > { %v6556_v56 = vpop.permute.xlu0 %6555  ;;  %v14729_v24 = vpop.xlane.xlu1 %5362  ;;  %v5713_v29 = vmul.f32 %v11145_v58, %v16926_v18  ;;  %v16929_v18 = vld [vmem:[#allocation49_spill] sm:$0xff]  ;;  %v16930_v58 = vld [vmem:[#allocation27_spill] sm:$0xff] }
 0x673   : > { %9552 = vmatmul.mubr.msk.bf16.vlgmr.msra.gmra.mxu1 %vm406_vm0, %v5811_v38  ;;  %9571 = vmatprep.subr.bf16.mxu0 %v6556_v56  ;;  %v11147_v38 = vpop.eup %11146 }
 0x674   : > { %5410 = vadd.xlane.f32.xlu1 %v5409_v19  ;;  %9564 = vmatpush3.bf16.msra.mxu1 %v6493_v14  ;;  %v5415_v14 = vsel %vm406_vm0, %v14741_v22, 0.0  ;;  %v2073_v19 = vpack.c.bf16 %v10011_v15, %v10010_v61  ;;  %v5719_v8 = vmul.f32 %v11147_v38, %v16927_v20  ;;  %v9880_v15 = vunpack.i.l.bf16 %v16929_v18  ;;  %v16931_v38 = vld [vmem:[#allocation137_spill] sm:$0xff]  ;;  %v16936_v20 = vld [vmem:[#allocation196_spill] sm:$0xff] }
 0x675   : > { %9567 = vmatprep.mubr.msk.bf16.mxu1 %vm406_vm0, %v5814_v3  ;;  %9572 = vmatpush3.bf16.msra.mxu0 %v6556_v56  ;;  %v5718_v56 = vmul.f32 %v11143_v40, %v14425_v63  ;;  %v16925_v3 = vld [vmem:[#allocation96_spill] sm:$0xff]  ;;  %v10251_v63 = vunpack.i.h.bf16 %v16928_v23  ;;  %v9881_v40 = vunpack.i.h.bf16 %v16929_v18 }
 0x676   : > { %v14737_v17 = vpop.xlane.xlu1 %5356  ;;  %v10205_v44 = vunpack.i.l.bf16 %v16925_v3 }
 0x677   : > { %v5820_v22 = vpack.c.bf16 %v5719_v8, %v5718_v56  ;;  %v2079_v61 = vpack.c.bf16 %v10251_v63, %v10250_v16  ;;  %v2082_v8 = vpack.c.bf16 %v9881_v40, %v9880_v15  ;;  %v16935_v56 = vld [vmem:[#allocation121_spill] sm:$0xff]  ;;  %v16938_v63 = vld [vmem:[#allocation199_spill] sm:$0xff] }
 0x678   : > { %5404 = vadd.xlane.f32.xlu1 %v5403_v48  ;;  %v10206_v48 = vunpack.i.h.bf16 %v16925_v3  ;;  %v16939_v16 = vld [vmem:[#allocation135_spill] sm:$0xff] }
 0x679   : > { %v4858_v18 = vsub.f32 %v16939_v16, %v16938_v63 }
 0x67a   : > { %v14743_v9 = vpop.xlane.xlu1 %5368  ;;  %v2080_v42 = vpack.c.bf16 %v10206_v48, %v10205_v44  ;;  %v16932_v44 = vld [vmem:[#allocation197_spill] sm:$0xff] }
 0x67b   : > { %v5074_v15 = vmul.f32 1.442695, %v4858_v18 }
 0x67c   : > { %5416 = vadd.xlane.f32.xlu1 %v5415_v14  ;;  %v5817_v14 = vpack.c.bf16 %v5713_v29, %v5712_v33  ;;  %v4851_v29 = vsub.f32 %v16931_v38, %v16930_v58  ;;  %v16933_v33 = vld [vmem:[#allocation130_spill] sm:$0xff]  ;;  %v16940_v58 = vld [vmem:[#allocation213_spill] sm:$0xff]  ;;  %v16941_v38 = vld [vmem:[#allocation167_spill] sm:$0xff] }
 0x67e   : > { %v6554_v52 = vpop.permute.xlu1 %6553 }
 0x67f   : > { %9573 = vmatprep.subr.bf16.mxu0 %v6554_v52 }
 0x680   : > { %9574 = vmatpush3.bf16.msra.mxu0 %v6554_v52  ;;  %v5060_v52 = vmul.f32 1.442695, %v4851_v29  ;;  %v4863_v29 = vsub.f32 %v16941_v38, %v16940_v58 }
 0x681   : > { %6616 = vrot.lane.b32.xlu0 %v2073_v19, %s11441_s24 }
 0x682   : > { %11148 = vpow2.f32 %v5060_v52  ;;  %v16943_v52 = vld [vmem:[#allocation136_spill] sm:$0xff]  ;;  %v6619_v58 = vpop.permute.xlu1 %6618 }
 0x683   : > { %9576 = vmatmul.mubr.msk.bf16.vlgmr.msra.gmra.mxu0 %vm406_vm0, %v5817_v14  ;;  %v16937_v14 = vld [vmem:[#allocation126_spill] sm:$0xff] }
 0x684   : > { %9591 = vmatprep.mubr.msk.bf16.mxu0 %vm406_vm0, %v5820_v22  ;;  %v4854_v22 = vsub.f32 %v16933_v33, %v16932_v44  ;;  %v4856_v23 = vsub.f32 %v16937_v14, %v16936_v20  ;;  %v16946_v14 = vld [vmem:[#allocation207_spill] sm:$0xff] }
 0x685   : > { %6807 = vrot.lane.b32.xlu0 %v2080_v42, %s11441_s24  ;;  %v16934_v42 = vld [vmem:[#allocation192_spill] sm:$0xff] }
 0x686   : > { %v4852_v19 = vsub.f32 %v16935_v56, %v16934_v42  ;;  %v5066_v3 = vmul.f32 1.442695, %v4854_v22  ;;  %v5070_v40 = vmul.f32 1.442695, %v4856_v23  ;;  %v16944_v42 = vld [vmem:[#allocation159_spill] sm:$0xff] }
 0x687   : > { %v4861_v56 = vsub.f32 %v16944_v42, %v16943_v52  ;;  %v16947_v23 = vld [vmem:[#allocation163_spill] sm:$0xff]  ;;  %v16949_v52 = vld [vmem:[#allocation125_spill] sm:$0xff] }
 0x688   : > { %v5062_v48 = vmul.f32 1.442695, %v4852_v19  ;;  %11150 = vpow2.f32 %v5066_v3  ;;  %v5084_v19 = vmul.f32 1.442695, %v4863_v29  ;;  %v4865_v63 = vsub.f32 %v16947_v23, %v16946_v14  ;;  %v16950_v14 = vld [vmem:[#allocation212_spill] sm:$0xff] }
 0x689   : > { %v5080_v20 = vmul.f32 1.442695, %v4861_v56 }
 0x68a   : > { %11152 = vpow2.f32 %v5062_v48 }
 0x68b   : > { %11154 = vpow2.f32 %v5070_v40 }
 0x68c   : > { %11156 = vpow2.f32 %v5074_v15 }
 0x68d   : > { %6805 = vrot.lane.b32.xlu1 %v2079_v61, %s11441_s24  ;;  %11158 = vrcp.f32 %v14459_v26 }
 0x68f   : > { %v14775_v61 = vpop.eup %11148 }
 0x690   : > { %v5397_v33 = vsel %vm406_vm0, %v14775_v61, 0.0 }
 0x691   : > { %6870 = vrot.lane.b32.xlu1 %v2082_v8, %s11441_s24  ;;  %v16942_v8 = vld [vmem:[#allocation148_spill] sm:$0xff] }
 0x692   : > { %11160 = vrcp.f32 %v16942_v8 }
 0x693   : > { %11162 = vrcp.f32 %v14589_v50 }
 0x694   : > { %11164 = vrcp.f32 %v14529_v53  ;;  %v5088_v53 = vmul.f32 1.442695, %v4865_v63 }
 0x695   : > { %v14785_v22 = vpop.eup %11150  ;;  %11166 = vpow2.f32 %v5084_v19 }
 0x696   : > { %v5406_v26 = vsel %vm406_vm0, %v14785_v22, 0.0  ;;  %11168 = vpow2.f32 %v5080_v20 }
 0x697   : > { %v14795_v48 = vpop.eup %11152  ;;  %11170 = vpow2.f32 %v5088_v53  ;;  %v16952_v53 = vld [vmem:[#allocation107_spill] sm:$0xff] }
 0x698   : > { %16945 = vst [vmem:[#allocation155_spill] sm:$0xff] %v14795_v48  ;;  %v5400_v50 = vsel %vm406_vm0, %v14795_v48, 0.0  ;;  %v14803_v18 = vpop.eup %11154  ;;  %11172 = vrcp.f32 %v14615_v27 }
 0x699   : > { %v14805_v40 = vpop.eup %11156  ;;  %v5412_v29 = vsel %vm406_vm0, %v14803_v18, 0.0  ;;  %11174 = vrcp.f32 %v14695_v25 }
 0x69a   : > { %16948 = vst [vmem:[#allocation151_spill] sm:$0xff] %v14805_v40  ;;  %v11159_v15 = vpop.eup %11158  ;;  %v5418_v20 = vsel %vm406_vm0, %v14805_v40, 0.0  ;;  %11176 = vrcp.f32 %v14549_v60  ;;  %v16961_v40 = vld [vmem:[#allocation20_spill] sm:$0xff] }
 0x69b   : > { %v5708_v42 = vmul.f32 %v11159_v15, %v16949_v52  ;;  %11178 = vrcp.f32 %v14633_v5 }
 0x69f   : > { %v11161_v8 = vpop.eup %11160 }
 0x6a0   : > { %v5709_v23 = vmul.f32 %v11161_v8, %v16950_v14 }
 0x6a2   : > { %v5815_v27 = vpack.c.bf16 %v5709_v23, %v5708_v42 }
 0x6a3   : > { %v14781_v44 = vpop.xlane.xlu0 %5350 }
 0x6a4   : > { %5398 = vadd.xlane.f32.xlu0 %v5397_v33  ;;  %v11163_v33 = vpop.eup %11162 }
 0x6a5   : > { %v11165_v56 = vpop.eup %11164  ;;  %v5714_v63 = vmul.f32 %v11163_v33, %v14419_v57 }
 0x6a6   : > { %v5715_v25 = vmul.f32 %v11165_v56, %v16952_v53 }
 0x6a7   : > { %v14791_v3 = vpop.xlane.xlu0 %5359 }
 0x6a8   : > { %5407 = vadd.xlane.f32.xlu0 %v5406_v26  ;;  %v5818_v60 = vpack.c.bf16 %v5715_v25, %v5714_v63 }
 0x6ab   : > { %v14799_v16 = vpop.xlane.xlu0 %5353 }
 0x6ac   : > { %5401 = vadd.xlane.f32.xlu0 %v5400_v50  ;;  %v14820_v50 = vpop.eup %11166 }
 0x6ad   : > { %16951 = vst [vmem:[#allocation22_spill] sm:$0xff] %v14820_v50  ;;  %v5433_v57 = vsel %vm406_vm0, %v14820_v50, 0.0  ;;  %v14832_v8 = vpop.eup %11168 }
 0x6ae   : > { %16954 = vst [vmem:[#allocation140_spill] sm:$0xff] %v14832_v8  ;;  %v5427_v42 = vsel %vm406_vm0, %v14832_v8, 0.0  ;;  %v14841_v56 = vpop.eup %11170 }
 0x6af   : > { %v14807_v38 = vpop.xlane.xlu0 %5365  ;;  %16956 = vst [vmem:[#allocation147_spill] sm:$0xff] %v14841_v56 }
 0x6b0   : > { %5413 = vadd.xlane.f32.xlu0 %v5412_v29  ;;  %v14825_v29 = vpop.f32.mrf.mxu0 }
 0x6b1   : > { %16953 = vst [vmem:[#allocation141_spill] sm:$0xff] %v14825_v29 }
 0x6b2   : > { %v14835_v5 = vpop.f32.mrf.mxu0 }
 0x6b3   : > { %v6491_v19 = vpop.permute.xlu0 %6490  ;;  %v14813_v26 = vpop.xlane.xlu1 %5371  ;;  %16955 = vst [vmem:[#allocation9_spill] sm:$0xff] %v14835_v5 }
 0x6b4   : > { %9565 = vmatprep.subr.bf16.mxu1 %v6491_v19  ;;  %v14845_v63 = vpop.f32.mrf.mxu0 }
 0x6b5   : > { %5419 = vadd.xlane.f32.xlu1 %v5418_v20  ;;  %9566 = vmatpush3.bf16.msra.mxu1 %v6491_v19  ;;  %v11173_v19 = vpop.eup %11172  ;;  %v16957_v20 = vld [vmem:[#allocation34_spill] sm:$0xff]  ;;  %16958 = vst [vmem:[#allocation21_spill] sm:$0xff] %v14845_v63 }
 0x6b6   : > { %9579 = vmatprep.subr.bf16.mxu1 %v6619_v58  ;;  %v10161_v14 = vunpack.i.h.bf16 %v16957_v20  ;;  %v10160_v23 = vunpack.i.l.bf16 %v16957_v20  ;;  %v11175_v53 = vpop.eup %11174  ;;  %v14854_v8 = vpop.f32.mrf.mxu0 }
 0x6b7   : > { %v6682_v15 = vpop.permute.xlu0 %6681  ;;  %v11177_v25 = vpop.eup %11176  ;;  %16960 = vst [vmem:[#allocation38_spill] sm:$0xff] %v14854_v8  ;;  %v5726_v63 = vmul.f32 %v11175_v53, %v14507_v6  ;;  %v16964_v6 = vld [vmem:[#allocation58_spill] sm:$0xff] }
 0x6b8   : > { %v14827_v52 = vpop.xlane.xlu1 %5386  ;;  %9568 = vmatmul.mubr.msk.bf16.vlgmr.msra.gmra.mxu1 %vm406_vm0, %v5815_v27  ;;  %9587 = vmatprep.subr.bf16.mxu0 %v6682_v15  ;;  %v5439_v27 = vsel %vm406_vm0, %v14841_v56, 0.0  ;;  %v2077_v5 = vpack.c.bf16 %v10161_v14, %v10160_v23  ;;  %v5721_v48 = vmul.f32 %v11177_v25, %v16961_v40  ;;  %v14858_v56 = vpop.f32.mrf.mxu0  ;;  %v9926_v40 = vunpack.i.h.bf16 %v16964_v6  ;;  %v16966_v25 = vld [vmem:[#allocation65_spill] sm:$0xff] }
 0x6b9   : > { %5434 = vadd.xlane.f32.xlu1 %v5433_v57  ;;  %9580 = vmatpush3.bf16.msra.mxu1 %v6619_v58  ;;  %v5720_v57 = vmul.f32 %v11173_v19, %v14435_v10  ;;  %16962 = vst [vmem:[#allocation72_spill] sm:$0xff] %v14858_v56  ;;  %v9925_v23 = vunpack.i.l.bf16 %v16964_v6  ;;  %v16974_v6 = vld [vmem:[#allocation131_spill] sm:$0xff] }
 0x6ba   : > { %9583 = vmatprep.mubr.msk.bf16.mxu1 %vm406_vm0, %v5818_v60  ;;  %9588 = vmatpush3.bf16.msra.mxu0 %v6682_v15  ;;  %v11179_v15 = vpop.eup %11178  ;;  %v16959_v60 = vld [vmem:[#allocation59_spill] sm:$0xff]  ;;  %v14863_v14 = vpop.f32.mrf.mxu0 }
 0x6bb   : > { %v9910_v29 = vunpack.i.l.bf16 %v16959_v60  ;;  %v5727_v10 = vmul.f32 %v11179_v15, %v14449_v11  ;;  %v5821_v19 = vpack.c.bf16 %v5721_v48, %v5720_v57  ;;  %16963 = vst [vmem:[#allocation37_spill] sm:$0xff] %v14863_v14  ;;  %v9941_v11 = vunpack.i.h.bf16 %v16966_v25  ;;  %v16977_v56 = vld [vmem:[#allocation139_spill] sm:$0xff] }
 0x6bc   : > { %v14837_v33 = vpop.xlane.xlu1 %5380  ;;  %v14869_v53 = vpop.f32.mrf.mxu0  ;;  %v9940_v48 = vunpack.i.l.bf16 %v16966_v25 }
 0x6bd   : > { %5428 = vadd.xlane.f32.xlu1 %v5427_v42  ;;  %v9911_v42 = vunpack.i.h.bf16 %v16959_v60  ;;  %v5824_v50 = vpack.c.bf16 %v5727_v10, %v5726_v63  ;;  %16965 = vst [vmem:[#allocation95_spill] sm:$0xff] %v14869_v53  ;;  %v16968_v63 = vld [vmem:[#allocation161_spill] sm:$0xff] }
 0x6be   : > { %v14875_v57 = vpop.f32.mrf.mxu0  ;;  %v2086_v60 = vpack.c.bf16 %v9941_v11, %v9940_v48  ;;  %v16979_v48 = vld [vmem:[#allocation5_spill] sm:$0xff] }
 0x6bf   : > { %16969 = vst [vmem:[#allocation109_spill] sm:$0xff] %v14875_v57 }
 0x6c0   : > { %v14847_v58 = vpop.xlane.xlu1 %5392 }
 0x6c1   : > { %5440 = vadd.xlane.f32.xlu1 %v5439_v27  ;;  %v2084_v27 = vpack.c.bf16 %v9911_v42, %v9910_v29  ;;  %v16967_v29 = vld [vmem:[#allocation205_spill] sm:$0xff]  ;;  %v16971_v42 = vld [vmem:[#allocation142_spill] sm:$0xff] }
 0x6c2   : > { %v4859_v15 = vsub.f32 %v16968_v63, %v16967_v29  ;;  %v16976_v63 = vld [vmem:[#allocation26_spill] sm:$0xff] }
 0x6c4   : > { %v6680_v20 = vpop.permute.xlu1 %6679  ;;  %v5076_v10 = vmul.f32 1.442695, %v4859_v15  ;;  %v16980_v15 = vld [vmem:[#allocation153_spill] sm:$0xff] }
 0x6c5   : > { %9589 = vmatprep.subr.bf16.mxu0 %v6680_v20 }
 0x6c6   : > { %6742 = vrot.lane.b32.xlu0 %v2077_v5, %s11441_s24  ;;  %9590 = vmatpush3.bf16.msra.mxu0 %v6680_v20  ;;  %v2083_v5 = vpack.c.bf16 %v9926_v40, %v9925_v23  ;;  %11180 = vpow2.f32 %v5076_v10  ;;  %v16983_v10 = vld [vmem:[#allocation28_spill] sm:$0xff] }
 0x6c9   : > { %9592 = vmatmul.mubr.msk.bf16.vlgmr.msra.gmra.mxu0 %vm406_vm0, %v5821_v19  ;;  %v14880_v19 = vpop.f32.mrf.mxu0 }
 0x6ca   : > { %6933 = vrot.lane.b32.xlu0 %v2084_v27, %s11441_s24  ;;  %9607 = vmatprep.mubr.msk.bf16.mxu0 %vm406_vm0, %v5824_v50  ;;  %v16970_v50 = vld [vmem:[#allocation201_spill] sm:$0xff]  ;;  %16972 = vst [vmem:[#allocation132_spill] sm:$0xff] %v14880_v19  ;;  %v16973_v27 = vld [vmem:[#allocation198_spill] sm:$0xff] }
 0x6cb   : > { %v4862_v20 = vsub.f32 %v16971_v42, %v16970_v50  ;;  %v4860_v40 = vsub.f32 %v16974_v6, %v16973_v27  ;;  %v14885_v25 = vpop.f32.mrf.mxu0  ;;  %v4866_v50 = vsub.f32 %v16980_v15, %v16979_v48  ;;  %v16984_v6 = vld [vmem:[#allocation176_spill] sm:$0xff]  ;;  %v16987_v48 = vld [vmem:[#allocation171_spill] sm:$0xff] }
 0x6cc   : > { %16975 = vst [vmem:[#allocation57_spill] sm:$0xff] %v14885_v25  ;;  %v17003_v25 = vld [vmem:[#allocation71_spill] sm:$0xff] }
 0x6cd   : > { %v5082_v23 = vmul.f32 1.442695, %v4862_v20  ;;  %v5078_v29 = vmul.f32 1.442695, %v4860_v40  ;;  %v14889_v11 = vpop.f32.mrf.mxu0  ;;  %v5090_v53 = vmul.f32 1.442695, %v4866_v50  ;;  %v4871_v40 = vsub.f32 %v16984_v6, %v16983_v10 }
 0x6ce   : > { %16978 = vst [vmem:[#allocation32_spill] sm:$0xff] %v14889_v11  ;;  %v16989_v6 = vld [vmem:[#allocation219_spill] sm:$0xff] }
 0x6cf   : > { %11182 = vpow2.f32 %v5082_v23  ;;  %v5100_v50 = vmul.f32 1.442695, %v4871_v40 }
 0x6d0   : > { %11184 = vpow2.f32 %v5078_v29 }
 0x6d2   : > { %6931 = vrot.lane.b32.xlu1 %v2083_v5, %s11441_s24  ;;  %v4864_v5 = vsub.f32 %v16977_v56, %v16976_v63 }
 0x6d3   : > { %v14897_v20 = vpop.eup %11180 }
 0x6d4   : > { %v5086_v42 = vmul.f32 1.442695, %v4864_v5  ;;  %v5421_v29 = vsel %vm406_vm0, %v14897_v20, 0.0  ;;  %v16986_v5 = vld [vmem:[#allocation218_spill] sm:$0xff] }
 0x6d5   : > { %v4869_v15 = vsub.f32 %v16987_v48, %v16986_v5 }
 0x6d6   : > { %6996 = vrot.lane.b32.xlu1 %v2086_v60, %s11441_s24  ;;  %v14893_v60 = vpop.f32.mrf.mxu0  ;;  %11186 = vpow2.f32 %v5086_v42 }
 0x6d7   : > { %16981 = vst [vmem:[#allocation33_spill] sm:$0xff] %v14893_v60  ;;  %11188 = vpow2.f32 %v5090_v53  ;;  %v5096_v10 = vmul.f32 1.442695, %v4869_v15  ;;  %v9971_v60 = vunpack.i.h.bf16 %v17003_v25 }
 0x6d8   : > { %v14895_v27 = vpop.f32.mrf.mxu0  ;;  %11190 = vrcp.f32 %v14607_v37 }
 0x6d9   : > { %16982 = vst [vmem:[#allocation103_spill] sm:$0xff] %v14895_v27  ;;  %11192 = vrcp.f32 %v14543_v34  ;;  %v16990_v27 = vld [vmem:[#allocation174_spill] sm:$0xff] }
 0x6da   : > { %v14901_v56 = vpop.f32.mrf.mxu0  ;;  %11194 = vrcp.f32 %v14685_v59 }
 0x6db   : > { %16985 = vst [vmem:[#allocation120_spill] sm:$0xff] %v14901_v56  ;;  %11196 = vrcp.f32 %v14622_v13  ;;  %v4873_v56 = vsub.f32 %v16990_v27, %v16989_v6 }
 0x6dc   : > { %v14909_v63 = vpop.eup %11182  ;;  %v14914_v53 = vpop.f32.mrf.mxu0  ;;  %11198 = vpow2.f32 %v5100_v50 }
 0x6dd   : > { %16988 = vst [vmem:[#allocation63_spill] sm:$0xff] %v14914_v53  ;;  %v5430_v34 = vsel %vm406_vm0, %v14909_v63, 0.0  ;;  %v14921_v42 = vpop.eup %11184  ;;  %11200 = vpow2.f32 %v5096_v10  ;;  %v5104_v48 = vmul.f32 1.442695, %v4873_v56 }
 0x6de   : > { %v14925_v40 = vpop.f32.mrf.mxu0  ;;  %v5424_v13 = vsel %vm406_vm0, %v14921_v42, 0.0 }
 0x6df   : > { %16991 = vst [vmem:[#allocation62_spill] sm:$0xff] %v14925_v40  ;;  %11202 = vpow2.f32 %v5104_v48  ;;  %v16995_v48 = vld [vmem:[#allocation16_spill] sm:$0xff] }
 0x6e0   : > { %v14927_v59 = vpop.f32.mrf.mxu0  ;;  %11204 = vrcp.f32 %v14711_v54 }
 0x6e1   : > { %16992 = vst [vmem:[#allocation101_spill] sm:$0xff] %v14927_v59  ;;  %v6745_v59 = vpop.permute.xlu1 %6744  ;;  %11206 = vrcp.f32 %v14791_v3 }
 0x6e2   : > { %v14937_v27 = vpop.f32.mrf.mxu0  ;;  %11208 = vrcp.f32 %v14647_v45 }
 0x6e3   : > { %v14933_v5 = vpop.eup %11186  ;;  %16993 = vst [vmem:[#allocation102_spill] sm:$0xff] %v14937_v27  ;;  %11210 = vrcp.f32 %v14729_v24 }
 0x6e4   : > { %v14935_v15 = vpop.eup %11188  ;;  %v14945_v56 = vpop.f32.mrf.mxu0 }
 0x6e5   : > { %v11191_v53 = vpop.eup %11190  ;;  %16994 = vst [vmem:[#allocation93_spill] sm:$0xff] %v14945_v56  ;;  %v5442_v57 = vsel %vm406_vm0, %v14935_v15, 0.0 }
 0x6e6   : > { %v11193_v6 = vpop.eup %11192  ;;  %v5716_v14 = vmul.f32 %v11191_v53, %v14431_v0  ;;  %v14959_v3 = vpop.f32.mrf.mxu0 }
 0x6e7   : > { %v11195_v40 = vpop.eup %11194  ;;  %v5717_v8 = vmul.f32 %v11193_v6, %v16995_v48  ;;  %16996 = vst [vmem:[#allocation94_spill] sm:$0xff] %v14959_v3  ;;  %v17002_v48 = vld [vmem:[#allocation50_spill] sm:$0xff] }
 0x6e8   : > { %v14905_v23 = vpop.xlane.xlu0 %5374  ;;  %v11197_v10 = vpop.eup %11196 }
 0x6e9   : > { %5422 = vadd.xlane.f32.xlu0 %v5421_v29  ;;  %v14954_v19 = vpop.eup %11198  ;;  %v5819_v0 = vpack.c.bf16 %v5717_v8, %v5716_v14  ;;  %v5722_v54 = vmul.f32 %v11197_v10, %v14441_v28 }
 0x6ec   : > { %v14917_v37 = vpop.xlane.xlu0 %5383 }
 0x6ed   : > { %5431 = vadd.xlane.f32.xlu0 %v5430_v34  ;;  %v5436_v34 = vsel %vm406_vm0, %v14933_v5, 0.0 }
 0x6f0   : > { %v14929_v29 = vpop.xlane.xlu0 %5377 }
 0x6f1   : > { %5425 = vadd.xlane.f32.xlu0 %v5424_v13 }
 0x6f4   : > { %v14939_v50 = vpop.xlane.xlu0 %5389 }
 0x6f5   : > { %5437 = vadd.xlane.f32.xlu0 %v5436_v34  ;;  %v5723_v34 = vmul.f32 %v11195_v40, %v14501_v47  ;;  %v5457_v47 = vsel %vm406_vm0, %v14954_v19, 0.0 }
 0x6f7   : > { %v5822_v45 = vpack.c.bf16 %v5723_v34, %v5722_v54  ;;  %v9896_v34 = vunpack.i.h.bf16 %v17002_v48 }
 0x6f8   : > { %v6617_v13 = vpop.permute.xlu0 %6616 }
 0x6f9   : > { %v14948_v27 = vpop.xlane.xlu1 %5395  ;;  %9581 = vmatprep.subr.bf16.mxu1 %v6617_v13 }
 0x6fa   : > { %5443 = vadd.xlane.f32.xlu1 %v5442_v57  ;;  %9582 = vmatpush3.bf16.msra.mxu1 %v6617_v13  ;;  %v14966_v57 = vpop.eup %11200 }
 0x6fb   : > { %9595 = vmatprep.subr.bf16.mxu1 %v6745_v59  ;;  %16997 = vst [vmem:[#allocation53_spill] sm:$0xff] %v14966_v57  ;;  %v5451_v14 = vsel %vm406_vm0, %v14966_v57, 0.0  ;;  %v14977_v40 = vpop.eup %11202 }
 0x6fc   : > { %v6808_v53 = vpop.permute.xlu0 %6807  ;;  %v11205_v13 = vpop.eup %11204 }
 0x6fd   : > { %v14961_v56 = vpop.xlane.xlu1 %5410  ;;  %9584 = vmatmul.mubr.msk.bf16.vlgmr.msra.gmra.mxu1 %vm406_vm0, %v5819_v0  ;;  %9603 = vmatprep.subr.bf16.mxu0 %v6808_v53  ;;  %v9895_v0 = vunpack.i.l.bf16 %v17002_v48  ;;  %v14996_v48 = vpop.f32.mrf.mxu1 }
 0x6fe   : > { %5458 = vadd.xlane.f32.xlu1 %v5457_v47  ;;  %9596 = vmatpush3.bf16.msra.mxu1 %v6745_v59  ;;  %v14968_v24 = vpop.f32.mrf.mxu0  ;;  %v5463_v47 = vsel %vm406_vm0, %v14977_v40, 0.0  ;;  %v5728_v59 = vmul.f32 %v11205_v13, %v14517_v41  ;;  %17004 = vst [vmem:[#allocation69_spill] sm:$0xff] %v14996_v48  ;;  %v17019_v48 = vld [vmem:[#allocation13_spill] sm:$0xff] }
 0x6ff   : > { %16998 = vst [vmem:[#allocation106_spill] sm:$0xff] %v14968_v24  ;;  %9599 = vmatprep.mubr.msk.bf16.mxu1 %vm406_vm0, %v5822_v45  ;;  %9604 = vmatpush3.bf16.msra.mxu0 %v6808_v53  ;;  %v11207_v45 = vpop.eup %11206  ;;  %v2081_v11 = vpack.c.bf16 %v9896_v34, %v9895_v0  ;;  %v9970_v24 = vunpack.i.l.bf16 %v17003_v25  ;;  %v15002_v13 = vpop.f32.mrf.mxu1 }
 0x700   : > { %v14971_v28 = vpop.f32.mrf.mxu0  ;;  %v5734_v57 = vmul.f32 %v11207_v45, %v14593_v39  ;;  %17005 = vst [vmem:[#allocation146_spill] sm:$0xff] %v15002_v13  ;;  %v17006_v39 = vld [vmem:[#allocation77_spill] sm:$0xff]  ;;  %v17013_v45 = vld [vmem:[#allocation128_spill] sm:$0xff] }
 0x701   : > { %16999 = vst [vmem:[#allocation51_spill] sm:$0xff] %v14971_v28  ;;  %v14973_v8 = vpop.xlane.xlu1 %5404  ;;  %v2088_v41 = vpack.c.bf16 %v9971_v60, %v9970_v24  ;;  %v9986_v25 = vunpack.i.h.bf16 %v17006_v39  ;;  %v15009_v0 = vpop.f32.mrf.mxu1  ;;  %v17010_v24 = vld [vmem:[#allocation172_spill] sm:$0xff] }
 0x702   : > { %5452 = vadd.xlane.f32.xlu1 %v5451_v14  ;;  %v14979_v6 = vpop.f32.mrf.mxu0  ;;  %v11209_v14 = vpop.eup %11208  ;;  %17007 = vst [vmem:[#allocation76_spill] sm:$0xff] %v15009_v0  ;;  %v17020_v0 = vld [vmem:[#allocation156_spill] sm:$0xff] }
 0x703   : > { %17000 = vst [vmem:[#allocation104_spill] sm:$0xff] %v14979_v6  ;;  %v11211_v3 = vpop.eup %11210  ;;  %v5729_v53 = vmul.f32 %v11209_v14, %v14463_v30  ;;  %v9985_v30 = vunpack.i.l.bf16 %v17006_v39  ;;  %v17014_v14 = vld [vmem:[#allocation158_spill] sm:$0xff] }
 0x704   : > { %v14983_v10 = vpop.f32.mrf.mxu0  ;;  %v17016_v39 = vld [vmem:[#allocation18_spill] sm:$0xff] }
 0x705   : > { %17001 = vst [vmem:[#allocation48_spill] sm:$0xff] %v14983_v10  ;;  %v14987_v54 = vpop.xlane.xlu1 %5416  ;;  %v5825_v28 = vpack.c.bf16 %v5729_v53, %v5728_v59  ;;  %v15015_v59 = vpop.f32.mrf.mxu1 }
 0x706   : > { %5464 = vadd.xlane.f32.xlu1 %v5463_v47  ;;  %v5735_v47 = vmul.f32 %v11211_v3, %v14533_v32  ;;  %v17009_v3 = vld [vmem:[#allocation15_spill] sm:$0xff]  ;;  %17011 = vst [vmem:[#allocation78_spill] sm:$0xff] %v15015_v59 }
 0x708   : > { %v5828_v34 = vpack.c.bf16 %v5735_v47, %v5734_v57  ;;  %v4867_v57 = vsub.f32 %v17010_v24, %v17009_v3  ;;  %v4870_v47 = vsub.f32 %v17014_v14, %v17013_v45 }
 0x709   : > { %v6806_v6 = vpop.permute.xlu1 %6805 }
 0x70a   : > { %9605 = vmatprep.subr.bf16.mxu0 %v6806_v6 }
 0x70b   : > { %6868 = vrot.lane.b32.xlu0 %v2081_v11, %s11441_s24  ;;  %9606 = vmatpush3.bf16.msra.mxu0 %v6806_v6  ;;  %v2087_v11 = vpack.c.bf16 %v9986_v25, %v9985_v30  ;;  %v17008_v6 = vld [vmem:[#allocation80_spill] sm:$0xff]  ;;  %v17017_v25 = vld [vmem:[#allocation149_spill] sm:$0xff] }
 0x70c   : > { %v10001_v32 = vunpack.i.h.bf16 %v17008_v6  ;;  %v10000_v60 = vunpack.i.l.bf16 %v17008_v6  ;;  %v4868_v30 = vsub.f32 %v17017_v25, %v17016_v39  ;;  %v5098_v6 = vmul.f32 1.442695, %v4870_v47  ;;  %v17026_v39 = vld [vmem:[#allocation116_spill] sm:$0xff]  ;;  %v17027_v25 = vld [vmem:[#allocation181_spill] sm:$0xff] }
 0x70e   : > { %9608 = vmatmul.mubr.msk.bf16.vlgmr.msra.gmra.mxu0 %vm406_vm0, %v5825_v28  ;;  %v15017_v28 = vpop.f32.mrf.mxu1  ;;  %v2090_v53 = vpack.c.bf16 %v10001_v32, %v10000_v60  ;;  %v5094_v24 = vmul.f32 1.442695, %v4868_v30  ;;  %v17021_v32 = vld [vmem:[#allocation55_spill] sm:$0xff]  ;;  %v17022_v60 = vld [vmem:[#allocation160_spill] sm:$0xff]  ;;  %v4879_v30 = vsub.f32 %v17027_v25, %v17026_v39 }
 0x70f   : > { %7059 = vrot.lane.b32.xlu0 %v2088_v41, %s11441_s24  ;;  %9623 = vmatprep.mubr.msk.bf16.mxu0 %vm406_vm0, %v5828_v34  ;;  %17012 = vst [vmem:[#allocation74_spill] sm:$0xff] %v15017_v28  ;;  %v5092_v41 = vmul.f32 1.442695, %v4867_v57  ;;  %v4874_v45 = vsub.f32 %v17022_v60, %v17021_v32  ;;  %v17030_v32 = vld [vmem:[#allocation178_spill] sm:$0xff]  ;;  %v17033_v25 = vld [vmem:[#allocation87_spill] sm:$0xff] }
 0x710   : > { %v15022_v34 = vpop.f32.mrf.mxu1 }
 0x711   : > { %17015 = vst [vmem:[#allocation75_spill] sm:$0xff] %v15022_v34  ;;  %11212 = vpow2.f32 %v5092_v41  ;;  %v5106_v13 = vmul.f32 1.442695, %v4874_v45  ;;  %v5116_v45 = vmul.f32 1.442695, %v4879_v30 }
 0x712   : > { %v15027_v3 = vpop.f32.mrf.mxu1  ;;  %11214 = vpow2.f32 %v5098_v6 }
 0x713   : > { %17018 = vst [vmem:[#allocation73_spill] sm:$0xff] %v15027_v3  ;;  %11216 = vpow2.f32 %v5094_v24 }
 0x714   : > { %v15033_v57 = vpop.f32.mrf.mxu1 }
 0x715   : > { %17023 = vst [vmem:[#allocation7_spill] sm:$0xff] %v15033_v57 }
 0x717   : > { %7057 = vrot.lane.b32.xlu1 %v2087_v11, %s11441_s24  ;;  %v4872_v11 = vsub.f32 %v17020_v0, %v17019_v48 }
 0x719   : > { %v5102_v14 = vmul.f32 1.442695, %v4872_v11  ;;  %v17029_v11 = vld [vmem:[#allocation129_spill] sm:$0xff] }
 0x71a   : > { %v4877_v60 = vsub.f32 %v17030_v32, %v17029_v11 }
 0x71b   : > { %7122 = vrot.lane.b32.xlu1 %v2090_v53, %s11441_s24  ;;  %v15035_v53 = vpop.f32.mrf.mxu1  ;;  %11218 = vpow2.f32 %v5102_v14 }
 0x71c   : > { %17024 = vst [vmem:[#allocation111_spill] sm:$0xff] %v15035_v53  ;;  %11220 = vpow2.f32 %v5106_v13  ;;  %v5112_v39 = vmul.f32 1.442695, %v4877_v60  ;;  %v17034_v53 = vld [vmem:[#allocation23_spill] sm:$0xff] }
 0x71d   : > { %v15037_v47 = vpop.f32.mrf.mxu1  ;;  %11222 = vrcp.f32 %v14703_v12 }
 0x71e   : > { %17025 = vst [vmem:[#allocation122_spill] sm:$0xff] %v15037_v47  ;;  %v15039_v41 = vpop.eup %11212  ;;  %11224 = vrcp.f32 %v14641_v31 }
 0x71f   : > { %v15045_v48 = vpop.f32.mrf.mxu1  ;;  %v5445_v6 = vsel %vm406_vm0, %v15039_v41, 0.0  ;;  %v15051_v24 = vpop.eup %11214  ;;  %11226 = vrcp.f32 %v14781_v44 }
 0x720   : > { %17028 = vst [vmem:[#allocation186_spill] sm:$0xff] %v15045_v48  ;;  %11228 = vrcp.f32 %v14718_v7  ;;  %v5454_v13 = vsel %vm406_vm0, %v15051_v24, 0.0  ;;  %v15063_v14 = vpop.eup %11216  ;;  %v4881_v48 = vsub.f32 %v17034_v53, %v17033_v25 }
 0x721   : > { %v15057_v12 = vpop.f32.mrf.mxu1  ;;  %17032 = vst [vmem:[#allocation217_spill] sm:$0xff] %v15063_v14  ;;  %11230 = vpow2.f32 %v5116_v45 }
 0x722   : > { %17031 = vst [vmem:[#allocation114_spill] sm:$0xff] %v15057_v12  ;;  %11232 = vpow2.f32 %v5112_v39  ;;  %v5120_v32 = vmul.f32 1.442695, %v4881_v48  ;;  %v6871_v39 = vpop.permute.xlu1 %6870 }
 0x724   : > { %11234 = vpow2.f32 %v5120_v32 }
 0x725   : > { %11236 = vrcp.f32 %v14807_v38 }
 0x726   : > { %11238 = vrcp.f32 %v14917_v37 }
 0x727   : > { %11240 = vrcp.f32 %v14743_v9 }
 0x728   : > { %v15075_v11 = vpop.eup %11218  ;;  %11242 = vrcp.f32 %v14827_v52 }
 0x729   : > { %v15079_v47 = vpop.eup %11220  ;;  %v5460_v12 = vsel %vm406_vm0, %v15075_v11, 0.0 }
 0x72a   : > { %v11223_v45 = vpop.eup %11222  ;;  %v5466_v32 = vsel %vm406_vm0, %v15079_v47, 0.0 }
 0x72b   : > { %v11225_v59 = vpop.eup %11224  ;;  %v5724_v34 = vmul.f32 %v11223_v45, %v14513_v1 }
 0x72c   : > { %v5725_v3 = vmul.f32 %v11225_v59, %v14457_v36 }
 0x72d   : > { %v15047_v0 = vpop.xlane.xlu0 %5398 }
 0x72e   : > { %5446 = vadd.xlane.f32.xlu0 %v5445_v6  ;;  %v5448_v6 = vsel %vm406_vm0, %v15063_v14, 0.0  ;;  %v5823_v1 = vpack.c.bf16 %v5725_v3, %v5724_v34 }
 0x731   : > { %v15059_v31 = vpop.xlane.xlu0 %5407 }
 0x732   : > { %5455 = vadd.xlane.f32.xlu0 %v5454_v13 }
 0x733   : > { %v15067_v30 = vpop.f32.mrf.mxu1 }
 0x734   : > { %17035 = vst [vmem:[#allocation216_spill] sm:$0xff] %v15067_v30  ;;  %v17043_v30 = vld [vmem:[#allocation83_spill] sm:$0xff] }
 0x735   : > { %v15069_v44 = vpop.f32.mrf.mxu1  ;;  %v15071_v7 = vpop.xlane.xlu0 %5401 }
 0x736   : > { %17036 = vst [vmem:[#allocation190_spill] sm:$0xff] %v15069_v44  ;;  %5449 = vadd.xlane.f32.xlu0 %v5448_v6  ;;  %v11227_v6 = vpop.eup %11226 }
 0x737   : > { %v15077_v60 = vpop.f32.mrf.mxu1  ;;  %v11229_v57 = vpop.eup %11228  ;;  %v5731_v48 = vmul.f32 %v11227_v6, %v14583_v49 }
 0x738   : > { %17037 = vst [vmem:[#allocation118_spill] sm:$0xff] %v15077_v60  ;;  %v5730_v38 = vmul.f32 %v11229_v57, %v14525_v51  ;;  %v10031_v60 = vunpack.i.h.bf16 %v17043_v30 }
 0x739   : > { %v15083_v13 = vpop.f32.mrf.mxu1  ;;  %v15085_v25 = vpop.xlane.xlu0 %5413 }
 0x73a   : > { %17038 = vst [vmem:[#allocation127_spill] sm:$0xff] %v15083_v13  ;;  %5461 = vadd.xlane.f32.xlu0 %v5460_v12  ;;  %v15100_v12 = vpop.eup %11230  ;;  %v5826_v49 = vpack.c.bf16 %v5731_v48, %v5730_v38  ;;  %v17042_v48 = vld [vmem:[#allocation68_spill] sm:$0xff] }
 0x73b   : > { %v5481_v36 = vsel %vm406_vm0, %v15100_v12, 0.0  ;;  %v15110_v59 = vpop.eup %11232  ;;  %v9956_v6 = vunpack.i.h.bf16 %v17042_v48 }
 0x73c   : > { %v5475_v34 = vsel %vm406_vm0, %v15110_v59, 0.0  ;;  %v15121_v3 = vpop.eup %11234 }
 0x73d   : > { %v6743_v53 = vpop.permute.xlu0 %6742  ;;  %v5487_v38 = vsel %vm406_vm0, %v15121_v3, 0.0 }
 0x73e   : > { %v15094_v28 = vpop.xlane.xlu1 %5419  ;;  %9597 = vmatprep.subr.bf16.mxu1 %v6743_v53 }
 0x73f   : > { %5467 = vadd.xlane.f32.xlu1 %v5466_v32  ;;  %9598 = vmatpush3.bf16.msra.mxu1 %v6743_v53  ;;  %v9955_v32 = vunpack.i.l.bf16 %v17042_v48  ;;  %v10030_v53 = vunpack.i.l.bf16 %v17043_v30 }
 0x740   : > { %9611 = vmatprep.subr.bf16.mxu1 %v6871_v39 }
 0x741   : > { %v6934_v37 = vpop.permute.xlu0 %6933  ;;  %v2085_v10 = vpack.c.bf16 %v9956_v6, %v9955_v32 }
 0x742   : > { %v15105_v45 = vpop.xlane.xlu1 %5434  ;;  %9600 = vmatmul.mubr.msk.bf16.vlgmr.msra.gmra.mxu1 %vm406_vm0, %v5823_v1  ;;  %9619 = vmatprep.subr.bf16.mxu0 %v6934_v37 }
 0x743   : > { %5482 = vadd.xlane.f32.xlu1 %v5481_v36  ;;  %9612 = vmatpush3.bf16.msra.mxu1 %v6871_v39  ;;  %v15112_v9 = vpop.f32.mrf.mxu0  ;;  %v11237_v39 = vpop.eup %11236 }
 0x744   : > { %17039 = vst [vmem:[#allocation220_spill] sm:$0xff] %v15112_v9  ;;  %9615 = vmatprep.mubr.msk.bf16.mxu1 %vm406_vm0, %v5826_v49  ;;  %9620 = vmatpush3.bf16.msra.mxu0 %v6934_v37  ;;  %v11239_v37 = vpop.eup %11238 }
 0x745   : > { %v15115_v51 = vpop.f32.mrf.mxu0  ;;  %v11241_v36 = vpop.eup %11240  ;;  %v5742_v13 = vmul.f32 %v11239_v37, %v14689_v4  ;;  %v17050_v37 = vld [vmem:[#allocation29_spill] sm:$0xff] }
 0x746   : > { %17040 = vst [vmem:[#allocation119_spill] sm:$0xff] %v15115_v51  ;;  %v15117_v52 = vpop.xlane.xlu1 %5428  ;;  %v11243_v49 = vpop.eup %11242  ;;  %v5737_v48 = vmul.f32 %v11241_v36, %v14547_v35  ;;  %v17051_v36 = vld [vmem:[#allocation177_spill] sm:$0xff] }
 0x747   : > { %5476 = vadd.xlane.f32.xlu1 %v5475_v34  ;;  %v15123_v57 = vpop.f32.mrf.mxu0  ;;  %v5736_v34 = vmul.f32 %v11237_v39, %v14611_v55  ;;  %v17044_v55 = vld [vmem:[#allocation86_spill] sm:$0xff] }
 0x748   : > { %17041 = vst [vmem:[#allocation170_spill] sm:$0xff] %v15123_v57  ;;  %v2092_v57 = vpack.c.bf16 %v10031_v60, %v10030_v53  ;;  %v10076_v30 = vunpack.i.h.bf16 %v17044_v55  ;;  %v10075_v4 = vunpack.i.l.bf16 %v17044_v55  ;;  %v17045_v39 = vld [vmem:[#allocation90_spill] sm:$0xff] }
 0x749   : > { %v5829_v9 = vpack.c.bf16 %v5737_v48, %v5736_v34  ;;  %v10121_v6 = vunpack.i.h.bf16 %v17045_v39  ;;  %v17052_v48 = vld [vmem:[#allocation138_spill] sm:$0xff] }
 0x74a   : > { %v15129_v1 = vpop.xlane.xlu1 %5440  ;;  %v2091_v35 = vpack.c.bf16 %v10076_v30, %v10075_v4  ;;  %v17054_v30 = vld [vmem:[#allocation206_spill] sm:$0xff]  ;;  %v17055_v4 = vld [vmem:[#allocation164_spill] sm:$0xff] }
 0x74b   : > { %5488 = vadd.xlane.f32.xlu1 %v5487_v38  ;;  %v5743_v38 = vmul.f32 %v11243_v49, %v14629_v46  ;;  %v17047_v46 = vld [vmem:[#allocation179_spill] sm:$0xff]  ;;  %v4876_v49 = vsub.f32 %v17051_v36, %v17050_v37 }
 0x74d   : > { %v5832_v14 = vpack.c.bf16 %v5743_v38, %v5742_v13  ;;  %v17048_v13 = vld [vmem:[#allocation204_spill] sm:$0xff]  ;;  %v5110_v34 = vmul.f32 1.442695, %v4876_v49 }
 0x74e   : > { %v6932_v44 = vpop.permute.xlu1 %6931  ;;  %v17053_v38 = vld [vmem:[#allocation180_spill] sm:$0xff] }
 0x74f   : > { %9621 = vmatprep.subr.bf16.mxu0 %v6932_v44  ;;  %v4880_v55 = vsub.f32 %v17053_v38, %v17052_v48 }
 0x750   : > { %6994 = vrot.lane.b32.xlu0 %v2085_v10, %s11441_s24  ;;  %9622 = vmatpush3.bf16.msra.mxu0 %v6932_v44  ;;  %v10120_v10 = vunpack.i.l.bf16 %v17045_v39  ;;  %v17046_v44 = vld [vmem:[#allocation56_spill] sm:$0xff] }
 0x751   : > { %v4875_v32 = vsub.f32 %v17047_v46, %v17046_v44  ;;  %v5118_v39 = vmul.f32 1.442695, %v4880_v55  ;;  %v17056_v44 = vld [vmem:[#allocation209_spill] sm:$0xff] }
 0x752   : > { %v2094_v60 = vpack.c.bf16 %v10121_v6, %v10120_v10  ;;  %v17057_v46 = vld [vmem:[#allocation165_spill] sm:$0xff] }
 0x753   : > { %9624 = vmatmul.mubr.msk.bf16.vlgmr.msra.gmra.mxu0 %vm406_vm0, %v5829_v9  ;;  %v17049_v9 = vld [vmem:[#allocation162_spill] sm:$0xff]  ;;  %v5108_v53 = vmul.f32 1.442695, %v4875_v32  ;;  %v4885_v32 = vsub.f32 %v17057_v46, %v17056_v44 }
 0x754   : > { %7185 = vrot.lane.b32.xlu0 %v2092_v57, %s11441_s24  ;;  %9639 = vmatprep.mubr.msk.bf16.mxu0 %vm406_vm0, %v5832_v14  ;;  %v4878_v57 = vsub.f32 %v17049_v9, %v17048_v13 }
 0x755   : > { %11244 = vpow2.f32 %v5108_v53 }
 0x756   : > { %v5114_v14 = vmul.f32 1.442695, %v4878_v57  ;;  %v5128_v57 = vmul.f32 1.442695, %v4885_v32 }
 0x758   : > { %11246 = vpow2.f32 %v5114_v14 }
 0x759   : > { %11248 = vpow2.f32 %v5110_v34 }
 0x75a   : > { %11250 = vpow2.f32 %v5118_v39  ;;  %v6997_v39 = vpop.permute.xlu1 %6996 }
 0x75c   : > { %7183 = vrot.lane.b32.xlu1 %v2091_v35, %s11441_s24  ;;  %v4882_v35 = vsub.f32 %v17055_v4, %v17054_v30 }
 0x75e   : > { %v5122_v6 = vmul.f32 1.442695, %v4882_v35 }
 0x760   : > { %7248 = vrot.lane.b32.xlu1 %v2094_v60, %s11441_s24  ;;  %11252 = vpow2.f32 %v5122_v6 }
 0x761   : > { %11254 = vrcp.f32 %v14799_v16 }
 0x762   : > { %v15159_v10 = vpop.eup %11244  ;;  %11256 = vrcp.f32 %v14737_v17 }
 0x763   : > { %v5469_v13 = vsel %vm406_vm0, %v15159_v10, 0.0  ;;  %11258 = vrcp.f32 %v14905_v23 }
 0x764   : > { %11260 = vrcp.f32 %v14813_v26 }
 0x765   : > { %v15169_v9 = vpop.eup %11246  ;;  %11262 = vpow2.f32 %v5128_v57 }
 0x766   : > { %v5478_v16 = vsel %vm406_vm0, %v15169_v9, 0.0  ;;  %v15177_v14 = vpop.eup %11248  ;;  %11264 = vrcp.f32 %v14939_v50 }
 0x767   : > { %v5472_v23 = vsel %vm406_vm0, %v15177_v14, 0.0  ;;  %v15187_v49 = vpop.eup %11250  ;;  %11266 = vrcp.f32 %v14847_v58 }
 0x768   : > { %v5484_v4 = vsel %vm406_vm0, %v15187_v49, 0.0  ;;  %11268 = vrcp.f32 %v15059_v31 }
 0x769   : > { %11270 = vrcp.f32 %v14961_v56 }
 0x76d   : > { %v15191_v34 = vpop.eup %11252 }
 0x76e   : > { %v11255_v38 = vpop.eup %11254 }
 0x76f   : > { %v11257_v35 = vpop.eup %11256  ;;  %v5732_v46 = vmul.f32 %v11255_v38, %v14603_v2  ;;  %v15217_v38 = vpop.f32.mrf.mxu0 }
 0x770   : > { %v11259_v44 = vpop.eup %11258  ;;  %17062 = vst [vmem:[#allocation175_spill] sm:$0xff] %v15217_v38 }
 0x771   : > { %v11261_v32 = vpop.eup %11260  ;;  %v5739_v48 = vmul.f32 %v11259_v44, %v14679_v43  ;;  %v17067_v44 = vld [vmem:[#allocation31_spill] sm:$0xff] }
 0x772   : > { %v15165_v60 = vpop.xlane.xlu0 %5422  ;;  %v5738_v58 = vmul.f32 %v11261_v32, %v14613_v62  ;;  %v10015_v32 = vunpack.i.l.bf16 %v17067_v44 }
 0x773   : > { %5470 = vadd.xlane.f32.xlu0 %v5469_v13 }
 0x774   : > { %v5830_v43 = vpack.c.bf16 %v5739_v48, %v5738_v58 }
 0x776   : > { %v15173_v53 = vpop.xlane.xlu0 %5431 }
 0x777   : > { %5479 = vadd.xlane.f32.xlu0 %v5478_v16  ;;  %v5490_v16 = vsel %vm406_vm0, %v15191_v34, 0.0 }
 0x778   : > { %v15179_v17 = vpop.f32.mrf.mxu1 }
 0x779   : > { %17058 = vst [vmem:[#allocation169_spill] sm:$0xff] %v15179_v17 }
 0x77a   : > { %v15181_v37 = vpop.f32.mrf.mxu1  ;;  %v15183_v36 = vpop.xlane.xlu0 %5425 }
 0x77b   : > { %17059 = vst [vmem:[#allocation66_spill] sm:$0xff] %v15181_v37  ;;  %5473 = vadd.xlane.f32.xlu0 %v5472_v23  ;;  %v5733_v23 = vmul.f32 %v11257_v35, %v14541_v21 }
 0x77c   : > { %v15189_v26 = vpop.f32.mrf.mxu1 }
 0x77d   : > { %17060 = vst [vmem:[#allocation194_spill] sm:$0xff] %v15189_v26  ;;  %v5827_v2 = vpack.c.bf16 %v5733_v23, %v5732_v46  ;;  %v10016_v46 = vunpack.i.h.bf16 %v17067_v44  ;;  %v17070_v26 = vld [vmem:[#allocation98_spill] sm:$0xff] }
 0x77e   : > { %v15195_v55 = vpop.f32.mrf.mxu1  ;;  %v15197_v30 = vpop.xlane.xlu0 %5437  ;;  %v10211_v37 = vunpack.i.h.bf16 %v17070_v26  ;;  %v10210_v44 = vunpack.i.l.bf16 %v17070_v26 }
 0x77f   : > { %17061 = vst [vmem:[#allocation35_spill] sm:$0xff] %v15195_v55  ;;  %5485 = vadd.xlane.f32.xlu0 %v5484_v4  ;;  %v15212_v4 = vpop.eup %11262  ;;  %v17071_v55 = vld [vmem:[#allocation99_spill] sm:$0xff] }
 0x780   : > { %v5499_v21 = vsel %vm406_vm0, %v15212_v4, 0.0  ;;  %v10256_v48 = vunpack.i.h.bf16 %v17071_v55 }
 0x782   : > { %v6869_v13 = vpop.permute.xlu0 %6868 }
 0x783   : > { %v15206_v57 = vpop.xlane.xlu1 %5443  ;;  %9613 = vmatprep.subr.bf16.mxu1 %v6869_v13 }
 0x784   : > { %5491 = vadd.xlane.f32.xlu1 %v5490_v16  ;;  %9614 = vmatpush3.bf16.msra.mxu1 %v6869_v13  ;;  %v11265_v13 = vpop.eup %11264 }
 0x785   : > { %9627 = vmatprep.subr.bf16.mxu1 %v6997_v39  ;;  %v11267_v23 = vpop.eup %11266 }
 0x786   : > { %v7060_v50 = vpop.permute.xlu0 %7059  ;;  %v11269_v58 = vpop.eup %11268 }
 0x787   : > { %v15219_v6 = vpop.xlane.xlu1 %5458  ;;  %9616 = vmatmul.mubr.msk.bf16.vlgmr.msra.gmra.mxu1 %vm406_vm0, %v5827_v2  ;;  %9635 = vmatprep.subr.bf16.mxu0 %v7060_v50  ;;  %v11271_v17 = vpop.eup %11270  ;;  %v5750_v51 = vmul.f32 %v11269_v58, %v14785_v22  ;;  %v17078_v58 = vld [vmem:[#allocation182_spill] sm:$0xff] }
 0x788   : > { %5500 = vadd.xlane.f32.xlu1 %v5499_v21  ;;  %9628 = vmatpush3.bf16.msra.mxu1 %v6997_v39  ;;  %v17069_v21 = vld [vmem:[#allocation47_spill] sm:$0xff] }
 0x789   : > { %9631 = vmatprep.mubr.msk.bf16.mxu1 %vm406_vm0, %v5830_v43  ;;  %9636 = vmatpush3.bf16.msra.mxu0 %v7060_v50  ;;  %v15225_v62 = vpop.f32.mrf.mxu0  ;;  %v2089_v50 = vpack.c.bf16 %v10016_v46, %v10015_v32  ;;  %v5744_v43 = vmul.f32 %v11265_v13, %v17069_v21  ;;  %v17073_v32 = vld [vmem:[#allocation41_spill] sm:$0xff]  ;;  %v17074_v21 = vld [vmem:[#allocation52_spill] sm:$0xff] }
 0x78a   : > { %17063 = vst [vmem:[#allocation210_spill] sm:$0xff] %v15225_v62  ;;  %v10255_v62 = vunpack.i.l.bf16 %v17071_v55  ;;  %v5751_v13 = vmul.f32 %v11271_v17, %v17073_v32  ;;  %v9886_v2 = vunpack.i.h.bf16 %v17074_v21  ;;  %v9885_v26 = vunpack.i.l.bf16 %v17074_v21  ;;  %v17076_v17 = vld [vmem:[#allocation166_spill] sm:$0xff] }
 0x78b   : > { %v15227_v56 = vpop.xlane.xlu1 %5452  ;;  %v15229_v31 = vpop.f32.mrf.mxu0 }
 0x78c   : > { %17064 = vst [vmem:[#allocation84_spill] sm:$0xff] %v15227_v56  ;;  %17065 = vst [vmem:[#allocation89_spill] sm:$0xff] %v15229_v31  ;;  %v17072_v56 = vld [vmem:[#allocation36_spill] sm:$0xff]  ;;  %v2096_v31 = vpack.c.bf16 %v10211_v37, %v10210_v44  ;;  %v5836_v55 = vpack.c.bf16 %v5751_v13, %v5750_v51  ;;  %v2098_v22 = vpack.c.bf16 %v9886_v2, %v9885_v26 }
 0x78d   : > { %v15231_v35 = vpop.f32.mrf.mxu0  ;;  %v5745_v38 = vmul.f32 %v11267_v23, %v17072_v56  ;;  %v17077_v23 = vld [vmem:[#allocation150_spill] sm:$0xff]  ;;  %v17080_v51 = vld [vmem:[#allocation184_spill] sm:$0xff] }
 0x78e   : > { %17066 = vst [vmem:[#allocation188_spill] sm:$0xff] %v15231_v35  ;;  %v4884_v37 = vsub.f32 %v17078_v58, %v17077_v23 }
 0x78f   : > { %v15237_v39 = vpop.xlane.xlu1 %5464  ;;  %v15239_v16 = vpop.f32.mrf.mxu0  ;;  %v5833_v46 = vpack.c.bf16 %v5745_v38, %v5744_v43  ;;  %v17075_v38 = vld [vmem:[#allocation211_spill] sm:$0xff] }
 0x790   : > { %17068 = vst [vmem:[#allocation117_spill] sm:$0xff] %v15239_v16  ;;  %v2095_v16 = vpack.c.bf16 %v10256_v48, %v10255_v62  ;;  %v4883_v56 = vsub.f32 %v17076_v17, %v17075_v38  ;;  %v5126_v62 = vmul.f32 1.442695, %v4884_v37  ;;  %v17079_v48 = vld [vmem:[#allocation133_spill] sm:$0xff]  ;;  %v17082_v43 = vld [vmem:[#allocation187_spill] sm:$0xff] }
 0x791   : > { %v17083_v37 = vld [vmem:[#allocation39_spill] sm:$0xff] }
 0x793   : > { %v7058_v35 = vpop.permute.xlu1 %7057 }
 0x794   : > { %9637 = vmatprep.subr.bf16.mxu0 %v7058_v35 }
 0x795   : > { %7120 = vrot.lane.b32.xlu0 %v2089_v50, %s11441_s24  ;;  %9638 = vmatpush3.bf16.msra.mxu0 %v7058_v35  ;;  %v5124_v35 = vmul.f32 1.442695, %v4883_v56  ;;  %v4886_v50 = vsub.f32 %v17080_v51, %v17079_v48 }
 0x797   : > { %11272 = vpow2.f32 %v5124_v35  ;;  %v7123_v56 = vpop.permute.xlu1 %7122 }
 0x798   : > { %9640 = vmatmul.mubr.msk.bf16.vlgmr.msra.gmra.mxu0 %vm406_vm0, %v5833_v46  ;;  %11274 = vpow2.f32 %v5126_v62 }
 0x799   : > { %7309 = vrot.lane.b32.xlu1 %v2095_v16, %s11441_s24  ;;  %7311 = vrot.lane.b32.xlu0 %v2096_v31, %s11441_s24  ;;  %v5130_v16 = vmul.f32 1.442695, %v4886_v50  ;;  %v17081_v31 = vld [vmem:[#allocation8_spill] sm:$0xff] }
 0x79a   : > { %9655 = vmatprep.mubr.msk.bf16.mxu0 %vm406_vm0, %v5836_v55  ;;  %v4889_v44 = vsub.f32 %v17082_v43, %v17081_v31  ;;  %v17085_v43 = vld [vmem:[#allocation40_spill] sm:$0xff] }
 0x79b   : > { %11276 = vpow2.f32 %v5130_v16  ;;  %v17084_v16 = vld [vmem:[#allocation92_spill] sm:$0xff] }
 0x79c   : > { %v5136_v2 = vmul.f32 1.442695, %v4889_v44 }
 0x79d   : > { %7374 = vrot.lane.b32.xlu1 %v2098_v22, %s11441_s24 }
 0x79e   : > { %11278 = vpow2.f32 %v5136_v2 }
 0x79f   : > { %11280 = vrcp.f32 %v14929_v29 }
 0x7a0   : > { %11282 = vrcp.f32 %v15047_v0 }
 0x7a1   : > { %11284 = vrcp.f32 %v14837_v33 }
 0x7a2   : > { %11286 = vrcp.f32 %v14948_v27 }
 0x7a3   : > { %11288 = vrcp.f32 %v15085_v25 }
 0x7a4   : > { %v15267_v46 = vpop.eup %11272  ;;  %11290 = vrcp.f32 %v15173_v53 }
 0x7a5   : > { %v5493_v13 = vsel %vm406_vm0, %v15267_v46, 0.0  ;;  %v15275_v21 = vpop.eup %11274  ;;  %11292 = vrcp.f32 %v14987_v54 }
 0x7a6   : > { %v5496_v55 = vsel %vm406_vm0, %v15275_v21, 0.0  ;;  %11294 = vrcp.f32 %v15105_v45  ;;  %v17088_v45 = vld [vmem:[#allocation60_spill] sm:$0xff] }
 0x7a8   : > { %v15283_v29 = vpop.eup %11276 }
 0x7a9   : > { %v5502_v22 = vsel %vm406_vm0, %v15283_v29, 0.0 }
 0x7ab   : > { %v15289_v38 = vpop.eup %11278 }
 0x7ac   : > { %v11281_v33 = vpop.eup %11280  ;;  %v5511_v35 = vsel %vm406_vm0, %v15289_v38, 0.0 }
 0x7ad   : > { %v11283_v27 = vpop.eup %11282  ;;  %v5740_v62 = vmul.f32 %v11281_v33, %v17083_v37  ;;  %v9931_v33 = vunpack.i.h.bf16 %v17088_v45 }
 0x7ae   : > { %v11285_v23 = vpop.eup %11284  ;;  %v5747_v51 = vmul.f32 %v11283_v27, %v14775_v61  ;;  %v9930_v27 = vunpack.i.l.bf16 %v17088_v45 }
 0x7af   : > { %v11287_v58 = vpop.eup %11286  ;;  %v5741_v31 = vmul.f32 %v11285_v23, %v17084_v16 }
 0x7b0   : > { %v5746_v44 = vmul.f32 %v11287_v58, %v17085_v43  ;;  %v11289_v16 = vpop.eup %11288 }
 0x7b1   : > { %v5831_v2 = vpack.c.bf16 %v5741_v31, %v5740_v62  ;;  %v2099_v31 = vpack.c.bf16 %v9931_v33, %v9930_v27  ;;  %v5752_v33 = vmul.f32 %v11289_v16, %v14803_v18  ;;  %v17098_v18 = vld [vmem:[#allocation214_spill] sm:$0xff]  ;;  %v17099_v16 = vld [vmem:[#allocation168_spill] sm:$0xff] }
 0x7b7   : > { %v15271_v32 = vpop.xlane.xlu0 %5446 }
 0x7b8   : > { %5494 = vadd.xlane.f32.xlu0 %v5493_v13  ;;  %v5834_v13 = vpack.c.bf16 %v5747_v51, %v5746_v44  ;;  %v17092_v44 = vld [vmem:[#allocation64_spill] sm:$0xff]  ;;  %v17095_v51 = vld [vmem:[#allocation22_spill] sm:$0xff] }
 0x7bb   : > { %v15279_v26 = vpop.xlane.xlu0 %5455 }
 0x7bc   : > { %5497 = vadd.xlane.f32.xlu0 %v5496_v55  ;;  %v17086_v55 = vld [vmem:[#allocation44_spill] sm:$0xff] }
 0x7bd   : > { %v10166_v61 = vunpack.i.h.bf16 %v17086_v55  ;;  %v10165_v53 = vunpack.i.l.bf16 %v17086_v55 }
 0x7bf   : > { %v15285_v0 = vpop.xlane.xlu0 %5449  ;;  %v2093_v37 = vpack.c.bf16 %v10166_v61, %v10165_v53  ;;  %v11291_v61 = vpop.eup %11290 }
 0x7c0   : > { %v11293_v45 = vpop.eup %11292 }
 0x7c1   : > { %5503 = vadd.xlane.f32.xlu1 %v5502_v22 }
 0x7c3   : > { %v15291_v17 = vpop.xlane.xlu0 %5461 }
 0x7c5   : > { %5512 = vadd.xlane.f32.xlu1 %v5511_v35  ;;  %v17089_v35 = vld [vmem:[#allocation61_spill] sm:$0xff] }
 0x7c6   : > { %v9916_v23 = vunpack.i.h.bf16 %v17089_v35  ;;  %v9915_v58 = vunpack.i.l.bf16 %v17089_v35  ;;  %v11295_v35 = vpop.eup %11294 }
 0x7c7   : > { %v6995_v48 = vpop.permute.xlu0 %6994  ;;  %v5759_v53 = vmul.f32 %v11295_v35, %v17095_v51  ;;  %v17102_v35 = vld [vmem:[#allocation157_spill] sm:$0xff] }
 0x7c8   : > { %v15299_v50 = vpop.xlane.xlu1 %5467  ;;  %9629 = vmatprep.subr.bf16.mxu1 %v6995_v48  ;;  %v2100_v43 = vpack.c.bf16 %v9916_v23, %v9915_v58  ;;  %v5758_v58 = vmul.f32 %v11291_v61, %v14909_v63  ;;  %v4888_v63 = vsub.f32 %v17099_v16, %v17098_v18  ;;  %v17100_v61 = vld [vmem:[#allocation222_spill] sm:$0xff] }
 0x7c9   : > { %9630 = vmatpush3.bf16.msra.mxu1 %v6995_v48 }
 0x7ca   : > { %9643 = vmatprep.subr.bf16.mxu1 %v7123_v56 }
 0x7cb   : > { %v7186_v25 = vpop.permute.xlu0 %7185 }
 0x7cc   : > { %v15307_v22 = vpop.xlane.xlu1 %5482  ;;  %9632 = vmatmul.mubr.msk.bf16.vlgmr.msra.gmra.mxu1 %vm406_vm0, %v5831_v2  ;;  %9651 = vmatprep.subr.bf16.mxu0 %v7186_v25  ;;  %v9946_v2 = vunpack.i.h.bf16 %v17092_v44 }
 0x7cd   : > { %9644 = vmatpush3.bf16.msra.mxu1 %v7123_v56  ;;  %9647 = vmatprep.mubr.msk.bf16.mxu1 %vm406_vm0, %v5834_v13 }
 0x7ce   : > { %9652 = vmatpush3.bf16.msra.mxu0 %v7186_v25  ;;  %v15311_v54 = vpop.f32.mrf.mxu0  ;;  %v9945_v25 = vunpack.i.l.bf16 %v17092_v44 }
 0x7cf   : > { %17087 = vst [vmem:[#allocation185_spill] sm:$0xff] %v15311_v54 }
 0x7d0   : > { %v15317_v62 = vpop.xlane.xlu1 %5476  ;;  %v15319_v48 = vpop.f32.mrf.mxu0  ;;  %v2102_v27 = vpack.c.bf16 %v9946_v2, %v9945_v25  ;;  %v5134_v25 = vmul.f32 1.442695, %v4888_v63 }
 0x7d1   : > { %17090 = vst [vmem:[#allocation115_spill] sm:$0xff] %v15319_v48 }
 0x7d2   : > { %7246 = vrot.lane.b32.xlu0 %v2093_v37, %s11441_s24  ;;  %v15322_v56 = vpop.f32.mrf.mxu0  ;;  %v17094_v37 = vld [vmem:[#allocation10_spill] sm:$0xff] }
 0x7d3   : > { %17091 = vst [vmem:[#allocation24_spill] sm:$0xff] %v15322_v56  ;;  %v5753_v44 = vmul.f32 %v11293_v45, %v17094_v37  ;;  %v17096_v56 = vld [vmem:[#allocation221_spill] sm:$0xff] }
 0x7d4   : > { %v15328_v13 = vpop.xlane.xlu1 %5488  ;;  %v15330_v55 = vpop.f32.mrf.mxu0  ;;  %v17101_v45 = vld [vmem:[#allocation193_spill] sm:$0xff] }
 0x7d5   : > { %17093 = vst [vmem:[#allocation110_spill] sm:$0xff] %v15330_v55  ;;  %v5837_v54 = vpack.c.bf16 %v5753_v44, %v5752_v33  ;;  %v17103_v33 = vld [vmem:[#allocation123_spill] sm:$0xff] }
 0x7d6   : > { %7435 = vrot.lane.b32.xlu1 %v2099_v31, %s11441_s24  ;;  %7437 = vrot.lane.b32.xlu0 %v2100_v43, %s11441_s24  ;;  %v17097_v31 = vld [vmem:[#allocation189_spill] sm:$0xff]  ;;  %v5840_v43 = vpack.c.bf16 %v5759_v53, %v5758_v58 }
 0x7d7   : > { %v4887_v48 = vsub.f32 %v17097_v31, %v17096_v56 }
 0x7d8   : > { %v7184_v23 = vpop.permute.xlu1 %7183 }
 0x7d9   : > { %9653 = vmatprep.subr.bf16.mxu0 %v7184_v23  ;;  %v5132_v2 = vmul.f32 1.442695, %v4887_v48 }
 0x7da   : > { %7500 = vrot.lane.b32.xlu1 %v2102_v27, %s11441_s24  ;;  %9654 = vmatpush3.bf16.msra.mxu0 %v7184_v23  ;;  %v4890_v27 = vsub.f32 %v17101_v45, %v17100_v61  ;;  %v4893_v23 = vsub.f32 %v17103_v33, %v17102_v35  ;;  %v17107_v45 = vld [vmem:[#allocation54_spill] sm:$0xff] }
 0x7db   : > { %11296 = vpow2.f32 %v5132_v2 }
 0x7dc   : > { %11298 = vpow2.f32 %v5134_v25  ;;  %v5138_v51 = vmul.f32 1.442695, %v4890_v27  ;;  %v5144_v56 = vmul.f32 1.442695, %v4893_v23  ;;  %v7249_v33 = vpop.permute.xlu1 %7248 }
 0x7dd   : > { %9656 = vmatmul.mubr.msk.bf16.vlgmr.msra.gmra.mxu0 %vm406_vm0, %v5837_v54  ;;  %v15353_v54 = vpop.f32.mrf.mxu1 }
 0x7de   : > { %9671 = vmatprep.mubr.msk.bf16.mxu0 %vm406_vm0, %v5840_v43  ;;  %11300 = vpow2.f32 %v5138_v51 }
 0x7df   : > { %11302 = vpow2.f32 %v5144_v56  ;;  %v15359_v37 = vpop.f32.mrf.mxu1 }
 0x7e0   : > { %11304 = vrcp.f32 %v14973_v8 }
 0x7e1   : > { %11306 = vrcp.f32 %v15071_v7  ;;  %v15369_v43 = vpop.f32.mrf.mxu1 }
 0x7e2   : > { %11308 = vrcp.f32 %v15299_v50 }
 0x7e3   : > { %11310 = vrcp.f32 %v15165_v60  ;;  %v15378_v8 = vpop.f32.mrf.mxu1 }
 0x7e8   : > { %v15351_v53 = vpop.eup %11296 }
 0x7e9   : > { %v5505_v48 = vsel %vm406_vm0, %v15351_v53, 0.0  ;;  %v15357_v58 = vpop.eup %11298 }
 0x7ea   : > { %v5508_v44 = vsel %vm406_vm0, %v15357_v58, 0.0 }
 0x7eb   : > { %v15364_v31 = vpop.eup %11300 }
 0x7ec   : > { %v5514_v16 = vsel %vm406_vm0, %v15364_v31, 0.0  ;;  %v15373_v63 = vpop.eup %11302 }
 0x7ed   : > { %v5523_v60 = vsel %vm406_vm0, %v15373_v63, 0.0 }
 0x7f5   : > { %5506 = vadd.xlane.f32.xlu0 %v5505_v48 }
 0x7f9   : > { %5509 = vadd.xlane.f32.xlu0 %v5508_v44 }
 0x7fc   : > { %v5471_v18 = vpop.xlane.xlu0 %5470 }
 0x7fd   : > { %11312 = vrcp.f32 %v5471_v18 }
 0x7fe   : > { %11314 = vrcp.f32 %v15094_v28  ;;  %5515 = vadd.xlane.f32.xlu1 %v5514_v16 }
 0x7ff   : > { %11316 = vrcp.f32 %v15307_v22 }
 0x800   : > { %11318 = vrcp.f32 %v15129_v1  ;;  %v5480_v7 = vpop.xlane.xlu0 %5479  ;;  %v11305_v1 = vpop.eup %11304 }
 0x801   : > { %11320 = vrcp.f32 %v5480_v7  ;;  %v11307_v25 = vpop.eup %11306 }
 0x802   : > { %11322 = vrcp.f32 %v15197_v30  ;;  %5524 = vadd.xlane.f32.xlu1 %v5523_v60  ;;  %v15383_v50 = vpop.f32.mrf.mxu1  ;;  %v11309_v61 = vpop.eup %11308  ;;  %v17110_v30 = vld [vmem:[#allocation25_spill] sm:$0xff] }
 0x803   : > { %17104 = vst [vmem:[#allocation183_spill] sm:$0xff] %v15383_v50  ;;  %11324 = vrcp.f32 %v15317_v62  ;;  %v9901_v62 = vunpack.i.h.bf16 %v17107_v45  ;;  %v11311_v35 = vpop.eup %11310  ;;  %v15403_v44 = vmul.f32 %v11309_v61, %v15079_v47  ;;  %v9991_v55 = vunpack.i.h.bf16 %v17110_v30  ;;  %v17112_v61 = vld [vmem:[#allocation70_spill] sm:$0xff] }
 0x804   : > { %11326 = vrcp.f32 %v15279_v26  ;;  %v15387_v28 = vpop.f32.mrf.mxu1  ;;  %v5474_v22 = vpop.xlane.xlu0 %5473  ;;  %v9900_v26 = vunpack.i.l.bf16 %v17107_v45 }
 0x805   : > { %17105 = vst [vmem:[#allocation113_spill] sm:$0xff] %v15387_v28  ;;  %11328 = vrcp.f32 %v5474_v22  ;;  %v5755_v22 = vmul.f32 %v11311_v35, %v14897_v20  ;;  %v17113_v20 = vld [vmem:[#allocation151_spill] sm:$0xff] }
 0x806   : > { %11330 = vrcp.f32 %v15219_v6  ;;  %v15390_v2 = vpop.f32.mrf.mxu1  ;;  %v2097_v7 = vpack.c.bf16 %v9901_v62, %v9900_v26  ;;  %v9975_v62 = vunpack.i.l.bf16 %v17112_v61 }
 0x807   : > { %17106 = vst [vmem:[#allocation195_spill] sm:$0xff] %v15390_v2  ;;  %11332 = vrcp.f32 %v15328_v13  ;;  %v17109_v13 = vld [vmem:[#allocation155_spill] sm:$0xff] }
 0x808   : > { %v15397_v27 = vpop.f32.mrf.mxu1  ;;  %v5486_v51 = vpop.xlane.xlu0 %5485  ;;  %v5748_v48 = vmul.f32 %v11307_v25, %v17109_v13  ;;  %v17111_v25 = vld [vmem:[#allocation143_spill] sm:$0xff] }
 0x809   : > { %17108 = vst [vmem:[#allocation124_spill] sm:$0xff] %v15397_v27  ;;  %11334 = vrcp.f32 %v5486_v51  ;;  %v9990_v51 = vunpack.i.l.bf16 %v17110_v30  ;;  %v5749_v13 = vmul.f32 %v11305_v1, %v17111_v25 }
 0x80a   : > { %v11313_v23 = vpop.eup %11312 }
 0x80b   : > { %v11315_v56 = vpop.eup %11314  ;;  %v15406_v18 = vmul.f32 %v11313_v23, %v15159_v10  ;;  %v9976_v23 = vunpack.i.h.bf16 %v17112_v61  ;;  %v5835_v30 = vpack.c.bf16 %v5749_v13, %v5748_v48  ;;  %v2103_v27 = vpack.c.bf16 %v9991_v55, %v9990_v51  ;;  %v17114_v61 = vld [vmem:[#allocation79_spill] sm:$0xff] }
 0x80c   : > { %v11317_v16 = vpop.eup %11316  ;;  %v7121_v60 = vpop.permute.xlu0 %7120  ;;  %v5754_v26 = vmul.f32 %v11315_v56, %v17113_v20  ;;  %v10005_v56 = vunpack.i.l.bf16 %v17114_v61 }
 0x80d   : > { %v11319_v45 = vpop.eup %11318  ;;  %v15411_v6 = vpop.xlane.xlu1 %5491  ;;  %9645 = vmatprep.subr.bf16.mxu1 %v7121_v60  ;;  %v15424_v1 = vmul.f32 %v11317_v16, %v15100_v12  ;;  %v2104_v12 = vpack.c.bf16 %v9976_v23, %v9975_v62 }
 0x80e   : > { %v11321_v10 = vpop.eup %11320  ;;  %9646 = vmatpush3.bf16.msra.mxu1 %v7121_v60  ;;  %v5838_v2 = vpack.c.bf16 %v5755_v22, %v5754_v26  ;;  %v10006_v60 = vunpack.i.h.bf16 %v17114_v61 }
 0x80f   : > { %v11323_v35 = vpop.eup %11322  ;;  %7372 = vrot.lane.b32.xlu0 %v2097_v7, %s11441_s24  ;;  %9659 = vmatprep.subr.bf16.mxu1 %v7249_v33  ;;  %v15421_v50 = vmul.f32 %v11321_v10, %v15169_v9 }
 0x810   : > { %v11325_v25 = vpop.eup %11324  ;;  %v7312_v47 = vpop.permute.xlu0 %7311  ;;  %v5760_v13 = vmul.f32 %v11323_v35, %v14933_v5 }
 0x811   : > { %v11327_v28 = vpop.eup %11326  ;;  %v15428_v20 = vpop.xlane.xlu1 %5500  ;;  %9648 = vmatmul.mubr.msk.bf16.vlgmr.msra.gmra.mxu1 %vm406_vm0, %v5835_v30  ;;  %9667 = vmatprep.subr.bf16.mxu0 %v7312_v47  ;;  %v5848_v9 = vpack.c.bf16 %v15424_v1, %v15421_v50  ;;  %v15435_v55 = vmul.f32 %v11325_v25, %v15110_v59  ;;  %v17116_v25 = vld [vmem:[#allocation105_spill] sm:$0xff] }
 0x812   : > { %v11329_v48 = vpop.eup %11328  ;;  %9660 = vmatpush3.bf16.msra.mxu1 %v7249_v33  ;;  %9663 = vmatprep.mubr.msk.bf16.mxu1 %vm406_vm0, %v5838_v2  ;;  %v2106_v33 = vpack.c.bf16 %v10006_v60, %v10005_v56  ;;  %v17118_v56 = vld [vmem:[#allocation108_spill] sm:$0xff] }
 0x813   : > { %v11331_v16 = vpop.eup %11330  ;;  %v15438_v7 = vmul.f32 %v11329_v48, %v15177_v14  ;;  %9668 = vmatpush3.bf16.msra.mxu0 %v7312_v47  ;;  %7561 = vrot.lane.b32.xlu1 %v2103_v27, %s11441_s24  ;;  %v15441_v22 = vpop.f32.mrf.mxu0  ;;  %v5766_v14 = vmul.f32 %v11327_v28, %v15051_v24  ;;  %v17115_v47 = vld [vmem:[#allocation147_spill] sm:$0xff]  ;;  %v17119_v48 = vld [vmem:[#allocation14_spill] sm:$0xff] }
 0x814   : > { %v11333_v51 = vpop.eup %11332  ;;  %7563 = vrot.lane.b32.xlu0 %v2104_v12, %s11441_s24  ;;  %v5761_v62 = vmul.f32 %v11319_v45, %v17115_v47  ;;  %v5767_v35 = vmul.f32 %v11331_v16, %v14954_v19  ;;  %v4892_v12 = vsub.f32 %v17119_v48, %v17118_v56  ;;  %v17123_v56 = vld [vmem:[#allocation67_spill] sm:$0xff] }
 0x815   : > { %v5847_v2 = vpack.c.bf16 %v15435_v55, %v15438_v7  ;;  %v7310_v10 = vpop.permute.xlu1 %7309  ;;  %v15447_v59 = vpop.f32.mrf.mxu0  ;;  %v15452_v27 = vmul.f32 %v11333_v51, %v15121_v3  ;;  %v17120_v51 = vld [vmem:[#allocation144_spill] sm:$0xff] }
 0x816   : > { %v11335_v23 = vpop.eup %11334  ;;  %9669 = vmatprep.subr.bf16.mxu0 %v7310_v10  ;;  %v5841_v28 = vpack.c.bf16 %v5761_v62, %v5760_v13  ;;  %v5844_v3 = vpack.c.bf16 %v5767_v35, %v5766_v14  ;;  %v5142_v16 = vmul.f32 1.442695, %v4892_v12  ;;  %v17121_v13 = vld [vmem:[#allocation43_spill] sm:$0xff] }
 0x817   : > { %v15455_v5 = vmul.f32 %v11335_v23, %v15187_v49  ;;  %7626 = vrot.lane.b32.xlu1 %v2106_v33, %s11441_s24  ;;  %v15458_v26 = vpop.f32.mrf.mxu0  ;;  %9670 = vmatpush3.bf16.msra.mxu0 %v7310_v10  ;;  %v17117_v49 = vld [vmem:[#allocation203_spill] sm:$0xff]  ;;  %v4895_v33 = vsub.f32 %v17121_v13, %v17120_v51 }
 0x818   : > { %v10742_v24 = vpack.i.bf16 %v15458_v26, %v15441_v22  ;;  %v4891_v61 = vsub.f32 %v17117_v49, %v17116_v25 }
 0x819   : > { %v5849_v45 = vpack.c.bf16 %v15452_v27, %v15455_v5  ;;  %v15465_v30 = vpop.f32.mrf.mxu0  ;;  %v5148_v10 = vmul.f32 1.442695, %v4895_v33  ;;  %v17124_v33 = vld [vmem:[#allocation85_spill] sm:$0xff] }
 0x81a   : > { %v10732_v60 = vpack.i.bf16 %v15465_v30, %v15447_v59  ;;  %9672 = vmatmul.mubr.msk.bf16.vlgmr.msra.gmra.mxu0 %vm406_vm0, %v5841_v28  ;;  %v5140_v19 = vmul.f32 1.442695, %v4891_v61 }
 0x81b   : > { %9687 = vmatprep.mubr.msk.bf16.mxu0 %vm406_vm0, %v5844_v3 }
 0x81c   : > { %11336 = vpow2.f32 %v5140_v19  ;;  %v7375_v19 = vpop.permute.xlu1 %7374 }
 0x81d   : > { %11338 = vpow2.f32 %v5142_v16 }
 0x81e   : > { %11340 = vpow2.f32 %v5148_v10  ;;  %v10081_v10 = vunpack.i.h.bf16 %v17124_v33 }
 0x81f   : > { %11342 = vrcp.f32 %v15183_v36 }
 0x820   : > { %11344 = vrcp.f32 %v15271_v32 }
 0x821   : > { %11346 = vrcp.f32 %v15117_v52  ;;  %v17122_v52 = vld [vmem:[#allocation30_spill] sm:$0xff] }
 0x822   : > { %11348 = vrcp.f32 %v15206_v57  ;;  %v10021_v49 = vunpack.i.h.bf16 %v17122_v52  ;;  %v10020_v61 = vunpack.i.l.bf16 %v17122_v52 }
 0x823   : > { %11350 = vrcp.f32 %v15411_v6  ;;  %v9961_v6 = vunpack.i.h.bf16 %v17123_v56 }
 0x824   : > { %11352 = vrcp.f32 %v15291_v17  ;;  %v9960_v17 = vunpack.i.l.bf16 %v17123_v56  ;;  %v2105_v13 = vpack.c.bf16 %v10021_v49, %v10020_v61 }
 0x829   : > { %v15477_v14 = vpop.eup %11336 }
 0x82a   : > { %v5517_v23 = vsel %vm406_vm0, %v15477_v14, 0.0  ;;  %v15481_v47 = vpop.eup %11338 }
 0x82b   : > { %v5520_v62 = vsel %vm406_vm0, %v15481_v47, 0.0  ;;  %v15485_v35 = vpop.eup %11340 }
 0x82c   : > { %v5529_v28 = vsel %vm406_vm0, %v15485_v35, 0.0  ;;  %v11343_v36 = vpop.eup %11342 }
 0x82d   : > { %v11345_v25 = vpop.eup %11344 }
 0x82e   : > { %v11347_v57 = vpop.eup %11346  ;;  %v5763_v51 = vmul.f32 %v11345_v25, %v15039_v41 }
 0x82f   : > { %v11349_v12 = vpop.eup %11348 }
 0x830   : > { %v11351_v25 = vpop.eup %11350 }
 0x831   : > { %v11353_v56 = vpop.eup %11352 }
 0x833   : > { %5518 = vadd.xlane.f32.xlu0 %v5517_v23  ;;  %v10080_v23 = vunpack.i.l.bf16 %v17124_v33 }
 0x837   : > { %5521 = vadd.xlane.f32.xlu0 %v5520_v62  ;;  %v17125_v62 = vld [vmem:[#allocation140_spill] sm:$0xff] }
 0x83b   : > { %5530 = vadd.xlane.f32.xlu1 %v5529_v28  ;;  %v5757_v28 = vmul.f32 %v11347_v57, %v17125_v62  ;;  %v5768_v62 = vmul.f32 %v11353_v56, %v15075_v11 }
 0x841   : > { %v5495_v3 = vpop.xlane.xlu0 %5494 }
 0x842   : > { %11354 = vrcp.f32 %v5495_v3 }
 0x843   : > { %11356 = vrcp.f32 %v15237_v39  ;;  %v5756_v39 = vmul.f32 %v11343_v36, %v14921_v42  ;;  %v5762_v42 = vmul.f32 %v11349_v12, %v14935_v15 }
 0x844   : > { %11358 = vrcp.f32 %v15428_v20 }
 0x845   : > { %v5498_v32 = vpop.xlane.xlu0 %5497  ;;  %v5839_v41 = vpack.c.bf16 %v5757_v28, %v5756_v39  ;;  %v5842_v57 = vpack.c.bf16 %v5763_v51, %v5762_v42  ;;  %v15531_v51 = vmul.f32 %v11351_v25, %v15191_v34 }
 0x846   : > { %11360 = vrcp.f32 %v5498_v32  ;;  %v2101_v32 = vpack.c.bf16 %v9961_v6, %v9960_v17  ;;  %v2107_v6 = vpack.c.bf16 %v10081_v10, %v10080_v23  ;;  %v17126_v17 = vld [vmem:[#allocation88_spill] sm:$0xff] }
 0x847   : > { %v15501_v48 = vpop.f32.mrf.mxu1  ;;  %v10125_v15 = vunpack.i.l.bf16 %v17126_v17 }
 0x849   : > { %v15504_v20 = vpop.f32.mrf.mxu1  ;;  %v7247_v16 = vpop.permute.xlu0 %7246 }
 0x84a   : > { %v15510_v3 = vpop.xlane.xlu1 %5503  ;;  %9661 = vmatprep.subr.bf16.mxu1 %v7247_v16 }
 0x84b   : > { %v15512_v52 = vpop.f32.mrf.mxu1  ;;  %9662 = vmatpush3.bf16.msra.mxu1 %v7247_v16  ;;  %v10126_v16 = vunpack.i.h.bf16 %v17126_v17  ;;  %v17129_v17 = vld [vmem:[#allocation6_spill] sm:$0xff] }
 0x84c   : > { %v10682_v36 = vpack.i.bf16 %v15512_v52, %v15501_v48  ;;  %7624 = vrot.lane.b32.xlu1 %v2105_v13, %s11441_s24  ;;  %9675 = vmatprep.subr.bf16.mxu1 %v7375_v19 }
 0x84d   : > { %7498 = vrot.lane.b32.xlu0 %v2101_v32, %s11441_s24  ;;  %v15519_v49 = vpop.f32.mrf.mxu1  ;;  %v7438_v61 = vpop.permute.xlu0 %7437  ;;  %v2110_v28 = vpack.c.bf16 %v10126_v16, %v10125_v15  ;;  %v17127_v32 = vld [vmem:[#allocation97_spill] sm:$0xff] }
 0x84e   : > { %v10672_v12 = vpack.i.bf16 %v15519_v49, %v15504_v20  ;;  %v15525_v33 = vpop.xlane.xlu1 %5512  ;;  %9664 = vmatmul.mubr.msk.bf16.vlgmr.msra.gmra.mxu1 %vm406_vm0, %v5839_v41  ;;  %9683 = vmatprep.subr.bf16.mxu0 %v7438_v61  ;;  %v10216_v42 = vunpack.i.h.bf16 %v17127_v32  ;;  %v17159_v20 = vld [vmem:[#allocation51_spill] sm:$0xff] }
 0x84f   : > { %v11355_v39 = vpop.eup %11354  ;;  %9676 = vmatpush3.bf16.msra.mxu1 %v7375_v19  ;;  %9679 = vmatprep.mubr.msk.bf16.mxu1 %vm406_vm0, %v5842_v57  ;;  %v10215_v19 = vunpack.i.l.bf16 %v17127_v32  ;;  %v17130_v32 = vld [vmem:[#allocation12_spill] sm:$0xff] }
 0x850   : > { %v11357_v13 = vpop.eup %11356  ;;  %9684 = vmatpush3.bf16.msra.mxu0 %v7438_v61  ;;  %7687 = vrot.lane.b32.xlu1 %v2107_v6, %s11441_s24  ;;  %v15534_v10 = vmul.f32 %v11355_v39, %v15267_v46  ;;  %v17128_v6 = vld [vmem:[#allocation100_spill] sm:$0xff] }
 0x851   : > { %v11359_v23 = vpop.eup %11358  ;;  %v4894_v34 = vsub.f32 %v17129_v17, %v17128_v6  ;;  %v5769_v25 = vmul.f32 %v11357_v13, %v14977_v40  ;;  %v2112_v16 = vpack.c.bf16 %v10216_v42, %v10215_v19  ;;  %v17131_v6 = vld [vmem:[#allocation42_spill] sm:$0xff]  ;;  %v17135_v42 = vld [vmem:[#allocation11_spill] sm:$0xff] }
 0x852   : > { %v7436_v41 = vpop.permute.xlu1 %7435  ;;  %v5850_v61 = vpack.c.bf16 %v15534_v10, %v15531_v51  ;;  %v15545_v46 = vmul.f32 %v11359_v23, %v15212_v4  ;;  %v4896_v17 = vsub.f32 %v17131_v6, %v17130_v32  ;;  %v17132_v4 = vld [vmem:[#allocation119_spill] sm:$0xff]  ;;  %v17136_v32 = vld [vmem:[#allocation84_spill] sm:$0xff]  ;;  %v17153_v51 = vld [vmem:[#allocation210_spill] sm:$0xff] }
 0x853   : > { %v11361_v57 = vpop.eup %11360  ;;  %9685 = vmatprep.subr.bf16.mxu0 %v7436_v41  ;;  %v5845_v56 = vpack.c.bf16 %v5769_v25, %v5768_v62  ;;  %v5146_v39 = vmul.f32 1.442695, %v4894_v34 }
 0x854   : > { %v15548_v11 = vmul.f32 %v11361_v57, %v15275_v21  ;;  %7752 = vrot.lane.b32.xlu1 %v2110_v28, %s11441_s24  ;;  %9686 = vmatpush3.bf16.msra.mxu0 %v7436_v41  ;;  %v17133_v21 = vld [vmem:[#allocation175_spill] sm:$0xff]  ;;  %v5150_v62 = vmul.f32 1.442695, %v4896_v17  ;;  %v17134_v28 = vld [vmem:[#allocation154_spill] sm:$0xff] }
 0x855   : > { %v10592_v13 = vpack.i.bf16 %v17133_v21, %v17132_v4  ;;  %11362 = vpow2.f32 %v5146_v39  ;;  %v4897_v19 = vsub.f32 %v17135_v42, %v17134_v28  ;;  %v17138_v42 = vld [vmem:[#allocation217_spill] sm:$0xff] }
 0x856   : > { %v5851_v15 = vpack.c.bf16 %v15545_v46, %v15548_v11  ;;  %11364 = vpow2.f32 %v5150_v62  ;;  %v7501_v21 = vpop.permute.xlu1 %7500 }
 0x857   : > { %9688 = vmatmul.mubr.msk.bf16.vlgmr.msra.gmra.mxu0 %vm406_vm0, %v5845_v56  ;;  %v5152_v34 = vmul.f32 1.442695, %v4897_v19 }
 0x858   : > { %7815 = vrot.lane.b32.xlu1 %v2112_v16, %s11441_s24  ;;  %v15557_v40 = vpop.f32.mrf.mxu0  ;;  %9703 = vmatprep.mubr.msk.bf16.mxu0 %vm406_vm0, %v5848_v9 }
 0x859   : > { %11366 = vpow2.f32 %v5152_v34 }
 0x85a   : > { %v7103_v23 = vpop.f32.mrf.mxu0  ;;  %11368 = vrcp.f32 %v15285_v0 }
 0x85b   : > { %11370 = vrcp.f32 %v17136_v32 }
 0x85c   : > { %10593 = vrot.lane.b32.xlu1 %v10592_v13, %s11442_s25  ;;  %v15568_v41 = vpop.f32.mrf.mxu0 }
 0x85e   : > { %v7106_v57 = vpop.f32.mrf.mxu0 }
 0x85f   : > { %v10602_v50 = vpack.i.bf16 %v7106_v57, %v7103_v23  ;;  %v17137_v23 = vld [vmem:[#allocation82_spill] sm:$0xff]  ;;  %v17139_v57 = vld [vmem:[#allocation53_spill] sm:$0xff] }
 0x860   : > { %v10036_v62 = vunpack.i.h.bf16 %v17137_v23  ;;  %v10035_v28 = vunpack.i.l.bf16 %v17137_v23 }
 0x861   : > { %10603 = vrot.lane.b32.xlu1 %v10602_v50, %s11443_s26 }
 0x862   : > { %v15571_v1 = vpop.eup %11362 }
 0x863   : > { %v5526_v9 = vsel %vm406_vm0, %v15571_v1, 0.0  ;;  %v15575_v25 = vpop.eup %11364 }
 0x864   : > { %v5532_v56 = vsel %vm406_vm0, %v15575_v25, 0.0 }
 0x866   : > { %v15579_v16 = vpop.eup %11366 }
 0x867   : > { %v5535_v39 = vsel %vm406_vm0, %v15579_v16, 0.0  ;;  %v11369_v17 = vpop.eup %11368 }
 0x868   : > { %v11371_v13 = vpop.eup %11370  ;;  %v5764_v19 = vmul.f32 %v11369_v17, %v17138_v42  ;;  %v17142_v42 = vpack.c.bf16 %v15406_v18, %v15403_v44 }
 0x869   : > { %v5765_v34 = vmul.f32 %v11371_v13, %v17139_v57  ;;  %v17141_v13 = vld [vmem:[#allocation45_spill] sm:$0xff] }
 0x86a   : > { %v10261_v23 = vunpack.i.h.bf16 %v17141_v13 }
 0x86c   : > { %5527 = vadd.xlane.f32.xlu0 %v5526_v9  ;;  %v2108_v9 = vpack.c.bf16 %v10036_v62, %v10035_v28  ;;  %v10260_v62 = vunpack.i.l.bf16 %v17141_v13  ;;  %v10607_v13 = vpack.i.bf16 %v15568_v41, %v15557_v40 }
 0x870   : > { %5533 = vadd.xlane.f32.xlu0 %v5532_v56 }
 0x874   : > { %5536 = vadd.xlane.f32.xlu0 %v5535_v39  ;;  %v5843_v39 = vpack.c.bf16 %v5765_v34, %v5764_v19 }
 0x87e   : > { %v5507_v6 = vpop.xlane.xlu0 %5506 }
 0x87f   : > { %11372 = vrcp.f32 %v5507_v6 }
 0x880   : > { %11374 = vrcp.f32 %v15510_v3  ;;  %v17140_v3 = vld [vmem:[#allocation91_spill] sm:$0xff] }
 0x881   : > { %11376 = vrcp.f32 %v15525_v33  ;;  %v10171_v56 = vunpack.i.h.bf16 %v17140_v3  ;;  %v10170_v33 = vunpack.i.l.bf16 %v17140_v3 }
 0x882   : > { %v5510_v4 = vpop.xlane.xlu0 %5509 }
 0x883   : > { %11378 = vrcp.f32 %v5510_v4  ;;  %v2109_v4 = vpack.c.bf16 %v10171_v56, %v10170_v33  ;;  %v2111_v56 = vpack.c.bf16 %v10261_v23, %v10260_v62 }
 0x886   : > { %v7373_v0 = vpop.permute.xlu0 %7372 }
 0x887   : > { %v5516_v50 = vpop.xlane.xlu1 %5515  ;;  %9677 = vmatprep.subr.bf16.mxu1 %v7373_v0 }
 0x888   : > { %9678 = vmatpush3.bf16.msra.mxu1 %v7373_v0 }
 0x889   : > { %9691 = vmatprep.subr.bf16.mxu1 %v7501_v21 }
 0x88a   : > { %7689 = vrot.lane.b32.xlu0 %v2108_v9, %s11441_s24  ;;  %v7564_v32 = vpop.permute.xlu0 %7563 }
 0x88b   : > { %v15594_v6 = vpop.xlane.xlu1 %5524  ;;  %9680 = vmatmul.mubr.msk.bf16.vlgmr.msra.gmra.mxu1 %vm406_vm0, %v5843_v39  ;;  %9699 = vmatprep.subr.bf16.mxu0 %v7564_v32 }
 0x88c   : > { %v11373_v17 = vpop.eup %11372  ;;  %v15599_v28 = vpop.f32.mrf.mxu1  ;;  %9692 = vmatpush3.bf16.msra.mxu1 %v7501_v21  ;;  %9695 = vmatprep.mubr.msk.bf16.mxu1 %vm406_vm0, %v17142_v42 }
 0x88d   : > { %v11375_v19 = vpop.eup %11374  ;;  %9700 = vmatpush3.bf16.msra.mxu0 %v7564_v32  ;;  %v5783_v9 = vmul.f32 %v11373_v17, %v15351_v53 }
 0x88e   : > { %v11377_v0 = vpop.eup %11376  ;;  %7750 = vrot.lane.b32.xlu0 %v2109_v4, %s11441_s24  ;;  %v15606_v57 = vpop.f32.mrf.mxu1  ;;  %v5782_v39 = vmul.f32 %v11375_v19, %v15283_v29  ;;  %v17143_v29 = vld [vmem:[#allocation170_spill] sm:$0xff] }
 0x88f   : > { %v7562_v34 = vpop.permute.xlu1 %7561  ;;  %v15612_v21 = vmul.f32 %v11377_v0, %v15289_v38 }
 0x890   : > { %v11379_v3 = vpop.eup %11378  ;;  %v15609_v33 = vpop.f32.mrf.mxu1  ;;  %9701 = vmatprep.subr.bf16.mxu0 %v7562_v34  ;;  %v5852_v17 = vpack.c.bf16 %v5783_v9, %v5782_v39 }
 0x891   : > { %v15615_v44 = vmul.f32 %v11379_v3, %v15357_v58  ;;  %v10802_v18 = vpack.i.bf16 %v15609_v33, %v15599_v28  ;;  %9702 = vmatpush3.bf16.msra.mxu0 %v7562_v34  ;;  %v17144_v58 = vld [vmem:[#allocation220_spill] sm:$0xff] }
 0x892   : > { %7813 = vrot.lane.b32.xlu0 %v2111_v56, %s11441_s24  ;;  %v15621_v53 = vpop.f32.mrf.mxu1  ;;  %v17145_v4 = vpack.i.bf16 %v17143_v29, %v17144_v58 }
 0x893   : > { %v5853_v32 = vpack.c.bf16 %v15612_v21, %v15615_v44  ;;  %v10792_v38 = vpack.i.bf16 %v15621_v53, %v15606_v57  ;;  %v7627_v40 = vpop.permute.xlu1 %7626  ;;  %v17177_v57 = vld [vmem:[#allocation195_spill] sm:$0xff] }
 0x894   : > { %9704 = vmatmul.mubr.msk.bf16.vlgmr.msra.gmra.mxu0 %vm406_vm0, %v5849_v45  ;;  %v17178_v53 = vld [vmem:[#allocation183_spill] sm:$0xff] }
 0x895   : > { %9719 = vmatprep.mubr.msk.bf16.mxu0 %vm406_vm0, %v5852_v17 }
 0x896   : > { %10598 = vrot.lane.b32.xlu0 %v17145_v4, %s11442_s25 }
 0x89a   : > { %10608 = vrot.lane.b32.xlu0 %v10607_v13, %s11443_s26 }
 0x89d   : > { %v15639_v23 = vpop.f32.mrf.mxu0 }
 0x89f   : > { %v15641_v62 = vpop.f32.mrf.mxu0 }
 0x8a1   : > { %v15643_v42 = vpop.f32.mrf.mxu0 }
 0x8a2   : > { %v10687_v27 = vpack.i.bf16 %v15643_v42, %v15639_v23  ;;  %v17162_v23 = vld [vmem:[#allocation106_spill] sm:$0xff] }
 0x8a3   : > { %v15647_v5 = vpop.f32.mrf.mxu0 }
 0x8a4   : > { %v10677_v45 = vpack.i.bf16 %v15647_v5, %v15641_v62  ;;  %v17158_v5 = vld [vmem:[#allocation48_spill] sm:$0xff] }
 0x8a5   : > { %v17160_v49 = vpack.i.bf16 %v17158_v5, %v17159_v20 }
 0x8bc   : > { %v5519_v19 = vpop.xlane.xlu0 %5518 }
 0x8bd   : > { %11380 = vrcp.f32 %v5519_v19 }
 0x8be   : > { %11382 = vrcp.f32 %v5516_v50 }
 0x8c0   : > { %v5522_v41 = vpop.xlane.xlu0 %5521 }
 0x8c1   : > { %11384 = vrcp.f32 %v5522_v41 }
 0x8c2   : > { %11386 = vrcp.f32 %v15594_v6 }
 0x8c4   : > { %v7499_v0 = vpop.permute.xlu0 %7498  ;;  %v5531_v34 = vpop.xlane.xlu1 %5530 }
 0x8c5   : > { %9693 = vmatprep.subr.bf16.mxu1 %v7499_v0 }
 0x8c6   : > { %9694 = vmatpush3.bf16.msra.mxu1 %v7499_v0 }
 0x8c7   : > { %9707 = vmatprep.subr.bf16.mxu1 %v7627_v40 }
 0x8c8   : > { %v7625_v9 = vpop.permute.xlu1 %7624 }
 0x8c9   : > { %9696 = vmatmul.mubr.msk.bf16.vlgmr.msra.gmra.mxu1 %vm406_vm0, %v5847_v2 }
 0x8ca   : > { %v11381_v3 = vpop.eup %11380  ;;  %9708 = vmatpush3.bf16.msra.mxu1 %v7627_v40  ;;  %9711 = vmatprep.mubr.msk.bf16.mxu1 %vm406_vm0, %v5850_v61 }
 0x8cb   : > { %v11383_v50 = vpop.eup %11382  ;;  %9709 = vmatprep.subr.bf16.mxu1 %v7625_v9  ;;  %v5787_v39 = vmul.f32 %v11381_v3, %v15477_v14 }
 0x8cc   : > { %v7688_v56 = vpop.permute.xlu1 %7687  ;;  %v5786_v17 = vmul.f32 %v11383_v50, %v15364_v31  ;;  %v17152_v31 = vld [vmem:[#allocation188_spill] sm:$0xff] }
 0x8ce   : > { %9710 = vmatpush3.bf16.msra.mxu1 %v7625_v9  ;;  %v5854_v58 = vpack.c.bf16 %v5787_v39, %v5786_v17 }
 0x8d0   : > { %v7753_v29 = vpop.permute.xlu1 %7752 }
 0x8d1   : > { %9712 = vmatmul.mubr.msk.bf16.vlgmr.msra.gmra.mxu1 %vm406_vm0, %v5851_v15  ;;  %9723 = vmatprep.subr.bf16.mxu1 %v7753_v29  ;;  %v15679_v11 = vpop.f32.mrf.mxu1  ;;  %v11385_v15 = vpop.eup %11384 }
 0x8d2   : > { %9727 = vmatprep.mubr.msk.bf16.mxu1 %vm406_vm0, %v5854_v58  ;;  %9724 = vmatpush3.bf16.msra.mxu1 %v7753_v29  ;;  %v11387_v13 = vpop.eup %11386  ;;  %v5788_v41 = vmul.f32 %v11385_v15, %v15481_v47 }
 0x8d3   : > { %v15682_v0 = vpop.f32.mrf.mxu1  ;;  %v5789_v9 = vmul.f32 %v11387_v13, %v15373_v63 }
 0x8d4   : > { %v7816_v3 = vpop.permute.xlu1 %7815 }
 0x8d5   : > { %v5855_v39 = vpack.c.bf16 %v5789_v9, %v5788_v41  ;;  %v9650_v17 = vpop.f32.mrf.mxu1  ;;  %v10850_v41 = vld [vmem:[%s16130_s4 + $0x8] sm:$0xff]  }
 0x8d8   : > { %v10594_v48 = vpop.permute.xlu1 %10593 }
 0x8d9   : > { %v10595_v30 = vunpack.i.l.bf16 %v10594_v48 }
 0x8da   : > { %v15666_v55 = vpop.f32.mrf.mxu0 }
 0x8dc   : > { %v15668_v7 = vpop.f32.mrf.mxu0 }
 0x8de   : > { %v15670_v2 = vpop.f32.mrf.mxu0 }
 0x8e0   : > { %v15674_v14 = vpop.f32.mrf.mxu0 }
 0x8f5   : > { %v5528_v10 = vpop.xlane.xlu0 %5527 }
 0x8f6   : > { %11388 = vrcp.f32 %v5528_v10 }
 0x8f7   : > { %11390 = vrcp.f32 %v5531_v34 }
 0x8f9   : > { %v5534_v61 = vpop.xlane.xlu0 %5533 }
 0x8fa   : > { %11392 = vrcp.f32 %v5534_v61 }
 0x8fd   : > { %v5537_v46 = vpop.xlane.xlu0 %5536 }
 0x8fe   : > { %11394 = vrcp.f32 %v5537_v46 }
 0x901   : > { %v7690_v4 = vpop.permute.xlu0 %7689 }
 0x902   : > { %9715 = vmatprep.subr.bf16.mxu0 %v7690_v4 }
 0x903   : > { %v11389_v19 = vpop.eup %11388  ;;  %9716 = vmatpush3.bf16.msra.mxu0 %v7690_v4 }
 0x904   : > { %v11391_v40 = vpop.eup %11390  ;;  %9717 = vmatprep.subr.bf16.mxu0 %v7688_v56  ;;  %v5790_v34 = vmul.f32 %v11389_v19, %v15571_v1  ;;  %v7169_v1 = vpop.f32.mrf.mxu1 }
 0x905   : > { %v7751_v6 = vpop.permute.xlu0 %7750  ;;  %v5791_v50 = vmul.f32 %v11391_v40, %v15485_v35 }
 0x906   : > { %9725 = vmatprep.subr.bf16.mxu1 %v7751_v6 }
 0x907   : > { %9718 = vmatpush3.bf16.msra.mxu0 %v7688_v56  ;;  %9726 = vmatpush3.bf16.msra.mxu1 %v7751_v6  ;;  %v5856_v29 = vpack.c.bf16 %v5791_v50, %v5790_v34  ;;  %v11393_v58 = vpop.eup %11392  ;;  %v10851_v34 = vld [vmem:[%s16130_s4] sm:$0xff]  }
 0x908   : > { %9731 = vmatprep.subr.bf16.mxu0 %v7816_v3  ;;  %v5792_v56 = vmul.f32 %v11393_v58, %v15575_v25  ;;  %9775 = vmatprep.subr.bf16.mxu1 %v10850_v41  ;;  %v10627_v58 = vpack.i.bf16 %v15369_v43, %v15353_v54 }
 0x909   : > { %v7814_v63 = vpop.permute.xlu0 %7813 }
 0x90a   : > { %9720 = vmatmul.mubr.msk.bf16.vlgmr.msra.gmra.mxu0 %vm406_vm0, %v5853_v32  ;;  %9728 = vmatmul.mubr.msk.bf16.vlgmr.msra.gmra.mxu1 %vm406_vm0, %v5855_v39 }
 0x90b   : > { %v11395_v47 = vpop.eup %11394  ;;  %9732 = vmatpush3.bf16.msra.mxu0 %v7816_v3  ;;  %9735 = vmatprep.mubr.msk.bf16.mxu0 %vm406_vm0, %v5856_v29 }
 0x90c   : > { %v5793_v35 = vmul.f32 %v11395_v47, %v15579_v16  ;;  %9733 = vmatprep.subr.bf16.mxu0 %v7814_v63  ;;  %9777 = vmatpush3.bf16.msra.mxu1 %v10850_v41  ;;  %v10622_v47 = vpack.i.bf16 %v15378_v8, %v15359_v37 }
 0x90d   : > { %9776 = vmatprep.subr.bf16.mxu1 %v10851_v34  ;;  %v10599_v52 = vpop.permute.xlu0 %10598 }
 0x90e   : > { %v15695_v10 = vpop.f32.mrf.mxu1  ;;  %v5857_v61 = vpack.c.bf16 %v5793_v35, %v5792_v56  ;;  %v10632_v35 = vpack.i.bf16 %v7169_v1, %v15682_v0  ;;  %v10600_v22 = vunpack.i.l.bf16 %v10599_v52 }
 0x90f   : > { %9734 = vmatpush3.bf16.msra.mxu0 %v7814_v63  ;;  %v10637_v63 = vpack.i.bf16 %v9650_v17, %v15679_v11 }
 0x910   : > { %v15697_v21 = vpop.f32.mrf.mxu1  ;;  %9739 = vmatprep.subr.bf16.mxu0 %v10850_v41  ;;  %9778 = vmatpush3.bf16.msra.mxu1 %v10851_v34 }
 0x912   : > { %9736 = vmatmul.mubr.msk.bf16.vlgmr.msra.gmra.mxu0 %vm406_vm0, %v5857_v61  ;;  %v15700_v44 = vpop.f32.mrf.mxu1 }
 0x913   : > { %v10747_v32 = vpack.i.bf16 %v15700_v44, %v15695_v10  ;;  %9740 = vmatpush3.bf16.msra.mxu0 %v10850_v41  ;;  %v17186_v44 = vpack.i.bf16 %v15674_v14, %v15668_v7 }
 0x914   : > { %v15704_v46 = vpop.f32.mrf.mxu1  ;;  %9741 = vmatprep.subr.bf16.mxu0 %v10851_v34 }
 0x915   : > { %v10737_v16 = vpack.i.bf16 %v15704_v46, %v15697_v21  ;;  %v17183_v46 = vld [vmem:[#allocation24_spill] sm:$0xff] }
 0x917   : > { %v15708_v15 = vpop.f32.mrf.mxu0  ;;  %9742 = vmatpush3.bf16.msra.mxu0 %v10851_v34 }
 0x919   : > { %v15710_v25 = vpop.f32.mrf.mxu0 }
 0x91b   : > { %v15712_v4 = vpop.f32.mrf.mxu0 }
 0x91c   : > { %v10762_v13 = vpack.i.bf16 %v15712_v4, %v15708_v15 }
 0x91d   : > { %v15716_v19 = vpop.f32.mrf.mxu0 }
 0x91e   : > { %v10752_v40 = vpack.i.bf16 %v15716_v19, %v15710_v25  ;;  %v17164_v19 = vld [vmem:[#allocation33_spill] sm:$0xff] }
 0x94b   : > { %v9681_v56 = vpop.f32.mrf.mxu1 }
 0x94d   : > { %v7418_v61 = vpop.f32.mrf.mxu1 }
 0x94f   : > { %v9682_v54 = vpop.f32.mrf.mxu1 }
 0x950   : > { %v10702_v62 = vpack.i.bf16 %v9682_v54, %v9681_v56  ;;  %v17165_v54 = vld [vmem:[#allocation35_spill] sm:$0xff] }
 0x951   : > { %v7421_v43 = vpop.f32.mrf.mxu1 }
 0x954   : > { %v9705_v6 = vpop.f32.mrf.mxu0 }
 0x956   : > { %v7607_v9 = vpop.f32.mrf.mxu0 }
 0x958   : > { %v9706_v3 = vpop.f32.mrf.mxu0 }
 0x959   : > { %v10617_v50 = vpack.i.bf16 %v9706_v3, %v9705_v6 }
 0x95a   : > { %v7610_v39 = vpop.f32.mrf.mxu0 }
 0x95b   : > { %v10612_v29 = vpack.i.bf16 %v7610_v39, %v7607_v9  ;;  %10618 = vrot.lane.b32.xlu0 %v10617_v50, %s11444_s7  ;;  %v17146_v39 = vld [vmem:[#allocation117_spill] sm:$0xff] }
 0x95d   : > { %10613 = vrot.lane.b32.xlu1 %v10612_v29, %s11444_s7  ;;  %v17147_v29 = vld [vmem:[#allocation89_spill] sm:$0xff] }
 0x95f   : > { %10628 = vrot.lane.b32.xlu0 %v10627_v58, %s11442_s25  ;;  %v17148_v58 = vpack.i.bf16 %v17146_v39, %v17147_v29 }
 0x961   : > { %10623 = vrot.lane.b32.xlu1 %v10622_v47, %s11442_s25  ;;  %v17149_v47 = vld [vmem:[#allocation127_spill] sm:$0xff] }
 0x963   : > { %10638 = vrot.lane.b32.xlu0 %v10637_v63, %s11443_s26  ;;  %v17150_v63 = vld [vmem:[#allocation190_spill] sm:$0xff] }
 0x965   : > { %10633 = vrot.lane.b32.xlu1 %v10632_v35, %s11443_s26  ;;  %v17151_v35 = vpack.i.bf16 %v17149_v47, %v17150_v63  ;;  %v17170_v63 = vld [vmem:[#allocation132_spill] sm:$0xff] }
 0x989   : > { %v15738_v41 = vpop.f32.mrf.mxu1 }
 0x98b   : > { %v15740_v6 = vpop.f32.mrf.mxu1 }
 0x98d   : > { %v15742_v37 = vpop.f32.mrf.mxu1 }
 0x98e   : > { %v10822_v8 = vpack.i.bf16 %v15742_v37, %v15738_v41  ;;  %v17180_v41 = vld [vmem:[#allocation110_spill] sm:$0xff]  ;;  %v17181_v37 = vld [vmem:[#allocation115_spill] sm:$0xff] }
 0x98f   : > { %v15746_v11 = vpop.f32.mrf.mxu1 }
 0x990   : > { %v10812_v0 = vpack.i.bf16 %v15746_v11, %v15740_v6 }
 0x991   : > { %v9713_v17 = vpop.f32.mrf.mxu1 }
 0x993   : > { %v7670_v1 = vpop.f32.mrf.mxu1 }
 0x995   : > { %v9714_v34 = vpop.f32.mrf.mxu1 }
 0x996   : > { %v10647_v9 = vpack.i.bf16 %v9714_v34, %v9713_v17  ;;  %v17154_v17 = vpack.i.bf16 %v17152_v31, %v17153_v51  ;;  %v17156_v34 = vld [vmem:[#allocation216_spill] sm:$0xff]  ;;  %v10692_v31 = vpack.i.bf16 %v7421_v43, %v7418_v61  ;;  %v10601_v51 = vunpack.i.h.bf16 %v10599_v52  ;;  %v17166_v43 = vld [vmem:[#allocation66_spill] sm:$0xff]  ;;  %v17172_v52 = vld [vmem:[#allocation169_spill] sm:$0xff] }
 0x997   : > { %v7673_v3 = vpop.f32.mrf.mxu1 }
 0x998   : > { %v10642_v50 = vpack.i.bf16 %v7673_v3, %v7670_v1  ;;  %10648 = vrot.lane.b32.xlu0 %v10647_v9, %s11444_s7  ;;  %v17155_v1 = vld [vmem:[#allocation118_spill] sm:$0xff]  ;;  %v17167_v3 = vpack.i.bf16 %v17165_v54, %v17166_v43 }
 0x999   : > { %v17157_v9 = vpack.i.bf16 %v17155_v1, %v17156_v34 }
 0x99a   : > { %10643 = vrot.lane.b32.xlu1 %v10642_v50, %s11444_s7  ;;  %v17168_v50 = vld [vmem:[#allocation57_spill] sm:$0xff] }
 0x99b   : > { %v8270_v39 = vsel %vm2247_vm2, %v17168_v50, %v10595_v30 }
 0x99c   : > { %10658 = vrot.lane.b32.xlu0 %v17148_v58, %s11442_s25  ;;  %v17169_v58 = vld [vmem:[#allocation32_spill] sm:$0xff] }
 0x99d   : > { %v8273_v47 = vsel %vm2247_vm2, %v17169_v58, %v10601_v51  ;;  %v17174_v51 = vld [vmem:[#allocation124_spill] sm:$0xff] }
 0x99e   : > { %10653 = vrot.lane.b32.xlu1 %v17151_v35, %s11442_s25  ;;  %v8272_v35 = vsel %vm2247_vm2, %v17170_v63, %v10600_v22 }
 0x9a0   : > { %10668 = vrot.lane.b32.xlu0 %v17154_v17, %s11442_s25 }
 0x9a2   : > { %10663 = vrot.lane.b32.xlu1 %v17157_v9, %s11442_s25 }
 0x9a4   : > { %10678 = vrot.lane.b32.xlu0 %v10677_v45, %s11443_s26  ;;  %v10596_v45 = vunpack.i.h.bf16 %v10594_v48  ;;  %v17171_v48 = vld [vmem:[#allocation194_spill] sm:$0xff] }
 0x9a6   : > { %10673 = vrot.lane.b32.xlu1 %v10672_v12, %s11443_s26  ;;  %v17161_v12 = vld [vmem:[#allocation104_spill] sm:$0xff] }
 0x9a7   : > { %v17163_v42 = vpack.i.bf16 %v17161_v12, %v17162_v23 }
 0x9a8   : > { %10688 = vrot.lane.b32.xlu0 %v10687_v27, %s11443_s26  ;;  %v10609_v27 = vpop.permute.xlu0 %10608 }
 0x9a9   : > { %v10611_v26 = vunpack.i.h.bf16 %v10609_v27 }
 0x9aa   : > { %10683 = vrot.lane.b32.xlu1 %v10682_v36, %s11443_s26  ;;  %v10604_v36 = vpop.permute.xlu1 %10603 }
 0x9ab   : > { %v10605_v61 = vunpack.i.l.bf16 %v10604_v36  ;;  %v8306_v34 = vsel %vm8290_vm3, %v8273_v47, %v10611_v26  ;;  %v17189_v47 = vld [vmem:[#allocation74_spill] sm:$0xff] }
 0x9ad   : > { %v8303_v5 = vsel %vm8290_vm3, %v8270_v39, %v10605_v61 }
 0x9ae   : > { %10693 = vrot.lane.b32.xlu1 %v10692_v31, %s11444_s7 }
 0x9b2   : > { %10703 = vrot.lane.b32.xlu1 %v10702_v62, %s11444_s7 }
 0x9b6   : > { %10713 = vrot.lane.b32.xlu1 %v17160_v49, %s11442_s25 }
 0x9ba   : > { %10723 = vrot.lane.b32.xlu1 %v17163_v42, %s11442_s25 }
 0x9be   : > { %10733 = vrot.lane.b32.xlu1 %v10732_v60, %s11443_s26  ;;  %v10606_v60 = vunpack.i.h.bf16 %v10604_v36  ;;  %v17173_v36 = vpack.i.bf16 %v17171_v48, %v17172_v52 }
 0x9c2   : > { %10743 = vrot.lane.b32.xlu1 %v10742_v24, %s11443_s26  ;;  %v10610_v24 = vunpack.i.l.bf16 %v10609_v27 }
 0x9c4   : > { %v8305_v1 = vsel %vm8290_vm3, %v8272_v35, %v10610_v24  ;;  %v17190_v35 = vld [vmem:[#allocation7_spill] sm:$0xff] }
 0x9c6   : > { %10753 = vrot.lane.b32.xlu1 %v10752_v40, %s11444_s7  ;;  %v8271_v40 = vsel %vm2247_vm2, %v17164_v19, %v10596_v45 }
 0x9c7   : > { %v8304_v29 = vsel %vm8290_vm3, %v8271_v40, %v10606_v60 }
 0x9ca   : > { %10763 = vrot.lane.b32.xlu1 %v10762_v13, %s11444_s7  ;;  %v9721_v59 = vpop.f32.mrf.mxu0  ;;  %v9729_v60 = vpop.f32.mrf.mxu1 }
 0x9cc   : > { %v7733_v56 = vpop.f32.mrf.mxu0  ;;  %v7796_v26 = vpop.f32.mrf.mxu1 }
 0x9cd   : > { %v10619_v25 = vpop.permute.xlu0 %10618 }
 0x9ce   : > { %10773 = vrot.lane.b32.xlu1 %v17167_v3, %s11442_s25  ;;  %v9722_v15 = vpop.f32.mrf.mxu0  ;;  %v10621_v4 = vunpack.i.h.bf16 %v10619_v25  ;;  %v10620_v13 = vunpack.i.l.bf16 %v10619_v25  ;;  %v9730_v24 = vpop.f32.mrf.mxu1 }
 0x9cf   : > { %v10614_v17 = vpop.permute.xlu1 %10613  ;;  %v10707_v30 = vpack.i.bf16 %v9722_v15, %v9721_v59  ;;  %v17175_v59 = vld [vmem:[#allocation113_spill] sm:$0xff] }
 0x9d0   : > { %v10616_v9 = vunpack.i.h.bf16 %v10614_v17  ;;  %v10615_v31 = vunpack.i.l.bf16 %v10614_v17  ;;  %v7736_v62 = vpop.f32.mrf.mxu0  ;;  %v8338_v20 = vsel %vm8323_vm4, %v8305_v1, %v10620_v13  ;;  %v8339_v49 = vsel %vm8323_vm4, %v8306_v34, %v10621_v4  ;;  %v7799_v28 = vpop.f32.mrf.mxu1  ;;  %v17191_v1 = vld [vmem:[#allocation75_spill] sm:$0xff] }
 0x9d1   : > { %v10697_v12 = vpack.i.bf16 %v7736_v62, %v7733_v56  ;;  %v8363_v45 = vpack.c.bf16 %v8339_v49, %v8338_v20  ;;  %v17176_v22 = vpack.i.bf16 %v17174_v51, %v17175_v59  ;;  %v10757_v33 = vpack.i.bf16 %v7799_v28, %v7796_v26  ;;  %v10629_v56 = vpop.permute.xlu0 %10628 }
 0x9d2   : > { %v8337_v23 = vsel %vm8323_vm4, %v8304_v29, %v10616_v9  ;;  %v8336_v42 = vsel %vm8323_vm4, %v8303_v5, %v10615_v31  ;;  %10783 = vrot.lane.b32.xlu1 %v17173_v36, %s11442_s25  ;;  %v9737_v6 = vpop.f32.mrf.mxu0  ;;  %v10631_v43 = vunpack.i.h.bf16 %v10629_v56  ;;  %v10630_v3 = vunpack.i.l.bf16 %v10629_v56  ;;  %v17188_v29 = vld [vmem:[#allocation73_spill] sm:$0xff] }
 0x9d3   : > { %v8362_v27 = vpack.c.bf16 %v8337_v23, %v8336_v42  ;;  %10698 = vrot.lane.b32.xlu0 %v10697_v12, %s11444_s7  ;;  %v10624_v61 = vpop.permute.xlu1 %10623 }
 0x9d4   : > { %v7859_v21 = vpop.f32.mrf.mxu0  ;;  %v10626_v7 = vunpack.i.h.bf16 %v10624_v61  ;;  %v10625_v14 = vunpack.i.l.bf16 %v10624_v61  ;;  %v8277_v58 = vsel %vm2247_vm2, %v17188_v29, %v10631_v43  ;;  %v8276_v63 = vsel %vm2247_vm2, %v17189_v47, %v10630_v3  ;;  %v17195_v61 = vld [vmem:[#allocation141_spill] sm:$0xff] }
 0x9d5   : > { %9755 = vmatprep.mubr.msk.bf16.mxu1 %vm406_vm0, %v8362_v27  ;;  %v10639_v40 = vpop.permute.xlu0 %10638 }
 0x9d6   : > { %10793 = vrot.lane.b32.xlu1 %v10792_v38, %s11443_s26  ;;  %9756 = vmatmul.mubr.msk.bf16.vlgmr.msra.gmra.mxu1 %vm406_vm0, %v8363_v45  ;;  %v17179_v38 = vpack.i.bf16 %v17177_v57, %v17178_v53  ;;  %v9738_v10 = vpop.f32.mrf.mxu0  ;;  %v10641_v15 = vunpack.i.h.bf16 %v10639_v40  ;;  %v10640_v4 = vunpack.i.l.bf16 %v10639_v40  ;;  %v8275_v17 = vsel %vm2247_vm2, %v17190_v35, %v10626_v7  ;;  %v17192_v53 = vld [vmem:[#allocation38_spill] sm:$0xff] }
 0x9d7   : > { %10708 = vrot.lane.b32.xlu0 %v10707_v30, %s11444_s7  ;;  %v10827_v19 = vpack.i.bf16 %v9738_v10, %v9737_v6  ;;  %v10634_v54 = vpop.permute.xlu1 %10633  ;;  %v8274_v34 = vsel %vm2247_vm2, %v17191_v1, %v10625_v14 }
 0x9d8   : > { %v10636_v13 = vunpack.i.h.bf16 %v10634_v54  ;;  %v10635_v50 = vunpack.i.l.bf16 %v10634_v54  ;;  %v8309_v31 = vsel %vm8290_vm3, %v8276_v63, %v10640_v4  ;;  %v8310_v62 = vsel %vm8290_vm3, %v8277_v58, %v10641_v15  ;;  %v17196_v63 = vld [vmem:[#allocation109_spill] sm:$0xff] }
 0x9da   : > { %10803 = vrot.lane.b32.xlu1 %v10802_v18, %s11443_s26  ;;  %v10767_v18 = vpack.i.bf16 %v9730_v24, %v9729_v60  ;;  %v8307_v49 = vsel %vm8290_vm3, %v8274_v34, %v10635_v50  ;;  %v8308_v12 = vsel %vm8290_vm3, %v8275_v17, %v10636_v13  ;;  %v17193_v24 = vld [vmem:[#allocation9_spill] sm:$0xff] }
 0x9db   : > { %10718 = vrot.lane.b32.xlu0 %v17176_v22, %s11442_s25  ;;  %v17197_v17 = vld [vmem:[#allocation37_spill] sm:$0xff] }
 0x9de   : > { %10813 = vrot.lane.b32.xlu1 %v10812_v0, %s11444_s7  ;;  %v17187_v0 = vpack.i.bf16 %v15670_v2, %v15666_v55 }
 0x9df   : > { %10728 = vrot.lane.b32.xlu0 %v17179_v38, %s11442_s25 }
 0x9e2   : > { %10823 = vrot.lane.b32.xlu1 %v10822_v8, %s11444_s7  ;;  %v17182_v8 = vpack.i.bf16 %v17180_v41, %v17181_v37 }
 0x9e3   : > { %10738 = vrot.lane.b32.xlu0 %v10737_v16, %s11443_s26  ;;  %v17184_v16 = vld [vmem:[#allocation185_spill] sm:$0xff] }
 0x9e4   : > { %v17185_v11 = vpack.i.bf16 %v17183_v46, %v17184_v16 }
 0x9e7   : > { %10748 = vrot.lane.b32.xlu0 %v10747_v32, %s11443_s26  ;;  %v7862_v32 = vpop.f32.mrf.mxu0 }
 0x9e8   : > { %v10817_v25 = vpack.i.bf16 %v7862_v32, %v7859_v21 }
 0x9eb   : > { %10758 = vrot.lane.b32.xlu0 %v10757_v33, %s11444_s7 }
 0x9ef   : > { %10768 = vrot.lane.b32.xlu0 %v10767_v18, %s11444_s7 }
 0x9f3   : > { %10778 = vrot.lane.b32.xlu0 %v17182_v8, %s11442_s25 }
 0x9f7   : > { %10788 = vrot.lane.b32.xlu0 %v17185_v11, %s11442_s25 }
 0x9fb   : > { %10798 = vrot.lane.b32.xlu0 %v17186_v44, %s11443_s26 }
 0x9ff   : > { %10808 = vrot.lane.b32.xlu0 %v17187_v0, %s11443_s26  ;;  %v17194_v0 = vld [vmem:[#allocation21_spill] sm:$0xff] }
 0xa03   : > { %10818 = vrot.lane.b32.xlu0 %v10817_v25, %s11444_s7 }
 0xa07   : > { %10828 = vrot.lane.b32.xlu0 %v10827_v19, %s11444_s7 }
 0xa0a   : > { %v10649_v55 = vpop.permute.xlu0 %10648 }
 0xa0b   : > { %v10651_v2 = vunpack.i.h.bf16 %v10649_v55  ;;  %v10650_v39 = vunpack.i.l.bf16 %v10649_v55 }
 0xa0c   : > { %v10644_v9 = vpop.permute.xlu1 %10643 }
 0xa0d   : > { %v10646_v5 = vunpack.i.h.bf16 %v10644_v9  ;;  %v10645_v20 = vunpack.i.l.bf16 %v10644_v9  ;;  %v8342_v23 = vsel %vm8323_vm4, %v8309_v31, %v10650_v39  ;;  %v8343_v42 = vsel %vm8323_vm4, %v8310_v62, %v10651_v2 }
 0xa0e   : > { %v8365_v45 = vpack.c.bf16 %v8343_v42, %v8342_v23  ;;  %v10659_v13 = vpop.permute.xlu0 %10658 }
 0xa0f   : > { %v8341_v48 = vsel %vm8323_vm4, %v8308_v12, %v10646_v5  ;;  %v8340_v52 = vsel %vm8323_vm4, %v8307_v49, %v10645_v20 }
 0xa10   : > { %v8364_v36 = vpack.c.bf16 %v8341_v48, %v8340_v52  ;;  %v10654_v27 = vpop.permute.xlu1 %10653 }
 0xa11   : > { %v10656_v51 = vunpack.i.h.bf16 %v10654_v27  ;;  %v10655_v59 = vunpack.i.l.bf16 %v10654_v27 }
 0xa12   : > { %9759 = vmatprep.mubr.msk.bf16.mxu1 %vm406_vm0, %v8364_v36  ;;  %v10669_v29 = vpop.permute.xlu0 %10668 }
 0xa13   : > { %9760 = vmatmul.mubr.msk.bf16.gmra.mxu1 %vm406_vm0, %v8365_v45  ;;  %v8259_v38 = vsel %vm2247_vm2, %v17192_v53, %v10656_v51  ;;  %v8258_v28 = vsel %vm2247_vm2, %v17193_v24, %v10655_v59  ;;  %v17198_v45 = vld [vmem:[#allocation95_spill] sm:$0xff] }
 0xa14   : > { %v10664_v30 = vpop.permute.xlu1 %10663 }
 0xa15   : > { %v10666_v18 = vunpack.i.h.bf16 %v10664_v30  ;;  %v10665_v6 = vunpack.i.l.bf16 %v10664_v30 }
 0xa16   : > { %v10679_v42 = vpop.permute.xlu0 %10678 }
 0xa17   : > { %v8261_v56 = vsel %vm2247_vm2, %v17194_v0, %v10666_v18  ;;  %v8260_v25 = vsel %vm2247_vm2, %v17195_v61, %v10665_v6  ;;  %v10660_v18 = vunpack.i.l.bf16 %v10659_v13 }
 0xa18   : > { %v10674_v60 = vpop.permute.xlu1 %10673 }
 0xa19   : > { %v10676_v26 = vunpack.i.h.bf16 %v10674_v60  ;;  %v10675_v57 = vunpack.i.l.bf16 %v10674_v60  ;;  %v17199_v60 = vld [vmem:[#allocation72_spill] sm:$0xff] }
 0xa1a   : > { %v10689_v6 = vpop.permute.xlu0 %10688 }
 0xa1b   : > { %v8291_v8 = vsel %vm8290_vm3, %v8258_v28, %v10675_v57  ;;  %v8292_v21 = vsel %vm8290_vm3, %v8259_v38, %v10676_v26 }
 0xa1c   : > { %v10684_v22 = vpop.permute.xlu1 %10683 }
 0xa1d   : > { %v10686_v46 = vunpack.i.h.bf16 %v10684_v22  ;;  %v10685_v16 = vunpack.i.l.bf16 %v10684_v22 }
 0xa1f   : > { %v8293_v54 = vsel %vm8290_vm3, %v8260_v25, %v10685_v16  ;;  %v8294_v43 = vsel %vm8290_vm3, %v8261_v56, %v10686_v46  ;;  %v17201_v16 = vld [vmem:[#allocation120_spill] sm:$0xff] }
 0xa20   : > { %v10694_v33 = vpop.permute.xlu1 %10693 }
 0xa21   : > { %v10696_v41 = vunpack.i.h.bf16 %v10694_v33  ;;  %v10695_v37 = vunpack.i.l.bf16 %v10694_v33  ;;  %v10661_v33 = vunpack.i.h.bf16 %v10659_v13  ;;  %v17203_v13 = vld [vmem:[#allocation103_spill] sm:$0xff] }
 0xa23   : > { %v8324_v11 = vsel %vm8323_vm4, %v8291_v8, %v10695_v37  ;;  %v8325_v10 = vsel %vm8323_vm4, %v8292_v21, %v10696_v41  ;;  %v10681_v41 = vunpack.i.h.bf16 %v10679_v42  ;;  %v10680_v37 = vunpack.i.l.bf16 %v10679_v42  ;;  %v17200_v21 = vld [vmem:[#allocation62_spill] sm:$0xff] }
 0xa24   : > { %v8356_v44 = vpack.c.bf16 %v8325_v10, %v8324_v11  ;;  %v10704_v32 = vpop.permute.xlu1 %10703  ;;  %v8279_v46 = vsel %vm2247_vm2, %v17200_v21, %v10661_v33  ;;  %v8278_v11 = vsel %vm2247_vm2, %v17201_v16, %v10660_v18 }
 0xa25   : > { %v10706_v19 = vunpack.i.h.bf16 %v10704_v32  ;;  %v10705_v40 = vunpack.i.l.bf16 %v10704_v32  ;;  %v10670_v32 = vunpack.i.l.bf16 %v10669_v29  ;;  %v8311_v61 = vsel %vm8290_vm3, %v8278_v11, %v10680_v37 }
 0xa26   : > { %9743 = vmatprep.mubr.msk.bf16.mxu0 %vm406_vm0, %v8356_v44  ;;  %v10671_v44 = vunpack.i.h.bf16 %v10669_v29  ;;  %v8312_v25 = vsel %vm8290_vm3, %v8279_v46, %v10681_v41 }
 0xa27   : > { %v8326_v3 = vsel %vm8323_vm4, %v8293_v54, %v10705_v40  ;;  %v8327_v7 = vsel %vm8323_vm4, %v8294_v43, %v10706_v19  ;;  %v10691_v19 = vunpack.i.h.bf16 %v10689_v6  ;;  %v10690_v40 = vunpack.i.l.bf16 %v10689_v6 }
 0xa28   : > { %v8357_v14 = vpack.c.bf16 %v8327_v7, %v8326_v3  ;;  %v10714_v15 = vpop.permute.xlu1 %10713 }
 0xa29   : > { %v10716_v55 = vunpack.i.h.bf16 %v10714_v15  ;;  %v10715_v2 = vunpack.i.l.bf16 %v10714_v15  ;;  %v17202_v15 = vld [vmem:[#allocation63_spill] sm:$0xff] }
 0xa2a   : > { %9744 = vmatmul.mubr.msk.bf16.vlgmr.msra.gmra.mxu0 %vm406_vm0, %v8357_v14 }
 0xa2b   : > { %v8263_v35 = vsel %vm2247_vm2, %v17196_v63, %v10716_v55  ;;  %v8262_v1 = vsel %vm2247_vm2, %v17197_v17, %v10715_v2 }
 0xa2c   : > { %v10724_v4 = vpop.permute.xlu1 %10723 }
 0xa2d   : > { %v10726_v9 = vunpack.i.h.bf16 %v10724_v4  ;;  %v10725_v31 = vunpack.i.l.bf16 %v10724_v4  ;;  %v8281_v4 = vsel %vm2247_vm2, %v17202_v15, %v10671_v44 }
 0xa2e   : > { %v8314_v29 = vsel %vm8290_vm3, %v8281_v4, %v10691_v19 }
 0xa2f   : > { %v8265_v30 = vsel %vm2247_vm2, %v17198_v45, %v10726_v9  ;;  %v8264_v51 = vsel %vm2247_vm2, %v17199_v60, %v10725_v31 }
 0xa30   : > { %v10734_v50 = vpop.permute.xlu1 %10733 }
 0xa31   : > { %v10736_v58 = vunpack.i.h.bf16 %v10734_v50  ;;  %v10735_v47 = vunpack.i.l.bf16 %v10734_v50  ;;  %v8280_v50 = vsel %vm2247_vm2, %v17203_v13, %v10670_v32  ;;  %v17208_v32 = vld [vmem:[#allocation114_spill] sm:$0xff] }
 0xa33   : > { %v8295_v20 = vsel %vm8290_vm3, %v8262_v1, %v10735_v47  ;;  %v8296_v49 = vsel %vm8290_vm3, %v8263_v35, %v10736_v58 }
 0xa34   : > { %v10744_v39 = vpop.permute.xlu1 %10743 }
 0xa35   : > { %v10746_v12 = vunpack.i.h.bf16 %v10744_v39  ;;  %v10745_v23 = vunpack.i.l.bf16 %v10744_v39  ;;  %v8313_v39 = vsel %vm8290_vm3, %v8280_v50, %v10690_v40 }
 0xa37   : > { %v8297_v26 = vsel %vm8290_vm3, %v8264_v51, %v10745_v23  ;;  %v8298_v57 = vsel %vm8290_vm3, %v8265_v30, %v10746_v12 }
 0xa38   : > { %v10754_v34 = vpop.permute.xlu1 %10753 }
 0xa39   : > { %v10756_v62 = vunpack.i.h.bf16 %v10754_v34  ;;  %v10755_v5 = vunpack.i.l.bf16 %v10754_v34 }
 0xa3b   : > { %v8328_v48 = vsel %vm8323_vm4, %v8295_v20, %v10755_v5  ;;  %v8329_v52 = vsel %vm8323_vm4, %v8296_v49, %v10756_v62  ;;  %v17204_v62 = vld [vmem:[#allocation78_spill] sm:$0xff] }
 0xa3c   : > { %v8358_v36 = vpack.c.bf16 %v8329_v52, %v8328_v48  ;;  %v10764_v27 = vpop.permute.xlu1 %10763  ;;  %v17205_v20 = vld [vmem:[#allocation146_spill] sm:$0xff] }
 0xa3d   : > { %v10766_v59 = vunpack.i.h.bf16 %v10764_v27  ;;  %v10765_v22 = vunpack.i.l.bf16 %v10764_v27 }
 0xa3e   : > { %9747 = vmatprep.mubr.msk.bf16.mxu0 %vm406_vm0, %v8358_v36 }
 0xa3f   : > { %v8330_v53 = vsel %vm8323_vm4, %v8297_v26, %v10765_v22  ;;  %v8331_v38 = vsel %vm8323_vm4, %v8298_v57, %v10766_v59  ;;  %v17206_v57 = vld [vmem:[#allocation76_spill] sm:$0xff] }
 0xa40   : > { %v8359_v24 = vpack.c.bf16 %v8331_v38, %v8330_v53  ;;  %v10774_v28 = vpop.permute.xlu1 %10773  ;;  %v17207_v38 = vld [vmem:[#allocation69_spill] sm:$0xff] }
 0xa41   : > { %v10776_v58 = vunpack.i.h.bf16 %v10774_v28  ;;  %v10775_v47 = vunpack.i.l.bf16 %v10774_v28 }
 0xa42   : > { %9748 = vmatmul.mubr.msk.bf16.gmra.mxu0 %vm406_vm0, %v8359_v24 }
 0xa43   : > { %v8267_v5 = vsel %vm2247_vm2, %v17204_v62, %v10776_v58  ;;  %v8266_v49 = vsel %vm2247_vm2, %v17205_v20, %v10775_v47 }
 0xa44   : > { %v10784_v8 = vpop.permute.xlu1 %10783 }
 0xa45   : > { %v10699_v10 = vpop.permute.xlu0 %10698  ;;  %v10786_v23 = vunpack.i.h.bf16 %v10784_v8  ;;  %v10785_v42 = vunpack.i.l.bf16 %v10784_v8 }
 0xa46   : > { %v10701_v0 = vunpack.i.h.bf16 %v10699_v10  ;;  %v10700_v56 = vunpack.i.l.bf16 %v10699_v10 }
 0xa47   : > { %v8269_v53 = vsel %vm2247_vm2, %v17206_v57, %v10786_v23  ;;  %v8268_v24 = vsel %vm2247_vm2, %v17207_v38, %v10785_v42 }
 0xa48   : > { %v8344_v54 = vsel %vm8323_vm4, %v8311_v61, %v10700_v56  ;;  %v8345_v43 = vsel %vm8323_vm4, %v8312_v25, %v10701_v0  ;;  %v10794_v3 = vpop.permute.xlu1 %10793  ;;  %v17209_v56 = vld [vmem:[#allocation122_spill] sm:$0xff] }
 0xa49   : > { %v8366_v7 = vpack.c.bf16 %v8345_v43, %v8344_v54  ;;  %v10709_v14 = vpop.permute.xlu0 %10708  ;;  %v10796_v9 = vunpack.i.h.bf16 %v10794_v3  ;;  %v10795_v31 = vunpack.i.l.bf16 %v10794_v3 }
 0xa4a   : > { %v10711_v55 = vunpack.i.h.bf16 %v10709_v14  ;;  %v10710_v2 = vunpack.i.l.bf16 %v10709_v14 }
 0xa4b   : > { %9763 = vmatprep.mubr.msk.bf16.mxu1 %vm406_vm0, %v8366_v7  ;;  %v8299_v27 = vsel %vm8290_vm3, %v8266_v49, %v10795_v31  ;;  %v8300_v45 = vsel %vm8290_vm3, %v8267_v5, %v10796_v9 }
 0xa4c   : > { %v8346_v63 = vsel %vm8323_vm4, %v8313_v39, %v10710_v2  ;;  %v8347_v35 = vsel %vm8323_vm4, %v8314_v29, %v10711_v55  ;;  %v10804_v17 = vpop.permute.xlu1 %10803  ;;  %v17210_v2 = vld [vmem:[#allocation186_spill] sm:$0xff]  ;;  %v17211_v29 = vld [vmem:[#allocation111_spill] sm:$0xff] }
 0xa4d   : > { %v8367_v1 = vpack.c.bf16 %v8347_v35, %v8346_v63  ;;  %v10719_v34 = vpop.permute.xlu0 %10718  ;;  %v10806_v30 = vunpack.i.h.bf16 %v10804_v17  ;;  %v10805_v60 = vunpack.i.l.bf16 %v10804_v17 }
 0xa4e   : > { %v10721_v46 = vunpack.i.h.bf16 %v10719_v34  ;;  %v10720_v16 = vunpack.i.l.bf16 %v10719_v34 }
 0xa4f   : > { %9764 = vmatmul.mubr.msk.bf16.gmra.mxu1 %vm406_vm0, %v8367_v1  ;;  %v8301_v6 = vsel %vm8290_vm3, %v8268_v24, %v10805_v60  ;;  %v8302_v41 = vsel %vm8290_vm3, %v8269_v53, %v10806_v30 }
 0xa50   : > { %v10814_v12 = vpop.permute.xlu1 %10813  ;;  %v8283_v0 = vsel %vm2247_vm2, %v17208_v32, %v10721_v46  ;;  %v8282_v61 = vsel %vm2247_vm2, %v17209_v56, %v10720_v16  ;;  %v16020_v32 = vld [vmem:[%s16131_s5] ss:$0 sm:$0xff] }
 0xa51   : > { %v10816_v48 = vunpack.i.h.bf16 %v10814_v12  ;;  %v10815_v52 = vunpack.i.l.bf16 %v10814_v12  ;;  %v10729_v36 = vpop.permute.xlu0 %10728 }
 0xa52   : > { %v10731_v19 = vunpack.i.h.bf16 %v10729_v36  ;;  %v10730_v40 = vunpack.i.l.bf16 %v10729_v36  ;;  %v17213_v36 = vld [vmem:[#allocation102_spill] sm:$0xff] }
 0xa53   : > { %v8332_v51 = vsel %vm8323_vm4, %v8299_v27, %v10815_v52  ;;  %v8333_v59 = vsel %vm8323_vm4, %v8300_v45, %v10816_v48  ;;  %v17212_v48 = vld [vmem:[#allocation94_spill] sm:$0xff] }
 0xa54   : > { %v8360_v22 = vpack.c.bf16 %v8333_v59, %v8332_v51  ;;  %v10824_v26 = vpop.permute.xlu1 %10823  ;;  %v8285_v39 = vsel %vm2247_vm2, %v17210_v2, %v10731_v19  ;;  %v8284_v58 = vsel %vm2247_vm2, %v17211_v29, %v10730_v40 }
 0xa55   : > { %v10826_v28 = vunpack.i.h.bf16 %v10824_v26  ;;  %v10825_v33 = vunpack.i.l.bf16 %v10824_v26  ;;  %v10739_v18 = vpop.permute.xlu0 %10738 }
 0xa56   : > { %9751 = vmatprep.mubr.msk.bf16.mxu0 %vm406_vm0, %v8360_v22  ;;  %v10741_v10 = vunpack.i.h.bf16 %v10739_v18  ;;  %v10740_v44 = vunpack.i.l.bf16 %v10739_v18  ;;  %v17214_v18 = vld [vmem:[#allocation93_spill] sm:$0xff] }
 0xa57   : > { %v8334_v37 = vsel %vm8323_vm4, %v8301_v6, %v10825_v33  ;;  %v8335_v8 = vsel %vm8323_vm4, %v8302_v41, %v10826_v28  ;;  %v17215_v41 = vld [vmem:[#allocation101_spill] sm:$0xff] }
 0xa58   : > { %v8361_v21 = vpack.c.bf16 %v8335_v8, %v8334_v37  ;;  %v8315_v3 = vsel %vm8290_vm3, %v8282_v61, %v10740_v44  ;;  %v8316_v7 = vsel %vm8290_vm3, %v8283_v0, %v10741_v10 }
 0xa59   : > { %v10749_v11 = vpop.permute.xlu0 %10748 }
 0xa5a   : > { %9752 = vmatmul.mubr.msk.bf16.gmra.mxu0 %vm406_vm0, %v8361_v21  ;;  %v10751_v14 = vunpack.i.h.bf16 %v10749_v11  ;;  %v10750_v15 = vunpack.i.l.bf16 %v10749_v11 }
 0xa5c   : > { %v8317_v35 = vsel %vm8290_vm3, %v8284_v58, %v10750_v15  ;;  %v8318_v17 = vsel %vm8290_vm3, %v8285_v39, %v10751_v14 }
 0xa5d   : > { %v10759_v25 = vpop.permute.xlu0 %10758 }
 0xa5e   : > { %v10761_v54 = vunpack.i.h.bf16 %v10759_v25  ;;  %v10760_v43 = vunpack.i.l.bf16 %v10759_v25 }
 0xa60   : > { %v8348_v4 = vsel %vm8323_vm4, %v8315_v3, %v10760_v43  ;;  %v8349_v13 = vsel %vm8323_vm4, %v8316_v7, %v10761_v54 }
 0xa61   : > { %v8368_v50 = vpack.c.bf16 %v8349_v13, %v8348_v4  ;;  %v10769_v55 = vpop.permute.xlu0 %10768 }
 0xa62   : > { %v10771_v47 = vunpack.i.h.bf16 %v10769_v55  ;;  %v10770_v63 = vunpack.i.l.bf16 %v10769_v55 }
 0xa63   : > { %9767 = vmatprep.mubr.msk.bf16.mxu1 %vm406_vm0, %v8368_v50 }
 0xa64   : > { %v8350_v1 = vsel %vm8323_vm4, %v8317_v35, %v10770_v63  ;;  %v8351_v34 = vsel %vm8323_vm4, %v8318_v17, %v10771_v47 }
 0xa65   : > { %v8369_v9 = vpack.c.bf16 %v8351_v34, %v8350_v1  ;;  %v10779_v31 = vpop.permute.xlu0 %10778 }
 0xa66   : > { %v10781_v20 = vunpack.i.h.bf16 %v10779_v31  ;;  %v10780_v49 = vunpack.i.l.bf16 %v10779_v31 }
 0xa67   : > { %9768 = vmatmul.mubr.msk.bf16.gmra.mxu1 %vm406_vm0, %v8369_v9 }
 0xa68   : > { %v8287_v52 = vsel %vm2247_vm2, %v17212_v48, %v10781_v20  ;;  %v8286_v27 = vsel %vm2247_vm2, %v17213_v36, %v10780_v49 }
 0xa69   : > { %v10789_v62 = vpop.permute.xlu0 %10788 }
 0xa6a   : > { %v10791_v30 = vunpack.i.h.bf16 %v10789_v62  ;;  %v10790_v60 = vunpack.i.l.bf16 %v10789_v62 }
 0xa6c   : > { %v8289_v6 = vsel %vm2247_vm2, %v17214_v18, %v10791_v30  ;;  %v8288_v37 = vsel %vm2247_vm2, %v17215_v41, %v10790_v60 }
 0xa6d   : > { %v10799_v5 = vpop.permute.xlu0 %10798 }
 0xa6e   : > { %v10801_v23 = vunpack.i.h.bf16 %v10799_v5  ;;  %v10800_v42 = vunpack.i.l.bf16 %v10799_v5 }
 0xa70   : > { %v8319_v22 = vsel %vm8290_vm3, %v8286_v27, %v10800_v42  ;;  %v8320_v26 = vsel %vm8290_vm3, %v8287_v52, %v10801_v23 }
 0xa71   : > { %v10809_v12 = vpop.permute.xlu0 %10808 }
 0xa72   : > { %v10811_v57 = vunpack.i.h.bf16 %v10809_v12  ;;  %v10810_v53 = vunpack.i.l.bf16 %v10809_v12 }
 0xa74   : > { %v8321_v46 = vsel %vm8290_vm3, %v8288_v37, %v10810_v53  ;;  %v8322_v16 = vsel %vm8290_vm3, %v8289_v6, %v10811_v57 }
 0xa75   : > { %v10819_v45 = vpop.permute.xlu0 %10818 }
 0xa76   : > { %v10821_v51 = vunpack.i.h.bf16 %v10819_v45  ;;  %v10820_v59 = vunpack.i.l.bf16 %v10819_v45 }
 0xa78   : > { %v8352_v38 = vsel %vm8323_vm4, %v8319_v22, %v10820_v59  ;;  %v8353_v24 = vsel %vm8323_vm4, %v8320_v26, %v10821_v51 }
 0xa79   : > { %v8370_v28 = vpack.c.bf16 %v8353_v24, %v8352_v38  ;;  %v10829_v33 = vpop.permute.xlu0 %10828 }
 0xa7a   : > { %v10831_v8 = vunpack.i.h.bf16 %v10829_v33  ;;  %v10830_v21 = vunpack.i.l.bf16 %v10829_v33 }
 0xa7b   : > { %9771 = vmatprep.mubr.msk.bf16.mxu1 %vm406_vm0, %v8370_v28 }
 0xa7c   : > { %v8354_v11 = vsel %vm8323_vm4, %v8321_v46, %v10830_v21  ;;  %v8355_v10 = vsel %vm8323_vm4, %v8322_v16, %v10831_v8 }
 0xa7d   : > { %v8371_v44 = vpack.c.bf16 %v8355_v10, %v8354_v11 }
 0xa7f   : > { %9772 = vmatmul.mubr.msk.bf16.gmra.mxu1 %vm406_vm0, %v8371_v44 }
 0xa96   : > { %v9757_v0 = vpop.f32.mrf.mxu1 }
 0xa97   : > { %v8534_v56 = vadd.f32 %v9757_v0, %v16020_v32 }
 0xa98   : > { %v8525_v61 = vpop.f32.mrf.mxu1 }
 0xa99   : > { %8618 = vst.msk [vmem:[%s16025_s14 + $0x70] sm:$0xff] %vm406_vm0, %v8534_v56  ;;  %v8526_v25 = vadd.f32 %v16020_v32, %v8525_v61 }
 0xa9a   : > { %v9758_v19 = vpop.f32.mrf.mxu1 }
 0xa9b   : > { %8616 = vst.msk [vmem:[%s16025_s14 + $0x60] sm:$0xff] %vm406_vm0, %v8526_v25  ;;  %v8537_v40 = vadd.f32 %v9758_v19, %v16020_v32 }
 0xa9c   : > { %v8528_v54 = vpop.f32.mrf.mxu1 }
 0xa9d   : > { %8619 = vst.msk [vmem:[%s16025_s14 + $0x78] sm:$0xff] %vm406_vm0, %v8537_v40  ;;  %v8529_v43 = vadd.f32 %v16020_v32, %v8528_v54 }
 0xa9f   : > { %8617 = vst.msk [vmem:[%s16025_s14 + $0x68] sm:$0xff] %vm406_vm0, %v8529_v43 }
 0xad3   : > { %v9761_v3 = vpop.f32.mrf.mxu1 }
 0xad4   : > { %v8550_v7 = vadd.f32 %v9761_v3, %v16020_v32 }
 0xad5   : > { %v8541_v14 = vpop.f32.mrf.mxu1 }
 0xad6   : > { %8622 = vst.msk [vmem:[%s16025_s14 + $0x90] sm:$0xff] %vm406_vm0, %v8550_v7  ;;  %v8542_v15 = vadd.f32 %v16020_v32, %v8541_v14 }
 0xad7   : > { %v9762_v4 = vpop.f32.mrf.mxu1 }
 0xad8   : > { %8620 = vst.msk [vmem:[%s16025_s14 + $0x80] sm:$0xff] %vm406_vm0, %v8542_v15  ;;  %v8553_v13 = vadd.f32 %v9762_v4, %v16020_v32 }
 0xad9   : > { %v8544_v50 = vpop.f32.mrf.mxu1 }
 0xada   : > { %8623 = vst.msk [vmem:[%s16025_s14 + $0x98] sm:$0xff] %vm406_vm0, %v8553_v13  ;;  %v8545_v55 = vadd.f32 %v16020_v32, %v8544_v50 }
 0xadc   : > { %8621 = vst.msk [vmem:[%s16025_s14 + $0x88] sm:$0xff] %vm406_vm0, %v8545_v55 }
 0xaea   : > { %v9745_v2 = vpop.f32.mrf.mxu0 }
 0xaeb   : > { %v8486_v39 = vadd.f32 %v9745_v2, %v16020_v32 }
 0xaec   : > { %v8477_v29 = vpop.f32.mrf.mxu0 }
 0xaed   : > { %8606 = vst.msk [vmem:[%s16025_s14 + $0x10] sm:$0xff] %vm406_vm0, %v8486_v39  ;;  %v8478_v58 = vadd.f32 %v16020_v32, %v8477_v29 }
 0xaee   : > { %v9746_v47 = vpop.f32.mrf.mxu0 }
 0xaef   : > { %8604 = vst.msk [vmem:[%s16025_s14] sm:$0xff] %vm406_vm0, %v8478_v58  ;;  %v8489_v63 = vadd.f32 %v9746_v47, %v16020_v32 }
 0xaf0   : > { %v8480_v35 = vpop.f32.mrf.mxu0 }
 0xaf1   : > { %8607 = vst.msk [vmem:[%s16025_s14 + $0x18] sm:$0xff] %vm406_vm0, %v8489_v63  ;;  %v8481_v17 = vadd.f32 %v16020_v32, %v8480_v35 }
 0xaf3   : > { %8605 = vst.msk [vmem:[%s16025_s14 + $0x8] sm:$0xff] %vm406_vm0, %v8481_v17 }
 0xb02   : > { %v9749_v1 = vpop.f32.mrf.mxu0 }
 0xb03   : > { %v8502_v34 = vadd.f32 %v9749_v1, %v16020_v32 }
 0xb04   : > { %v8493_v9 = vpop.f32.mrf.mxu0 }
 0xb05   : > { %8610 = vst.msk [vmem:[%s16025_s14 + $0x30] sm:$0xff] %vm406_vm0, %v8502_v34  ;;  %v8494_v31 = vadd.f32 %v16020_v32, %v8493_v9 }
 0xb06   : > { %v9750_v62 = vpop.f32.mrf.mxu0 }
 0xb07   : > { %8608 = vst.msk [vmem:[%s16025_s14 + $0x20] sm:$0xff] %vm406_vm0, %v8494_v31  ;;  %v8505_v5 = vadd.f32 %v9750_v62, %v16020_v32 }
 0xb08   : > { %v8496_v20 = vpop.f32.mrf.mxu0 }
 0xb09   : > { %8611 = vst.msk [vmem:[%s16025_s14 + $0x38] sm:$0xff] %vm406_vm0, %v8505_v5  ;;  %v8497_v49 = vadd.f32 %v16020_v32, %v8496_v20 }
 0xb0b   : > { %8609 = vst.msk [vmem:[%s16025_s14 + $0x28] sm:$0xff] %vm406_vm0, %v8497_v49 }
 0xb0f   : > { %v9765_v12 = vpop.f32.mrf.mxu1 }
 0xb10   : > { %v8566_v23 = vadd.f32 %v9765_v12, %v16020_v32 }
 0xb11   : > { %v8557_v42 = vpop.f32.mrf.mxu1 }
 0xb12   : > { %8626 = vst.msk [vmem:[%s16025_s14 + $0xb0] sm:$0xff] %vm406_vm0, %v8566_v23  ;;  %v8558_v48 = vadd.f32 %v16020_v32, %v8557_v42 }
 0xb13   : > { %v9766_v52 = vpop.f32.mrf.mxu1 }
 0xb14   : > { %8624 = vst.msk [vmem:[%s16025_s14 + $0xa0] sm:$0xff] %vm406_vm0, %v8558_v48  ;;  %v8569_v36 = vadd.f32 %v9766_v52, %v16020_v32 }
 0xb15   : > { %v8560_v27 = vpop.f32.mrf.mxu1 }
 0xb16   : > { %8627 = vst.msk [vmem:[%s16025_s14 + $0xb8] sm:$0xff] %vm406_vm0, %v8569_v36  ;;  %v8561_v45 = vadd.f32 %v16020_v32, %v8560_v27 }
 0xb18   : > { %8625 = vst.msk [vmem:[%s16025_s14 + $0xa8] sm:$0xff] %vm406_vm0, %v8561_v45 }
 0xb1a   : > { %v9753_v30 = vpop.f32.mrf.mxu0 }
 0xb1b   : > { %v8518_v60 = vadd.f32 %v9753_v30, %v16020_v32 }
 0xb1c   : > { %v8509_v51 = vpop.f32.mrf.mxu0 }
 0xb1d   : > { %8614 = vst.msk [vmem:[%s16025_s14 + $0x50] sm:$0xff] %vm406_vm0, %v8518_v60  ;;  %v8510_v59 = vadd.f32 %v16020_v32, %v8509_v51 }
 0xb1e   : > { %v9754_v22 = vpop.f32.mrf.mxu0 }
 0xb1f   : > { %8612 = vst.msk [vmem:[%s16025_s14 + $0x40] sm:$0xff] %vm406_vm0, %v8510_v59  ;;  %v8521_v26 = vadd.f32 %v9754_v22, %v16020_v32 }
 0xb20   : > { %v8512_v57 = vpop.f32.mrf.mxu0 }
 0xb21   : > { %8615 = vst.msk [vmem:[%s16025_s14 + $0x58] sm:$0xff] %vm406_vm0, %v8521_v26  ;;  %v8513_v53 = vadd.f32 %v16020_v32, %v8512_v57 }
 0xb23   : > { %8613 = vst.msk [vmem:[%s16025_s14 + $0x48] sm:$0xff] %vm406_vm0, %v8513_v53 }
 0xb27   : > { %v9769_v38 = vpop.f32.mrf.mxu1 }
 0xb28   : > { %v8582_v24 = vadd.f32 %v9769_v38, %v16020_v32 }
 0xb29   : > { %v8573_v28 = vpop.f32.mrf.mxu1 }
 0xb2a   : > { %8630 = vst.msk [vmem:[%s16025_s14 + $0xd0] sm:$0xff] %vm406_vm0, %v8582_v24  ;;  %v8574_v33 = vadd.f32 %v16020_v32, %v8573_v28 }
 0xb2b   : > { %v9770_v18 = vpop.f32.mrf.mxu1 }
 0xb2c   : > { %8628 = vst.msk [vmem:[%s16025_s14 + $0xc0] sm:$0xff] %vm406_vm0, %v8574_v33  ;;  %v8585_v6 = vadd.f32 %v9770_v18, %v16020_v32 }
 0xb2d   : > { %v8576_v41 = vpop.f32.mrf.mxu1 }
 0xb2e   : > { %8631 = vst.msk [vmem:[%s16025_s14 + $0xd8] sm:$0xff] %vm406_vm0, %v8585_v6  ;;  %v8577_v37 = vadd.f32 %v16020_v32, %v8576_v41 }
 0xb30   : > { %8629 = vst.msk [vmem:[%s16025_s14 + $0xc8] sm:$0xff] %vm406_vm0, %v8577_v37 }
 0xb3f   : > { %v9773_v8 = vpop.f32.mrf.mxu1 }
 0xb40   : > { %v8598_v21 = vadd.f32 %v9773_v8, %v16020_v32 }
 0xb41   : > { %v8589_v46 = vpop.f32.mrf.mxu1 }
 0xb42   : > { %8634 = vst.msk [vmem:[%s16025_s14 + $0xf0] sm:$0xff] %vm406_vm0, %v8598_v21  ;;  %v8590_v16 = vadd.f32 %v16020_v32, %v8589_v46 }
 0xb43   : > { %v9774_v11 = vpop.f32.mrf.mxu1 }
 0xb44   : > { %8632 = vst.msk [vmem:[%s16025_s14 + $0xe0] sm:$0xff] %vm406_vm0, %v8590_v16  ;;  %v8601_v10 = vadd.f32 %v9774_v11, %v16020_v32 }
 0xb45   : > { %v8592_v44 = vpop.f32.mrf.mxu1 }
 0xb46   : > { %8635 = vst.msk [vmem:[%s16025_s14 + $0xf8] sm:$0xff] %vm406_vm0, %v8601_v10  ;;  %v8593_v0 = vadd.f32 %v16020_v32, %v8592_v44 }
 0xb48   : > { %8633 = vst.msk [vmem:[%s16025_s14 + $0xe8] sm:$0xff] %vm406_vm0, %v8593_v0 }
 0xb49 PF: > { %s17_s21 = sadd.s32 1, %s11432_s21  }
 0xb4a   : > { %p14_p1 = scmp.ge.s32.totalorder %s17_s21, 4  }
 0xb4c   :  { %16 = sbr.rel (!%p14_p1) target bundleno = 1 (0x1), region = 79 }
 0xb51   :  { %8658 = vsyncpa [#allocation3], 1 }
 0xb52   :  { %8660 = vsyncpa [#allocation3 + $0x1], 1 }

</bundles_post_ra>
